<compile_context>
chip_gen: v7x
topology: tpu7x:2x2x1
jax: 0.10.0
libtpu: 0.0.40
codegen_flags: <defaults>
</compile_context>

<pallas_src>
import jax
import jax.numpy as jnp
from jax import lax
from jax.experimental import pallas as pl
from jax.experimental.pallas import tpu as pltpu


def _pad_to(n, m):
    return ((n + m - 1) // m) * m


# --------------------------- kernel helpers -----------------------------------

def _maxpool2x2(c_ref, Ho, Wo, Co):
    """MaxPool2d(2, 2), floor mode, reading the pre-pool conv scratch.

    Reads only the valid (Ho, Wo) region of c_ref (Ho, Wo_p, Co) and returns a
    (Ho//2, Wo//2, Co) value.  W-pooling = sublane-strided loads; H-pooling =
    leading-dim reshape (free) + max.
    """
    P, Q = Ho // 2, Wo // 2
    even = c_ref[pl.ds(0, 2 * P), pl.ds(0, Q, 2), :]
    odd = c_ref[pl.ds(0, 2 * P), pl.ds(1, Q, 2), :]
    m = jnp.maximum(even, odd).reshape(P, 2, Q, Co)          # leading-dim split only
    return jnp.maximum(m[:, 0], m[:, 1])                      # (P, Q, Co)


def _conv3x3_pool_block(a_ref, w_ref, b_ref, pat_ref, c_ref, g):
    """Conv2d(k=3, pad=0) + bias + MaxPool2d(2,2) via a single im2col matmul.

    a_ref  : (Hi, Wi_p, Ci)   input activation (valid region Hi x Wi)
    w_ref  : (9*Ci, Co)       conv weight, rows ordered (ki, kj, ci)
    b_ref  : (1, Co)
    pat_ref: (Ho, Wo_p, 9*Ci) scratch: im2col patch matrix
    c_ref  : (Ho, Wo_p, Co)   scratch: pre-pool conv output
    Returns the pooled (P, Q, Co) value (bias added post-pool).
    """
    Ho, Wo, Wo_p = g["Ho"], g["Wo"], g["Wo_p"]
    Ci, Co = g["Ci"], g["Co"]

    # im2col: 9 shifted copies of the input laid side by side along the
    # contraction (lane) axis.  Offsets are static; padded M-columns of pat are
    # never read back (pooling only touches the valid region).
    for k in range(9):
        ki, kj = divmod(k, 3)
        pat_ref[:, pl.ds(0, Wo), pl.ds(k * Ci, Ci)] = (
            a_ref[pl.ds(ki, Ho), pl.ds(kj, Wo), :])

    # One full-depth MXU matmul per layer (K = 9*Ci).  Both reshapes are
    # 8-aligned on the sublane dim -> pure layout reinterpretation.
    pat2d = pat_ref[...].reshape(Ho * Wo_p, 9 * Ci)
    c_ref[...] = jnp.dot(pat2d, w_ref[...],
                         preferred_element_type=jnp.float32
                         ).reshape(Ho, Wo_p, Co)

    return _maxpool2x2(c_ref, Ho, Wo, Co) + b_ref[...]


def _make_kernel(geoms, obs, A):
    g1, g2, g3, g4 = geoms

    def kernel(x_ref, x1_ref, w1, b1, w2, b2, w3, b3, w4, b4, wh, bh,
               out_ref,
               c1, a2, pat2, c2, a3, pat3, c3, a4, pat4, c4):
        # ----- layer 1: im2col already done in the wrapper -> one K=36 matmul ----
        o1 = jnp.dot(x1_ref[...], w1[...], preferred_element_type=jnp.float32)
        c1[...] = o1.reshape(g1["Ho"], g1["Wo_p"], g1["Co"])
        a2[:, pl.ds(0, g1["Q"]), :] = (
            _maxpool2x2(c1, g1["Ho"], g1["Wo"], g1["Co"]) + b1[...])

        # ----- layers 2..4: in-VMEM im2col + single matmul + pooled store -------
        a3[:, pl.ds(0, g2["Q"]), :] = _conv3x3_pool_block(a2, w2, b2, pat2, c2, g2)
        a4[:, pl.ds(0, g3["Q"]), :] = _conv3x3_pool_block(a3, w3, b3, pat3, c3, g3)
        p4 = _conv3x3_pool_block(a4, w4, b4, pat4, c4, g4)      # (1, 1, Co4)

        # ----- flatten + concat(x) + fused [mu | var | critic] head -------------
        # Final spatial is 1x1, so NHWC vs NCHW flatten order is identical; the
        # concat with x is realized by splitting the fused head weight rows.
        img_feat = g4["Co"]
        f_img = p4.reshape(1, img_feat)
        h = (jnp.dot(x_ref[...], wh[pl.ds(0, obs), :],
                     preferred_element_type=jnp.float32)
             + jnp.dot(f_img, wh[pl.ds(obs, img_feat), :],
                       preferred_element_type=jnp.float32)
             + bh[...])                                          # (1, 2A+1)

        # torch.nn.Softplus(beta=1, threshold=20) on the var columns only,
        # numerically stable (log1p) form.  Single fused output store.
        sp = jnp.where(h > 20.0, h,
                       jnp.maximum(h, 0.0) + jnp.log1p(jnp.exp(-jnp.abs(h))))
        col = lax.broadcasted_iota(jnp.int32, h.shape, 1)
        out_ref[...] = jnp.where((col >= A) & (col < 2 * A), sp, h)

    return kernel


# --------------------------- wrapper -------------------------------------------

def actor_critic_forward(x, y_nchw, params):
    """Pallas forward of ActorCritic (size_image is not None branch).

    x:      (B, observation_size) f32
    y_nchw: (B, (histo+1)*C, H, W) f32  (PyTorch NCHW layout)
    Returns (mu, var, value): (B, A), (B, A), (B, 1).
    """
    y = jnp.transpose(y_nchw, (0, 2, 3, 1))          # NCHW -> NHWC once at the boundary
    B, H, W, Cin0 = y.shape
    obs = x.shape[1]
    A = params["wmu"].shape[1]

    convs = params["conv"]
    assert len(convs) == 4, "kernel is specialized for the 4-layer conv trunk"

    # Static per-layer geometry (W dims padded to a multiple of 8 -> aligned
    # sublane layouts, relayout-free reshapes inside the kernel).
    geoms = []
    h, w, ci = H, W, Cin0
    for (cw, _) in convs:
        co = cw.shape[-1]
        ho, wo = h - 2, w - 2
        p, q = ho // 2, wo // 2
        geoms.append(dict(Hi=h, Wi=w, Wi_p=_pad_to(w, 8), Ci=ci, Co=co,
                          Ho=ho, Wo=wo, Wo_p=_pad_to(wo, 8), P=p, Q=q))
        h, w, ci = p, q, co
    # TODO(synk): the in-kernel flatten assumes the conv trunk ends at 1x1 spatial
    # (true for 48x48 inputs); a >1x1 tail would need channel-major flattening.
    assert h == 1 and w == 1, "fused kernel assumes the conv trunk reduces to 1x1"
    img_feat = ci
    hidden = obs + img_feat

    # Layer-1 im2col on the host: (B, Ho*Wo_p, 9*Cin0).  Keeps the tiny Cin0 off
    # the 128-lane axis and makes layer 1 a single matmul in-kernel.  Zero-pad
    # Wo -> Wo_p so the padded rows are exact zeros (never read after pooling).
    g1 = geoms[0]
    taps = [y[:, ki:ki + g1["Ho"], kj:kj + g1["Wo"], :]
            for ki in range(3) for kj in range(3)]
    x1 = jnp.concatenate(taps, axis=-1)                       # (B, Ho, Wo, 9*Cin0)
    x1 = jnp.pad(x1, ((0, 0), (0, 0), (0, g1["Wo_p"] - g1["Wo"]), (0, 0)))
    K1 = 9 * Cin0
    M1 = g1["Ho"] * g1["Wo_p"]
    x1 = x1.reshape(B, M1, K1)

    # Conv weights as (9*Ci, Co) matmul operands (tap-major rows, matching the
    # kernel's im2col lane layout); biases as (1, Co).
    conv_args = []
    w_shapes = []
    for (cw, cb) in convs:
        wl = cw.reshape(-1, cw.shape[-1])
        bl = cb.reshape(1, -1)
        conv_args += [wl, bl]
        w_shapes.append((wl.shape, bl.shape))

    # Fused head: [mu | var | critic] -> one (hidden, 2A+1) linear map; softplus
    # applied to the var columns in-kernel; split back into 3 arrays below.
    wh = jnp.concatenate([params["wmu"], params["wvar"], params["wc"]], axis=1)
    bh = jnp.concatenate([params["bmu"], params["bvar"], params["bc"]], axis=1)
    assert wh.shape == (hidden, 2 * A + 1)

    x3 = x.reshape(B, 1, obs)

    in_specs = [
        pl.BlockSpec((pl.Squeezed(), 1, obs), lambda b: (b, 0, 0)),      # x row
        pl.BlockSpec((pl.Squeezed(), M1, K1), lambda b: (b, 0, 0)),      # layer-1 im2col
    ]
    for ws, bs in w_shapes:
        in_specs += [pl.BlockSpec(ws, lambda b: (0, 0)),                 # conv W
                     pl.BlockSpec(bs, lambda b: (0, 0))]                 # conv b
    in_specs += [pl.BlockSpec(wh.shape, lambda b: (0, 0)),               # fused head W
                 pl.BlockSpec(bh.shape, lambda b: (0, 0))]               # fused head b

    scratch_shapes = [pltpu.VMEM((g1["Ho"], g1["Wo_p"], g1["Co"]), jnp.float32)]
    for g in geoms[1:]:
        scratch_shapes += [
            pltpu.VMEM((g["Hi"], g["Wi_p"], g["Ci"]), jnp.float32),      # input act
            pltpu.VMEM((g["Ho"], g["Wo_p"], 9 * g["Ci"]), jnp.float32),  # im2col patches
            pltpu.VMEM((g["Ho"], g["Wo_p"], g["Co"]), jnp.float32),      # pre-pool conv
        ]

    out_specs = pl.BlockSpec((pl.Squeezed(), 1, 2 * A + 1), lambda b: (b, 0, 0))
    out_shape = jax.ShapeDtypeStruct((B, 1, 2 * A + 1), jnp.float32)

    fused = pl.pallas_call(
        _make_kernel(geoms, obs, A),
        out_shape=out_shape,
        grid_spec=pltpu.PrefetchScalarGridSpec(
            num_scalar_prefetch=0,
            grid=(B,),
            in_specs=in_specs,
            out_specs=out_specs,
            scratch_shapes=scratch_shapes),
        compiler_params=pltpu.CompilerParams(
            dimension_semantics=("parallel",),            # batch across v7x's 2 TCs
            vmem_limit_bytes=32 * 1024 * 1024),           # actual use ~8 MiB
    )(x3, x1, *conv_args, wh, bh)

    fused = fused.reshape(B, 2 * A + 1)
    return fused[:, :A], fused[:, A:2 * A], fused[:, 2 * A:]


# --------------------------- pure-JAX reference ---------------------------------

def reference_forward(x, y_nchw, params):
    y = jnp.transpose(y_nchw, (0, 2, 3, 1))
    for (w, b) in params["conv"]:
        y = lax.conv_general_dilated(
            y, w, window_strides=(1, 1), padding="VALID",
            dimension_numbers=("NHWC", "HWIO", "NHWC"),
            precision=lax.Precision.HIGHEST) + b.reshape(1, 1, 1, -1)
        y = lax.reduce_window(y, -jnp.inf, lax.max,
                              (1, 2, 2, 1), (1, 2, 2, 1), "VALID")
    B = y.shape[0]
    y_flat = jnp.transpose(y, (0, 3, 1, 2)).reshape(B, -1)
    f = jnp.concatenate([x, y_flat], axis=1)
    mu = f @ params["wmu"] + params["bmu"]
    var = jax.nn.softplus(f @ params["wvar"] + params["bvar"])
    val = f @ params["wc"] + params["bc"]
    return mu, var, val


# --------------------------- main -----------------------------------------------

if __name__ == "__main__":
    key = jax.random.PRNGKey(0)

    # Small hyper-parameters consistent with the PyTorch __init__.
    B = 2
    action_size = 4
    observation_size = 16
    image_size = (2, 48, 48)                 # (C, H, W): 48 -> 46/23 -> 21/10 -> 8/4 -> 2/1
    histo_size = 1
    cin = (histo_size + 1) * image_size[0]   # 4 input channels to conv1
    size_output_image = 16                   # 16 * 1 * 1 (formula in __init__)
    hidden_size = observation_size + size_output_image  # 32, required by forward()

    keys = iter(jax.random.split(key, 32))

    def rnd(shape, scale):
        return scale * jax.random.normal(next(keys), shape, dtype=jnp.float32)

    conv_defs = [(cin, 64), (64, 64), (64, 64), (64, 16)]
    params = {
        "conv": [(rnd((3, 3, ci, co), 0.05), rnd((1, co), 0.05)) for ci, co in conv_defs],
        "wmu": rnd((hidden_size, action_size), 0.1), "bmu": rnd((1, action_size), 0.1),
        "wvar": rnd((hidden_size, action_size), 0.1), "bvar": rnd((1, action_size), 0.1),
        "wc": rnd((hidden_size, 1), 0.1), "bc": rnd((1, 1), 0.1),
    }
    # TODO(synk): self.base (2x Linear+ReLU) exists in the PyTorch module but is never
    # executed in forward() when size_image is not None, so it is omitted here.

    x = jax.random.normal(next(keys), (B, observation_size), dtype=jnp.float32)
    y = jax.random.normal(next(keys), (B, cin, image_size[1], image_size[2]),
                          dtype=jnp.float32)

    fwd = jax.jit(actor_critic_forward)
    mu, var, val = fwd(x, y, params)
    jax.block_until_ready((mu, var, val))

    assert mu.shape == (B, action_size)
    assert var.shape == (B, action_size)
    assert val.shape == (B, 1)

    mu_r, var_r, val_r = reference_forward(x, y, params)
    for name, got, ref in (("mu", mu, mu_r), ("var", var, var_r), ("value", val, val_r)):
        err = float(jnp.max(jnp.abs(got - ref)))
        assert jnp.allclose(got, ref, rtol=1e-3, atol=1e-3), f"{name}: max abs err {err}"

    print("KERNEL_OK")
</pallas_src>

<mosaic_0001>
module attributes {stable_mosaic.version = 11 : i64} {
  func.func @kernel(%arg0: i32, %arg1: memref<1x1x16xf32, #tpu.memory_space<vmem>>, %arg2: memref<1x2208x36xf32, #tpu.memory_space<vmem>>, %arg3: memref<36x64xf32, #tpu.memory_space<vmem>>, %arg4: memref<1x64xf32, #tpu.memory_space<vmem>>, %arg5: memref<576x64xf32, #tpu.memory_space<vmem>>, %arg6: memref<1x64xf32, #tpu.memory_space<vmem>>, %arg7: memref<576x64xf32, #tpu.memory_space<vmem>>, %arg8: memref<1x64xf32, #tpu.memory_space<vmem>>, %arg9: memref<576x16xf32, #tpu.memory_space<vmem>>, %arg10: memref<1x16xf32, #tpu.memory_space<vmem>>, %arg11: memref<32x9xf32, #tpu.memory_space<vmem>>, %arg12: memref<1x9xf32, #tpu.memory_space<vmem>>, %arg13: memref<1x1x9xf32, #tpu.memory_space<vmem>>, %arg14: memref<46x48x64xf32, #tpu.memory_space<vmem>>, %arg15: memref<23x24x64xf32, #tpu.memory_space<vmem>>, %arg16: memref<21x24x576xf32, #tpu.memory_space<vmem>>, %arg17: memref<21x24x64xf32, #tpu.memory_space<vmem>>, %arg18: memref<10x16x64xf32, #tpu.memory_space<vmem>>, %arg19: memref<8x8x576xf32, #tpu.memory_space<vmem>>, %arg20: memref<8x8x64xf32, #tpu.memory_space<vmem>>, %arg21: memref<4x8x64xf32, #tpu.memory_space<vmem>>, %arg22: memref<2x8x576xf32, #tpu.memory_space<vmem>>, %arg23: memref<2x8x16xf32, #tpu.memory_space<vmem>>) attributes {dimension_semantics = [#tpu.dimension_semantics<parallel>], iteration_bounds = array<i64: 2>, scalar_prefetch = 0 : i64, scratch_operands = 10 : i64, tpu.core_type = #tpu.core_type<tc>, window_params = [{transform_indices = @transform_0, window_bounds = array<i64: 1, 1, 16>}, {transform_indices = @transform_1, window_bounds = array<i64: 1, 2208, 36>}, {pipeline_mode = #tpu.pipeline_mode<synchronous>, transform_indices = @transform_2, window_bounds = array<i64: 36, 64>}, {pipeline_mode = #tpu.pipeline_mode<synchronous>, transform_indices = @transform_3, window_bounds = array<i64: 1, 64>}, {pipeline_mode = #tpu.pipeline_mode<synchronous>, transform_indices = @transform_4, window_bounds = array<i64: 576, 64>}, {pipeline_mode = #tpu.pipeline_mode<synchronous>, transform_indices = @transform_5, window_bounds = array<i64: 1, 64>}, {pipeline_mode = #tpu.pipeline_mode<synchronous>, transform_indices = @transform_6, window_bounds = array<i64: 576, 64>}, {pipeline_mode = #tpu.pipeline_mode<synchronous>, transform_indices = @transform_7, window_bounds = array<i64: 1, 64>}, {pipeline_mode = #tpu.pipeline_mode<synchronous>, transform_indices = @transform_8, window_bounds = array<i64: 576, 16>}, {pipeline_mode = #tpu.pipeline_mode<synchronous>, transform_indices = @transform_9, window_bounds = array<i64: 1, 16>}, {pipeline_mode = #tpu.pipeline_mode<synchronous>, transform_indices = @transform_10, window_bounds = array<i64: 32, 9>}, {pipeline_mode = #tpu.pipeline_mode<synchronous>, transform_indices = @transform_11, window_bounds = array<i64: 1, 9>}, {transform_indices = @transform_12, window_bounds = array<i64: 1, 1, 9>}]} {
    %c0 = arith.constant 0 : index
    %c0_0 = arith.constant 0 : index
    %c0_1 = arith.constant 0 : index
    %0 = vector.load %arg2[%c0, %c0_0, %c0_1] : memref<1x2208x36xf32, #tpu.memory_space<vmem>>, vector<1x2208x36xf32>
    %1 = vector.shape_cast %0 : vector<1x2208x36xf32> to vector<2208x36xf32>
    %c0_2 = arith.constant 0 : index
    %c0_3 = arith.constant 0 : index
    %2 = vector.load %arg3[%c0_2, %c0_3] : memref<36x64xf32, #tpu.memory_space<vmem>>, vector<36x64xf32>
    %cst = arith.constant dense<0.000000e+00> : vector<2208x64xf32>
    %3 = tpu.matmul %1, %2, %cst {dimension_numbers = #tpu.dot_dimension_numbers<[1], [0], [0], [1], [0, 0, 1, 1], [], []>} : vector<2208x36xf32>, vector<36x64xf32>, vector<2208x64xf32> -> vector<2208x64xf32>
    %4 = vector.shape_cast %3 : vector<2208x64xf32> to vector<46x48x64xf32>
    %c0_4 = arith.constant 0 : index
    %c0_5 = arith.constant 0 : index
    %c0_6 = arith.constant 0 : index
    %5 = vector.load %arg14[%c0_4, %c0_5, %c0_6] : memref<46x48x64xf32, #tpu.memory_space<vmem>>, vector<46x48x64xf32>
    tpu.vector_store %arg14[%c0_4, %c0_5, %c0_6], %4 {strides = array<i32>} : memref<46x48x64xf32, #tpu.memory_space<vmem>>, vector<46x48x64xf32>,
    %c0_7 = arith.constant 0 : index
    %c0_8 = arith.constant 0 : index
    %c0_9 = arith.constant 0 : index
    %6 = tpu.strided_load %arg14[%c0_7, %c0_8, %c0_9] {strides = array<i32: 1, 2, 1>} : memref<46x48x64xf32, #tpu.memory_space<vmem>>, vector<46x23x64xf32>
    %c0_10 = arith.constant 0 : index
    %c1 = arith.constant 1 : index
    %c0_11 = arith.constant 0 : index
    %7 = tpu.strided_load %arg14[%c0_10, %c1, %c0_11] {strides = array<i32: 1, 2, 1>} : memref<46x48x64xf32, #tpu.memory_space<vmem>>, vector<46x23x64xf32>
    %8 = arith.maximumf %6, %7 : vector<46x23x64xf32>
    %9 = vector.shape_cast %8 : vector<46x23x64xf32> to vector<23x2x23x64xf32>
    %10 = vector.extract_strided_slice %9 {offsets = [0, 0, 0, 0], sizes = [23, 1, 23, 64], strides = [1, 1, 1, 1]} : vector<23x2x23x64xf32> to vector<23x1x23x64xf32>
    %11 = vector.shape_cast %10 : vector<23x1x23x64xf32> to vector<23x23x64xf32>
    %12 = vector.extract_strided_slice %9 {offsets = [0, 1, 0, 0], sizes = [23, 1, 23, 64], strides = [1, 1, 1, 1]} : vector<23x2x23x64xf32> to vector<23x1x23x64xf32>
    %13 = vector.shape_cast %12 : vector<23x1x23x64xf32> to vector<23x23x64xf32>
    %14 = arith.maximumf %11, %13 : vector<23x23x64xf32>
    %c0_12 = arith.constant 0 : index
    %c0_13 = arith.constant 0 : index
    %15 = vector.load %arg4[%c0_12, %c0_13] : memref<1x64xf32, #tpu.memory_space<vmem>>, vector<1x64xf32>
    %16 = vector.shape_cast %15 : vector<1x64xf32> to vector<1x1x64xf32>
    %17 = vector.broadcast %16 : vector<1x1x64xf32> to vector<23x23x64xf32>
    %18 = arith.addf %14, %17 : vector<23x23x64xf32>
    %c0_14 = arith.constant 0 : index
    %c0_15 = arith.constant 0 : index
    %c0_16 = arith.constant 0 : index
    %19 = vector.load %arg15[%c0_14, %c0_15, %c0_16] : memref<23x24x64xf32, #tpu.memory_space<vmem>>, vector<23x23x64xf32>
    tpu.vector_store %arg15[%c0_14, %c0_15, %c0_16], %18 {strides = array<i32>} : memref<23x24x64xf32, #tpu.memory_space<vmem>>, vector<23x23x64xf32>,
    %c0_17 = arith.constant 0 : index
    %c0_18 = arith.constant 0 : index
    %c0_19 = arith.constant 0 : index
    %20 = vector.load %arg15[%c0_17, %c0_18, %c0_19] : memref<23x24x64xf32, #tpu.memory_space<vmem>>, vector<21x21x64xf32>
    %c0_20 = arith.constant 0 : index
    %c0_21 = arith.constant 0 : index
    %c0_22 = arith.constant 0 : index
    %21 = vector.load %arg16[%c0_20, %c0_21, %c0_22] : memref<21x24x576xf32, #tpu.memory_space<vmem>>, vector<21x21x64xf32>
    tpu.vector_store %arg16[%c0_20, %c0_21, %c0_22], %20 {strides = array<i32>} : memref<21x24x576xf32, #tpu.memory_space<vmem>>, vector<21x21x64xf32>,
    %c0_23 = arith.constant 0 : index
    %c1_24 = arith.constant 1 : index
    %c0_25 = arith.constant 0 : index
    %22 = vector.load %arg15[%c0_23, %c1_24, %c0_25] : memref<23x24x64xf32, #tpu.memory_space<vmem>>, vector<21x21x64xf32>
    %c0_26 = arith.constant 0 : index
    %c0_27 = arith.constant 0 : index
    %c64 = arith.constant 64 : index
    %23 = vector.load %arg16[%c0_26, %c0_27, %c64] : memref<21x24x576xf32, #tpu.memory_space<vmem>>, vector<21x21x64xf32>
    tpu.vector_store %arg16[%c0_26, %c0_27, %c64], %22 {strides = array<i32>} : memref<21x24x576xf32, #tpu.memory_space<vmem>>, vector<21x21x64xf32>,
    %c0_28 = arith.constant 0 : index
    %c2 = arith.constant 2 : index
    %c0_29 = arith.constant 0 : index
    %24 = vector.load %arg15[%c0_28, %c2, %c0_29] : memref<23x24x64xf32, #tpu.memory_space<vmem>>, vector<21x21x64xf32>
    %c0_30 = arith.constant 0 : index
    %c0_31 = arith.constant 0 : index
    %c128 = arith.constant 128 : index
    %25 = vector.load %arg16[%c0_30, %c0_31, %c128] : memref<21x24x576xf32, #tpu.memory_space<vmem>>, vector<21x21x64xf32>
    tpu.vector_store %arg16[%c0_30, %c0_31, %c128], %24 {strides = array<i32>} : memref<21x24x576xf32, #tpu.memory_space<vmem>>, vector<21x21x64xf32>,
    %c1_32 = arith.constant 1 : index
    %c0_33 = arith.constant 0 : index
    %c0_34 = arith.constant 0 : index
    %26 = vector.load %arg15[%c1_32, %c0_33, %c0_34] : memref<23x24x64xf32, #tpu.memory_space<vmem>>, vector<21x21x64xf32>
    %c0_35 = arith.constant 0 : index
    %c0_36 = arith.constant 0 : index
    %c192 = arith.constant 192 : index
    %27 = vector.load %arg16[%c0_35, %c0_36, %c192] : memref<21x24x576xf32, #tpu.memory_space<vmem>>, vector<21x21x64xf32>
    tpu.vector_store %arg16[%c0_35, %c0_36, %c192], %26 {strides = array<i32>} : memref<21x24x576xf32, #tpu.memory_space<vmem>>, vector<21x21x64xf32>,
    %c1_37 = arith.constant 1 : index
    %c1_38 = arith.constant 1 : index
    %c0_39 = arith.constant 0 : index
    %28 = vector.load %arg15[%c1_37, %c1_38, %c0_39] : memref<23x24x64xf32, #tpu.memory_space<vmem>>, vector<21x21x64xf32>
    %c0_40 = arith.constant 0 : index
    %c0_41 = arith.constant 0 : index
    %c256 = arith.constant 256 : index
    %29 = vector.load %arg16[%c0_40, %c0_41, %c256] : memref<21x24x576xf32, #tpu.memory_space<vmem>>, vector<21x21x64xf32>
    tpu.vector_store %arg16[%c0_40, %c0_41, %c256], %28 {strides = array<i32>} : memref<21x24x576xf32, #tpu.memory_space<vmem>>, vector<21x21x64xf32>,
    %c1_42 = arith.constant 1 : index
    %c2_43 = arith.constant 2 : index
    %c0_44 = arith.constant 0 : index
    %30 = vector.load %arg15[%c1_42, %c2_43, %c0_44] : memref<23x24x64xf32, #tpu.memory_space<vmem>>, vector<21x21x64xf32>
    %c0_45 = arith.constant 0 : index
    %c0_46 = arith.constant 0 : index
    %c320 = arith.constant 320 : index
    %31 = vector.load %arg16[%c0_45, %c0_46, %c320] : memref<21x24x576xf32, #tpu.memory_space<vmem>>, vector<21x21x64xf32>
    tpu.vector_store %arg16[%c0_45, %c0_46, %c320], %30 {strides = array<i32>} : memref<21x24x576xf32, #tpu.memory_space<vmem>>, vector<21x21x64xf32>,
    %c2_47 = arith.constant 2 : index
    %c0_48 = arith.constant 0 : index
    %c0_49 = arith.constant 0 : index
    %32 = vector.load %arg15[%c2_47, %c0_48, %c0_49] : memref<23x24x64xf32, #tpu.memory_space<vmem>>, vector<21x21x64xf32>
    %c0_50 = arith.constant 0 : index
    %c0_51 = arith.constant 0 : index
    %c384 = arith.constant 384 : index
    %33 = vector.load %arg16[%c0_50, %c0_51, %c384] : memref<21x24x576xf32, #tpu.memory_space<vmem>>, vector<21x21x64xf32>
    tpu.vector_store %arg16[%c0_50, %c0_51, %c384], %32 {strides = array<i32>} : memref<21x24x576xf32, #tpu.memory_space<vmem>>, vector<21x21x64xf32>,
    %c2_52 = arith.constant 2 : index
    %c1_53 = arith.constant 1 : index
    %c0_54 = arith.constant 0 : index
    %34 = vector.load %arg15[%c2_52, %c1_53, %c0_54] : memref<23x24x64xf32, #tpu.memory_space<vmem>>, vector<21x21x64xf32>
    %c0_55 = arith.constant 0 : index
    %c0_56 = arith.constant 0 : index
    %c448 = arith.constant 448 : index
    %35 = vector.load %arg16[%c0_55, %c0_56, %c448] : memref<21x24x576xf32, #tpu.memory_space<vmem>>, vector<21x21x64xf32>
    tpu.vector_store %arg16[%c0_55, %c0_56, %c448], %34 {strides = array<i32>} : memref<21x24x576xf32, #tpu.memory_space<vmem>>, vector<21x21x64xf32>,
    %c2_57 = arith.constant 2 : index
    %c2_58 = arith.constant 2 : index
    %c0_59 = arith.constant 0 : index
    %36 = vector.load %arg15[%c2_57, %c2_58, %c0_59] : memref<23x24x64xf32, #tpu.memory_space<vmem>>, vector<21x21x64xf32>
    %c0_60 = arith.constant 0 : index
    %c0_61 = arith.constant 0 : index
    %c512 = arith.constant 512 : index
    %37 = vector.load %arg16[%c0_60, %c0_61, %c512] : memref<21x24x576xf32, #tpu.memory_space<vmem>>, vector<21x21x64xf32>
    tpu.vector_store %arg16[%c0_60, %c0_61, %c512], %36 {strides = array<i32>} : memref<21x24x576xf32, #tpu.memory_space<vmem>>, vector<21x21x64xf32>,
    %c0_62 = arith.constant 0 : index
    %c0_63 = arith.constant 0 : index
    %c0_64 = arith.constant 0 : index
    %38 = vector.load %arg16[%c0_62, %c0_63, %c0_64] : memref<21x24x576xf32, #tpu.memory_space<vmem>>, vector<21x24x576xf32>
    %39 = vector.shape_cast %38 : vector<21x24x576xf32> to vector<504x576xf32>
    %c0_65 = arith.constant 0 : index
    %c0_66 = arith.constant 0 : index
    %40 = vector.load %arg5[%c0_65, %c0_66] : memref<576x64xf32, #tpu.memory_space<vmem>>, vector<576x64xf32>
    %cst_67 = arith.constant dense<0.000000e+00> : vector<504x64xf32>
    %41 = tpu.matmul %39, %40, %cst_67 {dimension_numbers = #tpu.dot_dimension_numbers<[1], [0], [0], [1], [0, 0, 1, 1], [], []>} : vector<504x576xf32>, vector<576x64xf32>, vector<504x64xf32> -> vector<504x64xf32>
    %42 = vector.shape_cast %41 : vector<504x64xf32> to vector<21x24x64xf32>
    %c0_68 = arith.constant 0 : index
    %c0_69 = arith.constant 0 : index
    %c0_70 = arith.constant 0 : index
    %43 = vector.load %arg17[%c0_68, %c0_69, %c0_70] : memref<21x24x64xf32, #tpu.memory_space<vmem>>, vector<21x24x64xf32>
    tpu.vector_store %arg17[%c0_68, %c0_69, %c0_70], %42 {strides = array<i32>} : memref<21x24x64xf32, #tpu.memory_space<vmem>>, vector<21x24x64xf32>,
    %c0_71 = arith.constant 0 : index
    %c0_72 = arith.constant 0 : index
    %c0_73 = arith.constant 0 : index
    %44 = tpu.strided_load %arg17[%c0_71, %c0_72, %c0_73] {strides = array<i32: 1, 2, 1>} : memref<21x24x64xf32, #tpu.memory_space<vmem>>, vector<20x10x64xf32>
    %c0_74 = arith.constant 0 : index
    %c1_75 = arith.constant 1 : index
    %c0_76 = arith.constant 0 : index
    %45 = tpu.strided_load %arg17[%c0_74, %c1_75, %c0_76] {strides = array<i32: 1, 2, 1>} : memref<21x24x64xf32, #tpu.memory_space<vmem>>, vector<20x10x64xf32>
    %46 = arith.maximumf %44, %45 : vector<20x10x64xf32>
    %47 = vector.shape_cast %46 : vector<20x10x64xf32> to vector<10x2x10x64xf32>
    %48 = vector.extract_strided_slice %47 {offsets = [0, 0, 0, 0], sizes = [10, 1, 10, 64], strides = [1, 1, 1, 1]} : vector<10x2x10x64xf32> to vector<10x1x10x64xf32>
    %49 = vector.shape_cast %48 : vector<10x1x10x64xf32> to vector<10x10x64xf32>
    %50 = vector.extract_strided_slice %47 {offsets = [0, 1, 0, 0], sizes = [10, 1, 10, 64], strides = [1, 1, 1, 1]} : vector<10x2x10x64xf32> to vector<10x1x10x64xf32>
    %51 = vector.shape_cast %50 : vector<10x1x10x64xf32> to vector<10x10x64xf32>
    %52 = arith.maximumf %49, %51 : vector<10x10x64xf32>
    %c0_77 = arith.constant 0 : index
    %c0_78 = arith.constant 0 : index
    %53 = vector.load %arg6[%c0_77, %c0_78] : memref<1x64xf32, #tpu.memory_space<vmem>>, vector<1x64xf32>
    %54 = vector.shape_cast %53 : vector<1x64xf32> to vector<1x1x64xf32>
    %55 = vector.broadcast %54 : vector<1x1x64xf32> to vector<10x10x64xf32>
    %56 = arith.addf %52, %55 : vector<10x10x64xf32>
    %c0_79 = arith.constant 0 : index
    %c0_80 = arith.constant 0 : index
    %c0_81 = arith.constant 0 : index
    %57 = vector.load %arg18[%c0_79, %c0_80, %c0_81] : memref<10x16x64xf32, #tpu.memory_space<vmem>>, vector<10x10x64xf32>
    tpu.vector_store %arg18[%c0_79, %c0_80, %c0_81], %56 {strides = array<i32>} : memref<10x16x64xf32, #tpu.memory_space<vmem>>, vector<10x10x64xf32>,
    %c0_82 = arith.constant 0 : index
    %c0_83 = arith.constant 0 : index
    %c0_84 = arith.constant 0 : index
    %58 = vector.load %arg18[%c0_82, %c0_83, %c0_84] : memref<10x16x64xf32, #tpu.memory_space<vmem>>, vector<8x8x64xf32>
    %c0_85 = arith.constant 0 : index
    %c0_86 = arith.constant 0 : index
    %c0_87 = arith.constant 0 : index
    %59 = vector.load %arg19[%c0_85, %c0_86, %c0_87] : memref<8x8x576xf32, #tpu.memory_space<vmem>>, vector<8x8x64xf32>
    tpu.vector_store %arg19[%c0_85, %c0_86, %c0_87], %58 {strides = array<i32>} : memref<8x8x576xf32, #tpu.memory_space<vmem>>, vector<8x8x64xf32>,
    %c0_88 = arith.constant 0 : index
    %c1_89 = arith.constant 1 : index
    %c0_90 = arith.constant 0 : index
    %60 = vector.load %arg18[%c0_88, %c1_89, %c0_90] : memref<10x16x64xf32, #tpu.memory_space<vmem>>, vector<8x8x64xf32>
    %c0_91 = arith.constant 0 : index
    %c0_92 = arith.constant 0 : index
    %c64_93 = arith.constant 64 : index
    %61 = vector.load %arg19[%c0_91, %c0_92, %c64_93] : memref<8x8x576xf32, #tpu.memory_space<vmem>>, vector<8x8x64xf32>
    tpu.vector_store %arg19[%c0_91, %c0_92, %c64_93], %60 {strides = array<i32>} : memref<8x8x576xf32, #tpu.memory_space<vmem>>, vector<8x8x64xf32>,
    %c0_94 = arith.constant 0 : index
    %c2_95 = arith.constant 2 : index
    %c0_96 = arith.constant 0 : index
    %62 = vector.load %arg18[%c0_94, %c2_95, %c0_96] : memref<10x16x64xf32, #tpu.memory_space<vmem>>, vector<8x8x64xf32>
    %c0_97 = arith.constant 0 : index
    %c0_98 = arith.constant 0 : index
    %c128_99 = arith.constant 128 : index
    %63 = vector.load %arg19[%c0_97, %c0_98, %c128_99] : memref<8x8x576xf32, #tpu.memory_space<vmem>>, vector<8x8x64xf32>
    tpu.vector_store %arg19[%c0_97, %c0_98, %c128_99], %62 {strides = array<i32>} : memref<8x8x576xf32, #tpu.memory_space<vmem>>, vector<8x8x64xf32>,
    %c1_100 = arith.constant 1 : index
    %c0_101 = arith.constant 0 : index
    %c0_102 = arith.constant 0 : index
    %64 = vector.load %arg18[%c1_100, %c0_101, %c0_102] : memref<10x16x64xf32, #tpu.memory_space<vmem>>, vector<8x8x64xf32>
    %c0_103 = arith.constant 0 : index
    %c0_104 = arith.constant 0 : index
    %c192_105 = arith.constant 192 : index
    %65 = vector.load %arg19[%c0_103, %c0_104, %c192_105] : memref<8x8x576xf32, #tpu.memory_space<vmem>>, vector<8x8x64xf32>
    tpu.vector_store %arg19[%c0_103, %c0_104, %c192_105], %64 {strides = array<i32>} : memref<8x8x576xf32, #tpu.memory_space<vmem>>, vector<8x8x64xf32>,
    %c1_106 = arith.constant 1 : index
    %c1_107 = arith.constant 1 : index
    %c0_108 = arith.constant 0 : index
    %66 = vector.load %arg18[%c1_106, %c1_107, %c0_108] : memref<10x16x64xf32, #tpu.memory_space<vmem>>, vector<8x8x64xf32>
    %c0_109 = arith.constant 0 : index
    %c0_110 = arith.constant 0 : index
    %c256_111 = arith.constant 256 : index
    %67 = vector.load %arg19[%c0_109, %c0_110, %c256_111] : memref<8x8x576xf32, #tpu.memory_space<vmem>>, vector<8x8x64xf32>
    tpu.vector_store %arg19[%c0_109, %c0_110, %c256_111], %66 {strides = array<i32>} : memref<8x8x576xf32, #tpu.memory_space<vmem>>, vector<8x8x64xf32>,
    %c1_112 = arith.constant 1 : index
    %c2_113 = arith.constant 2 : index
    %c0_114 = arith.constant 0 : index
    %68 = vector.load %arg18[%c1_112, %c2_113, %c0_114] : memref<10x16x64xf32, #tpu.memory_space<vmem>>, vector<8x8x64xf32>
    %c0_115 = arith.constant 0 : index
    %c0_116 = arith.constant 0 : index
    %c320_117 = arith.constant 320 : index
    %69 = vector.load %arg19[%c0_115, %c0_116, %c320_117] : memref<8x8x576xf32, #tpu.memory_space<vmem>>, vector<8x8x64xf32>
    tpu.vector_store %arg19[%c0_115, %c0_116, %c320_117], %68 {strides = array<i32>} : memref<8x8x576xf32, #tpu.memory_space<vmem>>, vector<8x8x64xf32>,
    %c2_118 = arith.constant 2 : index
    %c0_119 = arith.constant 0 : index
    %c0_120 = arith.constant 0 : index
    %70 = vector.load %arg18[%c2_118, %c0_119, %c0_120] : memref<10x16x64xf32, #tpu.memory_space<vmem>>, vector<8x8x64xf32>
    %c0_121 = arith.constant 0 : index
    %c0_122 = arith.constant 0 : index
    %c384_123 = arith.constant 384 : index
    %71 = vector.load %arg19[%c0_121, %c0_122, %c384_123] : memref<8x8x576xf32, #tpu.memory_space<vmem>>, vector<8x8x64xf32>
    tpu.vector_store %arg19[%c0_121, %c0_122, %c384_123], %70 {strides = array<i32>} : memref<8x8x576xf32, #tpu.memory_space<vmem>>, vector<8x8x64xf32>,
    %c2_124 = arith.constant 2 : index
    %c1_125 = arith.constant 1 : index
    %c0_126 = arith.constant 0 : index
    %72 = vector.load %arg18[%c2_124, %c1_125, %c0_126] : memref<10x16x64xf32, #tpu.memory_space<vmem>>, vector<8x8x64xf32>
    %c0_127 = arith.constant 0 : index
    %c0_128 = arith.constant 0 : index
    %c448_129 = arith.constant 448 : index
    %73 = vector.load %arg19[%c0_127, %c0_128, %c448_129] : memref<8x8x576xf32, #tpu.memory_space<vmem>>, vector<8x8x64xf32>
    tpu.vector_store %arg19[%c0_127, %c0_128, %c448_129], %72 {strides = array<i32>} : memref<8x8x576xf32, #tpu.memory_space<vmem>>, vector<8x8x64xf32>,
    %c2_130 = arith.constant 2 : index
    %c2_131 = arith.constant 2 : index
    %c0_132 = arith.constant 0 : index
    %74 = vector.load %arg18[%c2_130, %c2_131, %c0_132] : memref<10x16x64xf32, #tpu.memory_space<vmem>>, vector<8x8x64xf32>
    %c0_133 = arith.constant 0 : index
    %c0_134 = arith.constant 0 : index
    %c512_135 = arith.constant 512 : index
    %75 = vector.load %arg19[%c0_133, %c0_134, %c512_135] : memref<8x8x576xf32, #tpu.memory_space<vmem>>, vector<8x8x64xf32>
    tpu.vector_store %arg19[%c0_133, %c0_134, %c512_135], %74 {strides = array<i32>} : memref<8x8x576xf32, #tpu.memory_space<vmem>>, vector<8x8x64xf32>,
    %c0_136 = arith.constant 0 : index
    %c0_137 = arith.constant 0 : index
    %c0_138 = arith.constant 0 : index
    %76 = vector.load %arg19[%c0_136, %c0_137, %c0_138] : memref<8x8x576xf32, #tpu.memory_space<vmem>>, vector<8x8x576xf32>
    %77 = vector.shape_cast %76 : vector<8x8x576xf32> to vector<64x576xf32>
    %c0_139 = arith.constant 0 : index
    %c0_140 = arith.constant 0 : index
    %78 = vector.load %arg7[%c0_139, %c0_140] : memref<576x64xf32, #tpu.memory_space<vmem>>, vector<576x64xf32>
    %cst_141 = arith.constant dense<0.000000e+00> : vector<64x64xf32>
    %79 = tpu.matmul %77, %78, %cst_141 {dimension_numbers = #tpu.dot_dimension_numbers<[1], [0], [0], [1], [0, 0, 1, 1], [], []>} : vector<64x576xf32>, vector<576x64xf32>, vector<64x64xf32> -> vector<64x64xf32>
    %80 = vector.shape_cast %79 : vector<64x64xf32> to vector<8x8x64xf32>
    %c0_142 = arith.constant 0 : index
    %c0_143 = arith.constant 0 : index
    %c0_144 = arith.constant 0 : index
    %81 = vector.load %arg20[%c0_142, %c0_143, %c0_144] : memref<8x8x64xf32, #tpu.memory_space<vmem>>, vector<8x8x64xf32>
    tpu.vector_store %arg20[%c0_142, %c0_143, %c0_144], %80 {strides = array<i32>} : memref<8x8x64xf32, #tpu.memory_space<vmem>>, vector<8x8x64xf32>,
    %c0_145 = arith.constant 0 : index
    %c0_146 = arith.constant 0 : index
    %c0_147 = arith.constant 0 : index
    %82 = tpu.strided_load %arg20[%c0_145, %c0_146, %c0_147] {strides = array<i32: 1, 2, 1>} : memref<8x8x64xf32, #tpu.memory_space<vmem>>, vector<8x4x64xf32>
    %c0_148 = arith.constant 0 : index
    %c1_149 = arith.constant 1 : index
    %c0_150 = arith.constant 0 : index
    %83 = tpu.strided_load %arg20[%c0_148, %c1_149, %c0_150] {strides = array<i32: 1, 2, 1>} : memref<8x8x64xf32, #tpu.memory_space<vmem>>, vector<8x4x64xf32>
    %84 = arith.maximumf %82, %83 : vector<8x4x64xf32>
    %85 = vector.shape_cast %84 : vector<8x4x64xf32> to vector<4x2x4x64xf32>
    %86 = vector.extract_strided_slice %85 {offsets = [0, 0, 0, 0], sizes = [4, 1, 4, 64], strides = [1, 1, 1, 1]} : vector<4x2x4x64xf32> to vector<4x1x4x64xf32>
    %87 = vector.shape_cast %86 : vector<4x1x4x64xf32> to vector<4x4x64xf32>
    %88 = vector.extract_strided_slice %85 {offsets = [0, 1, 0, 0], sizes = [4, 1, 4, 64], strides = [1, 1, 1, 1]} : vector<4x2x4x64xf32> to vector<4x1x4x64xf32>
    %89 = vector.shape_cast %88 : vector<4x1x4x64xf32> to vector<4x4x64xf32>
    %90 = arith.maximumf %87, %89 : vector<4x4x64xf32>
    %c0_151 = arith.constant 0 : index
    %c0_152 = arith.constant 0 : index
    %91 = vector.load %arg8[%c0_151, %c0_152] : memref<1x64xf32, #tpu.memory_space<vmem>>, vector<1x64xf32>
    %92 = vector.shape_cast %91 : vector<1x64xf32> to vector<1x1x64xf32>
    %93 = vector.broadcast %92 : vector<1x1x64xf32> to vector<4x4x64xf32>
    %94 = arith.addf %90, %93 : vector<4x4x64xf32>
    %c0_153 = arith.constant 0 : index
    %c0_154 = arith.constant 0 : index
    %c0_155 = arith.constant 0 : index
    %95 = vector.load %arg21[%c0_153, %c0_154, %c0_155] : memref<4x8x64xf32, #tpu.memory_space<vmem>>, vector<4x4x64xf32>
    tpu.vector_store %arg21[%c0_153, %c0_154, %c0_155], %94 {strides = array<i32>} : memref<4x8x64xf32, #tpu.memory_space<vmem>>, vector<4x4x64xf32>,
    %c0_156 = arith.constant 0 : index
    %c0_157 = arith.constant 0 : index
    %c0_158 = arith.constant 0 : index
    %96 = vector.load %arg21[%c0_156, %c0_157, %c0_158] : memref<4x8x64xf32, #tpu.memory_space<vmem>>, vector<2x2x64xf32>
    %c0_159 = arith.constant 0 : index
    %c0_160 = arith.constant 0 : index
    %c0_161 = arith.constant 0 : index
    %97 = vector.load %arg22[%c0_159, %c0_160, %c0_161] : memref<2x8x576xf32, #tpu.memory_space<vmem>>, vector<2x2x64xf32>
    tpu.vector_store %arg22[%c0_159, %c0_160, %c0_161], %96 {strides = array<i32>} : memref<2x8x576xf32, #tpu.memory_space<vmem>>, vector<2x2x64xf32>,
    %c0_162 = arith.constant 0 : index
    %c1_163 = arith.constant 1 : index
    %c0_164 = arith.constant 0 : index
    %98 = vector.load %arg21[%c0_162, %c1_163, %c0_164] : memref<4x8x64xf32, #tpu.memory_space<vmem>>, vector<2x2x64xf32>
    %c0_165 = arith.constant 0 : index
    %c0_166 = arith.constant 0 : index
    %c64_167 = arith.constant 64 : index
    %99 = vector.load %arg22[%c0_165, %c0_166, %c64_167] : memref<2x8x576xf32, #tpu.memory_space<vmem>>, vector<2x2x64xf32>
    tpu.vector_store %arg22[%c0_165, %c0_166, %c64_167], %98 {strides = array<i32>} : memref<2x8x576xf32, #tpu.memory_space<vmem>>, vector<2x2x64xf32>,
    %c0_168 = arith.constant 0 : index
    %c2_169 = arith.constant 2 : index
    %c0_170 = arith.constant 0 : index
    %100 = vector.load %arg21[%c0_168, %c2_169, %c0_170] : memref<4x8x64xf32, #tpu.memory_space<vmem>>, vector<2x2x64xf32>
    %c0_171 = arith.constant 0 : index
    %c0_172 = arith.constant 0 : index
    %c128_173 = arith.constant 128 : index
    %101 = vector.load %arg22[%c0_171, %c0_172, %c128_173] : memref<2x8x576xf32, #tpu.memory_space<vmem>>, vector<2x2x64xf32>
    tpu.vector_store %arg22[%c0_171, %c0_172, %c128_173], %100 {strides = array<i32>} : memref<2x8x576xf32, #tpu.memory_space<vmem>>, vector<2x2x64xf32>,
    %c1_174 = arith.constant 1 : index
    %c0_175 = arith.constant 0 : index
    %c0_176 = arith.constant 0 : index
    %102 = vector.load %arg21[%c1_174, %c0_175, %c0_176] : memref<4x8x64xf32, #tpu.memory_space<vmem>>, vector<2x2x64xf32>
    %c0_177 = arith.constant 0 : index
    %c0_178 = arith.constant 0 : index
    %c192_179 = arith.constant 192 : index
    %103 = vector.load %arg22[%c0_177, %c0_178, %c192_179] : memref<2x8x576xf32, #tpu.memory_space<vmem>>, vector<2x2x64xf32>
    tpu.vector_store %arg22[%c0_177, %c0_178, %c192_179], %102 {strides = array<i32>} : memref<2x8x576xf32, #tpu.memory_space<vmem>>, vector<2x2x64xf32>,
    %c1_180 = arith.constant 1 : index
    %c1_181 = arith.constant 1 : index
    %c0_182 = arith.constant 0 : index
    %104 = vector.load %arg21[%c1_180, %c1_181, %c0_182] : memref<4x8x64xf32, #tpu.memory_space<vmem>>, vector<2x2x64xf32>
    %c0_183 = arith.constant 0 : index
    %c0_184 = arith.constant 0 : index
    %c256_185 = arith.constant 256 : index
    %105 = vector.load %arg22[%c0_183, %c0_184, %c256_185] : memref<2x8x576xf32, #tpu.memory_space<vmem>>, vector<2x2x64xf32>
    tpu.vector_store %arg22[%c0_183, %c0_184, %c256_185], %104 {strides = array<i32>} : memref<2x8x576xf32, #tpu.memory_space<vmem>>, vector<2x2x64xf32>,
    %c1_186 = arith.constant 1 : index
    %c2_187 = arith.constant 2 : index
    %c0_188 = arith.constant 0 : index
    %106 = vector.load %arg21[%c1_186, %c2_187, %c0_188] : memref<4x8x64xf32, #tpu.memory_space<vmem>>, vector<2x2x64xf32>
    %c0_189 = arith.constant 0 : index
    %c0_190 = arith.constant 0 : index
    %c320_191 = arith.constant 320 : index
    %107 = vector.load %arg22[%c0_189, %c0_190, %c320_191] : memref<2x8x576xf32, #tpu.memory_space<vmem>>, vector<2x2x64xf32>
    tpu.vector_store %arg22[%c0_189, %c0_190, %c320_191], %106 {strides = array<i32>} : memref<2x8x576xf32, #tpu.memory_space<vmem>>, vector<2x2x64xf32>,
    %c2_192 = arith.constant 2 : index
    %c0_193 = arith.constant 0 : index
    %c0_194 = arith.constant 0 : index
    %108 = vector.load %arg21[%c2_192, %c0_193, %c0_194] : memref<4x8x64xf32, #tpu.memory_space<vmem>>, vector<2x2x64xf32>
    %c0_195 = arith.constant 0 : index
    %c0_196 = arith.constant 0 : index
    %c384_197 = arith.constant 384 : index
    %109 = vector.load %arg22[%c0_195, %c0_196, %c384_197] : memref<2x8x576xf32, #tpu.memory_space<vmem>>, vector<2x2x64xf32>
    tpu.vector_store %arg22[%c0_195, %c0_196, %c384_197], %108 {strides = array<i32>} : memref<2x8x576xf32, #tpu.memory_space<vmem>>, vector<2x2x64xf32>,
    %c2_198 = arith.constant 2 : index
    %c1_199 = arith.constant 1 : index
    %c0_200 = arith.constant 0 : index
    %110 = vector.load %arg21[%c2_198, %c1_199, %c0_200] : memref<4x8x64xf32, #tpu.memory_space<vmem>>, vector<2x2x64xf32>
    %c0_201 = arith.constant 0 : index
    %c0_202 = arith.constant 0 : index
    %c448_203 = arith.constant 448 : index
    %111 = vector.load %arg22[%c0_201, %c0_202, %c448_203] : memref<2x8x576xf32, #tpu.memory_space<vmem>>, vector<2x2x64xf32>
    tpu.vector_store %arg22[%c0_201, %c0_202, %c448_203], %110 {strides = array<i32>} : memref<2x8x576xf32, #tpu.memory_space<vmem>>, vector<2x2x64xf32>,
    %c2_204 = arith.constant 2 : index
    %c2_205 = arith.constant 2 : index
    %c0_206 = arith.constant 0 : index
    %112 = vector.load %arg21[%c2_204, %c2_205, %c0_206] : memref<4x8x64xf32, #tpu.memory_space<vmem>>, vector<2x2x64xf32>
    %c0_207 = arith.constant 0 : index
    %c0_208 = arith.constant 0 : index
    %c512_209 = arith.constant 512 : index
    %113 = vector.load %arg22[%c0_207, %c0_208, %c512_209] : memref<2x8x576xf32, #tpu.memory_space<vmem>>, vector<2x2x64xf32>
    tpu.vector_store %arg22[%c0_207, %c0_208, %c512_209], %112 {strides = array<i32>} : memref<2x8x576xf32, #tpu.memory_space<vmem>>, vector<2x2x64xf32>,
    %c0_210 = arith.constant 0 : index
    %c0_211 = arith.constant 0 : index
    %c0_212 = arith.constant 0 : index
    %114 = vector.load %arg22[%c0_210, %c0_211, %c0_212] : memref<2x8x576xf32, #tpu.memory_space<vmem>>, vector<2x8x576xf32>
    %115 = vector.shape_cast %114 : vector<2x8x576xf32> to vector<16x576xf32>
    %c0_213 = arith.constant 0 : index
    %c0_214 = arith.constant 0 : index
    %116 = vector.load %arg9[%c0_213, %c0_214] : memref<576x16xf32, #tpu.memory_space<vmem>>, vector<576x16xf32>
    %cst_215 = arith.constant dense<0.000000e+00> : vector<16x16xf32>
    %117 = tpu.matmul %115, %116, %cst_215 {dimension_numbers = #tpu.dot_dimension_numbers<[1], [0], [0], [1], [0, 0, 1, 1], [], []>} : vector<16x576xf32>, vector<576x16xf32>, vector<16x16xf32> -> vector<16x16xf32>
    %118 = vector.shape_cast %117 : vector<16x16xf32> to vector<2x8x16xf32>
    %c0_216 = arith.constant 0 : index
    %c0_217 = arith.constant 0 : index
    %c0_218 = arith.constant 0 : index
    %119 = vector.load %arg23[%c0_216, %c0_217, %c0_218] : memref<2x8x16xf32, #tpu.memory_space<vmem>>, vector<2x8x16xf32>
    tpu.vector_store %arg23[%c0_216, %c0_217, %c0_218], %118 {strides = array<i32>} : memref<2x8x16xf32, #tpu.memory_space<vmem>>, vector<2x8x16xf32>,
    %c0_219 = arith.constant 0 : index
    %c0_220 = arith.constant 0 : index
    %c0_221 = arith.constant 0 : index
    %120 = tpu.strided_load %arg23[%c0_219, %c0_220, %c0_221] {strides = array<i32: 1, 2, 1>} : memref<2x8x16xf32, #tpu.memory_space<vmem>>, vector<2x1x16xf32>
    %c0_222 = arith.constant 0 : index
    %c1_223 = arith.constant 1 : index
    %c0_224 = arith.constant 0 : index
    %121 = tpu.strided_load %arg23[%c0_222, %c1_223, %c0_224] {strides = array<i32: 1, 2, 1>} : memref<2x8x16xf32, #tpu.memory_space<vmem>>, vector<2x1x16xf32>
    %122 = arith.maximumf %120, %121 : vector<2x1x16xf32>
    %123 = vector.shape_cast %122 : vector<2x1x16xf32> to vector<1x2x1x16xf32>
    %124 = vector.extract_strided_slice %123 {offsets = [0, 0, 0, 0], sizes = [1, 1, 1, 16], strides = [1, 1, 1, 1]} : vector<1x2x1x16xf32> to vector<1x1x1x16xf32>
    %125 = vector.shape_cast %124 : vector<1x1x1x16xf32> to vector<1x1x16xf32>
    %126 = vector.extract_strided_slice %123 {offsets = [0, 1, 0, 0], sizes = [1, 1, 1, 16], strides = [1, 1, 1, 1]} : vector<1x2x1x16xf32> to vector<1x1x1x16xf32>
    %127 = vector.shape_cast %126 : vector<1x1x1x16xf32> to vector<1x1x16xf32>
    %128 = arith.maximumf %125, %127 : vector<1x1x16xf32>
    %c0_225 = arith.constant 0 : index
    %c0_226 = arith.constant 0 : index
    %129 = vector.load %arg10[%c0_225, %c0_226] : memref<1x16xf32, #tpu.memory_space<vmem>>, vector<1x16xf32>
    %130 = vector.shape_cast %129 : vector<1x16xf32> to vector<1x1x16xf32>
    %131 = arith.addf %128, %130 : vector<1x1x16xf32>
    %132 = vector.shape_cast %131 : vector<1x1x16xf32> to vector<1x16xf32>
    %c0_227 = arith.constant 0 : index
    %c0_228 = arith.constant 0 : index
    %c0_229 = arith.constant 0 : index
    %133 = vector.load %arg1[%c0_227, %c0_228, %c0_229] : memref<1x1x16xf32, #tpu.memory_space<vmem>>, vector<1x1x16xf32>
    %134 = vector.shape_cast %133 : vector<1x1x16xf32> to vector<1x16xf32>
    %c0_230 = arith.constant 0 : index
    %c0_231 = arith.constant 0 : index
    %135 = vector.load %arg11[%c0_230, %c0_231] : memref<32x9xf32, #tpu.memory_space<vmem>>, vector<16x9xf32>
    %cst_232 = arith.constant dense<0.000000e+00> : vector<1x9xf32>
    %136 = tpu.matmul %134, %135, %cst_232 {dimension_numbers = #tpu.dot_dimension_numbers<[1], [0], [0], [1], [0, 0, 1, 1], [], []>} : vector<1x16xf32>, vector<16x9xf32>, vector<1x9xf32> -> vector<1x9xf32>
    %c16 = arith.constant 16 : index
    %c0_233 = arith.constant 0 : index
    %137 = vector.load %arg11[%c16, %c0_233] : memref<32x9xf32, #tpu.memory_space<vmem>>, vector<16x9xf32>
    %cst_234 = arith.constant dense<0.000000e+00> : vector<1x9xf32>
    %138 = tpu.matmul %132, %137, %cst_234 {dimension_numbers = #tpu.dot_dimension_numbers<[1], [0], [0], [1], [0, 0, 1, 1], [], []>} : vector<1x16xf32>, vector<16x9xf32>, vector<1x9xf32> -> vector<1x9xf32>
    %139 = arith.addf %136, %138 : vector<1x9xf32>
    %c0_235 = arith.constant 0 : index
    %c0_236 = arith.constant 0 : index
    %140 = vector.load %arg12[%c0_235, %c0_236] : memref<1x9xf32, #tpu.memory_space<vmem>>, vector<1x9xf32>
    %141 = arith.addf %139, %140 : vector<1x9xf32>
    %cst_237 = arith.constant 2.000000e+01 : f32
    %142 = vector.broadcast %cst_237 : f32 to vector<1x9xf32>
    %143 = arith.cmpf ogt, %141, %142 : vector<1x9xf32>
    %cst_238 = arith.constant 0.000000e+00 : f32
    %144 = vector.broadcast %cst_238 : f32 to vector<1x9xf32>
    %145 = arith.maximumf %141, %144 : vector<1x9xf32>
    %146 = math.absf %141 : vector<1x9xf32>
    %cst_239 = arith.constant 0.000000e+00 : f32
    %147 = vector.broadcast %cst_239 : f32 to vector<1x9xf32>
    %148 = arith.subf %147, %146 : vector<1x9xf32>
    %149 = math.exp %148 : vector<1x9xf32>
    %150 = math.log1p %149 : vector<1x9xf32>
    %151 = arith.addf %145, %150 : vector<1x9xf32>
    %152 = arith.select %143, %141, %151 : vector<1x9xi1>, vector<1x9xf32>
    %153 = tpu.iota {dimensions = array<i32: 1>} : vector<1x9xi32>
    %c4_i32 = arith.constant 4 : i32
    %154 = vector.broadcast %c4_i32 : i32 to vector<1x9xi32>
    %155 = arith.cmpi sge, %153, %154 : vector<1x9xi32>
    %c8_i32 = arith.constant 8 : i32
    %156 = vector.broadcast %c8_i32 : i32 to vector<1x9xi32>
    %157 = arith.cmpi slt, %153, %156 : vector<1x9xi32>
    %158 = arith.andi %155, %157 : vector<1x9xi1>
    %159 = arith.select %158, %152, %141 : vector<1x9xi1>, vector<1x9xf32>
    %c0_240 = arith.constant 0 : index
    %c0_241 = arith.constant 0 : index
    %c0_242 = arith.constant 0 : index
    %160 = vector.load %arg13[%c0_240, %c0_241, %c0_242] : memref<1x1x9xf32, #tpu.memory_space<vmem>>, vector<1x1x9xf32>
    %161 = vector.shape_cast %160 : vector<1x1x9xf32> to vector<1x9xf32>
    %162 = vector.shape_cast %159 : vector<1x9xf32> to vector<1x1x9xf32>
    tpu.vector_store %arg13[%c0_240, %c0_241, %c0_242], %162 {strides = array<i32>} : memref<1x1x9xf32, #tpu.memory_space<vmem>>, vector<1x1x9xf32>,
    return
  }
  func.func @transform_0(%arg0: i32) -> (i32, i32, i32) {
    %c0_i32 = arith.constant 0 : i32
    %c0_i32_0 = arith.constant 0 : i32
    %c0_i32_1 = arith.constant 0 : i32
    return %arg0, %c0_i32, %c0_i32_0 : i32, i32, i32
  }
  func.func @transform_1(%arg0: i32) -> (i32, i32, i32) {
    %c0_i32 = arith.constant 0 : i32
    %c0_i32_0 = arith.constant 0 : i32
    %c0_i32_1 = arith.constant 0 : i32
    return %arg0, %c0_i32, %c0_i32_0 : i32, i32, i32
  }
  func.func @transform_2(%arg0: i32) -> (i32, i32) {
    %c0_i32 = arith.constant 0 : i32
    %c0_i32_0 = arith.constant 0 : i32
    %c0_i32_1 = arith.constant 0 : i32
    return %c0_i32, %c0_i32_0 : i32, i32
  }
  func.func @transform_3(%arg0: i32) -> (i32, i32) {
    %c0_i32 = arith.constant 0 : i32
    %c0_i32_0 = arith.constant 0 : i32
    %c0_i32_1 = arith.constant 0 : i32
    return %c0_i32, %c0_i32_0 : i32, i32
  }
  func.func @transform_4(%arg0: i32) -> (i32, i32) {
    %c0_i32 = arith.constant 0 : i32
    %c0_i32_0 = arith.constant 0 : i32
    %c0_i32_1 = arith.constant 0 : i32
    return %c0_i32, %c0_i32_0 : i32, i32
  }
  func.func @transform_5(%arg0: i32) -> (i32, i32) {
    %c0_i32 = arith.constant 0 : i32
    %c0_i32_0 = arith.constant 0 : i32
    %c0_i32_1 = arith.constant 0 : i32
    return %c0_i32, %c0_i32_0 : i32, i32
  }
  func.func @transform_6(%arg0: i32) -> (i32, i32) {
    %c0_i32 = arith.constant 0 : i32
    %c0_i32_0 = arith.constant 0 : i32
    %c0_i32_1 = arith.constant 0 : i32
    return %c0_i32, %c0_i32_0 : i32, i32
  }
  func.func @transform_7(%arg0: i32) -> (i32, i32) {
    %c0_i32 = arith.constant 0 : i32
    %c0_i32_0 = arith.constant 0 : i32
    %c0_i32_1 = arith.constant 0 : i32
    return %c0_i32, %c0_i32_0 : i32, i32
  }
  func.func @transform_8(%arg0: i32) -> (i32, i32) {
    %c0_i32 = arith.constant 0 : i32
    %c0_i32_0 = arith.constant 0 : i32
    %c0_i32_1 = arith.constant 0 : i32
    return %c0_i32, %c0_i32_0 : i32, i32
  }
  func.func @transform_9(%arg0: i32) -> (i32, i32) {
    %c0_i32 = arith.constant 0 : i32
    %c0_i32_0 = arith.constant 0 : i32
    %c0_i32_1 = arith.constant 0 : i32
    return %c0_i32, %c0_i32_0 : i32, i32
  }
  func.func @transform_10(%arg0: i32) -> (i32, i32) {
    %c0_i32 = arith.constant 0 : i32
    %c0_i32_0 = arith.constant 0 : i32
    %c0_i32_1 = arith.constant 0 : i32
    return %c0_i32, %c0_i32_0 : i32, i32
  }
  func.func @transform_11(%arg0: i32) -> (i32, i32) {
    %c0_i32 = arith.constant 0 : i32
    %c0_i32_0 = arith.constant 0 : i32
    %c0_i32_1 = arith.constant 0 : i32
    return %c0_i32, %c0_i32_0 : i32, i32
  }
  func.func @transform_12(%arg0: i32) -> (i32, i32, i32) {
    %c0_i32 = arith.constant 0 : i32
    %c0_i32_0 = arith.constant 0 : i32
    %c0_i32_1 = arith.constant 0 : i32
    return %arg0, %c0_i32, %c0_i32_0 : i32, i32, i32
  }
}

</mosaic_0001>

<bundles_post_ra>
// kernel: actor_critic_forward.1
= control target key start
LH: loop header
LB: loop body
LE: loop exit
PB: predicated region body
PF: predicated region fallthrough
CT: control target
= control target key end

     0   :  { %s12061_s21 = smov 0   ;;  %s15396_s0 = inlined_call_operand.vmem [shape: f32[2,1,16], index: 0, kind: input, shape index: {}]   ;;  %s15397_s1 = inlined_call_operand.vmem [shape: f32[2,2208,36], index: 1, kind: input, shape index: {}]   ;;  %s15398_s2 = inlined_call_operand.vmem [shape: f32[36,64], index: 2, kind: input, shape index: {}]   ;;  %s15399_s3 = inlined_call_operand.vmem [shape: f32[1,64], index: 3, kind: input, shape index: {}]   ;;  %s15400_s4 = inlined_call_operand.vmem [shape: f32[576,64], index: 4, kind: input, shape index: {}]   ;;  %s15401_s5 = inlined_call_operand.vmem [shape: f32[1,64], index: 5, kind: input, shape index: {}]   ;;  %s15402_s6 = inlined_call_operand.vmem [shape: f32[576,64], index: 6, kind: input, shape index: {}]   ;;  %s15403_s7 = inlined_call_operand.vmem [shape: f32[1,64], index: 7, kind: input, shape index: {}]   ;;  %s15404_s8 = inlined_call_operand.vmem [shape: f32[576,16], index: 8, kind: input, shape index: {}]   ;;  %s15405_s9 = inlined_call_operand.vmem [shape: f32[1,16], index: 9, kind: input, shape index: {}]   ;;  %s15406_s10 = inlined_call_operand.vmem [shape: f32[32,9], index: 10, kind: input, shape index: {}]   ;;  %s15407_s11 = inlined_call_operand.vmem [shape: f32[1,9], index: 11, kind: input, shape index: {}]   ;;  %s15408_s12 = inlined_call_operand.vmem [shape: f32[2,1,9], index: 12, kind: output, shape index: {}]  }
   0x1 LB: > { %s9782_s22 = sadd.s32 4294967295, %s11990_s21   ;;  %p9786_p0 = scmp.ge.s32.totalorder %s11990_s21, 1  ;;  %s11990_s21 = sphi %s12061_s21, %s22_s21  }
   0x2   : > { %p370_p1 = scmp.lt.s32.totalorder %s11990_s21, 3 }
   0x4   : > { %p371_p2 = pnand %p9786_p0, %p370_p1 }
   0x6   : > { %374 = sbr.rel (%p371_p2) target bundleno = 2692 (0xa84), region = 68 }
   0xd   : > { %v700_v0 = vld [vmem:[%s15398_s2] sm:$0xff]  ;;  %v701_v1 = vld [vmem:[%s15398_s2 + $0x8] sm:$0xff]  ;;  %v702_v2 = vld [vmem:[%s15398_s2 + $0x10] sm:$0xff]  ;;  %p413_p3 = scmp.lt.s32.totalorder %s9782_s22, 1  ;;  %vm705_vm0 = vcmask 293888   ;;  %vm1534_vm1 = vcmask 1043456  }
   0xe   : > { %v11407_v3 = vpack.c.bf16 %v701_v1, %v700_v0  ;;  %v703_v4 = vld [vmem:[%s15398_s2 + $0x18] sm:$0xff]  ;;  %v704_v6 = vld [vmem:[%s15398_s2 + $0x20] sm:$0xf]  ;;  %vm2983_vm2 = vcmask 523264   ;;  %vm4096_vm3 = vcmask 522240   ;;  %vm4229_vm4 = vcmask 520192  }
   0xf   : > { %v11411_v5 = vpack.c.bf16 %v703_v4, %v702_v2  ;;  %s15437_s22 = smov (!%p413_p3, %s9782_s22), 1  ;;  %s11993_s29 = smov 64   ;;  %vm4606_vm5 = vcmask 1048064   ;;  %vm4609_vm6 = vcmask 1044992   ;;  %vm11994_vm7 = vmmov 0  }
  0x10   : > { %11408 = vmatprep.subr.bf16.mxu0 %v11407_v3  ;;  %s11961_s13 = smul.u32 2208, %s15437_s22  ;;  %vm8337_vm8 = vcmask 517120   ;;  %vm9144_vm9 = vcmask 519168   ;;  %vm9163_vm10 = vcmask 1041920   ;;  %vm9533_vm11 = vcmask 130048   ;;  %s423_s16 = scalar_lea.vmem %s15408_s12, %s15437_s22 }
  0x11   : > { %11410 = vmatpush3.bf16.msra.mxu0 %v11407_v3 }
  0x12   : > { %11412 = vmatprep.subr.bf16.mxu0 %v11411_v5  ;;  %s12090_s18 = scalar_lea.vmem %s15397_s1, %s11961_s13 }
  0x13   : > { %v424_v7 = vld [vmem:[%s12090_s18] sm:$0xff]  ;;  %v425_v8 = vld [vmem:[%s12090_s18 + $0x8] sm:$0xff]  ;;  %v426_v9 = vld [vmem:[%s12090_s18 + $0x10] sm:$0xff] }
  0x14   : > { %10727 = vmatprep.mubr.msk.f32.mxu0 %vm705_vm0, %v424_v7  ;;  %v427_v10 = vld [vmem:[%s12090_s18 + $0x18] sm:$0xff]  ;;  %v428_v11 = vld [vmem:[%s12090_s18 + $0x20] sm:$0xff]  ;;  %v429_v12 = vld [vmem:[%s12090_s18 + $0x28] sm:$0xff] }
  0x15   : > { %11414 = vmatpush3.bf16.msra.mxu0 %v11411_v5  ;;  %v430_v13 = vld [vmem:[%s12090_s18 + $0x30] sm:$0xff]  ;;  %v431_v14 = vld [vmem:[%s12090_s18 + $0x38] sm:$0xff]  ;;  %v432_v15 = vld [vmem:[%s12090_s18 + $0x40] sm:$0xff] }
  0x16   : > { %10725 = vmatprep.subr.msk.mxu0 %vm1534_vm1, %v704_v6  ;;  %v433_v16 = vld [vmem:[%s12090_s18 + $0x48] sm:$0xff]  ;;  %v434_v17 = vld [vmem:[%s12090_s18 + $0x50] sm:$0xff]  ;;  %v435_v18 = vld [vmem:[%s12090_s18 + $0x58] sm:$0xff] }
  0x17   : > { %v436_v19 = vld [vmem:[%s12090_s18 + $0x60] sm:$0xff]  ;;  %v437_v20 = vld [vmem:[%s12090_s18 + $0x68] sm:$0xff]  ;;  %v438_v21 = vld [vmem:[%s12090_s18 + $0x70] sm:$0xff] }
  0x18   : > { %v439_v22 = vld [vmem:[%s12090_s18 + $0x78] sm:$0xff]  ;;  %v440_v23 = vld [vmem:[%s12090_s18 + $0x80] sm:$0xff]  ;;  %v441_v24 = vld [vmem:[%s12090_s18 + $0x88] sm:$0xff] }
  0x19   : > { %10726 = vmatpush3.msk.msra.mxu0 %vm1534_vm1, %v704_v6  ;;  %v442_v25 = vld [vmem:[%s12090_s18 + $0x90] sm:$0xff]  ;;  %v443_v26 = vld [vmem:[%s12090_s18 + $0x98] sm:$0xff]  ;;  %v444_v27 = vld [vmem:[%s12090_s18 + $0xa0] sm:$0xff]  ;;  %vm9724_vm1 = vcmask 65536  }
  0x1a   : > { %10728 = vmatmul.mubr.msk.f32.vlgmr.msra.gmra.mrb[0].mxu0 %vm705_vm0, %v425_v8  ;;  %v445_v28 = vld [vmem:[%s12090_s18 + $0xa8] sm:$0xff]  ;;  %v446_v29 = vld [vmem:[%s12090_s18 + $0xb0] sm:$0xff]  ;;  %v447_v30 = vld [vmem:[%s12090_s18 + $0xb8] sm:$0xff] }
  0x1b   : > { %10730 = vmatprep.mubr.msk.f32.mxu0 %vm705_vm0, %v426_v9  ;;  %v448_v31 = vld [vmem:[%s12090_s18 + $0xc0] sm:$0xff]  ;;  %v449_v32 = vld [vmem:[%s12090_s18 + $0xc8] sm:$0xff]  ;;  %v450_v33 = vld [vmem:[%s12090_s18 + $0xd0] sm:$0xff] }
  0x1c   : > { %v451_v34 = vld [vmem:[%s12090_s18 + $0xd8] sm:$0xff]  ;;  %v452_v35 = vld [vmem:[%s12090_s18 + $0xe0] sm:$0xff]  ;;  %v453_v36 = vld [vmem:[%s12090_s18 + $0xe8] sm:$0xff] }
  0x1d   : > { %v454_v37 = vld [vmem:[%s12090_s18 + $0xf0] sm:$0xff]  ;;  %v455_v38 = vld [vmem:[%s12090_s18 + $0xf8] sm:$0xff]  ;;  %v456_v39 = vld [vmem:[%s12090_s18 + $0x100] sm:$0xff] }
  0x1e   : > { %10731 = vmatmul.mubr.msk.f32.gmra.mrb[2].mxu0 %vm705_vm0, %v427_v10  ;;  %v457_v40 = vld [vmem:[%s12090_s18 + $0x108] sm:$0xff]  ;;  %v458_v41 = vld [vmem:[%s12090_s18 + $0x110] sm:$0xff]  ;;  %v459_v42 = vld [vmem:[%s12090_s18 + $0x118] sm:$0xff] }
  0x1f   : > { %10733 = vmatprep.mubr.msk.f32.mxu0 %vm705_vm0, %v428_v11  ;;  %v460_v43 = vld [vmem:[%s12090_s18 + $0x120] sm:$0xff]  ;;  %v461_v44 = vld [vmem:[%s12090_s18 + $0x128] sm:$0xff]  ;;  %v462_v45 = vld [vmem:[%s12090_s18 + $0x130] sm:$0xff] }
  0x20   : > { %v463_v46 = vld [vmem:[%s12090_s18 + $0x138] sm:$0xff]  ;;  %v464_v47 = vld [vmem:[%s12090_s18 + $0x140] sm:$0xff]  ;;  %v465_v48 = vld [vmem:[%s12090_s18 + $0x148] sm:$0xff] }
  0x21   : > { %v466_v49 = vld [vmem:[%s12090_s18 + $0x150] sm:$0xff]  ;;  %v467_v50 = vld [vmem:[%s12090_s18 + $0x158] sm:$0xff]  ;;  %v468_v51 = vld [vmem:[%s12090_s18 + $0x160] sm:$0xff] }
  0x22   : > { %10734 = vmatmul.mubr.msk.f32.gmra.mrb[4].mxu0 %vm705_vm0, %v429_v12  ;;  %v469_v52 = vld [vmem:[%s12090_s18 + $0x168] sm:$0xff]  ;;  %v470_v53 = vld [vmem:[%s12090_s18 + $0x170] sm:$0xff]  ;;  %v471_v54 = vld [vmem:[%s12090_s18 + $0x178] sm:$0xff] }
  0x23   : > { %10736 = vmatprep.mubr.msk.f32.mxu0 %vm705_vm0, %v430_v13  ;;  %v472_v55 = vld [vmem:[%s12090_s18 + $0x180] sm:$0xff]  ;;  %v473_v56 = vld [vmem:[%s12090_s18 + $0x188] sm:$0xff]  ;;  %v474_v57 = vld [vmem:[%s12090_s18 + $0x190] sm:$0xff] }
  0x24   : > { %v475_v58 = vld [vmem:[%s12090_s18 + $0x198] sm:$0xff]  ;;  %v476_v59 = vld [vmem:[%s12090_s18 + $0x1a0] sm:$0xff]  ;;  %v477_v60 = vld [vmem:[%s12090_s18 + $0x1a8] sm:$0xff] }
  0x25   : > { %v478_v61 = vld [vmem:[%s12090_s18 + $0x1b0] sm:$0xff]  ;;  %v479_v62 = vld [vmem:[%s12090_s18 + $0x1b8] sm:$0xff]  ;;  %v480_v63 = vld [vmem:[%s12090_s18 + $0x1c0] sm:$0xff] }
  0x26   : > { %10737 = vmatmul.mubr.msk.f32.gmra.mrb[6].mxu0 %vm705_vm0, %v431_v14  ;;  %v481_v0 = vld [vmem:[%s12090_s18 + $0x1c8] sm:$0xff]  ;;  %v482_v1 = vld [vmem:[%s12090_s18 + $0x1d0] sm:$0xff]  ;;  %v483_v2 = vld [vmem:[%s12090_s18 + $0x1d8] sm:$0xff] }
  0x27   : > { %10739 = vmatprep.mubr.msk.f32.mxu0 %vm705_vm0, %v432_v15  ;;  %v484_v3 = vld [vmem:[%s12090_s18 + $0x1e0] sm:$0xff]  ;;  %v485_v4 = vld [vmem:[%s12090_s18 + $0x1e8] sm:$0xff]  ;;  %v486_v5 = vld [vmem:[%s12090_s18 + $0x1f0] sm:$0xff] }
  0x28   : > { %v487_v6 = vld [vmem:[%s12090_s18 + $0x1f8] sm:$0xff]  ;;  %v488_v7 = vld [vmem:[%s12090_s18 + $0x200] sm:$0xff]  ;;  %v489_v8 = vld [vmem:[%s12090_s18 + $0x208] sm:$0xff] }
  0x29   : > { %v490_v9 = vld [vmem:[%s12090_s18 + $0x210] sm:$0xff]  ;;  %v491_v10 = vld [vmem:[%s12090_s18 + $0x218] sm:$0xff]  ;;  %v492_v11 = vld [vmem:[%s12090_s18 + $0x220] sm:$0xff] }
  0x2a   : > { %10740 = vmatmul.mubr.msk.f32.gmra.mrb[8].mxu0 %vm705_vm0, %v433_v16  ;;  %v493_v12 = vld [vmem:[%s12090_s18 + $0x228] sm:$0xff]  ;;  %v494_v13 = vld [vmem:[%s12090_s18 + $0x230] sm:$0xff]  ;;  %v495_v14 = vld [vmem:[%s12090_s18 + $0x238] sm:$0xff] }
  0x2b   : > { %10742 = vmatprep.mubr.msk.f32.mxu0 %vm705_vm0, %v434_v17  ;;  %v496_v15 = vld [vmem:[%s12090_s18 + $0x240] sm:$0xff]  ;;  %v497_v16 = vld [vmem:[%s12090_s18 + $0x248] sm:$0xff]  ;;  %v498_v17 = vld [vmem:[%s12090_s18 + $0x250] sm:$0xff] }
  0x2e   : > { %10743 = vmatmul.mubr.msk.f32.gmra.mrb[10].mxu0 %vm705_vm0, %v435_v18  ;;  %v499_v18 = vld [vmem:[%s12090_s18 + $0x258] sm:$0xff] }
  0x2f   : > { %10745 = vmatprep.mubr.msk.f32.mxu0 %vm705_vm0, %v436_v19  ;;  %v500_v19 = vld [vmem:[%s12090_s18 + $0x260] sm:$0xff] }
  0x32   : > { %10746 = vmatmul.mubr.msk.f32.gmra.mrb[12].mxu0 %vm705_vm0, %v437_v20  ;;  %v501_v20 = vld [vmem:[%s12090_s18 + $0x268] sm:$0xff] }
  0x33   : > { %10748 = vmatprep.mubr.msk.f32.mxu0 %vm705_vm0, %v438_v21  ;;  %v502_v21 = vld [vmem:[%s12090_s18 + $0x270] sm:$0xff] }
  0x36   : > { %10749 = vmatmul.mubr.msk.f32.gmra.mrb[14].mxu0 %vm705_vm0, %v439_v22  ;;  %v503_v22 = vld [vmem:[%s12090_s18 + $0x278] sm:$0xff] }
  0x37   : > { %10751 = vmatprep.mubr.msk.f32.mxu0 %vm705_vm0, %v440_v23  ;;  %v504_v23 = vld [vmem:[%s12090_s18 + $0x280] sm:$0xff] }
  0x3a   : > { %10752 = vmatmul.mubr.msk.f32.gmra.mrb[16].mxu0 %vm705_vm0, %v441_v24  ;;  %v505_v24 = vld [vmem:[%s12090_s18 + $0x288] sm:$0xff] }
  0x3b   : > { %10754 = vmatprep.mubr.msk.f32.mxu0 %vm705_vm0, %v442_v25  ;;  %v506_v25 = vld [vmem:[%s12090_s18 + $0x290] sm:$0xff] }
  0x3e   : > { %10755 = vmatmul.mubr.msk.f32.gmra.mrb[18].mxu0 %vm705_vm0, %v443_v26  ;;  %v507_v26 = vld [vmem:[%s12090_s18 + $0x298] sm:$0xff] }
  0x3f   : > { %10757 = vmatprep.mubr.msk.f32.mxu0 %vm705_vm0, %v444_v27  ;;  %v508_v27 = vld [vmem:[%s12090_s18 + $0x2a0] sm:$0xff] }
  0x42   : > { %10758 = vmatmul.mubr.msk.f32.gmra.mrb[20].mxu0 %vm705_vm0, %v445_v28  ;;  %v509_v28 = vld [vmem:[%s12090_s18 + $0x2a8] sm:$0xff] }
  0x43   : > { %10760 = vmatprep.mubr.msk.f32.mxu0 %vm705_vm0, %v446_v29  ;;  %v510_v29 = vld [vmem:[%s12090_s18 + $0x2b0] sm:$0xff] }
  0x46   : > { %10761 = vmatmul.mubr.msk.f32.gmra.mrb[22].mxu0 %vm705_vm0, %v447_v30  ;;  %v511_v30 = vld [vmem:[%s12090_s18 + $0x2b8] sm:$0xff] }
  0x47   : > { %10763 = vmatprep.mubr.msk.f32.mxu0 %vm705_vm0, %v448_v31  ;;  %v512_v31 = vld [vmem:[%s12090_s18 + $0x2c0] sm:$0xff] }
  0x4a   : > { %10764 = vmatmul.mubr.msk.f32.gmra.mrb[24].mxu0 %vm705_vm0, %v449_v32  ;;  %v513_v32 = vld [vmem:[%s12090_s18 + $0x2c8] sm:$0xff] }
  0x4b   : > { %10766 = vmatprep.mubr.msk.f32.mxu0 %vm705_vm0, %v450_v33  ;;  %v514_v33 = vld [vmem:[%s12090_s18 + $0x2d0] sm:$0xff] }
  0x4e   : > { %10767 = vmatmul.mubr.msk.f32.gmra.mrb[26].mxu0 %vm705_vm0, %v451_v34  ;;  %v515_v34 = vld [vmem:[%s12090_s18 + $0x2d8] sm:$0xff] }
  0x4f   : > { %10769 = vmatprep.mubr.msk.f32.mxu0 %vm705_vm0, %v452_v35  ;;  %v516_v35 = vld [vmem:[%s12090_s18 + $0x2e0] sm:$0xff] }
  0x52   : > { %10770 = vmatmul.mubr.msk.f32.gmra.mrb[28].mxu0 %vm705_vm0, %v453_v36  ;;  %v517_v36 = vld [vmem:[%s12090_s18 + $0x2e8] sm:$0xff] }
  0x53   : > { %10772 = vmatprep.mubr.msk.f32.mxu0 %vm705_vm0, %v454_v37  ;;  %v518_v37 = vld [vmem:[%s12090_s18 + $0x2f0] sm:$0xff] }
  0x56   : > { %10773 = vmatmul.mubr.msk.f32.gmra.mrb[30].mxu0 %vm705_vm0, %v455_v38  ;;  %v519_v38 = vld [vmem:[%s12090_s18 + $0x2f8] sm:$0xff] }
  0x57   : > { %10775 = vmatprep.mubr.msk.f32.mxu0 %vm705_vm0, %v456_v39  ;;  %v520_v39 = vld [vmem:[%s12090_s18 + $0x300] sm:$0xff] }
  0x5a   : > { %10776 = vmatmul.mubr.msk.f32.gmra.mrb[32].mxu0 %vm705_vm0, %v457_v40  ;;  %v521_v40 = vld [vmem:[%s12090_s18 + $0x308] sm:$0xff] }
  0x5b   : > { %10778 = vmatprep.mubr.msk.f32.mxu0 %vm705_vm0, %v458_v41  ;;  %v522_v41 = vld [vmem:[%s12090_s18 + $0x310] sm:$0xff] }
  0x5e   : > { %10779 = vmatmul.mubr.msk.f32.gmra.mrb[34].mxu0 %vm705_vm0, %v459_v42  ;;  %v523_v42 = vld [vmem:[%s12090_s18 + $0x318] sm:$0xff] }
  0x5f   : > { %10781 = vmatprep.mubr.msk.f32.mxu0 %vm705_vm0, %v460_v43  ;;  %v524_v43 = vld [vmem:[%s12090_s18 + $0x320] sm:$0xff] }
  0x62   : > { %10782 = vmatmul.mubr.msk.f32.gmra.mrb[36].mxu0 %vm705_vm0, %v461_v44  ;;  %v525_v44 = vld [vmem:[%s12090_s18 + $0x328] sm:$0xff] }
  0x63   : > { %10784 = vmatprep.mubr.msk.f32.mxu0 %vm705_vm0, %v462_v45  ;;  %v526_v45 = vld [vmem:[%s12090_s18 + $0x330] sm:$0xff] }
  0x66   : > { %10785 = vmatmul.mubr.msk.f32.gmra.mrb[38].mxu0 %vm705_vm0, %v463_v46  ;;  %v527_v46 = vld [vmem:[%s12090_s18 + $0x338] sm:$0xff] }
  0x67   : > { %10787 = vmatprep.mubr.msk.f32.mxu0 %vm705_vm0, %v464_v47  ;;  %v528_v47 = vld [vmem:[%s12090_s18 + $0x340] sm:$0xff] }
  0x6a   : > { %10788 = vmatmul.mubr.msk.f32.gmra.mrb[40].mxu0 %vm705_vm0, %v465_v48  ;;  %v529_v48 = vld [vmem:[%s12090_s18 + $0x348] sm:$0xff] }
  0x6b   : > { %10790 = vmatprep.mubr.msk.f32.mxu0 %vm705_vm0, %v466_v49  ;;  %v530_v49 = vld [vmem:[%s12090_s18 + $0x350] sm:$0xff] }
  0x6e   : > { %10791 = vmatmul.mubr.msk.f32.gmra.mrb[42].mxu0 %vm705_vm0, %v467_v50  ;;  %v531_v50 = vld [vmem:[%s12090_s18 + $0x358] sm:$0xff] }
  0x6f   : > { %10793 = vmatprep.mubr.msk.f32.mxu0 %vm705_vm0, %v468_v51  ;;  %v532_v51 = vld [vmem:[%s12090_s18 + $0x360] sm:$0xff] }
  0x72   : > { %10794 = vmatmul.mubr.msk.f32.gmra.mrb[44].mxu0 %vm705_vm0, %v469_v52 }
  0x73   : > { %10796 = vmatprep.mubr.msk.f32.mxu0 %vm705_vm0, %v470_v53 }
  0x76   : > { %10797 = vmatmul.mubr.msk.f32.gmra.mrb[46].mxu0 %vm705_vm0, %v471_v54  ;;  %v533_v54 = vld [vmem:[%s12090_s18 + $0x368] sm:$0xff] }
  0x77   : > { %10799 = vmatprep.mubr.msk.f32.mxu0 %vm705_vm0, %v472_v55  ;;  %v534_v55 = vld [vmem:[%s12090_s18 + $0x370] sm:$0xff] }
  0x7a   : > { %10800 = vmatmul.mubr.msk.f32.gmra.mrb[48].mxu0 %vm705_vm0, %v473_v56 }
  0x7b   : > { %10802 = vmatprep.mubr.msk.f32.mxu0 %vm705_vm0, %v474_v57 }
  0x7e   : > { %10803 = vmatmul.mubr.msk.f32.gmra.mrb[50].mxu0 %vm705_vm0, %v475_v58  ;;  %v535_v58 = vld [vmem:[%s12090_s18 + $0x378] sm:$0xff] }
  0x7f   : > { %10805 = vmatprep.mubr.msk.f32.mxu0 %vm705_vm0, %v476_v59  ;;  %v536_v59 = vld [vmem:[%s12090_s18 + $0x380] sm:$0xff] }
  0x82   : > { %10806 = vmatmul.mubr.msk.f32.gmra.mrb[52].mxu0 %vm705_vm0, %v477_v60 }
  0x83   : > { %10808 = vmatprep.mubr.msk.f32.mxu0 %vm705_vm0, %v478_v61 }
  0x86   : > { %10809 = vmatmul.mubr.msk.f32.gmra.mrb[54].mxu0 %vm705_vm0, %v479_v62  ;;  %v537_v62 = vld [vmem:[%s12090_s18 + $0x388] sm:$0xff] }
  0x87   : > { %10811 = vmatprep.mubr.msk.f32.mxu0 %vm705_vm0, %v480_v63  ;;  %v538_v63 = vld [vmem:[%s12090_s18 + $0x390] sm:$0xff] }
  0x8a   : > { %10812 = vmatmul.mubr.msk.f32.gmra.mrb[56].mxu0 %vm705_vm0, %v481_v0 }
  0x8b   : > { %10814 = vmatprep.mubr.msk.f32.mxu0 %vm705_vm0, %v482_v1 }
  0x8e   : > { %10815 = vmatmul.mubr.msk.f32.gmra.mrb[58].mxu0 %vm705_vm0, %v483_v2  ;;  %v539_v2 = vld [vmem:[%s12090_s18 + $0x398] sm:$0xff] }
  0x8f   : > { %10817 = vmatprep.mubr.msk.f32.mxu0 %vm705_vm0, %v484_v3  ;;  %v540_v3 = vld [vmem:[%s12090_s18 + $0x3a0] sm:$0xff] }
  0x92   : > { %10818 = vmatmul.mubr.msk.f32.gmra.mrb[60].mxu0 %vm705_vm0, %v485_v4 }
  0x93   : > { %10820 = vmatprep.mubr.msk.f32.mxu0 %vm705_vm0, %v486_v5 }
  0x96   : > { %10821 = vmatmul.mubr.msk.f32.gmra.mrb[62].mxu0 %vm705_vm0, %v487_v6  ;;  %v541_v6 = vld [vmem:[%s12090_s18 + $0x3a8] sm:$0xff] }
  0x97   : > { %10823 = vmatprep.mubr.msk.f32.mxu0 %vm705_vm0, %v488_v7 }
  0x9a   : > { %10824 = vmatmul.mubr.msk.f32.gmra.mrb[64].mxu0 %vm705_vm0, %v489_v8 }
  0x9b   : > { %10826 = vmatprep.mubr.msk.f32.mxu0 %vm705_vm0, %v490_v9  ;;  %v542_v9 = vld [vmem:[%s12090_s18 + $0x3b0] sm:$0xff] }
  0x9e   : > { %10827 = vmatmul.mubr.msk.f32.gmra.mrb[66].mxu0 %vm705_vm0, %v491_v10 }
  0x9f   : > { %10829 = vmatprep.mubr.msk.f32.mxu0 %vm705_vm0, %v492_v11 }
  0xa2   : > { %10830 = vmatmul.mubr.msk.f32.gmra.mrb[68].mxu0 %vm705_vm0, %v493_v12 }
  0xa3   : > { %10832 = vmatprep.mubr.msk.f32.mxu0 %vm705_vm0, %v494_v13 }
  0xa6   : > { %10833 = vmatmul.mubr.msk.f32.gmra.mrb[70].mxu0 %vm705_vm0, %v495_v14 }
  0xa7   : > { %10835 = vmatprep.mubr.msk.f32.mxu0 %vm705_vm0, %v496_v15 }
  0xaa   : > { %10836 = vmatmul.mubr.msk.f32.gmra.mrb[72].mxu0 %vm705_vm0, %v497_v16  ;;  %v543_v16 = vld [vmem:[%s12090_s18 + $0x3b8] sm:$0xff] }
  0xab   : > { %10838 = vmatprep.mubr.msk.f32.mxu0 %vm705_vm0, %v498_v17  ;;  %v544_v17 = vld [vmem:[%s12090_s18 + $0x3c0] sm:$0xff] }
  0xae   : > { %10839 = vmatmul.mubr.msk.f32.gmra.mrb[74].mxu0 %vm705_vm0, %v499_v18  ;;  %v12347_v18 = vld [vmem:[%s15399_s3] ss:$0 sm:$0xff] }
  0xaf   : > { %10841 = vmatprep.mubr.msk.f32.mxu0 %vm705_vm0, %v500_v19 }
  0xb2   : > { %10842 = vmatmul.mubr.msk.f32.gmra.mrb[76].mxu0 %vm705_vm0, %v501_v20 }
  0xb3   : > { %10844 = vmatprep.mubr.msk.f32.mxu0 %vm705_vm0, %v502_v21 }
  0xb6   : > { %10845 = vmatmul.mubr.msk.f32.gmra.mrb[78].mxu0 %vm705_vm0, %v503_v22 }
  0xb7   : > { %10847 = vmatprep.mubr.msk.f32.mxu0 %vm705_vm0, %v504_v23 }
  0xba   : > { %10848 = vmatmul.mubr.msk.f32.gmra.mrb[80].mxu0 %vm705_vm0, %v505_v24  ;;  %v545_v24 = vld [vmem:[%s12090_s18 + $0x3c8] sm:$0xff] }
  0xbb   : > { %10850 = vmatprep.mubr.msk.f32.mxu0 %vm705_vm0, %v506_v25 }
  0xbe   : > { %10851 = vmatmul.mubr.msk.f32.gmra.mrb[82].mxu0 %vm705_vm0, %v507_v26 }
  0xbf   : > { %10853 = vmatprep.mubr.msk.f32.mxu0 %vm705_vm0, %v508_v27  ;;  %v546_v27 = vld [vmem:[%s12090_s18 + $0x3d0] sm:$0xff] }
  0xc2   : > { %10854 = vmatmul.mubr.msk.f32.gmra.mrb[84].mxu0 %vm705_vm0, %v509_v28 }
  0xc3   : > { %10856 = vmatprep.mubr.msk.f32.mxu0 %vm705_vm0, %v510_v29 }
  0xc6   : > { %10857 = vmatmul.mubr.msk.f32.gmra.mrb[86].mxu0 %vm705_vm0, %v511_v30 }
  0xc7   : > { %10859 = vmatprep.mubr.msk.f32.mxu0 %vm705_vm0, %v512_v31 }
  0xca   : > { %10860 = vmatmul.mubr.msk.f32.gmra.mrb[88].mxu0 %vm705_vm0, %v513_v32 }
  0xcb   : > { %10862 = vmatprep.mubr.msk.f32.mxu0 %vm705_vm0, %v514_v33 }
  0xce   : > { %10863 = vmatmul.mubr.msk.f32.gmra.mrb[90].mxu0 %vm705_vm0, %v515_v34 }
  0xcf   : > { %10865 = vmatprep.mubr.msk.f32.mxu0 %vm705_vm0, %v516_v35 }
  0xd2   : > { %10866 = vmatmul.mubr.msk.f32.gmra.mrb[92].mxu0 %vm705_vm0, %v517_v36 }
  0xd3   : > { %10868 = vmatprep.mubr.msk.f32.mxu0 %vm705_vm0, %v518_v37 }
  0xd6   : > { %10869 = vmatmul.mubr.msk.f32.gmra.mrb[94].mxu0 %vm705_vm0, %v519_v38 }
  0xd7   : > { %10871 = vmatprep.mubr.msk.f32.mxu0 %vm705_vm0, %v520_v39 }
  0xda   : > { %10872 = vmatmul.mubr.msk.f32.gmra.mrb[96].mxu0 %vm705_vm0, %v521_v40  ;;  %v547_v40 = vld [vmem:[%s12090_s18 + $0x3d8] sm:$0xff] }
  0xdb   : > { %10874 = vmatprep.mubr.msk.f32.mxu0 %vm705_vm0, %v522_v41  ;;  %v548_v41 = vld [vmem:[%s12090_s18 + $0x3e0] sm:$0xff] }
  0xde   : > { %10875 = vmatmul.mubr.msk.f32.gmra.mrb[98].mxu0 %vm705_vm0, %v523_v42 }
  0xdf   : > { %10877 = vmatprep.mubr.msk.f32.mxu0 %vm705_vm0, %v524_v43 }
  0xe2   : > { %10878 = vmatmul.mubr.msk.f32.gmra.mrb[100].mxu0 %vm705_vm0, %v525_v44 }
  0xe3   : > { %10880 = vmatprep.mubr.msk.f32.mxu0 %vm705_vm0, %v526_v45 }
  0xe6   : > { %10881 = vmatmul.mubr.msk.f32.gmra.mrb[102].mxu0 %vm705_vm0, %v527_v46  ;;  %v549_v46 = vld [vmem:[%s12090_s18 + $0x3e8] sm:$0xff] }
  0xe7   : > { %10883 = vmatprep.mubr.msk.f32.mxu0 %vm705_vm0, %v528_v47 }
  0xea   : > { %10884 = vmatmul.mubr.msk.f32.gmra.mrb[104].mxu0 %vm705_vm0, %v529_v48  ;;  %v550_v48 = vld [vmem:[%s12090_s18 + $0x3f0] sm:$0xff] }
  0xeb   : > { %10886 = vmatprep.mubr.msk.f32.mxu0 %vm705_vm0, %v530_v49 }
  0xed   : > { %v10729_v52 = vpop.f32.mrb[0].mxu0 }
  0xee   : > { %2985 = vst.msk [vmem:[#allocation2 + $0x8] sm:$0xff] %vm2983_vm2, %v10729_v52  ;;  %v1604_v53 = vpop.f32.mrb[1].mxu0  ;;  %10887 = vmatmul.mubr.msk.f32.gmra.mrb[106].mxu0 %vm705_vm0, %v531_v50  ;;  %v551_v52 = vld [vmem:[%s12090_s18 + $0x3f8] sm:$0xff] }
  0xef   : > { %2984 = vst.msk [vmem:[#allocation2] sm:$0xff] %vm2983_vm2, %v1604_v53  ;;  %10889 = vmatprep.mubr.msk.f32.mxu0 %vm705_vm0, %v532_v51  ;;  %v552_v53 = vld [vmem:[%s12090_s18 + $0x400] sm:$0xff] }
  0xf1   : > { %v10732_v56 = vpop.f32.mrb[2].mxu0 }
  0xf2   : > { %2987 = vst.msk [vmem:[#allocation2 + $0x18] sm:$0xff] %vm2983_vm2, %v10732_v56  ;;  %v1614_v57 = vpop.f32.mrb[3].mxu0  ;;  %10890 = vmatmul.mubr.msk.f32.gmra.mrb[108].mxu0 %vm705_vm0, %v533_v54 }
  0xf3   : > { %2986 = vst.msk [vmem:[#allocation2 + $0x10] sm:$0xff] %vm2983_vm2, %v1614_v57  ;;  %10892 = vmatprep.mubr.msk.f32.mxu0 %vm705_vm0, %v534_v55  ;;  %v553_v57 = vld [vmem:[%s12090_s18 + $0x408] sm:$0xff] }
  0xf5   : > { %v10735_v60 = vpop.f32.mrb[4].mxu0 }
  0xf6   : > { %2989 = vst.msk [vmem:[#allocation2 + $0x28] sm:$0xff] %vm2983_vm2, %v10735_v60  ;;  %v1624_v61 = vpop.f32.mrb[5].mxu0  ;;  %10893 = vmatmul.mubr.msk.f32.gmra.mrb[110].mxu0 %vm705_vm0, %v535_v58  ;;  %v3260_v7 = vld [vmem:[#allocation2] ss:$2 sm:$0xff]  ;;  %v3536_v8 = vld [vmem:[#allocation2 + $0x1] ss:$2 sm:$0xff] }
  0xf7   : > { %2988 = vst.msk [vmem:[#allocation2 + $0x20] sm:$0xff] %vm2983_vm2, %v1624_v61  ;;  %10895 = vmatprep.mubr.msk.f32.mxu0 %vm705_vm0, %v536_v59  ;;  %v3811_v14 = vmax.f32 %v3260_v7, %v3536_v8  ;;  %v554_v58 = vld [vmem:[%s12090_s18 + $0x410] sm:$0xff]  ;;  %v555_v7 = vld [vmem:[%s12090_s18 + $0x418] sm:$0xff]  ;;  %v556_v8 = vld [vmem:[%s12090_s18 + $0x420] sm:$0xff] }
  0xf9   : > { %v10738_v0 = vpop.f32.mrb[6].mxu0 }
  0xfa   : > { %2991 = vst.msk [vmem:[#allocation2 + $0x38] sm:$0xff] %vm2983_vm2, %v10738_v0  ;;  %v1634_v1 = vpop.f32.mrb[7].mxu0  ;;  %10896 = vmatmul.mubr.msk.f32.gmra.mrb[112].mxu0 %vm705_vm0, %v537_v62  ;;  %v3262_v19 = vld [vmem:[#allocation2 + $0x10] ss:$2 sm:$0xff]  ;;  %v3538_v20 = vld [vmem:[#allocation2 + $0x11] ss:$2 sm:$0xff] }
  0xfb   : > { %2990 = vst.msk [vmem:[#allocation2 + $0x30] sm:$0xff] %vm2983_vm2, %v1634_v1  ;;  %10898 = vmatprep.mubr.msk.f32.mxu0 %vm705_vm0, %v538_v63  ;;  %v3812_v29 = vmax.f32 %v3262_v19, %v3538_v20 }
  0xfd   : > { %v10741_v4 = vpop.f32.mrb[8].mxu0 }
  0xfe   : > { %2993 = vst.msk [vmem:[#allocation2 + $0x48] sm:$0xff] %vm2983_vm2, %v10741_v4  ;;  %10899 = vmatmul.mubr.msk.f32.gmra.mrb[114].mxu0 %vm705_vm0, %v539_v2  ;;  %v1644_v5 = vpop.f32.mrb[9].mxu0  ;;  %v3264_v30 = vld [vmem:[#allocation2 + $0x20] ss:$2 sm:$0x7f] }
  0xff   : > { %10901 = vmatprep.mubr.msk.f32.mxu0 %vm705_vm0, %v540_v3  ;;  %2992 = vst.msk [vmem:[#allocation2 + $0x40] sm:$0xff] %vm2983_vm2, %v1644_v5  ;;  %v3540_v31 = vld [vmem:[#allocation2 + $0x21] ss:$2 sm:$0x7f] }
 0x100   : > { %v3813_v37 = vmax.f32 %v3264_v30, %v3540_v31  ;;  %v559_v31 = vld [vmem:[%s12090_s18 + $0x438] sm:$0xff] }
 0x101   : > { %v10744_v10 = vpop.f32.mrb[10].mxu0 }
 0x102   : > { %v3266_v11 = vld [vmem:[#allocation2 + $0x30] ss:$2 sm:$0xff]  ;;  %v3542_v12 = vld [vmem:[#allocation2 + $0x31] ss:$2 sm:$0xff]  ;;  %2995 = vst.msk [vmem:[#allocation2 + $0x58] sm:$0xff] %vm2983_vm2, %v10744_v10  ;;  %v1654_v13 = vpop.f32.mrb[11].mxu0  ;;  %10902 = vmatmul.mubr.msk.f32.gmra.mrb[116].mxu0 %vm705_vm0, %v541_v6 }
 0x103   : > { %v3814_v15 = vmax.f32 %v3266_v11, %v3542_v12  ;;  %2994 = vst.msk [vmem:[#allocation2 + $0x50] sm:$0xff] %vm2983_vm2, %v1654_v13  ;;  %10904 = vmatprep.mubr.msk.f32.mxu0 %vm705_vm0, %v542_v9 }
 0x105   : > { %v3949_v21 = vmax.f32 %v3811_v14, %v3814_v15  ;;  %v10747_v22 = vpop.f32.mrb[12].mxu0  ;;  %v557_v14 = vld [vmem:[%s12090_s18 + $0x428] sm:$0xff] }
 0x106   : > { %2997 = vst.msk [vmem:[#allocation2 + $0x68] sm:$0xff] %vm2983_vm2, %v10747_v22  ;;  %v1664_v23 = vpop.f32.mrb[13].mxu0  ;;  %10905 = vmatmul.mubr.msk.f32.gmra.mrb[118].mxu0 %vm705_vm0, %v543_v16  ;;  %v3268_v25 = vld [vmem:[#allocation2 + $0x40] ss:$2 sm:$0xff]  ;;  %v3544_v26 = vld [vmem:[#allocation2 + $0x41] ss:$2 sm:$0xff] }
 0x107   : > { %2996 = vst.msk [vmem:[#allocation2 + $0x60] sm:$0xff] %vm2983_vm2, %v1664_v23  ;;  %10907 = vmatprep.mubr.msk.f32.mxu0 %vm705_vm0, %v544_v17  ;;  %v4025_v28 = vadd.f32 %v12347_v18, %v3949_v21  ;;  %v3815_v32 = vmax.f32 %v3268_v25, %v3544_v26  ;;  %v558_v17 = vld [vmem:[%s12090_s18 + $0x430] sm:$0xff] }
 0x109   : > { %v10750_v33 = vpop.f32.mrb[14].mxu0  ;;  %4094 = vst.msk [vmem:[#allocation3] sm:$0xff] %vm2983_vm2, %v4025_v28  ;;  %v3950_v34 = vmax.f32 %v3812_v29, %v3815_v32  ;;  %v560_v32 = vld [vmem:[%s12090_s18 + $0x440] sm:$0xff] }
 0x10a   : > { %v3270_v35 = vld [vmem:[#allocation2 + $0x50] ss:$2 sm:$0x7f]  ;;  %v3546_v36 = vld [vmem:[#allocation2 + $0x51] ss:$2 sm:$0x7f]  ;;  %10908 = vmatmul.mubr.msk.f32.gmra.mrb[120].mxu0 %vm705_vm0, %v545_v24 }
 0x10b   : > { %2999 = vst.msk [vmem:[#allocation2 + $0x78] sm:$0xff] %vm2983_vm2, %v10750_v33  ;;  %v3816_v38 = vmax.f32 %v3270_v35, %v3546_v36  ;;  %v1674_v39 = vpop.f32.mrb[15].mxu0  ;;  %10910 = vmatprep.mubr.msk.f32.mxu0 %vm705_vm0, %v546_v27  ;;  %v4026_v42 = vadd.f32 %v12347_v18, %v3950_v34 }
 0x10c   : > { %2998 = vst.msk [vmem:[#allocation2 + $0x70] sm:$0xff] %vm2983_vm2, %v1674_v39  ;;  %v562_v39 = vld [vmem:[%s12090_s18 + $0x450] sm:$0xff] }
 0x10d   : > { %v3951_v43 = vmax.f32 %v3813_v37, %v3816_v38  ;;  %v10753_v44 = vpop.f32.mrb[16].mxu0  ;;  %4095 = vst.msk [vmem:[#allocation3 + $0x8] sm:$0xff] %vm2983_vm2, %v4026_v42  ;;  %v561_v37 = vld [vmem:[%s12090_s18 + $0x448] sm:$0xff] }
 0x10e   : > { %3001 = vst.msk [vmem:[#allocation2 + $0x88] sm:$0xff] %vm2983_vm2, %v10753_v44  ;;  %v1684_v45 = vpop.f32.mrb[17].mxu0  ;;  %10911 = vmatmul.mubr.msk.f32.gmra.mrb[122].mxu0 %vm705_vm0, %v547_v40  ;;  %v3272_v60 = vld [vmem:[#allocation2 + $0x60] ss:$2 sm:$0xff]  ;;  %v3548_v61 = vld [vmem:[#allocation2 + $0x61] ss:$2 sm:$0xff] }
 0x10f   : > { %3000 = vst.msk [vmem:[#allocation2 + $0x80] sm:$0xff] %vm2983_vm2, %v1684_v45  ;;  %10913 = vmatprep.mubr.msk.f32.mxu0 %vm705_vm0, %v548_v41  ;;  %v4027_v47 = vadd.f32 %v12347_v18, %v3951_v43  ;;  %v3817_v5 = vmax.f32 %v3272_v60, %v3548_v61  ;;  %v563_v43 = vld [vmem:[%s12090_s18 + $0x458] sm:$0xff]  ;;  %v564_v44 = vld [vmem:[%s12090_s18 + $0x460] sm:$0xff] }
 0x110   : > { %v4164_v49 = vld [vmem:[#allocation3] sm:$0xff]  ;;  %v567_v61 = vld [vmem:[%s12090_s18 + $0x478] sm:$0xff] }
 0x111   : > { %v10756_v50 = vpop.f32.mrb[18].mxu0  ;;  %4097 = vst.msk [vmem:[#allocation3 + $0x10] sm:$0x7f] %vm4096_vm3, %v4027_v47 }
 0x112   : > { %4227 = vst.msk [vmem:[#allocation4] sm:$0xff] %vm2983_vm2, %v4164_v49  ;;  %3003 = vst.msk [vmem:[#allocation2 + $0x98] sm:$0xff] %vm2983_vm2, %v10756_v50  ;;  %v1694_v51 = vpop.f32.mrb[19].mxu0  ;;  %10914 = vmatmul.mubr.msk.f32.gmra.mrb[124].mxu0 %vm705_vm0, %v549_v46  ;;  %v566_v49 = vld [vmem:[%s12090_s18 + $0x470] sm:$0xff] }
 0x113   : > { %3002 = vst.msk [vmem:[#allocation2 + $0x90] sm:$0xff] %vm2983_vm2, %v1694_v51  ;;  %10916 = vmatprep.mubr.msk.f32.mxu0 %vm705_vm0, %v550_v48  ;;  %v3274_v9 = vld [vmem:[#allocation2 + $0x70] ss:$2 sm:$0xff]  ;;  %v3550_v10 = vld [vmem:[#allocation2 + $0x71] ss:$2 sm:$0xff]  ;;  %v565_v48 = vld [vmem:[%s12090_s18 + $0x468] sm:$0xff] }
 0x114   : > { %v4165_v55 = vld [vmem:[#allocation3 + $0x8] sm:$0xff]  ;;  %v3818_v20 = vmax.f32 %v3274_v9, %v3550_v10 }
 0x115   : > { %v10759_v54 = vpop.f32.mrb[20].mxu0  ;;  %4228 = vst.msk [vmem:[#allocation4 + $0x28] sm:$0xff] %vm2983_vm2, %v4165_v55  ;;  %v4671_v59 = vld [vmem:[#allocation3 + $0x2] sm:$0xff] }
 0x116   : > { %3005 = vst.msk [vmem:[#allocation2 + $0xa8] sm:$0xff] %vm2983_vm2, %v10759_v54  ;;  %10917 = vmatmul.mubr.msk.f32.gmra.mrb[126].mxu0 %vm705_vm0, %v551_v52  ;;  %v1704_v56 = vpop.f32.mrb[21].mxu0  ;;  %4734 = vst.msk [vmem:[#allocation4 + $0x8] sm:$0xff] %vm2983_vm2, %v4671_v59  ;;  %v3276_v21 = vld [vmem:[#allocation2 + $0x80] ss:$2 sm:$0x7f] }
 0x117   : > { %10919 = vmatprep.mubr.msk.f32.mxu0 %vm705_vm0, %v552_v53  ;;  %3004 = vst.msk [vmem:[#allocation2 + $0xa0] sm:$0xff] %vm2983_vm2, %v1704_v56  ;;  %v3552_v22 = vld [vmem:[#allocation2 + $0x81] ss:$2 sm:$0x7f] }
 0x118   : > { %v4166_v62 = vld [vmem:[#allocation3 + $0x10] sm:$0x1f]  ;;  %v3819_v28 = vmax.f32 %v3276_v21, %v3552_v22 }
 0x119   : > { %v10762_v63 = vpop.f32.mrb[22].mxu0  ;;  %4230 = vst.msk [vmem:[#allocation4 + $0x50] sm:$0x1f] %vm4229_vm4, %v4166_v62  ;;  %v4672_v0 = vld [vmem:[#allocation3 + $0xa] sm:$0xff]  ;;  %v4673_v1 = vld [vmem:[#allocation3 + $0x12] sm:$0x1f] }
 0x11a   : > { %v3278_v2 = vld [vmem:[#allocation2 + $0x90] ss:$2 sm:$0xff]  ;;  %v3554_v3 = vld [vmem:[#allocation2 + $0x91] ss:$2 sm:$0xff]  ;;  %3007 = vst.msk [vmem:[#allocation2 + $0xb8] sm:$0xff] %vm2983_vm2, %v10762_v63  ;;  %v1714_v4 = vpop.f32.mrb[23].mxu0  ;;  %10920 = vmatmul.mubr.msk.f32.gmra.mrb[128].mxu0 %vm705_vm0, %v553_v57 }
 0x11b   : > { %4735 = vst.msk [vmem:[#allocation4 + $0x30] sm:$0xff] %vm2983_vm2, %v4672_v0  ;;  %v3820_v6 = vmax.f32 %v3278_v2, %v3554_v3  ;;  %3006 = vst.msk [vmem:[#allocation2 + $0xb0] sm:$0xff] %vm2983_vm2, %v1714_v4  ;;  %10922 = vmatprep.mubr.msk.f32.mxu0 %vm705_vm0, %v554_v58  ;;  %v568_v62 = vld [vmem:[%s12090_s18 + $0x480] sm:$0xff] }
 0x11c   : > { %4736 = vst.msk [vmem:[#allocation4 + $0x58] sm:$0x1f] %vm4229_vm4, %v4673_v1 }
 0x11d   : > { %v3952_v11 = vmax.f32 %v3817_v5, %v3820_v6  ;;  %v10765_v12 = vpop.f32.mrb[24].mxu0 }
 0x11e   : > { %3009 = vst.msk [vmem:[#allocation2 + $0xc8] sm:$0xff] %vm2983_vm2, %v10765_v12  ;;  %v1724_v13 = vpop.f32.mrb[25].mxu0  ;;  %10923 = vmatmul.mubr.msk.f32.gmra.mrb[130].mxu0 %vm705_vm0, %v555_v7  ;;  %v3280_v15 = vld [vmem:[#allocation2 + $0xa0] ss:$2 sm:$0xff]  ;;  %v3556_v16 = vld [vmem:[#allocation2 + $0xa1] ss:$2 sm:$0xff] }
 0x11f   : > { %3008 = vst.msk [vmem:[#allocation2 + $0xc0] sm:$0xff] %vm2983_vm2, %v1724_v13  ;;  %10925 = vmatprep.mubr.msk.f32.mxu0 %vm705_vm0, %v556_v8  ;;  %v4028_v19 = vadd.f32 %v12347_v18, %v3952_v11  ;;  %v3821_v23 = vmax.f32 %v3280_v15, %v3556_v16  ;;  %v569_v8 = vld [vmem:[%s12090_s18 + $0x488] sm:$0xff]  ;;  %v570_v11 = vld [vmem:[%s12090_s18 + $0x490] sm:$0xff] }
 0x121   : > { %v10768_v24 = vpop.f32.mrb[26].mxu0  ;;  %4098 = vst.msk [vmem:[#allocation3 + $0x18] sm:$0xff] %vm2983_vm2, %v4028_v19  ;;  %v3953_v25 = vmax.f32 %v3818_v20, %v3821_v23 }
 0x122   : > { %v3282_v26 = vld [vmem:[#allocation2 + $0xb0] ss:$2 sm:$0x7f]  ;;  %v3558_v27 = vld [vmem:[#allocation2 + $0xb1] ss:$2 sm:$0x7f]  ;;  %10926 = vmatmul.mubr.msk.f32.gmra.mrb[132].mxu0 %vm705_vm0, %v557_v14 }
 0x123   : > { %3011 = vst.msk [vmem:[#allocation2 + $0xd8] sm:$0xff] %vm2983_vm2, %v10768_v24  ;;  %v3822_v29 = vmax.f32 %v3282_v26, %v3558_v27  ;;  %v1734_v30 = vpop.f32.mrb[27].mxu0  ;;  %10928 = vmatprep.mubr.msk.f32.mxu0 %vm705_vm0, %v558_v17  ;;  %v4029_v33 = vadd.f32 %v12347_v18, %v3953_v25  ;;  %v571_v25 = vld [vmem:[%s12090_s18 + $0x498] sm:$0xff]  ;;  %v572_v26 = vld [vmem:[%s12090_s18 + $0x4a0] sm:$0xff] }
 0x124   : > { %3010 = vst.msk [vmem:[#allocation2 + $0xd0] sm:$0xff] %vm2983_vm2, %v1734_v30 }
 0x125   : > { %v3954_v34 = vmax.f32 %v3819_v28, %v3822_v29  ;;  %v10771_v35 = vpop.f32.mrb[28].mxu0  ;;  %4099 = vst.msk [vmem:[#allocation3 + $0x20] sm:$0xff] %vm2983_vm2, %v4029_v33  ;;  %v574_v33 = vld [vmem:[%s12090_s18 + $0x4b0] sm:$0xff] }
 0x126   : > { %3013 = vst.msk [vmem:[#allocation2 + $0xe8] sm:$0xff] %vm2983_vm2, %v10771_v35  ;;  %v1744_v36 = vpop.f32.mrb[29].mxu0  ;;  %10929 = vmatmul.mubr.msk.f32.gmra.mrb[134].mxu0 %vm705_vm0, %v559_v31  ;;  %v3284_v51 = vld [vmem:[#allocation2 + $0xc0] ss:$2 sm:$0xff]  ;;  %v3560_v52 = vld [vmem:[#allocation2 + $0xc1] ss:$2 sm:$0xff] }
 0x127   : > { %3012 = vst.msk [vmem:[#allocation2 + $0xe0] sm:$0xff] %vm2983_vm2, %v1744_v36  ;;  %10931 = vmatprep.mubr.msk.f32.mxu0 %vm705_vm0, %v560_v32  ;;  %v4030_v38 = vadd.f32 %v12347_v18, %v3954_v34  ;;  %v3823_v59 = vmax.f32 %v3284_v51, %v3560_v52  ;;  %v573_v31 = vld [vmem:[%s12090_s18 + $0x4a8] sm:$0xff] }
 0x128   : > { %v12420_v40 = vld [vmem:[#allocation3 + $0x18] sm:$0xff] }
 0x129   : > { %15419 = vst [vmem:[#allocation12_spill] sm:$0xff] %v12420_v40  ;;  %v10774_v41 = vpop.f32.mrb[30].mxu0  ;;  %4100 = vst.msk [vmem:[#allocation3 + $0x28] sm:$0x7f] %vm4096_vm3, %v4030_v38  ;;  %v575_v38 = vld [vmem:[%s12090_s18 + $0x4b8] sm:$0xff] }
 0x12a   : > { %4231 = vst.msk [vmem:[#allocation4 + $0x78] sm:$0xff] %vm2983_vm2, %v12420_v40  ;;  %3015 = vst.msk [vmem:[#allocation2 + $0xf8] sm:$0xff] %vm2983_vm2, %v10774_v41  ;;  %v1754_v42 = vpop.f32.mrb[31].mxu0  ;;  %10932 = vmatmul.mubr.msk.f32.gmra.mrb[136].mxu0 %vm705_vm0, %v561_v37 }
 0x12b   : > { %3014 = vst.msk [vmem:[#allocation2 + $0xf0] sm:$0xff] %vm2983_vm2, %v1754_v42  ;;  %10934 = vmatprep.mubr.msk.f32.mxu0 %vm705_vm0, %v562_v39  ;;  %v3286_v3 = vld [vmem:[#allocation2 + $0xd0] ss:$2 sm:$0xff]  ;;  %v3562_v4 = vld [vmem:[#allocation2 + $0xd1] ss:$2 sm:$0xff]  ;;  %v576_v39 = vld [vmem:[%s12090_s18 + $0x4c0] sm:$0xff] }
 0x12c   : > { %v5176_v46 = vld [vmem:[#allocation3 + $0x19] sm:$0xff]  ;;  %v3824_v13 = vmax.f32 %v3286_v3, %v3562_v4 }
 0x12d   : > { %v10777_v45 = vpop.f32.mrb[32].mxu0  ;;  %5239 = vst.msk [vmem:[#allocation4 + $0x10] sm:$0xff] %vm2983_vm2, %v5176_v46  ;;  %v12437_v50 = vld [vmem:[#allocation3 + $0x20] sm:$0xff] }
 0x12e   : > { %3017 = vst.msk [vmem:[#allocation2 + $0x108] sm:$0xff] %vm2983_vm2, %v10777_v45  ;;  %10935 = vmatmul.mubr.msk.f32.gmra.mrb[138].mxu0 %vm705_vm0, %v563_v43  ;;  %v1764_v47 = vpop.f32.mrb[33].mxu0  ;;  %15420 = vst [vmem:[#allocation13_spill] sm:$0xff] %v12437_v50  ;;  %v4674_v0 = vld [vmem:[#allocation3 + $0x1a] sm:$0xff]  ;;  %v577_v43 = vld [vmem:[%s12090_s18 + $0x4c8] sm:$0xff] }
 0x12f   : > { %10937 = vmatprep.mubr.msk.f32.mxu0 %vm705_vm0, %v564_v44  ;;  %3016 = vst.msk [vmem:[#allocation2 + $0x100] sm:$0xff] %vm2983_vm2, %v1764_v47  ;;  %4232 = vst.msk [vmem:[#allocation4 + $0xa0] sm:$0xff] %vm2983_vm2, %v12437_v50  ;;  %v3288_v14 = vld [vmem:[#allocation2 + $0xe0] ss:$2 sm:$0x7f]  ;;  %v578_v45 = vld [vmem:[%s12090_s18 + $0x4d0] sm:$0xff] }
 0x130   : > { %v5177_v53 = vld [vmem:[#allocation3 + $0x21] sm:$0xff]  ;;  %v5178_v55 = vld [vmem:[#allocation3 + $0x29] sm:$0x1f]  ;;  %4737 = vst.msk [vmem:[#allocation4 + $0x80] sm:$0xff] %vm2983_vm2, %v4674_v0 }
 0x131   : > { %v10780_v54 = vpop.f32.mrb[34].mxu0  ;;  %5240 = vst.msk [vmem:[#allocation4 + $0x38] sm:$0xff] %vm2983_vm2, %v5177_v53  ;;  %v4169_v63 = vld [vmem:[#allocation3 + $0x28] sm:$0x1f]  ;;  %v6626_v46 = vld [vmem:[%s15400_s4] sm:$0xff] }
 0x132   : > { %v3290_v56 = vld [vmem:[#allocation2 + $0xf0] ss:$2 sm:$0xff]  ;;  %v3566_v57 = vld [vmem:[#allocation2 + $0xf1] ss:$2 sm:$0xff]  ;;  %3019 = vst.msk [vmem:[#allocation2 + $0x118] sm:$0xff] %vm2983_vm2, %v10780_v54  ;;  %v1774_v58 = vpop.f32.mrb[35].mxu0  ;;  %10938 = vmatmul.mubr.msk.f32.gmra.mrb[140].mxu0 %vm705_vm0, %v565_v48 }
 0x133   : > { %5241 = vst.msk [vmem:[#allocation4 + $0x60] sm:$0x1f] %vm4229_vm4, %v5178_v55  ;;  %v3826_v60 = vmax.f32 %v3290_v56, %v3566_v57  ;;  %10940 = vmatprep.mubr.msk.f32.mxu0 %vm705_vm0, %v566_v49  ;;  %4233 = vst.msk [vmem:[#allocation4 + $0xc8] sm:$0x1f] %vm4229_vm4, %v4169_v63  ;;  %v4675_v1 = vld [vmem:[#allocation3 + $0x22] sm:$0xff]  ;;  %v15409_v54 = vmov 0.0|0.0  }
 0x134   : > { %3018 = vst.msk [vmem:[#allocation2 + $0x110] sm:$0xff] %vm2983_vm2, %v1774_v58  ;;  %v4676_v2 = vld [vmem:[#allocation3 + $0x2a] sm:$0x1f]  ;;  %4738 = vst.msk [vmem:[#allocation4 + $0xa8] sm:$0xff] %vm2983_vm2, %v4675_v1  ;;  %11689 = vmatprep.subr.bf16.mxu1 %v15409_v54  ;;  %11415 = vmatprep.subr.bf16.mxu0 %v15409_v54  ;;  %v6629_v63 = vld [vmem:[%s15400_s4 + $0x18] sm:$0xff] }
 0x135   : > { %v3955_v5 = vmax.f32 %v3823_v59, %v3826_v60  ;;  %v10783_v6 = vpop.f32.mrb[36].mxu0  ;;  %4739 = vst.msk [vmem:[#allocation4 + $0xd0] sm:$0x1f] %vm4229_vm4, %v4676_v2  ;;  %v3564_v15 = vld [vmem:[#allocation2 + $0xe1] ss:$2 sm:$0x7f] }
 0x136   : > { %3021 = vst.msk [vmem:[#allocation2 + $0x128] sm:$0xff] %vm2983_vm2, %v10783_v6  ;;  %v1784_v7 = vpop.f32.mrb[37].mxu0  ;;  %10941 = vmatmul.mubr.msk.f32.gmra.mrb[142].mxu0 %vm705_vm0, %v567_v61  ;;  %v3292_v9 = vld [vmem:[#allocation2 + $0x100] ss:$2 sm:$0xff]  ;;  %v3568_v10 = vld [vmem:[#allocation2 + $0x101] ss:$2 sm:$0xff]  ;;  %v3825_v22 = vmax.f32 %v3288_v14, %v3564_v15 }
 0x137   : > { %3020 = vst.msk [vmem:[#allocation2 + $0x120] sm:$0xff] %vm2983_vm2, %v1784_v7  ;;  %10943 = vmatprep.mubr.msk.f32.mxu0 %vm705_vm0, %v568_v62  ;;  %v4031_v12 = vadd.f32 %v12347_v18, %v3955_v5  ;;  %v3827_v16 = vmax.f32 %v3292_v9, %v3568_v10  ;;  %v6627_v47 = vld [vmem:[%s15400_s4 + $0x8] sm:$0xff]  ;;  %v579_v59 = vld [vmem:[%s12090_s18 + $0x4d8] sm:$0xff]  ;;  %v6628_v62 = vld [vmem:[%s15400_s4 + $0x10] sm:$0xff] }
 0x138   : > { %v11416_v51 = vpack.c.bf16 %v6627_v47, %v6626_v46  ;;  %v580_v1 = vld [vmem:[%s12090_s18 + $0x4e0] sm:$0xff]  ;;  %v11419_v2 = vpack.c.bf16 %v6629_v63, %v6628_v62  ;;  %v585_v47 = vld [vmem:[%s12090_s18 + $0x508] sm:$0xff]  ;;  %v6637_v63 = vld [vmem:[%s15400_s4 + $0x58] sm:$0xff] }
 0x139   : > { %v10786_v17 = vpop.f32.mrb[38].mxu0  ;;  %4101 = vst.msk [vmem:[#allocation3 + $0x30] sm:$0xff] %vm2983_vm2, %v4031_v12  ;;  %v3956_v19 = vmax.f32 %v3824_v13, %v3827_v16  ;;  %v582_v13 = vld [vmem:[%s12090_s18 + $0x4f0] sm:$0xff]  ;;  %v588_v62 = vld [vmem:[%s12090_s18 + $0x520] sm:$0xff] }
 0x13a   : > { %3023 = vst.msk [vmem:[#allocation2 + $0x138] sm:$0xff] %vm2983_vm2, %v10786_v17  ;;  %10944 = vmatmul.mubr.msk.f32.gmra.mrb[144].mxu0 %vm705_vm0, %v569_v8  ;;  %v1794_v24 = vpop.f32.mrb[39].mxu0  ;;  %11705 = vmatpush1.bf16.msra.mxu1 %v11416_v51  ;;  %v581_v8 = vld [vmem:[%s12090_s18 + $0x4e8] sm:$0xff]  ;;  %v6630_v17 = vld [vmem:[%s15400_s4 + $0x20] sm:$0xff] }
 0x13b   : > { %v3294_v20 = vld [vmem:[#allocation2 + $0x110] ss:$2 sm:$0x7f]  ;;  %v3570_v21 = vld [vmem:[#allocation2 + $0x111] ss:$2 sm:$0x7f]  ;;  %10946 = vmatprep.mubr.msk.f32.mxu0 %vm705_vm0, %v570_v11  ;;  %v4032_v27 = vadd.f32 %v12347_v18, %v3956_v19  ;;  %11690 = vmatprep.subr.bf16.mxu1 %v15409_v54 }
 0x13c   : > { %v3828_v23 = vmax.f32 %v3294_v20, %v3570_v21  ;;  %3022 = vst.msk [vmem:[#allocation2 + $0x130] sm:$0xff] %vm2983_vm2, %v1794_v24  ;;  %11417 = vmatpush1.bf16.msra.mxu0 %v11416_v51 }
 0x13d   : > { %v10789_v29 = vpop.f32.mrb[40].mxu0  ;;  %4102 = vst.msk [vmem:[#allocation3 + $0x38] sm:$0xff] %vm2983_vm2, %v4032_v27  ;;  %11418 = vmatprep.subr.bf16.mxu0 %v15409_v54 }
 0x13e   : > { %v3957_v28 = vmax.f32 %v3825_v22, %v3828_v23  ;;  %3025 = vst.msk [vmem:[#allocation2 + $0x148] sm:$0xff] %vm2983_vm2, %v10789_v29  ;;  %v1804_v30 = vpop.f32.mrb[41].mxu0  ;;  %10947 = vmatmul.mubr.msk.f32.gmra.mrb[146].mxu0 %vm705_vm0, %v571_v25  ;;  %v3296_v48 = vld [vmem:[#allocation2 + $0x120] ss:$2 sm:$0xff]  ;;  %v3572_v49 = vld [vmem:[#allocation2 + $0x121] ss:$2 sm:$0xff]  ;;  %11706 = vmatpush1.bf16.msra.mxu1 %v11419_v2 }
 0x13f   : > { %3024 = vst.msk [vmem:[#allocation2 + $0x140] sm:$0xff] %vm2983_vm2, %v1804_v30  ;;  %10949 = vmatprep.mubr.msk.f32.mxu0 %vm705_vm0, %v572_v26  ;;  %v3829_v60 = vmax.f32 %v3296_v48, %v3572_v49  ;;  %11691 = vmatprep.subr.bf16.mxu1 %v15409_v54  ;;  %v6631_v22 = vld [vmem:[%s15400_s4 + $0x28] sm:$0xff]  ;;  %v6634_v48 = vld [vmem:[%s15400_s4 + $0x40] sm:$0xff] }
 0x140   : > { %v4033_v32 = vadd.f32 %v12347_v18, %v3957_v28  ;;  %v5681_v34 = vld [vmem:[#allocation3 + $0x30] sm:$0xff]  ;;  %11420 = vmatpush1.bf16.msra.mxu0 %v11419_v2  ;;  %v11422_v26 = vpack.c.bf16 %v6631_v22, %v6630_v17  ;;  %v6635_v49 = vld [vmem:[%s15400_s4 + $0x48] sm:$0xff] }
 0x141   : > { %v12477_v35 = vld [vmem:[#allocation3 + $0x30] sm:$0xff]  ;;  %v10792_v36 = vpop.f32.mrb[42].mxu0  ;;  %5744 = vst.msk [vmem:[#allocation4 + $0x18] sm:$0xff] %vm2983_vm2, %v5681_v34  ;;  %11421 = vmatprep.subr.bf16.mxu0 %v15409_v54 }
 0x142   : > { %15421 = vst [vmem:[#allocation14_spill] sm:$0xff] %v12477_v35  ;;  %4103 = vst.msk [vmem:[#allocation3 + $0x40] sm:$0x7f] %vm4096_vm3, %v4033_v32  ;;  %v1814_v37 = vpop.f32.mrb[43].mxu0  ;;  %10950 = vmatmul.mubr.msk.f32.gmra.mrb[148].mxu0 %vm705_vm0, %v573_v31  ;;  %11707 = vmatpush1.bf16.msra.mxu1 %v11422_v26  ;;  %v6640_v22 = vld [vmem:[%s15400_s4 + $0x70] sm:$0xff] }
 0x143   : > { %4234 = vst.msk [vmem:[#allocation4 + $0xf0] sm:$0xff] %vm2983_vm2, %v12477_v35  ;;  %3027 = vst.msk [vmem:[#allocation2 + $0x158] sm:$0xff] %vm2983_vm2, %v10792_v36  ;;  %10952 = vmatprep.mubr.msk.f32.mxu0 %vm705_vm0, %v574_v33  ;;  %v3298_v4 = vld [vmem:[#allocation2 + $0x130] ss:$2 sm:$0xff]  ;;  %v3574_v5 = vld [vmem:[#allocation2 + $0x131] ss:$2 sm:$0xff]  ;;  %11692 = vmatprep.subr.bf16.mxu1 %v15409_v54 }
 0x144   : > { %3026 = vst.msk [vmem:[#allocation2 + $0x150] sm:$0xff] %vm2983_vm2, %v1814_v37  ;;  %v12489_v42 = vld [vmem:[#allocation3 + $0x31] sm:$0xff]  ;;  %v3830_v20 = vmax.f32 %v3298_v4, %v3574_v5  ;;  %11423 = vmatpush1.bf16.msra.mxu0 %v11422_v26 }
 0x145   : > { %v10795_v41 = vpop.f32.mrb[44].mxu0  ;;  %5242 = vst.msk [vmem:[#allocation4 + $0x88] sm:$0xff] %vm2983_vm2, %v12489_v42  ;;  %v5682_v0 = vld [vmem:[#allocation3 + $0x38] sm:$0xff]  ;;  %v6632_v37 = vld [vmem:[%s15400_s4 + $0x30] sm:$0xff]  ;;  %11424 = vmatprep.subr.bf16.mxu0 %v15409_v54 }
 0x146   : > { %3029 = vst.msk [vmem:[#allocation2 + $0x168] sm:$0xff] %vm2983_vm2, %v10795_v41  ;;  %10953 = vmatmul.mubr.msk.f32.gmra.mrb[150].mxu0 %vm705_vm0, %v575_v38  ;;  %v1824_v44 = vpop.f32.mrb[45].mxu0  ;;  %5745 = vst.msk [vmem:[#allocation4 + $0x40] sm:$0xff] %vm2983_vm2, %v5682_v0  ;;  %v12529_v9 = vld [vmem:[#allocation3 + $0x38] sm:$0xff]  ;;  %v590_v5 = vld [vmem:[%s12090_s18 + $0x530] sm:$0xff] }
 0x147   : > { %10955 = vmatprep.mubr.msk.f32.mxu0 %vm705_vm0, %v576_v39  ;;  %3028 = vst.msk [vmem:[#allocation2 + $0x160] sm:$0xff] %vm2983_vm2, %v1824_v44  ;;  %15422 = vst [vmem:[#allocation15_spill] sm:$0xff] %v12529_v9  ;;  %v3300_v10 = vld [vmem:[#allocation2 + $0x140] ss:$2 sm:$0x7f]  ;;  %v6185_v14 = vld [vmem:[#allocation3 + $0x32] sm:$0xff] }
 0x148   : > { %v3576_v11 = vld [vmem:[#allocation2 + $0x141] ss:$2 sm:$0x7f]  ;;  %4235 = vst.msk [vmem:[#allocation4 + $0x118] sm:$0xff] %vm2983_vm2, %v12529_v9  ;;  %6248 = vst.msk [vmem:[#allocation4 + $0x20] sm:$0xff] %vm2983_vm2, %v6185_v14  ;;  %v583_v36 = vld [vmem:[%s12090_s18 + $0x4f8] sm:$0xff] }
 0x149   : > { %v12505_v52 = vld [vmem:[#allocation3 + $0x39] sm:$0xff]  ;;  %v10798_v53 = vpop.f32.mrb[46].mxu0  ;;  %v5181_v55 = vld [vmem:[#allocation3 + $0x41] sm:$0x1f]  ;;  %4740 = vst.msk [vmem:[#allocation4 + $0xf8] sm:$0xff] %vm2983_vm2, %v6185_v14  ;;  %v3831_v32 = vmax.f32 %v3300_v10, %v3576_v11 }
 0x14a   : > { %5243 = vst.msk [vmem:[#allocation4 + $0xb0] sm:$0xff] %vm2983_vm2, %v12505_v52  ;;  %3031 = vst.msk [vmem:[#allocation2 + $0x178] sm:$0xff] %vm2983_vm2, %v10798_v53  ;;  %v1834_v58 = vpop.f32.mrb[47].mxu0  ;;  %10956 = vmatmul.mubr.msk.f32.gmra.mrb[152].mxu0 %vm705_vm0, %v577_v43  ;;  %v5683_v3 = vld [vmem:[#allocation3 + $0x40] sm:$0x1f]  ;;  %v6633_v38 = vld [vmem:[%s15400_s4 + $0x38] sm:$0xff] }
 0x14b   : > { %v3302_v56 = vld [vmem:[#allocation2 + $0x150] ss:$2 sm:$0xff]  ;;  %v3578_v57 = vld [vmem:[#allocation2 + $0x151] ss:$2 sm:$0xff]  ;;  %5244 = vst.msk [vmem:[#allocation4 + $0xd8] sm:$0x1f] %vm4229_vm4, %v5181_v55  ;;  %10958 = vmatprep.mubr.msk.f32.mxu0 %vm705_vm0, %v578_v45  ;;  %v11425_v41 = vpack.c.bf16 %v6633_v38, %v6632_v37  ;;  %v11428_v55 = vpack.c.bf16 %v6635_v49, %v6634_v48 }
 0x14c   : > { %v3832_v61 = vmax.f32 %v3302_v56, %v3578_v57  ;;  %3030 = vst.msk [vmem:[#allocation2 + $0x170] sm:$0xff] %vm2983_vm2, %v1834_v58  ;;  %v4172_v23 = vld [vmem:[#allocation3 + $0x40] sm:$0x1f]  ;;  %v586_v53 = vld [vmem:[%s12090_s18 + $0x510] sm:$0xff]  ;;  %v6643_v48 = vld [vmem:[%s15400_s4 + $0x88] sm:$0xff] }
 0x14d   : > { %v10801_v7 = vpop.f32.mrb[48].mxu0  ;;  %5746 = vst.msk [vmem:[#allocation4 + $0x68] sm:$0x1f] %vm4229_vm4, %v5683_v3  ;;  %v6186_v24 = vld [vmem:[#allocation3 + $0x3a] sm:$0xff]  ;;  %4236 = vst.msk [vmem:[#allocation4 + $0x140] sm:$0x1f] %vm4229_vm4, %v4172_v23  ;;  %11708 = vmatpush1.bf16.msra.mxu1 %v11425_v41  ;;  %11426 = vmatpush1.bf16.msra.mxu0 %v11425_v41 }
 0x14e   : > { %v3958_v6 = vmax.f32 %v3829_v60, %v3832_v61  ;;  %3033 = vst.msk [vmem:[#allocation2 + $0x188] sm:$0xff] %vm2983_vm2, %v10801_v7  ;;  %v1844_v12 = vpop.f32.mrb[49].mxu0  ;;  %10959 = vmatmul.mubr.msk.f32.gmra.mrb[154].mxu0 %vm705_vm0, %v579_v59  ;;  %v3304_v15 = vld [vmem:[#allocation2 + $0x160] ss:$2 sm:$0xff]  ;;  %v3580_v16 = vld [vmem:[#allocation2 + $0x161] ss:$2 sm:$0xff]  ;;  %11693 = vmatprep.subr.bf16.mxu1 %v15409_v54 }
 0x14f   : > { %3032 = vst.msk [vmem:[#allocation2 + $0x180] sm:$0xff] %vm2983_vm2, %v1844_v12  ;;  %10961 = vmatprep.mubr.msk.f32.mxu0 %vm705_vm0, %v580_v1  ;;  %v3833_v21 = vmax.f32 %v3304_v15, %v3580_v16  ;;  %6249 = vst.msk [vmem:[#allocation4 + $0x48] sm:$0xff] %vm2983_vm2, %v6186_v24  ;;  %v6187_v27 = vld [vmem:[#allocation3 + $0x42] sm:$0x1f]  ;;  %11427 = vmatprep.subr.bf16.mxu0 %v15409_v54  ;;  %v587_v60 = vld [vmem:[%s12090_s18 + $0x518] sm:$0xff] }
 0x150   : > { %v4034_v19 = vadd.f32 %v12347_v18, %v3958_v6  ;;  %4741 = vst.msk [vmem:[#allocation4 + $0x120] sm:$0xff] %vm2983_vm2, %v6186_v24  ;;  %v4679_v28 = vld [vmem:[#allocation3 + $0x42] sm:$0x1f]  ;;  %v6636_v61 = vld [vmem:[%s15400_s4 + $0x50] sm:$0xff]  ;;  %v589_v3 = vld [vmem:[%s12090_s18 + $0x528] sm:$0xff] }
 0x151   : > { %v10804_v25 = vpop.f32.mrb[50].mxu0  ;;  %v3959_v29 = vmax.f32 %v3830_v20, %v3833_v21  ;;  %6250 = vst.msk [vmem:[#allocation4 + $0x70] sm:$0x1f] %vm4229_vm4, %v6187_v27  ;;  %4742 = vst.msk [vmem:[#allocation4 + $0x148] sm:$0x1f] %vm4229_vm4, %v4679_v28  ;;  %v584_v39 = vld [vmem:[%s12090_s18 + $0x500] sm:$0xff]  ;;  %11709 = vmatpush1.bf16.msra.mxu1 %v11428_v55  ;;  %11429 = vmatpush1.bf16.msra.mxu0 %v11428_v55  ;;  %v11431_v1 = vpack.c.bf16 %v6637_v63, %v6636_v61 }
 0x152   : > { %4104 = vst.msk [vmem:[#allocation3 + $0x48] sm:$0xff] %vm2983_vm2, %v4034_v19  ;;  %3035 = vst.msk [vmem:[#allocation2 + $0x198] sm:$0xff] %vm2983_vm2, %v10804_v25  ;;  %10962 = vmatmul.mubr.msk.f32.gmra.mrb[156].mxu0 %vm705_vm0, %v581_v8  ;;  %v1854_v34 = vpop.f32.mrb[51].mxu0  ;;  %11694 = vmatprep.subr.bf16.mxu1 %v15409_v54  ;;  %v6638_v6 = vld [vmem:[%s15400_s4 + $0x60] sm:$0xff]  ;;  %v6639_v7 = vld [vmem:[%s15400_s4 + $0x68] sm:$0xff] }
 0x153   : > { %v3306_v30 = vld [vmem:[#allocation2 + $0x170] ss:$2 sm:$0x7f]  ;;  %v3582_v31 = vld [vmem:[#allocation2 + $0x171] ss:$2 sm:$0x7f]  ;;  %10964 = vmatprep.mubr.msk.f32.mxu0 %vm705_vm0, %v582_v13  ;;  %v4035_v43 = vadd.f32 %v12347_v18, %v3959_v29  ;;  %11430 = vmatprep.subr.bf16.mxu0 %v15409_v54  ;;  %v11434_v11 = vpack.c.bf16 %v6639_v7, %v6638_v6 }
 0x154   : > { %v3834_v33 = vmax.f32 %v3306_v30, %v3582_v31  ;;  %3034 = vst.msk [vmem:[#allocation2 + $0x190] sm:$0xff] %vm2983_vm2, %v1854_v34  ;;  %v591_v19 = vld [vmem:[%s12090_s18 + $0x538] sm:$0xff]  ;;  %v592_v25 = vld [vmem:[%s12090_s18 + $0x540] sm:$0xff]  ;;  %v593_v31 = vld [vmem:[%s12090_s18 + $0x548] sm:$0xff] }
 0x155   : > { %v10807_v45 = vpop.f32.mrb[52].mxu0  ;;  %4105 = vst.msk [vmem:[#allocation3 + $0x50] sm:$0xff] %vm2983_vm2, %v4035_v43  ;;  %11710 = vmatpush1.bf16.msra.mxu1 %v11431_v1  ;;  %11432 = vmatpush1.bf16.msra.mxu0 %v11431_v1  ;;  %v6641_v23 = vld [vmem:[%s15400_s4 + $0x78] sm:$0xff]  ;;  %v594_v38 = vld [vmem:[%s12090_s18 + $0x550] sm:$0xff] }
 0x156   : > { %v3960_v44 = vmax.f32 %v3831_v32, %v3834_v33  ;;  %3037 = vst.msk [vmem:[#allocation2 + $0x1a8] sm:$0xff] %vm2983_vm2, %v10807_v45  ;;  %v1864_v46 = vpop.f32.mrb[53].mxu0  ;;  %10965 = vmatmul.mubr.msk.f32.gmra.mrb[158].mxu0 %vm705_vm0, %v583_v36  ;;  %v3308_v8 = vld [vmem:[#allocation2 + $0x180] ss:$2 sm:$0xff]  ;;  %v3584_v10 = vld [vmem:[#allocation2 + $0x181] ss:$2 sm:$0xff]  ;;  %11695 = vmatprep.subr.bf16.mxu1 %v15409_v54  ;;  %v11437_v26 = vpack.c.bf16 %v6641_v23, %v6640_v22 }
 0x157   : > { %3036 = vst.msk [vmem:[#allocation2 + $0x1a0] sm:$0xff] %vm2983_vm2, %v1864_v46  ;;  %10967 = vmatprep.mubr.msk.f32.mxu0 %vm705_vm0, %v584_v39  ;;  %11433 = vmatprep.subr.bf16.mxu0 %v15409_v54  ;;  %v3835_v20 = vmax.f32 %v3308_v8, %v3584_v10  ;;  %v6642_v45 = vld [vmem:[%s15400_s4 + $0x80] sm:$0xff]  ;;  %v595_v1 = vld [vmem:[%s12090_s18 + $0x558] sm:$0xff] }
 0x158   : > { %v4036_v51 = vadd.f32 %v12347_v18, %v3960_v44  ;;  %v11440_v55 = vpack.c.bf16 %v6643_v48, %v6642_v45  ;;  %v599_v23 = vld [vmem:[%s12090_s18 + $0x578] sm:$0xff] }
 0x159   : > { %v5684_v56 = vld [vmem:[#allocation3 + $0x48] sm:$0xff]  ;;  %v10810_v58 = vpop.f32.mrb[54].mxu0  ;;  %11711 = vmatpush1.bf16.msra.mxu1 %v11434_v11  ;;  %11435 = vmatpush1.bf16.msra.mxu0 %v11434_v11 }
 0x15a   : > { %v12585_v57 = vld [vmem:[#allocation3 + $0x48] sm:$0xff]  ;;  %4106 = vst.msk [vmem:[#allocation3 + $0x58] sm:$0x7f] %vm4096_vm3, %v4036_v51  ;;  %v1874_v59 = vpop.f32.mrb[55].mxu0  ;;  %10968 = vmatmul.mubr.msk.f32.gmra.mrb[160].mxu0 %vm705_vm0, %v585_v47  ;;  %11696 = vmatprep.subr.bf16.mxu1 %v15409_v54 }
 0x15b   : > { %15423 = vst [vmem:[#allocation16_spill] sm:$0xff] %v12585_v57  ;;  %5747 = vst.msk [vmem:[#allocation4 + $0x90] sm:$0xff] %vm2983_vm2, %v5684_v56  ;;  %10970 = vmatprep.mubr.msk.f32.mxu0 %vm705_vm0, %v586_v53  ;;  %v3310_v28 = vld [vmem:[#allocation2 + $0x190] ss:$2 sm:$0xff]  ;;  %v3586_v29 = vld [vmem:[#allocation2 + $0x191] ss:$2 sm:$0xff]  ;;  %11436 = vmatprep.subr.bf16.mxu0 %v15409_v54 }
 0x15c   : > { %4237 = vst.msk [vmem:[#allocation4 + $0x168] sm:$0xff] %vm2983_vm2, %v12585_v57  ;;  %3039 = vst.msk [vmem:[#allocation2 + $0x1b8] sm:$0xff] %vm2983_vm2, %v10810_v58  ;;  %v12605_v2 = vld [vmem:[#allocation3 + $0x49] sm:$0xff]  ;;  %v3836_v46 = vmax.f32 %v3310_v28, %v3586_v29 }
 0x15d   : > { %3038 = vst.msk [vmem:[#allocation2 + $0x1b0] sm:$0xff] %vm2983_vm2, %v1874_v59  ;;  %v10813_v0 = vpop.f32.mrb[56].mxu0  ;;  %5245 = vst.msk [vmem:[#allocation4 + $0x100] sm:$0xff] %vm2983_vm2, %v12605_v2  ;;  %v5685_v24 = vld [vmem:[#allocation3 + $0x50] sm:$0xff]  ;;  %11712 = vmatpush1.bf16.msra.mxu1 %v11437_v26  ;;  %11438 = vmatpush1.bf16.msra.mxu0 %v11437_v26  ;;  %v6649_v26 = vld [vmem:[%s15400_s4 + $0xb8] sm:$0xff] }
 0x15e   : > { %3041 = vst.msk [vmem:[#allocation2 + $0x1c8] sm:$0xff] %vm2983_vm2, %v10813_v0  ;;  %10971 = vmatmul.mubr.msk.f32.gmra.mrb[162].mxu0 %vm705_vm0, %v587_v60  ;;  %v1884_v4 = vpop.f32.mrb[57].mxu0  ;;  %5748 = vst.msk [vmem:[#allocation4 + $0xb8] sm:$0xff] %vm2983_vm2, %v5685_v24  ;;  %v12646_v33 = vld [vmem:[#allocation3 + $0x50] sm:$0xff]  ;;  %11697 = vmatprep.subr.bf16.mxu1 %v15409_v54 }
 0x15f   : > { %10973 = vmatprep.mubr.msk.f32.mxu0 %vm705_vm0, %v588_v62  ;;  %3040 = vst.msk [vmem:[#allocation2 + $0x1c0] sm:$0xff] %vm2983_vm2, %v1884_v4  ;;  %15424 = vst [vmem:[#allocation17_spill] sm:$0xff] %v12646_v33  ;;  %v3312_v34 = vld [vmem:[#allocation2 + $0x1a0] ss:$2 sm:$0x7f]  ;;  %11439 = vmatprep.subr.bf16.mxu0 %v15409_v54  ;;  %v6645_v4 = vld [vmem:[%s15400_s4 + $0x98] sm:$0xff] }
 0x160   : > { %v3588_v36 = vld [vmem:[#allocation2 + $0x1a1] ss:$2 sm:$0x7f]  ;;  %4238 = vst.msk [vmem:[#allocation4 + $0x190] sm:$0xff] %vm2983_vm2, %v12646_v33  ;;  %v6648_v24 = vld [vmem:[%s15400_s4 + $0xb0] sm:$0xff] }
 0x161   : > { %v12623_v12 = vld [vmem:[#allocation3 + $0x51] sm:$0xff]  ;;  %v10816_v13 = vpop.f32.mrb[58].mxu0  ;;  %v5184_v14 = vld [vmem:[#allocation3 + $0x59] sm:$0x1f]  ;;  %v3837_v62 = vmax.f32 %v3312_v34, %v3588_v36  ;;  %11713 = vmatpush1.bf16.msra.mxu1 %v11440_v55  ;;  %11441 = vmatpush1.bf16.msra.mxu0 %v11440_v55  ;;  %v11449_v28 = vpack.c.bf16 %v6649_v26, %v6648_v24  ;;  %v6650_v34 = vld [vmem:[%s15400_s4 + $0xc0] sm:$0xff] }
 0x162   : > { %5246 = vst.msk [vmem:[#allocation4 + $0x128] sm:$0xff] %vm2983_vm2, %v12623_v12  ;;  %3043 = vst.msk [vmem:[#allocation2 + $0x1d8] sm:$0xff] %vm2983_vm2, %v10816_v13  ;;  %v1894_v17 = vpop.f32.mrb[59].mxu0  ;;  %10974 = vmatmul.mubr.msk.f32.gmra.mrb[164].mxu0 %vm705_vm0, %v589_v3  ;;  %v5686_v27 = vld [vmem:[#allocation3 + $0x58] sm:$0x1f]  ;;  %v6188_v39 = vld [vmem:[#allocation3 + $0x4a] sm:$0xff]  ;;  %11698 = vmatprep.subr.bf16.mxu1 %v15409_v54 }
 0x163   : > { %5247 = vst.msk [vmem:[#allocation4 + $0x150] sm:$0x1f] %vm4229_vm4, %v5184_v14  ;;  %10976 = vmatprep.mubr.msk.f32.mxu0 %vm705_vm0, %v590_v5  ;;  %5749 = vst.msk [vmem:[#allocation4 + $0xe0] sm:$0x1f] %vm4229_vm4, %v5686_v27  ;;  %v4175_v49 = vld [vmem:[#allocation3 + $0x58] sm:$0x1f]  ;;  %11442 = vmatprep.subr.bf16.mxu0 %v15409_v54 }
 0x164   : > { %v3314_v15 = vld [vmem:[#allocation2 + $0x1b0] ss:$2 sm:$0xff]  ;;  %v3590_v16 = vld [vmem:[#allocation2 + $0x1b1] ss:$2 sm:$0xff]  ;;  %3042 = vst.msk [vmem:[#allocation2 + $0x1d0] sm:$0xff] %vm2983_vm2, %v1894_v17  ;;  %6251 = vst.msk [vmem:[#allocation4 + $0x98] sm:$0xff] %vm2983_vm2, %v6188_v39 }
 0x165   : > { %v3838_v21 = vmax.f32 %v3314_v15, %v3590_v16  ;;  %v10819_v30 = vpop.f32.mrb[60].mxu0  ;;  %4743 = vst.msk [vmem:[#allocation4 + $0x170] sm:$0xff] %vm2983_vm2, %v6188_v39  ;;  %v6189_v51 = vld [vmem:[#allocation3 + $0x52] sm:$0xff]  ;;  %v6190_v56 = vld [vmem:[#allocation3 + $0x5a] sm:$0x1f]  ;;  %v596_v5 = vld [vmem:[%s12090_s18 + $0x560] sm:$0xff] }
 0x166   : > { %3045 = vst.msk [vmem:[#allocation2 + $0x1e8] sm:$0xff] %vm2983_vm2, %v10819_v30  ;;  %v1904_v37 = vpop.f32.mrb[61].mxu0  ;;  %10977 = vmatmul.mubr.msk.f32.gmra.mrb[166].mxu0 %vm705_vm0, %v591_v19  ;;  %v3316_v41 = vld [vmem:[#allocation2 + $0x1c0] ss:$2 sm:$0xff]  ;;  %v3592_v43 = vld [vmem:[#allocation2 + $0x1c1] ss:$2 sm:$0xff] }
 0x167   : > { %v3961_v32 = vmax.f32 %v3835_v20, %v3838_v21  ;;  %3044 = vst.msk [vmem:[#allocation2 + $0x1e0] sm:$0xff] %vm2983_vm2, %v1904_v37  ;;  %10979 = vmatprep.mubr.msk.f32.mxu0 %vm705_vm0, %v592_v25  ;;  %v3839_v47 = vmax.f32 %v3316_v41, %v3592_v43  ;;  %6252 = vst.msk [vmem:[#allocation4 + $0xc0] sm:$0xff] %vm2983_vm2, %v6189_v51  ;;  %v4682_v58 = vld [vmem:[#allocation3 + $0x5a] sm:$0x1f]  ;;  %v6644_v3 = vld [vmem:[%s15400_s4 + $0x90] sm:$0xff] }
 0x168   : > { %4239 = vst.msk [vmem:[#allocation4 + $0x1b8] sm:$0x1f] %vm4229_vm4, %v4175_v49  ;;  %6253 = vst.msk [vmem:[#allocation4 + $0xe8] sm:$0x1f] %vm4229_vm4, %v6190_v56  ;;  %v11443_v7 = vpack.c.bf16 %v6645_v4, %v6644_v3  ;;  %v597_v13 = vld [vmem:[%s12090_s18 + $0x568] sm:$0xff]  ;;  %v6646_v15 = vld [vmem:[%s15400_s4 + $0xa0] sm:$0xff] }
 0x169   : > { %v4037_v44 = vadd.f32 %v12347_v18, %v3961_v32  ;;  %v10822_v53 = vpop.f32.mrb[62].mxu0  ;;  %4744 = vst.msk [vmem:[#allocation4 + $0x198] sm:$0xff] %vm2983_vm2, %v6189_v51  ;;  %v3962_v61 = vmax.f32 %v3836_v46, %v3839_v47  ;;  %v6647_v16 = vld [vmem:[%s15400_s4 + $0xa8] sm:$0xff]  ;;  %v598_v17 = vld [vmem:[%s12090_s18 + $0x570] sm:$0xff]  ;;  %v600_v25 = vld [vmem:[%s12090_s18 + $0x580] sm:$0xff] }
 0x16a   : > { %3047 = vst.msk [vmem:[#allocation2 + $0x1f8] sm:$0xff] %vm2983_vm2, %v10822_v53  ;;  %10980 = vmatmul.mubr.msk.f32.gmra.mrb[168].mxu0 %vm705_vm0, %v593_v31  ;;  %v1914_v0 = vpop.f32.mrb[63].mxu0  ;;  %11714 = vmatpush1.bf16.msra.mxu1 %v11443_v7  ;;  %v11446_v19 = vpack.c.bf16 %v6647_v16, %v6646_v15  ;;  %v601_v30 = vld [vmem:[%s12090_s18 + $0x588] sm:$0xff]  ;;  %v602_v32 = vld [vmem:[%s12090_s18 + $0x590] sm:$0xff]  ;;  %v603_v49 = vld [vmem:[%s12090_s18 + $0x598] sm:$0xff] }
 0x16b   : > { %4107 = vst.msk [vmem:[#allocation3 + $0x60] sm:$0xff] %vm2983_vm2, %v4037_v44  ;;  %v3318_v59 = vld [vmem:[#allocation2 + $0x1d0] ss:$2 sm:$0x7f]  ;;  %10982 = vmatprep.mubr.msk.f32.mxu0 %vm705_vm0, %v594_v38  ;;  %3046 = vst.msk [vmem:[#allocation2 + $0x1f0] sm:$0xff] %vm2983_vm2, %v1914_v0  ;;  %v4038_v6 = vadd.f32 %v12347_v18, %v3962_v61  ;;  %11699 = vmatprep.subr.bf16.mxu1 %v15409_v54  ;;  %v6651_v36 = vld [vmem:[%s15400_s4 + $0xc8] sm:$0xff] }
 0x16c   : > { %v3594_v60 = vld [vmem:[#allocation2 + $0x1d1] ss:$2 sm:$0x7f]  ;;  %4745 = vst.msk [vmem:[#allocation4 + $0x1c0] sm:$0x1f] %vm4229_vm4, %v4682_v58  ;;  %11444 = vmatpush1.bf16.msra.mxu0 %v11443_v7  ;;  %v11452_v39 = vpack.c.bf16 %v6651_v36, %v6650_v34  ;;  %v605_v0 = vld [vmem:[%s12090_s18 + $0x5a8] sm:$0xff] }
 0x16d   : > { %v3840_v63 = vmax.f32 %v3318_v59, %v3594_v60  ;;  %v10825_v8 = vpop.f32.mrb[64].mxu0  ;;  %4108 = vst.msk [vmem:[#allocation3 + $0x68] sm:$0xff] %vm2983_vm2, %v4038_v6  ;;  %11445 = vmatprep.subr.bf16.mxu0 %v15409_v54  ;;  %v6652_v55 = vld [vmem:[%s15400_s4 + $0xd0] sm:$0xff]  ;;  %v6653_v56 = vld [vmem:[%s15400_s4 + $0xd8] sm:$0xff]  ;;  %v604_v60 = vld [vmem:[%s12090_s18 + $0x5a0] sm:$0xff] }
 0x16e   : > { %3049 = vst.msk [vmem:[#allocation2 + $0x208] sm:$0xff] %vm2983_vm2, %v10825_v8  ;;  %v1924_v11 = vpop.f32.mrb[65].mxu0  ;;  %10983 = vmatmul.mubr.msk.f32.gmra.mrb[170].mxu0 %vm705_vm0, %v595_v1  ;;  %11715 = vmatpush1.bf16.msra.mxu1 %v11446_v19  ;;  %v3320_v37 = vld [vmem:[#allocation2 + $0x1e0] ss:$2 sm:$0xff]  ;;  %v3596_v38 = vld [vmem:[#allocation2 + $0x1e1] ss:$2 sm:$0xff]  ;;  %v11455_v61 = vpack.c.bf16 %v6653_v56, %v6652_v55 }
 0x16f   : > { %v3963_v10 = vmax.f32 %v3837_v62, %v3840_v63  ;;  %3048 = vst.msk [vmem:[#allocation2 + $0x200] sm:$0xff] %vm2983_vm2, %v1924_v11  ;;  %10985 = vmatprep.mubr.msk.f32.mxu0 %vm705_vm0, %v596_v5  ;;  %11700 = vmatprep.subr.bf16.mxu1 %v15409_v54  ;;  %v3841_v51 = vmax.f32 %v3320_v37, %v3596_v38  ;;  %v606_v8 = vld [vmem:[%s12090_s18 + $0x5b0] sm:$0xff]  ;;  %v6654_v16 = vld [vmem:[%s15400_s4 + $0xe0] sm:$0xff] }
 0x170   : > { %11447 = vmatpush1.bf16.msra.mxu0 %v11446_v19  ;;  %v608_v34 = vld [vmem:[%s12090_s18 + $0x5c0] sm:$0xff] }
 0x171   : > { %v4039_v14 = vadd.f32 %v12347_v18, %v3963_v10  ;;  %v10828_v22 = vpop.f32.mrb[66].mxu0  ;;  %11448 = vmatprep.subr.bf16.mxu0 %v15409_v54 }
 0x172   : > { %v4176_v20 = vld [vmem:[#allocation3 + $0x60] sm:$0xff]  ;;  %3051 = vst.msk [vmem:[#allocation2 + $0x218] sm:$0xff] %vm2983_vm2, %v10828_v22  ;;  %v1934_v18 = vpop.f32.mrb[67].mxu0  ;;  %10986 = vmatmul.mubr.msk.f32.gmra.mrb[172].mxu0 %vm705_vm0, %v597_v13  ;;  %11716 = vmatpush1.bf16.msra.mxu1 %v11449_v28  ;;  %v3322_v59 = vld [vmem:[#allocation2 + $0x1f0] ss:$2 sm:$0xff] }
 0x173   : > { %v5687_v21 = vld [vmem:[#allocation3 + $0x60] sm:$0xff]  ;;  %4109 = vst.msk [vmem:[#allocation3 + $0x70] sm:$0x7f] %vm4096_vm3, %v4039_v14  ;;  %10988 = vmatprep.mubr.msk.f32.mxu0 %vm705_vm0, %v598_v17  ;;  %11701 = vmatprep.subr.bf16.mxu1 %v15409_v54  ;;  %v3598_v62 = vld [vmem:[#allocation2 + $0x1f1] ss:$2 sm:$0xff] }
 0x174   : > { %4240 = vst.msk [vmem:[#allocation4 + $0x1e0] sm:$0xff] %vm2983_vm2, %v4176_v20  ;;  %5750 = vst.msk [vmem:[#allocation4 + $0x108] sm:$0xff] %vm2983_vm2, %v5687_v21  ;;  %v4683_v29 = vld [vmem:[#allocation3 + $0x62] sm:$0xff]  ;;  %11450 = vmatpush1.bf16.msra.mxu0 %v11449_v28  ;;  %v12770_v14 = vld [vmem:[%s15399_s3] ss:$0 sm:$0xff]  ;;  %v3842_v17 = vmax.f32 %v3322_v59, %v3598_v62 }
 0x175   : > { %3050 = vst.msk [vmem:[#allocation2 + $0x210] sm:$0xff] %vm2983_vm2, %v1934_v18  ;;  %v10831_v27 = vpop.f32.mrb[68].mxu0  ;;  %4746 = vst.msk [vmem:[#allocation4 + $0x1e8] sm:$0xff] %vm2983_vm2, %v4683_v29  ;;  %v4177_v44 = vld [vmem:[#allocation3 + $0x68] sm:$0xff]  ;;  %11451 = vmatprep.subr.bf16.mxu0 %v15409_v54 }
 0x176   : > { %3053 = vst.msk [vmem:[#allocation2 + $0x228] sm:$0xff] %vm2983_vm2, %v10831_v27  ;;  %10989 = vmatmul.mubr.msk.f32.gmra.mrb[174].mxu0 %vm705_vm0, %v599_v23  ;;  %v1944_v31 = vpop.f32.mrb[69].mxu0  ;;  %4241 = vst.msk [vmem:[#allocation4 + $0x208] sm:$0xff] %vm2983_vm2, %v4177_v44  ;;  %11717 = vmatpush1.bf16.msra.mxu1 %v11452_v39  ;;  %v12753_v3 = vld [vmem:[#allocation3 + $0x61] sm:$0xff]  ;;  %v610_v44 = vld [vmem:[%s12090_s18 + $0x5d0] sm:$0xff] }
 0x177   : > { %10991 = vmatprep.mubr.msk.f32.mxu0 %vm705_vm0, %v600_v25  ;;  %3052 = vst.msk [vmem:[#allocation2 + $0x220] sm:$0xff] %vm2983_vm2, %v1944_v31  ;;  %11702 = vmatprep.subr.bf16.mxu1 %v15409_v54  ;;  %v3324_v5 = vld [vmem:[#allocation2 + $0x200] ss:$2 sm:$0x7f]  ;;  %5248 = vst.msk [vmem:[#allocation4 + $0x178] sm:$0xff] %vm2983_vm2, %v12753_v3 }
 0x178   : > { %11453 = vmatpush1.bf16.msra.mxu0 %v11452_v39  ;;  %v3600_v6 = vld [vmem:[#allocation2 + $0x201] ss:$2 sm:$0x7f] }
 0x179   : > { %v10834_v43 = vpop.f32.mrb[70].mxu0  ;;  %11454 = vmatprep.subr.bf16.mxu0 %v15409_v54  ;;  %v6655_v20 = vld [vmem:[%s15400_s4 + $0xe8] sm:$0xff]  ;;  %v3843_v27 = vmax.f32 %v3324_v5, %v3600_v6 }
 0x17a   : > { %v4684_v41 = vld [vmem:[#allocation3 + $0x6a] sm:$0xff]  ;;  %v4685_v45 = vld [vmem:[#allocation3 + $0x72] sm:$0x1f]  ;;  %3055 = vst.msk [vmem:[#allocation2 + $0x238] sm:$0xff] %vm2983_vm2, %v10834_v43  ;;  %v1954_v48 = vpop.f32.mrb[71].mxu0  ;;  %10992 = vmatmul.mubr.msk.f32.gmra.mrb[176].mxu0 %vm705_vm0, %v601_v30  ;;  %11718 = vmatpush1.bf16.msra.mxu1 %v11455_v61  ;;  %v11458_v23 = vpack.c.bf16 %v6655_v20, %v6654_v16  ;;  %v607_v30 = vld [vmem:[%s12090_s18 + $0x5b8] sm:$0xff] }
 0x17b   : > { %4747 = vst.msk [vmem:[#allocation4 + $0x210] sm:$0xff] %vm2983_vm2, %v4684_v41  ;;  %3054 = vst.msk [vmem:[#allocation2 + $0x230] sm:$0xff] %vm2983_vm2, %v1954_v48  ;;  %10994 = vmatprep.mubr.msk.f32.mxu0 %vm705_vm0, %v602_v32  ;;  %v4178_v58 = vld [vmem:[#allocation3 + $0x70] sm:$0x1f]  ;;  %11703 = vmatprep.subr.bf16.mxu1 %v15409_v54  ;;  %v5688_v21 = vld [vmem:[#allocation3 + $0x68] sm:$0xff] }
 0x17c   : > { %v3326_v46 = vld [vmem:[#allocation2 + $0x210] ss:$2 sm:$0xff]  ;;  %v3602_v47 = vld [vmem:[#allocation2 + $0x211] ss:$2 sm:$0xff]  ;;  %4748 = vst.msk [vmem:[#allocation4 + $0x238] sm:$0x1f] %vm4229_vm4, %v4685_v45  ;;  %11456 = vmatpush1.bf16.msra.mxu0 %v11455_v61 }
 0x17d   : > { %v3844_v53 = vmax.f32 %v3326_v46, %v3602_v47  ;;  %4242 = vst.msk [vmem:[#allocation4 + $0x230] sm:$0x1f] %vm4229_vm4, %v4178_v58  ;;  %v10837_v63 = vpop.f32.mrb[72].mxu0  ;;  %v12755_v4 = vld [vmem:[#allocation3 + $0x69] sm:$0xff]  ;;  %v5187_v10 = vld [vmem:[#allocation3 + $0x71] sm:$0x1f]  ;;  %11457 = vmatprep.subr.bf16.mxu0 %v15409_v54 }
 0x17e   : > { %3057 = vst.msk [vmem:[#allocation2 + $0x248] sm:$0xff] %vm2983_vm2, %v10837_v63  ;;  %v1964_v7 = vpop.f32.mrb[73].mxu0  ;;  %10995 = vmatmul.mubr.msk.f32.gmra.mrb[178].mxu0 %vm705_vm0, %v603_v49  ;;  %5249 = vst.msk [vmem:[#allocation4 + $0x1a0] sm:$0xff] %vm2983_vm2, %v12755_v4  ;;  %v3328_v11 = vld [vmem:[#allocation2 + $0x220] ss:$2 sm:$0xff]  ;;  %11719 = vmatpush1.bf16.msra.mxu1 %v11458_v23  ;;  %v6656_v46 = vld [vmem:[%s15400_s4 + $0xf0] sm:$0xff] }
 0x17f   : > { %v3964_v1 = vmax.f32 %v3841_v51, %v3844_v53  ;;  %v3604_v13 = vld [vmem:[#allocation2 + $0x221] ss:$2 sm:$0xff]  ;;  %3056 = vst.msk [vmem:[#allocation2 + $0x240] sm:$0xff] %vm2983_vm2, %v1964_v7  ;;  %10997 = vmatprep.mubr.msk.f32.mxu0 %vm705_vm0, %v604_v60  ;;  %v5689_v22 = vld [vmem:[#allocation3 + $0x70] sm:$0x1f]  ;;  %5751 = vst.msk [vmem:[#allocation4 + $0x130] sm:$0xff] %vm2983_vm2, %v5688_v21  ;;  %11704 = vmatprep.subr.bf16.mxu1 %v15409_v54 }
 0x180   : > { %5250 = vst.msk [vmem:[#allocation4 + $0x1c8] sm:$0x1f] %vm4229_vm4, %v5187_v10  ;;  %v3845_v19 = vmax.f32 %v3328_v11, %v3604_v13  ;;  %5752 = vst.msk [vmem:[#allocation4 + $0x158] sm:$0x1f] %vm4229_vm4, %v5689_v22  ;;  %v6191_v31 = vld [vmem:[#allocation3 + $0x62] sm:$0xff]  ;;  %v6192_v32 = vld [vmem:[#allocation3 + $0x6a] sm:$0xff]  ;;  %11459 = vmatpush1.bf16.msra.mxu0 %v11458_v23 }
 0x181   : > { %v4040_v15 = vadd.f32 %v12770_v14, %v3964_v1  ;;  %v10840_v18 = vpop.f32.mrb[74].mxu0  ;;  %6254 = vst.msk [vmem:[#allocation4 + $0x110] sm:$0xff] %vm2983_vm2, %v6191_v31  ;;  %6255 = vst.msk [vmem:[#allocation4 + $0x138] sm:$0xff] %vm2983_vm2, %v6192_v32  ;;  %v6193_v37 = vld [vmem:[#allocation3 + $0x72] sm:$0x1f]  ;;  %11460 = vmatprep.subr.bf16.mxu0 %v15409_v54  ;;  %v609_v43 = vld [vmem:[%s12090_s18 + $0x5c8] sm:$0xff] }
 0x182   : > { %v3330_v24 = vld [vmem:[#allocation2 + $0x230] ss:$2 sm:$0x7f]  ;;  %v3606_v25 = vld [vmem:[#allocation2 + $0x231] ss:$2 sm:$0x7f]  ;;  %10998 = vmatmul.mubr.msk.f32.gmra.mrb[180].mxu0 %vm705_vm0, %v605_v0  ;;  %v3965_v26 = vmax.f32 %v3842_v17, %v3845_v19 }
 0x183   : > { %4110 = vst.msk [vmem:[#allocation3 + $0x78] sm:$0xff] %vm2983_vm2, %v4040_v15  ;;  %3059 = vst.msk [vmem:[#allocation2 + $0x258] sm:$0xff] %vm2983_vm2, %v10840_v18  ;;  %v3846_v28 = vmax.f32 %v3330_v24, %v3606_v25  ;;  %v1974_v29 = vpop.f32.mrb[75].mxu0  ;;  %11000 = vmatprep.mubr.msk.f32.mxu0 %vm705_vm0, %v606_v8  ;;  %v6657_v47 = vld [vmem:[%s15400_s4 + $0xf8] sm:$0xff]  ;;  %v4303_v59 = vld [vmem:[#allocation3 + $0x61] sm:$0xff] }
 0x184   : > { %3058 = vst.msk [vmem:[#allocation2 + $0x250] sm:$0xff] %vm2983_vm2, %v1974_v29  ;;  %v4041_v36 = vadd.f32 %v12770_v14, %v3965_v26  ;;  %v11461_v49 = vpack.c.bf16 %v6657_v47, %v6656_v46  ;;  %v611_v58 = vld [vmem:[%s12090_s18 + $0x5d8] sm:$0xff]  ;;  %v612_v60 = vld [vmem:[%s12090_s18 + $0x5e0] sm:$0xff]  ;;  %v613_v63 = vld [vmem:[%s12090_s18 + $0x5e8] sm:$0xff] }
 0x185   : > { %v10843_v38 = vpop.f32.mrb[76].mxu0  ;;  %v3966_v39 = vmax.f32 %v3843_v27, %v3846_v28  ;;  %6256 = vst.msk [vmem:[#allocation4 + $0x160] sm:$0x1f] %vm4229_vm4, %v6193_v37  ;;  %v614_v1 = vld [vmem:[%s12090_s18 + $0x5f0] sm:$0xff]  ;;  %v615_v21 = vld [vmem:[%s12090_s18 + $0x5f8] sm:$0xff]  ;;  %v616_v24 = vld [vmem:[%s12090_s18 + $0x600] sm:$0xff] }
 0x186   : > { %3061 = vst.msk [vmem:[#allocation2 + $0x268] sm:$0xff] %vm2983_vm2, %v10843_v38  ;;  %v1984_v41 = vpop.f32.mrb[77].mxu0  ;;  %11001 = vmatmul.mubr.msk.f32.gmra.mrb[182].mxu0 %vm705_vm0, %v607_v30  ;;  %4111 = vst.msk [vmem:[#allocation3 + $0x80] sm:$0xff] %vm2983_vm2, %v4041_v36  ;;  %11720 = vmatpush1.bf16.msra.mxu1 %v11461_v49  ;;  %v3332_v7 = vld [vmem:[#allocation2 + $0x240] ss:$2 sm:$0xff]  ;;  %v618_v38 = vld [vmem:[%s12090_s18 + $0x610] sm:$0xff] }
 0x187   : > { %3060 = vst.msk [vmem:[#allocation2 + $0x260] sm:$0xff] %vm2983_vm2, %v1984_v41  ;;  %11003 = vmatprep.mubr.msk.f32.mxu0 %vm705_vm0, %v608_v34  ;;  %v4042_v45 = vadd.f32 %v12770_v14, %v3966_v39  ;;  %11463 = vmatprep.subr.bf16.mxu1 %v15409_v54  ;;  %v3608_v8 = vld [vmem:[#allocation2 + $0x241] ss:$2 sm:$0xff]  ;;  %v4305_v23 = vld [vmem:[#allocation3 + $0x71] sm:$0x1f] }
 0x188   : > { %11462 = vmatpush1.bf16.msra.mxu0 %v11461_v49  ;;  %v4304_v11 = vld [vmem:[#allocation3 + $0x69] sm:$0xff]  ;;  %v3847_v22 = vmax.f32 %v3332_v7, %v3608_v8 }
 0x189   : > { %v10846_v55 = vpop.f32.mrb[78].mxu0  ;;  %4112 = vst.msk [vmem:[#allocation3 + $0x88] sm:$0x7f] %vm4096_vm3, %v4042_v45  ;;  %v617_v31 = vld [vmem:[%s12090_s18 + $0x608] sm:$0xff] }
 0x18a   : > { %v4810_v48 = vld [vmem:[#allocation3 + $0x78] sm:$0xff]  ;;  %3063 = vst.msk [vmem:[#allocation2 + $0x278] sm:$0xff] %vm2983_vm2, %v10846_v55  ;;  %v1994_v56 = vpop.f32.mrb[79].mxu0  ;;  %11004 = vmatmul.mubr.msk.f32.gmra.mrb[184].mxu0 %vm705_vm0, %v609_v43 }
 0x18b   : > { %v4179_v51 = vld [vmem:[#allocation3 + $0x78] sm:$0xff]  ;;  %4948 = vrot.lane.b32.xlu0 %v4810_v48, %s11993_s29  ;;  %3062 = vst.msk [vmem:[#allocation2 + $0x270] sm:$0xff] %vm2983_vm2, %v1994_v56  ;;  %11006 = vmatprep.mubr.msk.f32.mxu0 %vm705_vm0, %v610_v44 }
 0x18c   : > { %v5690_v53 = vld [vmem:[#allocation3 + $0x78] sm:$0xff]  ;;  %4243 = vst.msk [vmem:[#allocation4 + $0x258] sm:$0xff] %vm2983_vm2, %v4179_v51 }
 0x18d   : > { %5753 = vst.msk [vmem:[#allocation4 + $0x180] sm:$0xff] %vm2983_vm2, %v5690_v53  ;;  %v4811_v61 = vld [vmem:[#allocation3 + $0x80] sm:$0xff]  ;;  %v10849_v62 = vpop.f32.mrb[80].mxu0  ;;  %v3334_v26 = vld [vmem:[#allocation2 + $0x250] ss:$2 sm:$0xff] }
 0x18e   : > { %4950 = vrot.lane.b32.xlu1 %v4811_v61, %s11993_s29  ;;  %3065 = vst.msk [vmem:[#allocation2 + $0x288] sm:$0xff] %vm2983_vm2, %v10849_v62  ;;  %11007 = vmatmul.mubr.msk.f32.gmra.mrb[186].mxu0 %vm705_vm0, %v611_v58  ;;  %v2004_v0 = vpop.f32.mrb[81].mxu0  ;;  %v4180_v5 = vld [vmem:[#allocation3 + $0x80] sm:$0xff]  ;;  %v3610_v29 = vld [vmem:[#allocation2 + $0x251] ss:$2 sm:$0xff] }
 0x18f   : > { %4441 = vrot.lane.b32.xlu0 %v4303_v59, %s11993_s29  ;;  %11009 = vmatprep.mubr.msk.f32.mxu0 %vm705_vm0, %v612_v60  ;;  %v4686_v6 = vld [vmem:[#allocation3 + $0x7a] sm:$0xff]  ;;  %3064 = vst.msk [vmem:[#allocation2 + $0x280] sm:$0xff] %vm2983_vm2, %v2004_v0  ;;  %4244 = vst.msk [vmem:[#allocation4 + $0x280] sm:$0xff] %vm2983_vm2, %v4180_v5  ;;  %v3848_v47 = vmax.f32 %v3334_v26, %v3610_v29 }
 0x190   : > { %v4812_v10 = vld [vmem:[#allocation3 + $0x88] sm:$0x1f]  ;;  %4749 = vst.msk [vmem:[#allocation4 + $0x260] sm:$0xff] %vm2983_vm2, %v4686_v6  ;;  %v12843_v27 = vld [vmem:[#allocation3 + $0x79] sm:$0xff] }
 0x191   : > { %v10852_v13 = vpop.f32.mrb[82].mxu0  ;;  %v4181_v15 = vld [vmem:[#allocation3 + $0x88] sm:$0x1f]  ;;  %5251 = vst.msk [vmem:[#allocation4 + $0x1f0] sm:$0xff] %vm2983_vm2, %v12843_v27  ;;  %v5691_v39 = vld [vmem:[#allocation3 + $0x80] sm:$0xff]  ;;  %v619_v0 = vld [vmem:[%s12090_s18 + $0x618] sm:$0xff] }
 0x192   : > { %v4687_v16 = vld [vmem:[#allocation3 + $0x82] sm:$0xff]  ;;  %v3338_v17 = vld [vmem:[#allocation2 + $0x270] ss:$2 sm:$0xff]  ;;  %v3614_v19 = vld [vmem:[#allocation2 + $0x271] ss:$2 sm:$0xff]  ;;  %4443 = vrot.lane.b32.xlu1 %v4304_v11, %s11993_s29  ;;  %3067 = vst.msk [vmem:[#allocation2 + $0x298] sm:$0xff] %vm2983_vm2, %v10852_v13  ;;  %11010 = vmatmul.mubr.msk.f32.gmra.mrb[188].mxu0 %vm705_vm0, %v613_v63 }
 0x193   : > { %4952 = vrot.lane.b32.xlu0 %v4812_v10, %s11993_s29  ;;  %v2014_v20 = vpop.f32.mrb[83].mxu0  ;;  %4245 = vst.msk [vmem:[#allocation4 + $0x2a8] sm:$0x1f] %vm4229_vm4, %v4181_v15  ;;  %v3850_v18 = vmax.f32 %v3338_v17, %v3614_v19  ;;  %11012 = vmatprep.mubr.msk.f32.mxu0 %vm705_vm0, %v614_v1  ;;  %v4688_v25 = vld [vmem:[#allocation3 + $0x8a] sm:$0x1f]  ;;  %v12845_v28 = vld [vmem:[#allocation3 + $0x81] sm:$0xff] }
 0x194   : > { %4750 = vst.msk [vmem:[#allocation4 + $0x288] sm:$0xff] %vm2983_vm2, %v4687_v16  ;;  %3066 = vst.msk [vmem:[#allocation2 + $0x290] sm:$0xff] %vm2983_vm2, %v2014_v20  ;;  %v5190_v34 = vld [vmem:[#allocation3 + $0x89] sm:$0x1f]  ;;  %v6194_v46 = vld [vmem:[#allocation3 + $0x7a] sm:$0xff] }
 0x195   : > { %4751 = vst.msk [vmem:[#allocation4 + $0x2b0] sm:$0x1f] %vm4229_vm4, %v4688_v25  ;;  %v10855_v30 = vpop.f32.mrb[84].mxu0  ;;  %v3967_v32 = vmax.f32 %v3847_v22, %v3850_v18  ;;  %v3336_v36 = vld [vmem:[#allocation2 + $0x260] ss:$2 sm:$0x7f] }
 0x196   : > { %5252 = vst.msk [vmem:[#allocation4 + $0x218] sm:$0xff] %vm2983_vm2, %v12845_v28  ;;  %4445 = vrot.lane.b32.xlu1 %v4305_v23, %s11993_s29  ;;  %3069 = vst.msk [vmem:[#allocation2 + $0x2a8] sm:$0xff] %vm2983_vm2, %v10855_v30  ;;  %v2024_v37 = vpop.f32.mrb[85].mxu0  ;;  %11013 = vmatmul.mubr.msk.f32.gmra.mrb[190].mxu0 %vm705_vm0, %v615_v21  ;;  %v5692_v41 = vld [vmem:[#allocation3 + $0x88] sm:$0x1f]  ;;  %v4306_v55 = vld [vmem:[#allocation3 + $0x79] sm:$0xff] }
 0x197   : > { %5253 = vst.msk [vmem:[#allocation4 + $0x240] sm:$0x1f] %vm4229_vm4, %v5190_v34  ;;  %v3340_v43 = vld [vmem:[#allocation2 + $0x280] ss:$2 sm:$0xff]  ;;  %v3616_v44 = vld [vmem:[#allocation2 + $0x281] ss:$2 sm:$0xff]  ;;  %11015 = vmatprep.mubr.msk.f32.mxu0 %vm705_vm0, %v616_v24  ;;  %v4043_v45 = vadd.f32 %v12770_v14, %v3967_v32 }
 0x198   : > { %3068 = vst.msk [vmem:[#allocation2 + $0x2a0] sm:$0xff] %vm2983_vm2, %v2024_v37  ;;  %5754 = vst.msk [vmem:[#allocation4 + $0x1a8] sm:$0xff] %vm2983_vm2, %v5691_v39  ;;  %v3612_v48 = vld [vmem:[#allocation2 + $0x261] ss:$2 sm:$0x7f]  ;;  %v3851_v49 = vmax.f32 %v3340_v43, %v3616_v44  ;;  %v622_v13 = vld [vmem:[%s12090_s18 + $0x630] sm:$0xff] }
 0x199   : > { %5755 = vst.msk [vmem:[#allocation4 + $0x1d0] sm:$0x1f] %vm4229_vm4, %v5692_v41  ;;  %v6195_v51 = vld [vmem:[#allocation3 + $0x82] sm:$0xff]  ;;  %v6196_v53 = vld [vmem:[#allocation3 + $0x8a] sm:$0x1f]  ;;  %v10858_v56 = vpop.f32.mrb[86].mxu0  ;;  %v3849_v61 = vmax.f32 %v3336_v36, %v3612_v48 }
 0x19a   : > { %6257 = vst.msk [vmem:[#allocation4 + $0x188] sm:$0xff] %vm2983_vm2, %v6194_v46  ;;  %4113 = vst.msk [vmem:[#allocation3 + $0x90] sm:$0xff] %vm2983_vm2, %v4043_v45  ;;  %4447 = vrot.lane.b32.xlu1 %v4306_v55, %s11993_s29  ;;  %11016 = vmatmul.mubr.msk.f32.gmra.mrb[192].mxu0 %vm705_vm0, %v617_v31  ;;  %v3968_v60 = vmax.f32 %v3848_v47, %v3851_v49  ;;  %v2034_v63 = vpop.f32.mrb[87].mxu0  ;;  %v620_v1 = vld [vmem:[%s12090_s18 + $0x620] sm:$0xff]  ;;  %v621_v11 = vld [vmem:[%s12090_s18 + $0x628] sm:$0xff] }
 0x19b   : > { %6258 = vst.msk [vmem:[#allocation4 + $0x1b0] sm:$0xff] %vm2983_vm2, %v6195_v51  ;;  %v3342_v58 = vld [vmem:[#allocation2 + $0x290] ss:$2 sm:$0x7f]  ;;  %3071 = vst.msk [vmem:[#allocation2 + $0x2b8] sm:$0xff] %vm2983_vm2, %v10858_v56  ;;  %11018 = vmatprep.mubr.msk.f32.mxu0 %vm705_vm0, %v618_v38  ;;  %v4307_v6 = vld [vmem:[#allocation3 + $0x81] sm:$0xff] }
 0x19c   : > { %6259 = vst.msk [vmem:[#allocation4 + $0x1d8] sm:$0x1f] %vm4229_vm4, %v6196_v53  ;;  %v3618_v59 = vld [vmem:[#allocation2 + $0x291] ss:$2 sm:$0x7f]  ;;  %v4044_v5 = vadd.f32 %v12770_v14, %v3968_v60  ;;  %v624_v23 = vld [vmem:[%s12090_s18 + $0x640] sm:$0xff] }
 0x19d   : > { %v3852_v62 = vmax.f32 %v3342_v58, %v3618_v59  ;;  %3070 = vst.msk [vmem:[#allocation2 + $0x2b0] sm:$0xff] %vm2983_vm2, %v2034_v63  ;;  %v10861_v7 = vpop.f32.mrb[88].mxu0  ;;  %v4308_v20 = vld [vmem:[#allocation3 + $0x89] sm:$0x1f]  ;;  %v623_v18 = vld [vmem:[%s12090_s18 + $0x638] sm:$0xff]  ;;  %v626_v41 = vld [vmem:[%s12090_s18 + $0x650] sm:$0xff] }
 0x19e   : > { %4449 = vrot.lane.b32.xlu1 %v4307_v6, %s11993_s29  ;;  %3073 = vst.msk [vmem:[#allocation2 + $0x2c8] sm:$0xff] %vm2983_vm2, %v10861_v7  ;;  %v2044_v10 = vpop.f32.mrb[89].mxu0  ;;  %11019 = vmatmul.mubr.msk.f32.gmra.mrb[194].mxu0 %vm705_vm0, %v619_v0  ;;  %4114 = vst.msk [vmem:[#allocation3 + $0x98] sm:$0xff] %vm2983_vm2, %v4044_v5  ;;  %v625_v32 = vld [vmem:[%s12090_s18 + $0x648] sm:$0xff]  ;;  %v627_v48 = vld [vmem:[%s12090_s18 + $0x658] sm:$0xff] }
 0x19f   : > { %v3969_v8 = vmax.f32 %v3849_v61, %v3852_v62  ;;  %3072 = vst.msk [vmem:[#allocation2 + $0x2c0] sm:$0xff] %vm2983_vm2, %v2044_v10  ;;  %11021 = vmatprep.mubr.msk.f32.mxu0 %vm705_vm0, %v620_v1  ;;  %v3344_v30 = vld [vmem:[#allocation2 + $0x2a0] ss:$2 sm:$0xff]  ;;  %v3620_v36 = vld [vmem:[#allocation2 + $0x2a1] ss:$2 sm:$0xff] }
 0x1a0   : > { %v3853_v49 = vmax.f32 %v3344_v30, %v3620_v36  ;;  %v628_v55 = vld [vmem:[%s12090_s18 + $0x660] sm:$0xff]  ;;  %v629_v6 = vld [vmem:[%s12090_s18 + $0x668] sm:$0xff] }
 0x1a1   : > { %v4045_v15 = vadd.f32 %v12770_v14, %v3969_v8  ;;  %v4813_v16 = vld [vmem:[#allocation3 + $0x90] sm:$0xff]  ;;  %v10864_v21 = vpop.f32.mrb[90].mxu0  ;;  %v632_v36 = vld [vmem:[%s12090_s18 + $0x680] sm:$0xff] }
 0x1a2   : > { %v4182_v17 = vld [vmem:[#allocation3 + $0x90] sm:$0xff]  ;;  %4954 = vrot.lane.b32.xlu0 %v4813_v16, %s11993_s29  ;;  %4451 = vrot.lane.b32.xlu1 %v4308_v20, %s11993_s29  ;;  %3075 = vst.msk [vmem:[#allocation2 + $0x2d8] sm:$0xff] %vm2983_vm2, %v10864_v21  ;;  %v2054_v22 = vpop.f32.mrb[91].mxu0 }
 0x1a3   : > { %v5693_v19 = vld [vmem:[#allocation3 + $0x90] sm:$0xff]  ;;  %4115 = vst.msk [vmem:[#allocation3 + $0xa0] sm:$0x7f] %vm4096_vm3, %v4045_v15  ;;  %11022 = vmatmul.mubr.msk.f32.gmra.mrb[196].mxu0 %vm705_vm0, %v621_v11 }
 0x1a4   : > { %4246 = vst.msk [vmem:[#allocation4 + $0x2d0] sm:$0xff] %vm2983_vm2, %v4182_v17  ;;  %5756 = vst.msk [vmem:[#allocation4 + $0x1f8] sm:$0xff] %vm2983_vm2, %v5693_v19  ;;  %11024 = vmatprep.mubr.msk.f32.mxu0 %vm705_vm0, %v622_v13  ;;  %v3346_v51 = vld [vmem:[#allocation2 + $0x2b0] ss:$2 sm:$0xff]  ;;  %v3622_v58 = vld [vmem:[#allocation2 + $0x2b1] ss:$2 sm:$0xff] }
 0x1a5   : > { %3074 = vst.msk [vmem:[#allocation2 + $0x2d0] sm:$0xff] %vm2983_vm2, %v2054_v22  ;;  %v4814_v24 = vld [vmem:[#allocation3 + $0x98] sm:$0xff]  ;;  %v10867_v26 = vpop.f32.mrb[92].mxu0  ;;  %v3854_v17 = vmax.f32 %v3346_v51, %v3622_v58  ;;  %v636_v51 = vld [vmem:[%s12090_s18 + $0x6a0] sm:$0xff] }
 0x1a6   : > { %v4309_v25 = vld [vmem:[#allocation3 + $0x91] sm:$0xff]  ;;  %4956 = vrot.lane.b32.xlu0 %v4814_v24, %s11993_s29  ;;  %3077 = vst.msk [vmem:[#allocation2 + $0x2e8] sm:$0xff] %vm2983_vm2, %v10867_v26  ;;  %v2064_v31 = vpop.f32.mrb[93].mxu0  ;;  %v3348_v19 = vld [vmem:[#allocation2 + $0x2c0] ss:$2 sm:$0x7f] }
 0x1a7   : > { %v4183_v29 = vld [vmem:[#allocation3 + $0x98] sm:$0xff]  ;;  %4453 = vrot.lane.b32.xlu1 %v4309_v25, %s11993_s29  ;;  %11025 = vmatmul.mubr.msk.f32.gmra.mrb[198].mxu0 %vm705_vm0, %v623_v18  ;;  %3076 = vst.msk [vmem:[#allocation2 + $0x2e0] sm:$0xff] %vm2983_vm2, %v2064_v31  ;;  %v3624_v20 = vld [vmem:[#allocation2 + $0x2c1] ss:$2 sm:$0x7f]  ;;  %v630_v18 = vld [vmem:[%s12090_s18 + $0x670] sm:$0xff] }
 0x1a8   : > { %4247 = vst.msk [vmem:[#allocation4 + $0x2f8] sm:$0xff] %vm2983_vm2, %v4183_v29  ;;  %v4689_v34 = vld [vmem:[#allocation3 + $0x92] sm:$0xff]  ;;  %11027 = vmatprep.mubr.msk.f32.mxu0 %vm705_vm0, %v624_v23  ;;  %v3855_v26 = vmax.f32 %v3348_v19, %v3624_v20 }
 0x1a9   : > { %4752 = vst.msk [vmem:[#allocation4 + $0x2d8] sm:$0xff] %vm2983_vm2, %v4689_v34  ;;  %v10870_v39 = vpop.f32.mrb[94].mxu0  ;;  %v12915_v59 = vld [vmem:[#allocation3 + $0x91] sm:$0xff] }
 0x1aa   : > { %v4815_v37 = vld [vmem:[#allocation3 + $0xa0] sm:$0x1f]  ;;  %3079 = vst.msk [vmem:[#allocation2 + $0x2f8] sm:$0xff] %vm2983_vm2, %v10870_v39  ;;  %v2074_v47 = vpop.f32.mrb[95].mxu0  ;;  %5254 = vst.msk [vmem:[#allocation4 + $0x268] sm:$0xff] %vm2983_vm2, %v12915_v59  ;;  %v5694_v1 = vld [vmem:[#allocation3 + $0x98] sm:$0xff] }
 0x1ab   : > { %v4310_v38 = vld [vmem:[#allocation3 + $0x99] sm:$0xff]  ;;  %4958 = vrot.lane.b32.xlu0 %v4815_v37, %s11993_s29  ;;  %3078 = vst.msk [vmem:[#allocation2 + $0x2f0] sm:$0xff] %vm2983_vm2, %v2074_v47  ;;  %11028 = vmatmul.mubr.msk.f32.gmra.mrb[200].mxu0 %vm705_vm0, %v625_v32  ;;  %v4691_v56 = vld [vmem:[#allocation3 + $0xa2] sm:$0x1f]  ;;  %5757 = vst.msk [vmem:[#allocation4 + $0x220] sm:$0xff] %vm2983_vm2, %v5694_v1 }
 0x1ac   : > { %v4184_v43 = vld [vmem:[#allocation3 + $0xa0] sm:$0x1f]  ;;  %v3350_v45 = vld [vmem:[#allocation2 + $0x2d0] ss:$2 sm:$0xff]  ;;  %v3626_v46 = vld [vmem:[#allocation2 + $0x2d1] ss:$2 sm:$0xff]  ;;  %4455 = vrot.lane.b32.xlu1 %v4310_v38, %s11993_s29  ;;  %11030 = vmatprep.mubr.msk.f32.mxu0 %vm705_vm0, %v626_v41 }
 0x1ad   : > { %v4690_v44 = vld [vmem:[#allocation3 + $0x9a] sm:$0xff]  ;;  %4248 = vst.msk [vmem:[#allocation4 + $0x320] sm:$0x1f] %vm4229_vm4, %v4184_v43  ;;  %v3856_v53 = vmax.f32 %v3350_v45, %v3626_v46  ;;  %4754 = vst.msk [vmem:[#allocation4 + $0x328] sm:$0x1f] %vm4229_vm4, %v4691_v56  ;;  %v10873_v62 = vpop.f32.mrb[96].mxu0 }
 0x1ae   : > { %4753 = vst.msk [vmem:[#allocation4 + $0x300] sm:$0xff] %vm2983_vm2, %v4690_v44  ;;  %v12917_v60 = vld [vmem:[#allocation3 + $0x99] sm:$0xff]  ;;  %v4311_v61 = vld [vmem:[#allocation3 + $0xa1] sm:$0x1f]  ;;  %3081 = vst.msk [vmem:[#allocation2 + $0x308] sm:$0xff] %vm2983_vm2, %v10873_v62  ;;  %v2084_v5 = vpop.f32.mrb[97].mxu0 }
 0x1af   : > { %v3970_v63 = vmax.f32 %v3853_v49, %v3856_v53  ;;  %5255 = vst.msk [vmem:[#allocation4 + $0x290] sm:$0xff] %vm2983_vm2, %v12917_v60  ;;  %v5193_v0 = vld [vmem:[#allocation3 + $0xa1] sm:$0x1f]  ;;  %v6197_v8 = vld [vmem:[#allocation3 + $0x92] sm:$0xff]  ;;  %3080 = vst.msk [vmem:[#allocation2 + $0x300] sm:$0xff] %vm2983_vm2, %v2084_v5  ;;  %11031 = vmatmul.mubr.msk.f32.gmra.mrb[202].mxu0 %vm705_vm0, %v627_v48 }
 0x1b0   : > { %4457 = vrot.lane.b32.xlu1 %v4311_v61, %s11993_s29  ;;  %5256 = vst.msk [vmem:[#allocation4 + $0x2b8] sm:$0x1f] %vm4229_vm4, %v5193_v0  ;;  %v5695_v7 = vld [vmem:[#allocation3 + $0xa0] sm:$0x1f]  ;;  %11033 = vmatprep.mubr.msk.f32.mxu0 %vm705_vm0, %v628_v55  ;;  %v631_v31 = vld [vmem:[%s12090_s18 + $0x678] sm:$0xff]  ;;  %v633_v39 = vld [vmem:[%s12090_s18 + $0x688] sm:$0xff] }
 0x1b1   : > { %v6198_v10 = vld [vmem:[#allocation3 + $0x9a] sm:$0xff]  ;;  %v4046_v15 = vadd.f32 %v12770_v14, %v3970_v63  ;;  %5758 = vst.msk [vmem:[#allocation4 + $0x248] sm:$0x1f] %vm4229_vm4, %v5695_v7  ;;  %v6199_v16 = vld [vmem:[#allocation3 + $0xa2] sm:$0x1f]  ;;  %v10876_v22 = vpop.f32.mrb[98].mxu0 }
 0x1b2   : > { %v3352_v11 = vld [vmem:[#allocation2 + $0x2e0] ss:$2 sm:$0xff]  ;;  %v3628_v13 = vld [vmem:[#allocation2 + $0x2e1] ss:$2 sm:$0xff]  ;;  %6260 = vst.msk [vmem:[#allocation4 + $0x200] sm:$0xff] %vm2983_vm2, %v6197_v8  ;;  %6261 = vst.msk [vmem:[#allocation4 + $0x228] sm:$0xff] %vm2983_vm2, %v6198_v10 }
 0x1b3   : > { %v3857_v21 = vmax.f32 %v3352_v11, %v3628_v13  ;;  %6262 = vst.msk [vmem:[#allocation4 + $0x250] sm:$0x1f] %vm4229_vm4, %v6199_v16  ;;  %v3354_v23 = vld [vmem:[#allocation2 + $0x2f0] ss:$2 sm:$0x7f]  ;;  %v2094_v30 = vpop.f32.mrb[99].mxu0  ;;  %11034 = vmatmul.mubr.msk.f32.gmra.mrb[204].mxu0 %vm705_vm0, %v629_v6 }
 0x1b4   : > { %4116 = vst.msk [vmem:[#allocation3 + $0xa8] sm:$0xff] %vm2983_vm2, %v4046_v15  ;;  %v3630_v24 = vld [vmem:[#allocation2 + $0x2f1] ss:$2 sm:$0x7f]  ;;  %3083 = vst.msk [vmem:[#allocation2 + $0x318] sm:$0xff] %vm2983_vm2, %v10876_v22  ;;  %11036 = vmatprep.mubr.msk.f32.mxu0 %vm705_vm0, %v630_v18  ;;  %v637_v61 = vld [vmem:[%s12090_s18 + $0x6a8] sm:$0xff] }
 0x1b5   : > { %v3971_v25 = vmax.f32 %v3854_v17, %v3857_v21  ;;  %v3858_v29 = vmax.f32 %v3354_v23, %v3630_v24  ;;  %3082 = vst.msk [vmem:[#allocation2 + $0x310] sm:$0xff] %vm2983_vm2, %v2094_v30  ;;  %v10879_v34 = vpop.f32.mrb[100].mxu0  ;;  %v634_v47 = vld [vmem:[%s12090_s18 + $0x690] sm:$0xff]  ;;  %v635_v49 = vld [vmem:[%s12090_s18 + $0x698] sm:$0xff] }
 0x1b6   : > { %3085 = vst.msk [vmem:[#allocation2 + $0x328] sm:$0xff] %vm2983_vm2, %v10879_v34  ;;  %v2104_v38 = vpop.f32.mrb[101].mxu0  ;;  %v3356_v62 = vld [vmem:[#allocation2 + $0x300] ss:$2 sm:$0xff]  ;;  %v638_v0 = vld [vmem:[%s12090_s18 + $0x6b0] sm:$0xff]  ;;  %v639_v20 = vld [vmem:[%s12090_s18 + $0x6b8] sm:$0xff] }
 0x1b7   : > { %v4047_v32 = vadd.f32 %v12770_v14, %v3971_v25  ;;  %v3972_v37 = vmax.f32 %v3855_v26, %v3858_v29  ;;  %3084 = vst.msk [vmem:[#allocation2 + $0x320] sm:$0xff] %vm2983_vm2, %v2104_v38  ;;  %11037 = vmatmul.mubr.msk.f32.gmra.mrb[206].mxu0 %vm705_vm0, %v631_v31  ;;  %v3632_v6 = vld [vmem:[#allocation2 + $0x301] ss:$2 sm:$0xff] }
 0x1b8   : > { %11039 = vmatprep.mubr.msk.f32.mxu0 %vm705_vm0, %v632_v36  ;;  %v3859_v21 = vmax.f32 %v3356_v62, %v3632_v6  ;;  %v640_v25 = vld [vmem:[%s12090_s18 + $0x6c0] sm:$0xff] }
 0x1b9   : > { %4117 = vst.msk [vmem:[#allocation3 + $0xb0] sm:$0xff] %vm2983_vm2, %v4047_v32  ;;  %v4048_v41 = vadd.f32 %v12770_v14, %v3972_v37  ;;  %v10882_v46 = vpop.f32.mrb[102].mxu0 }
 0x1ba   : > { %3087 = vst.msk [vmem:[#allocation2 + $0x338] sm:$0xff] %vm2983_vm2, %v10882_v46  ;;  %v2114_v48 = vpop.f32.mrb[103].mxu0 }
 0x1bb   : > { %v4816_v43 = vld [vmem:[#allocation3 + $0xa8] sm:$0xff]  ;;  %4118 = vst.msk [vmem:[#allocation3 + $0xb8] sm:$0x7f] %vm4096_vm3, %v4048_v41  ;;  %11040 = vmatmul.mubr.msk.f32.gmra.mrb[208].mxu0 %vm705_vm0, %v633_v39 }
 0x1bc   : > { %v4185_v44 = vld [vmem:[#allocation3 + $0xa8] sm:$0xff]  ;;  %4960 = vrot.lane.b32.xlu0 %v4816_v43, %s11993_s29  ;;  %3086 = vst.msk [vmem:[#allocation2 + $0x330] sm:$0xff] %vm2983_vm2, %v2114_v48  ;;  %11042 = vmatprep.mubr.msk.f32.mxu0 %vm705_vm0, %v634_v47  ;;  %v3358_v22 = vld [vmem:[#allocation2 + $0x310] ss:$2 sm:$0xff]  ;;  %v3634_v18 = vld [vmem:[#allocation2 + $0x311] ss:$2 sm:$0xff] }
 0x1bd   : > { %v5696_v45 = vld [vmem:[#allocation3 + $0xa8] sm:$0xff]  ;;  %4249 = vst.msk [vmem:[#allocation4 + $0x348] sm:$0xff] %vm2983_vm2, %v4185_v44  ;;  %v10885_v56 = vpop.f32.mrb[104].mxu0  ;;  %v3860_v46 = vmax.f32 %v3358_v22, %v3634_v18  ;;  %v647_v22 = vld [vmem:[%s12090_s18 + $0x6f8] sm:$0xff]  ;;  %v648_v18 = vld [vmem:[%s12090_s18 + $0x700] sm:$0xff] }
 0x1be   : > { %5759 = vst.msk [vmem:[#allocation4 + $0x270] sm:$0xff] %vm2983_vm2, %v5696_v45  ;;  %3089 = vst.msk [vmem:[#allocation2 + $0x348] sm:$0xff] %vm2983_vm2, %v10885_v56  ;;  %v2124_v63 = vpop.f32.mrb[105].mxu0  ;;  %v641_v44 = vld [vmem:[%s12090_s18 + $0x6c8] sm:$0xff] }
 0x1bf   : > { %11043 = vmatmul.mubr.msk.f32.gmra.mrb[210].mxu0 %vm705_vm0, %v635_v49  ;;  %3088 = vst.msk [vmem:[#allocation2 + $0x340] sm:$0xff] %vm2983_vm2, %v2124_v63  ;;  %v3360_v47 = vld [vmem:[#allocation2 + $0x320] ss:$2 sm:$0x7f] }
 0x1c0   : > { %v4817_v53 = vld [vmem:[#allocation3 + $0xb0] sm:$0xff]  ;;  %11045 = vmatprep.mubr.msk.f32.mxu0 %vm705_vm0, %v636_v51  ;;  %v3636_v48 = vld [vmem:[#allocation2 + $0x321] ss:$2 sm:$0x7f] }
 0x1c1   : > { %v4312_v55 = vld [vmem:[#allocation3 + $0xa9] sm:$0xff]  ;;  %4962 = vrot.lane.b32.xlu0 %v4817_v53, %s11993_s29  ;;  %v10888_v10 = vpop.f32.mrb[106].mxu0 }
 0x1c2   : > { %v4186_v58 = vld [vmem:[#allocation3 + $0xb0] sm:$0xff]  ;;  %4459 = vrot.lane.b32.xlu1 %v4312_v55, %s11993_s29  ;;  %v4818_v7 = vld [vmem:[#allocation3 + $0xb8] sm:$0x1f]  ;;  %3091 = vst.msk [vmem:[#allocation2 + $0x358] sm:$0xff] %vm2983_vm2, %v10888_v10  ;;  %v2134_v19 = vpop.f32.mrb[107].mxu0 }
 0x1c3   : > { %4250 = vst.msk [vmem:[#allocation4 + $0x370] sm:$0xff] %vm2983_vm2, %v4186_v58  ;;  %v4692_v1 = vld [vmem:[#allocation3 + $0xaa] sm:$0xff]  ;;  %v4187_v11 = vld [vmem:[#allocation3 + $0xb8] sm:$0x1f]  ;;  %3090 = vst.msk [vmem:[#allocation2 + $0x350] sm:$0xff] %vm2983_vm2, %v2134_v19  ;;  %11046 = vmatmul.mubr.msk.f32.gmra.mrb[212].mxu0 %vm705_vm0, %v637_v61  ;;  %v3861_v61 = vmax.f32 %v3360_v47, %v3636_v48 }
 0x1c4   : > { %v12970_v5 = vld [vmem:[#allocation3 + $0xa9] sm:$0xff]  ;;  %v4313_v8 = vld [vmem:[#allocation3 + $0xb1] sm:$0xff]  ;;  %4755 = vst.msk [vmem:[#allocation4 + $0x350] sm:$0xff] %vm2983_vm2, %v4692_v1  ;;  %v4694_v15 = vld [vmem:[#allocation3 + $0xba] sm:$0x1f]  ;;  %11048 = vmatprep.mubr.msk.f32.mxu0 %vm705_vm0, %v638_v0 }
 0x1c5   : > { %5257 = vst.msk [vmem:[#allocation4 + $0x2e0] sm:$0xff] %vm2983_vm2, %v12970_v5  ;;  %v4693_v13 = vld [vmem:[#allocation3 + $0xb2] sm:$0xff]  ;;  %4964 = vrot.lane.b32.xlu0 %v4818_v7, %s11993_s29  ;;  %v10891_v34 = vpop.f32.mrb[108].mxu0  ;;  %v6200_v36 = vld [vmem:[#allocation3 + $0xaa] sm:$0xff]  ;;  %v6202_v38 = vld [vmem:[#allocation3 + $0xba] sm:$0x1f] }
 0x1c6   : > { %v3362_v16 = vld [vmem:[#allocation2 + $0x330] ss:$2 sm:$0xff]  ;;  %v3638_v17 = vld [vmem:[#allocation2 + $0x331] ss:$2 sm:$0xff]  ;;  %4461 = vrot.lane.b32.xlu1 %v4313_v8, %s11993_s29  ;;  %4251 = vst.msk [vmem:[#allocation4 + $0x398] sm:$0x1f] %vm4229_vm4, %v4187_v11 }
 0x1c7   : > { %4756 = vst.msk [vmem:[#allocation4 + $0x378] sm:$0xff] %vm2983_vm2, %v4693_v13  ;;  %v3862_v23 = vmax.f32 %v3362_v16, %v3638_v17  ;;  %v4314_v24 = vld [vmem:[#allocation3 + $0xb9] sm:$0x1f]  ;;  %v12987_v26 = vld [vmem:[#allocation3 + $0xb1] sm:$0xff]  ;;  %3093 = vst.msk [vmem:[#allocation2 + $0x368] sm:$0xff] %vm2983_vm2, %v10891_v34  ;;  %v2144_v39 = vpop.f32.mrb[109].mxu0  ;;  %11049 = vmatmul.mubr.msk.f32.gmra.mrb[214].mxu0 %vm705_vm0, %v639_v20 }
 0x1c8   : > { %4757 = vst.msk [vmem:[#allocation4 + $0x3a0] sm:$0x1f] %vm4229_vm4, %v4694_v15  ;;  %v5196_v29 = vld [vmem:[#allocation3 + $0xb9] sm:$0x1f]  ;;  %v5697_v30 = vld [vmem:[#allocation3 + $0xb0] sm:$0xff]  ;;  %11051 = vmatprep.mubr.msk.f32.mxu0 %vm705_vm0, %v640_v25  ;;  %v644_v8 = vld [vmem:[%s12090_s18 + $0x6e0] sm:$0xff] }
 0x1c9   : > { %5258 = vst.msk [vmem:[#allocation4 + $0x308] sm:$0xff] %vm2983_vm2, %v12987_v26  ;;  %v5698_v31 = vld [vmem:[#allocation3 + $0xb8] sm:$0x1f]  ;;  %v3973_v32 = vmax.f32 %v3859_v21, %v3862_v23  ;;  %5760 = vst.msk [vmem:[#allocation4 + $0x298] sm:$0xff] %vm2983_vm2, %v5697_v30  ;;  %v3364_v41 = vld [vmem:[#allocation2 + $0x340] ss:$2 sm:$0xff] }
 0x1ca   : > { %5259 = vst.msk [vmem:[#allocation4 + $0x330] sm:$0x1f] %vm4229_vm4, %v5196_v29  ;;  %5761 = vst.msk [vmem:[#allocation4 + $0x2c0] sm:$0x1f] %vm4229_vm4, %v5698_v31  ;;  %v6201_v37 = vld [vmem:[#allocation3 + $0xb2] sm:$0xff]  ;;  %4463 = vrot.lane.b32.xlu1 %v4314_v24, %s11993_s29  ;;  %v10894_v51 = vpop.f32.mrb[110].mxu0 }
 0x1cb   : > { %6263 = vst.msk [vmem:[#allocation4 + $0x278] sm:$0xff] %vm2983_vm2, %v6200_v36  ;;  %6264 = vst.msk [vmem:[#allocation4 + $0x2a0] sm:$0xff] %vm2983_vm2, %v6201_v37  ;;  %v3640_v43 = vld [vmem:[#allocation2 + $0x341] ss:$2 sm:$0xff]  ;;  %v4049_v45 = vadd.f32 %v12770_v14, %v3973_v32  ;;  %v642_v53 = vld [vmem:[%s12090_s18 + $0x6d0] sm:$0xff]  ;;  %v2154_v63 = vpop.f32.mrb[111].mxu0  ;;  %11052 = vmatmul.mubr.msk.f32.gmra.mrb[216].mxu0 %vm705_vm0, %v641_v44 }
 0x1cc   : > { %6265 = vst.msk [vmem:[#allocation4 + $0x2c8] sm:$0x1f] %vm4229_vm4, %v6202_v38  ;;  %v3863_v49 = vmax.f32 %v3364_v41, %v3640_v43  ;;  %v3366_v56 = vld [vmem:[#allocation2 + $0x350] ss:$2 sm:$0x7f]  ;;  %11054 = vmatprep.mubr.msk.f32.mxu0 %vm705_vm0, %v642_v53  ;;  %v645_v11 = vld [vmem:[%s12090_s18 + $0x6e8] sm:$0xff] }
 0x1cd   : > { %3092 = vst.msk [vmem:[#allocation2 + $0x360] sm:$0xff] %vm2983_vm2, %v2144_v39  ;;  %4119 = vst.msk [vmem:[#allocation3 + $0xc0] sm:$0xff] %vm2983_vm2, %v4049_v45  ;;  %v3642_v58 = vld [vmem:[#allocation2 + $0x351] ss:$2 sm:$0x7f]  ;;  %v10897_v7 = vpop.f32.mrb[112].mxu0 }
 0x1ce   : > { %v3974_v55 = vmax.f32 %v3860_v46, %v3863_v49  ;;  %3095 = vst.msk [vmem:[#allocation2 + $0x378] sm:$0xff] %vm2983_vm2, %v10894_v51  ;;  %v3864_v62 = vmax.f32 %v3366_v56, %v3642_v58  ;;  %3094 = vst.msk [vmem:[#allocation2 + $0x370] sm:$0xff] %vm2983_vm2, %v2154_v63  ;;  %v643_v0 = vld [vmem:[%s12090_s18 + $0x6d8] sm:$0xff]  ;;  %v2164_v10 = vpop.f32.mrb[113].mxu0  ;;  %v646_v20 = vld [vmem:[%s12090_s18 + $0x6f0] sm:$0xff] }
 0x1cf   : > { %3097 = vst.msk [vmem:[#allocation2 + $0x388] sm:$0xff] %vm2983_vm2, %v10897_v7  ;;  %3096 = vst.msk [vmem:[#allocation2 + $0x380] sm:$0xff] %vm2983_vm2, %v2164_v10  ;;  %11055 = vmatmul.mubr.msk.f32.gmra.mrb[218].mxu0 %vm705_vm0, %v643_v0  ;;  %v649_v30 = vld [vmem:[%s12090_s18 + $0x708] sm:$0xff]  ;;  %v650_v34 = vld [vmem:[%s12090_s18 + $0x710] sm:$0xff] }
 0x1d0   : > { %v4050_v1 = vadd.f32 %v12770_v14, %v3974_v55  ;;  %v3975_v6 = vmax.f32 %v3861_v61, %v3864_v62  ;;  %11057 = vmatprep.mubr.msk.f32.mxu0 %vm705_vm0, %v644_v8  ;;  %v651_v51 = vld [vmem:[%s12090_s18 + $0x718] sm:$0xff]  ;;  %v652_v62 = vld [vmem:[%s12090_s18 + $0x720] sm:$0xff] }
 0x1d1   : > { %v10900_v19 = vpop.f32.mrb[114].mxu0 }
 0x1d2   : > { %4120 = vst.msk [vmem:[#allocation3 + $0xc8] sm:$0xff] %vm2983_vm2, %v4050_v1  ;;  %v4051_v13 = vadd.f32 %v12770_v14, %v3975_v6  ;;  %3099 = vst.msk [vmem:[#allocation2 + $0x398] sm:$0xff] %vm2983_vm2, %v10900_v19  ;;  %v2174_v21 = vpop.f32.mrb[115].mxu0  ;;  %v653_v19 = vld [vmem:[%s12090_s18 + $0x728] sm:$0xff] }
 0x1d3   : > { %3098 = vst.msk [vmem:[#allocation2 + $0x390] sm:$0xff] %vm2983_vm2, %v2174_v21  ;;  %11058 = vmatmul.mubr.msk.f32.gmra.mrb[220].mxu0 %vm705_vm0, %v645_v11 }
 0x1d4   : > { %v4819_v15 = vld [vmem:[#allocation3 + $0xc0] sm:$0xff]  ;;  %4121 = vst.msk [vmem:[#allocation3 + $0xd0] sm:$0x7f] %vm4096_vm3, %v4051_v13  ;;  %11060 = vmatprep.mubr.msk.f32.mxu0 %vm705_vm0, %v646_v20 }
 0x1d5   : > { %v4188_v16 = vld [vmem:[#allocation3 + $0xc0] sm:$0xff]  ;;  %4966 = vrot.lane.b32.xlu0 %v4819_v15, %s11993_s29  ;;  %v10903_v25 = vpop.f32.mrb[116].mxu0  ;;  %v3370_v55 = vld [vmem:[#allocation2 + $0x370] ss:$2 sm:$0xff]  ;;  %v3646_v56 = vld [vmem:[#allocation2 + $0x371] ss:$2 sm:$0xff] }
 0x1d6   : > { %v5699_v17 = vld [vmem:[#allocation3 + $0xc0] sm:$0xff]  ;;  %4252 = vst.msk [vmem:[#allocation4 + $0x3c0] sm:$0xff] %vm2983_vm2, %v4188_v16  ;;  %3101 = vst.msk [vmem:[#allocation2 + $0x3a8] sm:$0xff] %vm2983_vm2, %v10903_v25  ;;  %v2184_v32 = vpop.f32.mrb[117].mxu0  ;;  %v3866_v21 = vmax.f32 %v3370_v55, %v3646_v56  ;;  %v654_v25 = vld [vmem:[%s12090_s18 + $0x730] sm:$0xff] }
 0x1d7   : > { %5762 = vst.msk [vmem:[#allocation4 + $0x2e8] sm:$0xff] %vm2983_vm2, %v5699_v17  ;;  %v3368_v31 = vld [vmem:[#allocation2 + $0x360] ss:$2 sm:$0xff]  ;;  %11061 = vmatmul.mubr.msk.f32.gmra.mrb[222].mxu0 %vm705_vm0, %v647_v22  ;;  %v3644_v38 = vld [vmem:[#allocation2 + $0x361] ss:$2 sm:$0xff]  ;;  %3100 = vst.msk [vmem:[#allocation2 + $0x3a0] sm:$0xff] %vm2983_vm2, %v2184_v32 }
 0x1d8   : > { %11063 = vmatprep.mubr.msk.f32.mxu0 %vm705_vm0, %v648_v18  ;;  %v3865_v53 = vmax.f32 %v3368_v31, %v3644_v38  ;;  %v3372_v22 = vld [vmem:[#allocation2 + $0x380] ss:$2 sm:$0x7f]  ;;  %v3648_v18 = vld [vmem:[#allocation2 + $0x381] ss:$2 sm:$0x7f] }
 0x1d9   : > { %v4820_v23 = vld [vmem:[#allocation3 + $0xc8] sm:$0xff]  ;;  %v10906_v43 = vpop.f32.mrb[118].mxu0  ;;  %v3867_v32 = vmax.f32 %v3372_v22, %v3648_v18  ;;  %v13084_v38 = vld [vmem:[%s15399_s3] ss:$0 sm:$0xff]  ;;  %v658_v55 = vld [vmem:[%s12090_s18 + $0x750] sm:$0xff] }
 0x1da   : > { %v4315_v24 = vld [vmem:[#allocation3 + $0xc1] sm:$0xff]  ;;  %4968 = vrot.lane.b32.xlu0 %v4820_v23, %s11993_s29  ;;  %v3374_v47 = vld [vmem:[#allocation2 + $0x390] ss:$2 sm:$0xff]  ;;  %v3650_v48 = vld [vmem:[#allocation2 + $0x391] ss:$2 sm:$0xff]  ;;  %3103 = vst.msk [vmem:[#allocation2 + $0x3b8] sm:$0xff] %vm2983_vm2, %v10906_v43 }
 0x1db   : > { %v4189_v29 = vld [vmem:[#allocation3 + $0xc8] sm:$0xff]  ;;  %4465 = vrot.lane.b32.xlu1 %v4315_v24, %s11993_s29  ;;  %v4821_v39 = vld [vmem:[#allocation3 + $0xd0] sm:$0x1f]  ;;  %v2194_v49 = vpop.f32.mrb[119].mxu0  ;;  %v3868_v58 = vmax.f32 %v3374_v47, %v3650_v48  ;;  %11064 = vmatmul.mubr.msk.f32.gmra.mrb[224].mxu0 %vm705_vm0, %v649_v30 }
 0x1dc   : > { %4253 = vst.msk [vmem:[#allocation4 + $0x3e8] sm:$0xff] %vm2983_vm2, %v4189_v29  ;;  %v4695_v36 = vld [vmem:[#allocation3 + $0xc2] sm:$0xff]  ;;  %v4190_v44 = vld [vmem:[#allocation3 + $0xd0] sm:$0x1f]  ;;  %3102 = vst.msk [vmem:[#allocation2 + $0x3b0] sm:$0xff] %vm2983_vm2, %v2194_v49  ;;  %11066 = vmatprep.mubr.msk.f32.mxu0 %vm705_vm0, %v650_v34 }
 0x1dd   : > { %v13039_v37 = vld [vmem:[#allocation3 + $0xc1] sm:$0xff]  ;;  %v4316_v41 = vld [vmem:[#allocation3 + $0xc9] sm:$0xff]  ;;  %4758 = vst.msk [vmem:[#allocation4 + $0x3c8] sm:$0xff] %vm2983_vm2, %v4695_v36  ;;  %v4697_v46 = vld [vmem:[#allocation3 + $0xd2] sm:$0x1f]  ;;  %v3976_v7 = vmax.f32 %v3865_v53, %v3868_v58  ;;  %v10909_v8 = vpop.f32.mrb[120].mxu0 }
 0x1de   : > { %5260 = vst.msk [vmem:[#allocation4 + $0x358] sm:$0xff] %vm2983_vm2, %v13039_v37  ;;  %v4696_v45 = vld [vmem:[#allocation3 + $0xca] sm:$0xff]  ;;  %4970 = vrot.lane.b32.xlu0 %v4821_v39, %s11993_s29  ;;  %v6203_v10 = vld [vmem:[#allocation3 + $0xc2] sm:$0xff]  ;;  %v6205_v13 = vld [vmem:[#allocation3 + $0xd2] sm:$0x1f]  ;;  %v2204_v15 = vpop.f32.mrb[121].mxu0 }
 0x1df   : > { %4467 = vrot.lane.b32.xlu1 %v4316_v41, %s11993_s29  ;;  %4254 = vst.msk [vmem:[#allocation4 + $0x410] sm:$0x1f] %vm4229_vm4, %v4190_v44  ;;  %4760 = vst.msk [vmem:[#allocation4 + $0x418] sm:$0x1f] %vm4229_vm4, %v4697_v46  ;;  %v4317_v61 = vld [vmem:[#allocation3 + $0xd1] sm:$0x1f]  ;;  %11067 = vmatmul.mubr.msk.f32.gmra.mrb[226].mxu0 %vm705_vm0, %v651_v51  ;;  %v4052_v20 = vadd.f32 %v12770_v14, %v3976_v7 }
 0x1e0   : > { %4759 = vst.msk [vmem:[#allocation4 + $0x3f0] sm:$0xff] %vm2983_vm2, %v4696_v45  ;;  %v13056_v63 = vld [vmem:[#allocation3 + $0xc9] sm:$0xff]  ;;  %v5199_v0 = vld [vmem:[#allocation3 + $0xd1] sm:$0x1f]  ;;  %3105 = vst.msk [vmem:[#allocation2 + $0x3c8] sm:$0xff] %vm2983_vm2, %v10909_v8  ;;  %11069 = vmatprep.mubr.msk.f32.mxu0 %vm705_vm0, %v652_v62 }
 0x1e1   : > { %5261 = vst.msk [vmem:[#allocation4 + $0x380] sm:$0xff] %vm2983_vm2, %v13056_v63  ;;  %v5700_v1 = vld [vmem:[#allocation3 + $0xc8] sm:$0xff]  ;;  %v5701_v6 = vld [vmem:[#allocation3 + $0xd0] sm:$0x1f]  ;;  %6266 = vst.msk [vmem:[#allocation4 + $0x2f0] sm:$0xff] %vm2983_vm2, %v6203_v10  ;;  %v10912_v24 = vpop.f32.mrb[122].mxu0 }
 0x1e2   : > { %5262 = vst.msk [vmem:[#allocation4 + $0x3a8] sm:$0x1f] %vm4229_vm4, %v5199_v0  ;;  %5764 = vst.msk [vmem:[#allocation4 + $0x338] sm:$0x1f] %vm4229_vm4, %v5701_v6  ;;  %v6204_v11 = vld [vmem:[#allocation3 + $0xca] sm:$0xff]  ;;  %v2214_v14 = vpop.f32.mrb[123].mxu0 }
 0x1e3   : > { %5763 = vst.msk [vmem:[#allocation4 + $0x310] sm:$0xff] %vm2983_vm2, %v5700_v1  ;;  %4469 = vrot.lane.b32.xlu1 %v4317_v61, %s11993_s29  ;;  %6267 = vst.msk [vmem:[#allocation4 + $0x318] sm:$0xff] %vm2983_vm2, %v6204_v11  ;;  %v3376_v16 = vld [vmem:[#allocation2 + $0x3a0] ss:$2 sm:$0xff]  ;;  %v3652_v17 = vld [vmem:[#allocation2 + $0x3a1] ss:$2 sm:$0xff]  ;;  %11070 = vmatmul.mubr.msk.f32.gmra.mrb[228].mxu0 %vm705_vm0, %v653_v19 }
 0x1e4   : > { %6268 = vst.msk [vmem:[#allocation4 + $0x340] sm:$0x1f] %vm4229_vm4, %v6205_v13  ;;  %v3869_v23 = vmax.f32 %v3376_v16, %v3652_v17  ;;  %v3378_v30 = vld [vmem:[#allocation2 + $0x3b0] ss:$2 sm:$0x7f]  ;;  %11072 = vmatprep.mubr.msk.f32.mxu0 %vm705_vm0, %v654_v25  ;;  %v656_v44 = vld [vmem:[%s12090_s18 + $0x740] sm:$0xff] }
 0x1e5   : > { %3104 = vst.msk [vmem:[#allocation2 + $0x3c0] sm:$0xff] %vm2983_vm2, %v2204_v15  ;;  %4122 = vst.msk [vmem:[#allocation3 + $0xd8] sm:$0xff] %vm2983_vm2, %v4052_v20  ;;  %v3654_v31 = vld [vmem:[#allocation2 + $0x3b1] ss:$2 sm:$0x7f]  ;;  %v10915_v43 = vpop.f32.mrb[124].mxu0 }
 0x1e6   : > { %v3977_v29 = vmax.f32 %v3866_v21, %v3869_v23  ;;  %3107 = vst.msk [vmem:[#allocation2 + $0x3d8] sm:$0xff] %vm2983_vm2, %v10912_v24  ;;  %v3870_v34 = vmax.f32 %v3378_v30, %v3654_v31  ;;  %3106 = vst.msk [vmem:[#allocation2 + $0x3d0] sm:$0xff] %vm2983_vm2, %v2214_v14  ;;  %v655_v36 = vld [vmem:[%s12090_s18 + $0x738] sm:$0xff]  ;;  %v2224_v45 = vpop.f32.mrb[125].mxu0  ;;  %v657_v46 = vld [vmem:[%s12090_s18 + $0x748] sm:$0xff] }
 0x1e7   : > { %3109 = vst.msk [vmem:[#allocation2 + $0x3e8] sm:$0xff] %vm2983_vm2, %v10915_v43  ;;  %3108 = vst.msk [vmem:[#allocation2 + $0x3e0] sm:$0xff] %vm2983_vm2, %v2224_v45  ;;  %11073 = vmatmul.mubr.msk.f32.gmra.mrb[230].mxu0 %vm705_vm0, %v655_v36  ;;  %v659_v58 = vld [vmem:[%s12090_s18 + $0x758] sm:$0xff]  ;;  %v660_v61 = vld [vmem:[%s12090_s18 + $0x760] sm:$0xff] }
 0x1e8   : > { %v4053_v39 = vadd.f32 %v13084_v38, %v3977_v29  ;;  %v3978_v41 = vmax.f32 %v3867_v32, %v3870_v34  ;;  %11075 = vmatprep.mubr.msk.f32.mxu0 %vm705_vm0, %v656_v44  ;;  %v661_v7 = vld [vmem:[%s12090_s18 + $0x768] sm:$0xff]  ;;  %v662_v11 = vld [vmem:[%s12090_s18 + $0x770] sm:$0xff]  ;;  %v663_v29 = vld [vmem:[%s12090_s18 + $0x778] sm:$0xff] }
 0x1e9   : > { %v10918_v53 = vpop.f32.mrb[126].mxu0  ;;  %v664_v36 = vld [vmem:[%s12090_s18 + $0x780] sm:$0xff] }
 0x1ea   : > { %4123 = vst.msk [vmem:[#allocation3 + $0xe0] sm:$0xff] %vm2983_vm2, %v4053_v39  ;;  %v4054_v47 = vadd.f32 %v13084_v38, %v3978_v41  ;;  %3111 = vst.msk [vmem:[#allocation2 + $0x3f8] sm:$0xff] %vm2983_vm2, %v10918_v53  ;;  %v2234_v56 = vpop.f32.mrb[127].mxu0 }
 0x1eb   : > { %3110 = vst.msk [vmem:[#allocation2 + $0x3f0] sm:$0xff] %vm2983_vm2, %v2234_v56  ;;  %11076 = vmatmul.mubr.msk.f32.gmra.mrb[232].mxu0 %vm705_vm0, %v657_v46  ;;  %v665_v56 = vld [vmem:[%s12090_s18 + $0x788] sm:$0xff] }
 0x1ec   : > { %v4822_v48 = vld [vmem:[#allocation3 + $0xd8] sm:$0xff]  ;;  %4124 = vst.msk [vmem:[#allocation3 + $0xe8] sm:$0x7f] %vm4096_vm3, %v4054_v47  ;;  %11078 = vmatprep.mubr.msk.f32.mxu0 %vm705_vm0, %v658_v55  ;;  %v3380_v8 = vld [vmem:[#allocation2 + $0x3c0] ss:$2 sm:$0xff] }
 0x1ed   : > { %v4191_v49 = vld [vmem:[#allocation3 + $0xd8] sm:$0xff]  ;;  %4972 = vrot.lane.b32.xlu0 %v4822_v48, %s11993_s29  ;;  %v10921_v1 = vpop.f32.mrb[128].mxu0  ;;  %v3656_v16 = vld [vmem:[#allocation2 + $0x3c1] ss:$2 sm:$0xff] }
 0x1ee   : > { %v5702_v51 = vld [vmem:[#allocation3 + $0xd8] sm:$0xff]  ;;  %4255 = vst.msk [vmem:[#allocation4 + $0x438] sm:$0xff] %vm2983_vm2, %v4191_v49  ;;  %3113 = vst.msk [vmem:[#allocation2 + $0x408] sm:$0xff] %vm2983_vm2, %v10921_v1  ;;  %v2244_v10 = vpop.f32.mrb[129].mxu0  ;;  %v3871_v30 = vmax.f32 %v3380_v8, %v3656_v16 }
 0x1ef   : > { %5765 = vst.msk [vmem:[#allocation4 + $0x360] sm:$0xff] %vm2983_vm2, %v5702_v51  ;;  %11079 = vmatmul.mubr.msk.f32.gmra.mrb[234].mxu0 %vm705_vm0, %v659_v58  ;;  %3112 = vst.msk [vmem:[#allocation2 + $0x400] sm:$0xff] %vm2983_vm2, %v2244_v10  ;;  %v3382_v31 = vld [vmem:[#allocation2 + $0x3d0] ss:$2 sm:$0xff]  ;;  %v3658_v32 = vld [vmem:[#allocation2 + $0x3d1] ss:$2 sm:$0xff] }
 0x1f0   : > { %11081 = vmatprep.mubr.msk.f32.mxu0 %vm705_vm0, %v660_v61  ;;  %v3872_v61 = vmax.f32 %v3382_v31, %v3658_v32 }
 0x1f1   : > { %v4823_v62 = vld [vmem:[#allocation3 + $0xe0] sm:$0xff]  ;;  %v10924_v20 = vpop.f32.mrb[130].mxu0 }
 0x1f2   : > { %v4318_v0 = vld [vmem:[#allocation3 + $0xd9] sm:$0xff]  ;;  %4974 = vrot.lane.b32.xlu0 %v4823_v62, %s11993_s29  ;;  %3115 = vst.msk [vmem:[#allocation2 + $0x418] sm:$0xff] %vm2983_vm2, %v10924_v20  ;;  %v2254_v25 = vpop.f32.mrb[131].mxu0 }
 0x1f3   : > { %v4192_v6 = vld [vmem:[#allocation3 + $0xe0] sm:$0xff]  ;;  %4471 = vrot.lane.b32.xlu1 %v4318_v0, %s11993_s29  ;;  %v4824_v17 = vld [vmem:[#allocation3 + $0xe8] sm:$0x1f]  ;;  %v3386_v23 = vld [vmem:[#allocation2 + $0x3f0] ss:$2 sm:$0xff]  ;;  %3114 = vst.msk [vmem:[#allocation2 + $0x410] sm:$0xff] %vm2983_vm2, %v2254_v25  ;;  %11082 = vmatmul.mubr.msk.f32.gmra.mrb[236].mxu0 %vm705_vm0, %v661_v7 }
 0x1f4   : > { %4256 = vst.msk [vmem:[#allocation4 + $0x460] sm:$0xff] %vm2983_vm2, %v4192_v6  ;;  %v4698_v13 = vld [vmem:[#allocation3 + $0xda] sm:$0xff]  ;;  %v4193_v21 = vld [vmem:[#allocation3 + $0xe8] sm:$0x1f]  ;;  %11084 = vmatprep.mubr.msk.f32.mxu0 %vm705_vm0, %v662_v11  ;;  %v666_v7 = vld [vmem:[%s12090_s18 + $0x790] sm:$0xff] }
 0x1f5   : > { %v13113_v15 = vld [vmem:[#allocation3 + $0xd9] sm:$0xff]  ;;  %v4319_v19 = vld [vmem:[#allocation3 + $0xe1] sm:$0xff]  ;;  %4761 = vst.msk [vmem:[#allocation4 + $0x440] sm:$0xff] %vm2983_vm2, %v4698_v13  ;;  %v4700_v18 = vld [vmem:[#allocation3 + $0xea] sm:$0x1f]  ;;  %v10927_v46 = vpop.f32.mrb[132].mxu0 }
 0x1f6   : > { %5263 = vst.msk [vmem:[#allocation4 + $0x3d0] sm:$0xff] %vm2983_vm2, %v13113_v15  ;;  %v4699_v22 = vld [vmem:[#allocation3 + $0xe2] sm:$0xff]  ;;  %v3662_v24 = vld [vmem:[#allocation2 + $0x3f1] ss:$2 sm:$0xff]  ;;  %4976 = vrot.lane.b32.xlu0 %v4824_v17, %s11993_s29  ;;  %v6208_v49 = vld [vmem:[#allocation3 + $0xea] sm:$0x1f] }
 0x1f7   : > { %4473 = vrot.lane.b32.xlu1 %v4319_v19, %s11993_s29  ;;  %4257 = vst.msk [vmem:[#allocation4 + $0x488] sm:$0x1f] %vm4229_vm4, %v4193_v21  ;;  %4763 = vst.msk [vmem:[#allocation4 + $0x490] sm:$0x1f] %vm4229_vm4, %v4700_v18  ;;  %v3874_v34 = vmax.f32 %v3386_v23, %v3662_v24  ;;  %v4320_v14 = vld [vmem:[#allocation3 + $0xe9] sm:$0x1f]  ;;  %11085 = vmatmul.mubr.msk.f32.gmra.mrb[238].mxu0 %vm705_vm0, %v663_v29 }
 0x1f8   : > { %4762 = vst.msk [vmem:[#allocation4 + $0x468] sm:$0xff] %vm2983_vm2, %v4699_v22  ;;  %v13130_v39 = vld [vmem:[#allocation3 + $0xe1] sm:$0xff]  ;;  %v5202_v41 = vld [vmem:[#allocation3 + $0xe9] sm:$0x1f]  ;;  %3117 = vst.msk [vmem:[#allocation2 + $0x428] sm:$0xff] %vm2983_vm2, %v10927_v46  ;;  %v2264_v51 = vpop.f32.mrb[133].mxu0  ;;  %11087 = vmatprep.mubr.msk.f32.mxu0 %vm705_vm0, %v664_v36 }
 0x1f9   : > { %5264 = vst.msk [vmem:[#allocation4 + $0x3f8] sm:$0xff] %vm2983_vm2, %v13130_v39  ;;  %v5703_v43 = vld [vmem:[#allocation3 + $0xe0] sm:$0xff]  ;;  %v5704_v44 = vld [vmem:[#allocation3 + $0xe8] sm:$0x1f]  ;;  %v3979_v45 = vmax.f32 %v3871_v30, %v3874_v34  ;;  %3116 = vst.msk [vmem:[#allocation2 + $0x420] sm:$0xff] %vm2983_vm2, %v2264_v51  ;;  %v10930_v6 = vpop.f32.mrb[134].mxu0 }
 0x1fa   : > { %5265 = vst.msk [vmem:[#allocation4 + $0x420] sm:$0x1f] %vm4229_vm4, %v5202_v41  ;;  %5767 = vst.msk [vmem:[#allocation4 + $0x3b0] sm:$0x1f] %vm4229_vm4, %v5704_v44  ;;  %v6206_v47 = vld [vmem:[#allocation3 + $0xda] sm:$0xff]  ;;  %v6207_v48 = vld [vmem:[#allocation3 + $0xe2] sm:$0xff] }
 0x1fb   : > { %5766 = vst.msk [vmem:[#allocation4 + $0x388] sm:$0xff] %vm2983_vm2, %v5703_v43  ;;  %4475 = vrot.lane.b32.xlu1 %v4320_v14, %s11993_s29  ;;  %6269 = vst.msk [vmem:[#allocation4 + $0x368] sm:$0xff] %vm2983_vm2, %v6206_v47  ;;  %v3388_v53 = vld [vmem:[#allocation2 + $0x400] ss:$2 sm:$0xff]  ;;  %v3664_v55 = vld [vmem:[#allocation2 + $0x401] ss:$2 sm:$0xff]  ;;  %v4055_v58 = vadd.f32 %v13084_v38, %v3979_v45  ;;  %11088 = vmatmul.mubr.msk.f32.gmra.mrb[240].mxu0 %vm705_vm0, %v665_v56 }
 0x1fc   : > { %6270 = vst.msk [vmem:[#allocation4 + $0x390] sm:$0xff] %vm2983_vm2, %v6207_v48  ;;  %v3384_v62 = vld [vmem:[#allocation2 + $0x3e0] ss:$2 sm:$0x7f]  ;;  %v3875_v1 = vmax.f32 %v3388_v53, %v3664_v55  ;;  %3119 = vst.msk [vmem:[#allocation2 + $0x438] sm:$0xff] %vm2983_vm2, %v10930_v6  ;;  %v2274_v17 = vpop.f32.mrb[135].mxu0  ;;  %11090 = vmatprep.mubr.msk.f32.mxu0 %vm705_vm0, %v666_v7 }
 0x1fd   : > { %6271 = vst.msk [vmem:[#allocation4 + $0x3b8] sm:$0x1f] %vm4229_vm4, %v6208_v49  ;;  %v3660_v0 = vld [vmem:[#allocation2 + $0x3e1] ss:$2 sm:$0x7f]  ;;  %v4949_v19 = vpop.permute.xlu0 %4948  ;;  %v667_v20 = vld [vmem:[%s12090_s18 + $0x798] sm:$0xff] }
 0x1fe   : > { %4125 = vst.msk [vmem:[#allocation3 + $0xf0] sm:$0xff] %vm2983_vm2, %v4055_v58  ;;  %v3980_v8 = vmax.f32 %v3872_v61, %v3875_v1  ;;  %v3390_v10 = vld [vmem:[#allocation2 + $0x410] ss:$2 sm:$0x7f]  ;;  %v3873_v13 = vmax.f32 %v3384_v62, %v3660_v0  ;;  %3118 = vst.msk [vmem:[#allocation2 + $0x430] sm:$0xff] %vm2983_vm2, %v2274_v17  ;;  %v10933_v18 = vpop.f32.mrb[136].mxu0 }
 0x1ff   : > { %v3666_v11 = vld [vmem:[#allocation2 + $0x411] ss:$2 sm:$0x7f]  ;;  %5125 = vst.msk [vmem:[#allocation4 + $0x1e8] sm:$0xff] %vm4606_vm5, %v4949_v19  ;;  %v668_v23 = vld [vmem:[%s12090_s18 + $0x7a0] sm:$0xff]  ;;  %v2284_v24 = vpop.f32.mrb[137].mxu0  ;;  %11091 = vmatmul.mubr.msk.f32.gmra.mrb[242].mxu0 %vm705_vm0, %v667_v20 }
 0x200   : > { %v3876_v16 = vmax.f32 %v3390_v10, %v3666_v11  ;;  %v4056_v21 = vadd.f32 %v13084_v38, %v3980_v8  ;;  %3121 = vst.msk [vmem:[#allocation2 + $0x448] sm:$0xff] %vm2983_vm2, %v10933_v18  ;;  %3120 = vst.msk [vmem:[#allocation2 + $0x440] sm:$0xff] %vm2983_vm2, %v2284_v24  ;;  %v669_v29 = vld [vmem:[%s12090_s18 + $0x7a8] sm:$0xff]  ;;  %v4951_v31 = vpop.permute.xlu1 %4950  ;;  %11093 = vmatprep.mubr.msk.f32.mxu0 %vm705_vm0, %v668_v23  ;;  %v670_v41 = vld [vmem:[%s12090_s18 + $0x7b0] sm:$0xff] }
 0x201   : > { %v4442_v25 = vpop.permute.xlu0 %4441  ;;  %5126 = vst.msk [vmem:[#allocation4 + $0x210] sm:$0xff] %vm4606_vm5, %v4951_v31  ;;  %v10936_v36 = vpop.f32.mrb[138].mxu0  ;;  %v671_v47 = vld [vmem:[%s12090_s18 + $0x7b8] sm:$0xff]  ;;  %v672_v48 = vld [vmem:[%s12090_s18 + $0x7c0] sm:$0xff]  ;;  %v673_v58 = vld [vmem:[%s12090_s18 + $0x7c8] sm:$0xff] }
 0x202   : > { %v3981_v22 = vmax.f32 %v3873_v13, %v3876_v16  ;;  %4126 = vst.msk [vmem:[#allocation3 + $0xf8] sm:$0xff] %vm2983_vm2, %v4056_v21  ;;  %3123 = vst.msk [vmem:[#allocation2 + $0x458] sm:$0xff] %vm2983_vm2, %v10936_v36  ;;  %v2294_v43 = vpop.f32.mrb[139].mxu0  ;;  %v3392_v56 = vld [vmem:[#allocation2 + $0x420] ss:$2 sm:$0xff]  ;;  %v674_v13 = vld [vmem:[%s12090_s18 + $0x7d0] sm:$0xff] }
 0x203   : > { %4620 = vst.msk [vmem:[#allocation4 + $0x1e0] sm:$0xff] %vm4606_vm5, %v4442_v25  ;;  %11094 = vmatmul.mubr.msk.f32.gmra.mrb[244].mxu0 %vm705_vm0, %v669_v29  ;;  %v3668_v61 = vld [vmem:[#allocation2 + $0x421] ss:$2 sm:$0xff] }
 0x204   : > { %v4057_v30 = vadd.f32 %v13084_v38, %v3981_v22  ;;  %3122 = vst.msk [vmem:[#allocation2 + $0x450] sm:$0xff] %vm2983_vm2, %v2294_v43  ;;  %v4444_v46 = vpop.permute.xlu1 %4443  ;;  %11096 = vmatprep.mubr.msk.f32.mxu0 %vm705_vm0, %v670_v41  ;;  %v675_v22 = vld [vmem:[%s12090_s18 + $0x7d8] sm:$0xff]  ;;  %v3877_v18 = vmax.f32 %v3392_v56, %v3668_v61 }
 0x205   : > { %v4825_v32 = vld [vmem:[#allocation3 + $0xf0] sm:$0xff]  ;;  %v4953_v44 = vpop.permute.xlu0 %4952  ;;  %4621 = vst.msk [vmem:[#allocation4 + $0x208] sm:$0xff] %vm4606_vm5, %v4444_v46  ;;  %v10939_v53 = vpop.f32.mrb[140].mxu0 }
 0x206   : > { %v4194_v34 = vld [vmem:[#allocation3 + $0xf0] sm:$0xff]  ;;  %4978 = vrot.lane.b32.xlu0 %v4825_v32, %s11993_s29  ;;  %4127 = vst.msk [vmem:[#allocation3 + $0x100] sm:$0x7f] %vm4096_vm3, %v4057_v30  ;;  %v2304_v62 = vpop.f32.mrb[141].mxu0  ;;  %v676_v30 = vld [vmem:[%s12090_s18 + $0x7e0] sm:$0xff] }
 0x207   : > { %v5705_v14 = vld [vmem:[#allocation3 + $0xf0] sm:$0xff]  ;;  %4258 = vst.msk [vmem:[#allocation4 + $0x4b0] sm:$0xff] %vm2983_vm2, %v4194_v34  ;;  %3125 = vst.msk [vmem:[#allocation2 + $0x468] sm:$0xff] %vm2983_vm2, %v10939_v53  ;;  %11097 = vmatmul.mubr.msk.f32.gmra.mrb[246].mxu0 %vm705_vm0, %v671_v47  ;;  %v3396_v47 = vld [vmem:[#allocation2 + $0x440] ss:$2 sm:$0x7f] }
 0x208   : > { %5768 = vst.msk [vmem:[#allocation4 + $0x3d8] sm:$0xff] %vm2983_vm2, %v5705_v14  ;;  %v6372_v45 = vld [vmem:[#allocation4 + $0x1e8] sm:$0xff]  ;;  %3124 = vst.msk [vmem:[#allocation2 + $0x460] sm:$0xff] %vm2983_vm2, %v2304_v62  ;;  %v4446_v6 = vpop.permute.xlu1 %4445  ;;  %11099 = vmatprep.mubr.msk.f32.mxu0 %vm705_vm0, %v672_v48  ;;  %v6377_v7 = vld [vmem:[#allocation4 + $0x210] sm:$0xff] }
 0x209   : > { %5127 = vst.msk [vmem:[#allocation4 + $0x238] sm:$0x1f] %vm4609_vm6, %v4953_v44  ;;  %7011 = vmatprep.mubr.f32.mxu1 %v6372_v45  ;;  %v4826_v49 = vld [vmem:[#allocation3 + $0xf8] sm:$0xff]  ;;  %4622 = vst.msk [vmem:[#allocation4 + $0x230] sm:$0x1f] %vm4609_vm6, %v4446_v6  ;;  %v10942_v11 = vpop.f32.mrb[142].mxu0 }
 0x20a   : > { %v4321_v51 = vld [vmem:[#allocation3 + $0xf1] sm:$0xff]  ;;  %4980 = vrot.lane.b32.xlu0 %v4826_v49, %s11993_s29  ;;  %v6371_v0 = vld [vmem:[#allocation4 + $0x1e0] sm:$0xff]  ;;  %3127 = vst.msk [vmem:[#allocation2 + $0x478] sm:$0xff] %vm2983_vm2, %v10942_v11  ;;  %v2314_v21 = vpop.f32.mrb[143].mxu0 }
 0x20b   : > { %v4195_v55 = vld [vmem:[#allocation3 + $0xf8] sm:$0xff]  ;;  %4477 = vrot.lane.b32.xlu1 %v4321_v51, %s11993_s29  ;;  %7012 = vmatmul.mubr.f32.vlgmr.msra.gmra.mrb[0].mxu1 %v6371_v0  ;;  %3126 = vst.msk [vmem:[#allocation2 + $0x470] sm:$0xff] %vm2983_vm2, %v2314_v21  ;;  %v3672_v0 = vld [vmem:[#allocation2 + $0x441] ss:$2 sm:$0x7f]  ;;  %v678_v11 = vld [vmem:[%s12090_s18 + $0x7f0] sm:$0xff] }
 0x20c   : > { %4259 = vst.msk [vmem:[#allocation4 + $0x4d8] sm:$0xff] %vm2983_vm2, %v4195_v55  ;;  %v4701_v1 = vld [vmem:[#allocation3 + $0xf2] sm:$0xff]  ;;  %7016 = vmatprep.mubr.f32.mxu1 %v6377_v7  ;;  %11100 = vmatmul.mubr.msk.f32.gmra.mrb[248].mxu0 %vm705_vm0, %v673_v58  ;;  %v4448_v32 = vpop.permute.xlu1 %4447 }
 0x20d   : > { %v4827_v8 = vld [vmem:[#allocation3 + $0x100] sm:$0x1f]  ;;  %4764 = vst.msk [vmem:[#allocation4 + $0x4b8] sm:$0xff] %vm2983_vm2, %v4701_v1  ;;  %v3398_v19 = vld [vmem:[#allocation2 + $0x450] ss:$2 sm:$0xff]  ;;  %11102 = vmatprep.mubr.msk.f32.mxu0 %vm705_vm0, %v674_v13  ;;  %v10945_v44 = vpop.f32.mrb[144].mxu0 }
 0x20e   : > { %v4322_v10 = vld [vmem:[#allocation3 + $0xf9] sm:$0xff]  ;;  %4982 = vrot.lane.b32.xlu0 %v4827_v8, %s11993_s29  ;;  %v4703_v31 = vld [vmem:[#allocation3 + $0x102] sm:$0x1f]  ;;  %v6376_v34 = vld [vmem:[#allocation4 + $0x208] sm:$0xff]  ;;  %4623 = vst.msk [vmem:[#allocation4 + $0x258] sm:$0xff] %vm4606_vm5, %v4448_v32  ;;  %v2324_v48 = vpop.f32.mrb[145].mxu0 }
 0x20f   : > { %v4196_v16 = vld [vmem:[#allocation3 + $0x100] sm:$0x1f]  ;;  %v3674_v20 = vld [vmem:[#allocation2 + $0x451] ss:$2 sm:$0xff]  ;;  %4479 = vrot.lane.b32.xlu1 %v4322_v10, %s11993_s29  ;;  %v3394_v23 = vld [vmem:[#allocation2 + $0x430] ss:$2 sm:$0xff]  ;;  %7017 = vmatmul.mubr.f32.gmra.mrb[2].mxu1 %v6376_v34 }
 0x210   : > { %v4702_v17 = vld [vmem:[#allocation3 + $0xfa] sm:$0xff]  ;;  %4260 = vst.msk [vmem:[#allocation4 + $0x500] sm:$0x1f] %vm4229_vm4, %v4196_v16  ;;  %v3880_v25 = vmax.f32 %v3398_v19, %v3674_v20  ;;  %4766 = vst.msk [vmem:[#allocation4 + $0x508] sm:$0x1f] %vm4229_vm4, %v4703_v31  ;;  %v13202_v14 = vld [vmem:[#allocation3 + $0xf1] sm:$0xff]  ;;  %11103 = vmatmul.mubr.msk.f32.gmra.mrb[250].mxu0 %vm705_vm0, %v675_v22  ;;  %v4450_v6 = vpop.permute.xlu1 %4449  ;;  %v3879_v19 = vmax.f32 %v3396_v47, %v3672_v0 }
 0x211   : > { %4765 = vst.msk [vmem:[#allocation4 + $0x4e0] sm:$0xff] %vm2983_vm2, %v4702_v17  ;;  %v3670_v24 = vld [vmem:[#allocation2 + $0x431] ss:$2 sm:$0xff]  ;;  %v6382_v29 = vld [vmem:[#allocation4 + $0x238] sm:$0xff]  ;;  %5266 = vst.msk [vmem:[#allocation4 + $0x448] sm:$0xff] %vm2983_vm2, %v13202_v14  ;;  %11105 = vmatprep.mubr.msk.f32.mxu0 %vm705_vm0, %v676_v30  ;;  %v10948_v10 = vpop.f32.mrb[146].mxu0 }
 0x212   : > { %v13204_v36 = vld [vmem:[#allocation3 + $0xf9] sm:$0xff]  ;;  %v3982_v41 = vmax.f32 %v3877_v18, %v3880_v25  ;;  %v4323_v43 = vld [vmem:[#allocation3 + $0x101] sm:$0x1f]  ;;  %7021 = vmatprep.mubr.f32.mxu1 %v6382_v29  ;;  %3129 = vst.msk [vmem:[#allocation2 + $0x488] sm:$0xff] %vm2983_vm2, %v10945_v44  ;;  %3128 = vst.msk [vmem:[#allocation2 + $0x480] sm:$0xff] %vm2983_vm2, %v2324_v48  ;;  %v3878_v62 = vmax.f32 %v3394_v23, %v3670_v24  ;;  %v2334_v21 = vpop.f32.mrb[147].mxu0 }
 0x213   : > { %5267 = vst.msk [vmem:[#allocation4 + $0x470] sm:$0xff] %vm2983_vm2, %v13204_v36  ;;  %v5205_v45 = vld [vmem:[#allocation3 + $0x101] sm:$0x1f]  ;;  %v5706_v46 = vld [vmem:[#allocation3 + $0xf8] sm:$0xff]  ;;  %4481 = vrot.lane.b32.xlu1 %v4323_v43, %s11993_s29  ;;  %v677_v8 = vld [vmem:[%s12090_s18 + $0x7e8] sm:$0xff] }
 0x214   : > { %5268 = vst.msk [vmem:[#allocation4 + $0x498] sm:$0x1f] %vm4229_vm4, %v5205_v45  ;;  %v5707_v49 = vld [vmem:[#allocation3 + $0x100] sm:$0x1f]  ;;  %v6209_v51 = vld [vmem:[#allocation3 + $0xf2] sm:$0xff]  ;;  %v4058_v58 = vadd.f32 %v13084_v38, %v3982_v41  ;;  %11106 = vmatmul.mubr.msk.f32.gmra.mrb[252].mxu0 %vm705_vm0, %v677_v8  ;;  %v4955_v22 = vpop.permute.xlu0 %4954  ;;  %v4452_v18 = vpop.permute.xlu1 %4451  ;;  %v681_v44 = vld [vmem:[%s12090_s18 + $0x808] sm:$0xff] }
 0x215   : > { %5769 = vst.msk [vmem:[#allocation4 + $0x400] sm:$0xff] %vm2983_vm2, %v5706_v46  ;;  %v6210_v53 = vld [vmem:[#allocation3 + $0xfa] sm:$0xff]  ;;  %6272 = vst.msk [vmem:[#allocation4 + $0x3e0] sm:$0xff] %vm2983_vm2, %v6209_v51  ;;  %v6211_v61 = vld [vmem:[#allocation3 + $0x102] sm:$0x1f]  ;;  %11108 = vmatprep.mubr.msk.f32.mxu0 %vm705_vm0, %v678_v11  ;;  %v10951_v29 = vpop.f32.mrb[148].mxu0 }
 0x216   : > { %v3400_v55 = vld [vmem:[#allocation2 + $0x460] ss:$2 sm:$0xff]  ;;  %v3676_v56 = vld [vmem:[#allocation2 + $0x461] ss:$2 sm:$0xff]  ;;  %5770 = vst.msk [vmem:[#allocation4 + $0x428] sm:$0x1f] %vm4229_vm4, %v5707_v49 }
 0x217   : > { %6273 = vst.msk [vmem:[#allocation4 + $0x408] sm:$0xff] %vm2983_vm2, %v6210_v53  ;;  %v3881_v1 = vmax.f32 %v3400_v55, %v3676_v56  ;;  %v6381_v7 = vld [vmem:[#allocation4 + $0x230] sm:$0xff]  ;;  %4128 = vst.msk [vmem:[#allocation3 + $0x108] sm:$0xff] %vm2983_vm2, %v4058_v58  ;;  %v680_v30 = vld [vmem:[%s12090_s18 + $0x800] sm:$0xff]  ;;  %v2344_v31 = vpop.f32.mrb[149].mxu0 }
 0x218   : > { %6274 = vst.msk [vmem:[#allocation4 + $0x430] sm:$0x1f] %vm4229_vm4, %v6211_v61  ;;  %7022 = vmatmul.mubr.f32.gmra.mrb[4].mxu1 %v6381_v7  ;;  %v3402_v16 = vld [vmem:[#allocation2 + $0x470] ss:$2 sm:$0x7f]  ;;  %v4957_v34 = vpop.permute.xlu0 %4956  ;;  %v6386_v55 = vld [vmem:[#allocation4 + $0x258] sm:$0xff] }
 0x219   : > { %4624 = vst.msk [vmem:[#allocation4 + $0x280] sm:$0xff] %vm4606_vm5, %v4450_v6  ;;  %v3983_v13 = vmax.f32 %v3878_v62, %v3881_v1  ;;  %v3678_v17 = vld [vmem:[#allocation2 + $0x471] ss:$2 sm:$0x7f]  ;;  %5128 = vst.msk [vmem:[#allocation4 + $0x260] sm:$0xff] %vm4606_vm5, %v4955_v22  ;;  %v4454_v41 = vpop.permute.xlu1 %4453  ;;  %v10954_v46 = vpop.f32.mrb[150].mxu0 }
 0x21a   : > { %3131 = vst.msk [vmem:[#allocation2 + $0x498] sm:$0xff] %vm2983_vm2, %v10948_v10  ;;  %v3882_v20 = vmax.f32 %v3402_v16, %v3678_v17  ;;  %3130 = vst.msk [vmem:[#allocation2 + $0x490] sm:$0xff] %vm2983_vm2, %v2334_v21  ;;  %v679_v23 = vld [vmem:[%s12090_s18 + $0x7f8] sm:$0xff]  ;;  %v682_v47 = vld [vmem:[%s12090_s18 + $0x810] sm:$0xff]  ;;  %v2354_v48 = vpop.f32.mrb[151].mxu0 }
 0x21b   : > { %v4059_v24 = vadd.f32 %v13084_v38, %v3983_v13  ;;  %4625 = vst.msk [vmem:[#allocation4 + $0x2a8] sm:$0x1f] %vm4609_vm6, %v4452_v18  ;;  %11109 = vmatmul.mubr.msk.f32.gmra.mrb[254].mxu0 %vm705_vm0, %v679_v23  ;;  %v683_v56 = vld [vmem:[%s12090_s18 + $0x818] sm:$0xff]  ;;  %v684_v58 = vld [vmem:[%s12090_s18 + $0x820] sm:$0xff]  ;;  %v685_v7 = vld [vmem:[%s12090_s18 + $0x828] sm:$0xff] }
 0x21c   : > { %v3984_v25 = vmax.f32 %v3879_v19, %v3882_v20  ;;  %3133 = vst.msk [vmem:[#allocation2 + $0x4a8] sm:$0xff] %vm2983_vm2, %v10951_v29  ;;  %3132 = vst.msk [vmem:[#allocation2 + $0x4a0] sm:$0xff] %vm2983_vm2, %v2344_v31  ;;  %11111 = vmatprep.mubr.msk.f32.mxu0 %vm705_vm0, %v680_v30  ;;  %v3404_v6 = vld [vmem:[#allocation2 + $0x480] ss:$2 sm:$0xff]  ;;  %v3680_v8 = vld [vmem:[#allocation2 + $0x481] ss:$2 sm:$0xff] }
 0x21d   : > { %4129 = vst.msk [vmem:[#allocation3 + $0x110] sm:$0xff] %vm2983_vm2, %v4059_v24  ;;  %3135 = vst.msk [vmem:[#allocation2 + $0x4b8] sm:$0xff] %vm2983_vm2, %v10954_v46  ;;  %v4959_v51 = vpop.permute.xlu0 %4958  ;;  %v10957_v0 = vpop.f32.mrb[152].mxu0  ;;  %v686_v18 = vld [vmem:[%s12090_s18 + $0x830] sm:$0xff]  ;;  %v687_v30 = vld [vmem:[%s12090_s18 + $0x838] sm:$0xff] }
 0x21e   : > { %v4060_v32 = vadd.f32 %v13084_v38, %v3984_v25  ;;  %v4828_v43 = vld [vmem:[#allocation3 + $0x108] sm:$0xff]  ;;  %5129 = vst.msk [vmem:[#allocation4 + $0x288] sm:$0xff] %vm4606_vm5, %v4957_v34  ;;  %4626 = vst.msk [vmem:[#allocation4 + $0x2d0] sm:$0xff] %vm4606_vm5, %v4454_v41  ;;  %v4456_v53 = vpop.permute.xlu1 %4455  ;;  %v2364_v10 = vpop.f32.mrb[153].mxu0 }
 0x21f   : > { %v5708_v45 = vld [vmem:[#allocation3 + $0x108] sm:$0xff]  ;;  %4984 = vrot.lane.b32.xlu0 %v4828_v43, %s11993_s29  ;;  %4261 = vst.msk [vmem:[#allocation4 + $0x528] sm:$0xff] %vm2983_vm2, %v4828_v43  ;;  %3134 = vst.msk [vmem:[#allocation2 + $0x4b0] sm:$0xff] %vm2983_vm2, %v2354_v48  ;;  %11112 = vmatmul.mubr.msk.f32.gmra.mrb[0].mxu0 %vm705_vm0, %v681_v44 }
 0x220   : > { %4130 = vst.msk [vmem:[#allocation3 + $0x118] sm:$0x7f] %vm4096_vm3, %v4060_v32  ;;  %v6387_v49 = vld [vmem:[#allocation4 + $0x260] sm:$0xff]  ;;  %11114 = vmatprep.mubr.msk.f32.mxu0 %vm705_vm0, %v682_v47  ;;  %v3883_v32 = vmax.f32 %v3404_v6, %v3680_v8 }
 0x221   : > { %5771 = vst.msk [vmem:[#allocation4 + $0x450] sm:$0xff] %vm2983_vm2, %v5708_v45  ;;  %7026 = vmatprep.mubr.f32.mxu1 %v6387_v49  ;;  %3137 = vst.msk [vmem:[#allocation2 + $0x4c8] sm:$0xff] %vm2983_vm2, %v10957_v0  ;;  %v6391_v21 = vld [vmem:[#allocation4 + $0x280] sm:$0xff]  ;;  %v10960_v22 = vpop.f32.mrb[154].mxu0  ;;  %v3406_v34 = vld [vmem:[#allocation2 + $0x490] ss:$2 sm:$0xff] }
 0x222   : > { %5130 = vst.msk [vmem:[#allocation4 + $0x2b0] sm:$0x1f] %vm4609_vm6, %v4959_v51  ;;  %7027 = vmatmul.mubr.f32.gmra.mrb[6].mxu1 %v6386_v55  ;;  %v4458_v16 = vpop.permute.xlu1 %4457  ;;  %v2374_v29 = vpop.f32.mrb[155].mxu0  ;;  %v3682_v41 = vld [vmem:[#allocation2 + $0x491] ss:$2 sm:$0xff] }
 0x223   : > { %4627 = vst.msk [vmem:[#allocation4 + $0x2f8] sm:$0xff] %vm4606_vm5, %v4456_v53  ;;  %11115 = vmatmul.mubr.msk.f32.gmra.mrb[2].mxu0 %vm705_vm0, %v683_v56  ;;  %v6396_v46 = vld [vmem:[#allocation4 + $0x2a8] sm:$0xff]  ;;  %v3408_v8 = vld [vmem:[#allocation2 + $0x4a0] ss:$2 sm:$0x7f] }
 0x224   : > { %v4829_v61 = vld [vmem:[#allocation3 + $0x110] sm:$0xff]  ;;  %3136 = vst.msk [vmem:[#allocation2 + $0x4c0] sm:$0xff] %vm2983_vm2, %v2364_v10  ;;  %11117 = vmatprep.mubr.msk.f32.mxu0 %vm705_vm0, %v684_v58  ;;  %3139 = vst.msk [vmem:[#allocation2 + $0x4d8] sm:$0xff] %vm2983_vm2, %v10960_v22  ;;  %v3684_v10 = vld [vmem:[#allocation2 + $0x4a1] ss:$2 sm:$0x7f] }
 0x225   : > { %v4324_v62 = vld [vmem:[#allocation3 + $0x109] sm:$0xff]  ;;  %4986 = vrot.lane.b32.xlu0 %v4829_v61, %s11993_s29  ;;  %4262 = vst.msk [vmem:[#allocation4 + $0x550] sm:$0xff] %vm2983_vm2, %v4829_v61  ;;  %3138 = vst.msk [vmem:[#allocation2 + $0x4d0] sm:$0xff] %vm2983_vm2, %v2374_v29  ;;  %v10963_v51 = vpop.f32.mrb[156].mxu0 }
 0x226   : > { %v4704_v1 = vld [vmem:[#allocation3 + $0x10a] sm:$0xff]  ;;  %4483 = vrot.lane.b32.xlu1 %v4324_v62, %s11993_s29  ;;  %4628 = vst.msk [vmem:[#allocation4 + $0x320] sm:$0x1f] %vm4609_vm6, %v4458_v16  ;;  %v2384_v56 = vpop.f32.mrb[157].mxu0 }
 0x227   : > { %4767 = vst.msk [vmem:[#allocation4 + $0x530] sm:$0xff] %vm2983_vm2, %v4704_v1  ;;  %v13265_v11 = vld [vmem:[#allocation3 + $0x109] sm:$0xff]  ;;  %v4830_v19 = vld [vmem:[#allocation3 + $0x118] sm:$0x1f]  ;;  %11118 = vmatmul.mubr.msk.f32.gmra.mrb[4].mxu0 %vm705_vm0, %v685_v7  ;;  %3141 = vst.msk [vmem:[#allocation2 + $0x4e8] sm:$0xff] %vm2983_vm2, %v10963_v51  ;;  %v3884_v7 = vmax.f32 %v3406_v34, %v3682_v41 }
 0x228   : > { %v5709_v13 = vld [vmem:[#allocation3 + $0x110] sm:$0xff]  ;;  %5269 = vst.msk [vmem:[#allocation4 + $0x4c0] sm:$0xff] %vm2983_vm2, %v13265_v11  ;;  %v4199_v23 = vld [vmem:[#allocation3 + $0x118] sm:$0x1f]  ;;  %11120 = vmatprep.mubr.msk.f32.mxu0 %vm705_vm0, %v686_v18  ;;  %3140 = vst.msk [vmem:[#allocation2 + $0x4e0] sm:$0xff] %vm2983_vm2, %v2384_v56 }
 0x229   : > { %v6392_v17 = vld [vmem:[#allocation4 + $0x288] sm:$0xff]  ;;  %5772 = vst.msk [vmem:[#allocation4 + $0x478] sm:$0xff] %vm2983_vm2, %v5709_v13  ;;  %4988 = vrot.lane.b32.xlu0 %v4830_v19, %s11993_s29  ;;  %v4706_v44 = vld [vmem:[#allocation3 + $0x11a] sm:$0x1f]  ;;  %v10966_v16 = vpop.f32.mrb[158].mxu0 }
 0x22a   : > { %v4325_v20 = vld [vmem:[#allocation3 + $0x111] sm:$0xff]  ;;  %7031 = vmatprep.mubr.f32.mxu1 %v6392_v17  ;;  %4263 = vst.msk [vmem:[#allocation4 + $0x578] sm:$0x1f] %vm4229_vm4, %v4199_v23  ;;  %4769 = vst.msk [vmem:[#allocation4 + $0x580] sm:$0x1f] %vm4229_vm4, %v4706_v44  ;;  %v2394_v18 = vpop.f32.mrb[159].mxu0 }
 0x22b   : > { %v3410_v24 = vld [vmem:[#allocation2 + $0x4b0] ss:$2 sm:$0xff]  ;;  %v3686_v25 = vld [vmem:[#allocation2 + $0x4b1] ss:$2 sm:$0xff]  ;;  %7032 = vmatmul.mubr.f32.gmra.mrb[8].mxu1 %v6391_v21  ;;  %4485 = vrot.lane.b32.xlu1 %v4325_v20, %s11993_s29  ;;  %v3412_v0 = vld [vmem:[#allocation2 + $0x4c0] ss:$2 sm:$0xff]  ;;  %v3885_v21 = vmax.f32 %v3408_v8, %v3684_v10 }
 0x22c   : > { %v4705_v31 = vld [vmem:[#allocation3 + $0x112] sm:$0xff]  ;;  %v3886_v43 = vmax.f32 %v3410_v24, %v3686_v25  ;;  %v6212_v55 = vld [vmem:[#allocation3 + $0x10a] sm:$0xff]  ;;  %v6214_v62 = vld [vmem:[#allocation3 + $0x11a] sm:$0x1f]  ;;  %11121 = vmatmul.mubr.msk.f32.gmra.mrb[6].mxu0 %vm705_vm0, %v687_v30  ;;  %3143 = vst.msk [vmem:[#allocation2 + $0x4f8] sm:$0xff] %vm2983_vm2, %v10966_v16 }
 0x22d   : > { %4768 = vst.msk [vmem:[#allocation4 + $0x558] sm:$0xff] %vm2983_vm2, %v4705_v31  ;;  %v6397_v45 = vld [vmem:[#allocation4 + $0x2b0] sm:$0xff]  ;;  %6275 = vst.msk [vmem:[#allocation4 + $0x458] sm:$0xff] %vm2983_vm2, %v6212_v55  ;;  %v3688_v1 = vld [vmem:[#allocation2 + $0x4c1] ss:$2 sm:$0xff]  ;;  %v10969_v29 = vpop.f32.mrb[160].mxu0 }
 0x22e   : > { %v13284_v47 = vld [vmem:[#allocation3 + $0x111] sm:$0xff]  ;;  %v3985_v48 = vmax.f32 %v3883_v32, %v3886_v43  ;;  %7036 = vmatprep.mubr.f32.mxu1 %v6397_v45  ;;  %v4326_v49 = vld [vmem:[#allocation3 + $0x119] sm:$0x1f]  ;;  %6277 = vst.msk [vmem:[#allocation4 + $0x4a8] sm:$0x1f] %vm4229_vm4, %v6214_v62  ;;  %v3887_v13 = vmax.f32 %v3412_v0, %v3688_v1  ;;  %v4961_v23 = vpop.permute.xlu0 %4960  ;;  %v2404_v30 = vpop.f32.mrb[161].mxu0 }
 0x22f   : > { %5270 = vst.msk [vmem:[#allocation4 + $0x4e8] sm:$0xff] %vm2983_vm2, %v13284_v47  ;;  %v5208_v53 = vld [vmem:[#allocation3 + $0x119] sm:$0x1f]  ;;  %7037 = vmatmul.mubr.f32.gmra.mrb[10].mxu1 %v6396_v46  ;;  %4487 = vrot.lane.b32.xlu1 %v4326_v49, %s11993_s29  ;;  %3142 = vst.msk [vmem:[#allocation2 + $0x4f0] sm:$0xff] %vm2983_vm2, %v2394_v18  ;;  %v3692_v62 = vld [vmem:[#allocation2 + $0x4e1] ss:$2 sm:$0xff] }
 0x230   : > { %5271 = vst.msk [vmem:[#allocation4 + $0x510] sm:$0x1f] %vm4229_vm4, %v5208_v53  ;;  %v5710_v58 = vld [vmem:[#allocation3 + $0x118] sm:$0x1f]  ;;  %v4061_v6 = vadd.f32 %v13084_v38, %v3985_v48  ;;  %v3986_v17 = vmax.f32 %v3884_v7, %v3887_v13  ;;  %v6406_v16 = vld [vmem:[#allocation4 + $0x2f8] sm:$0xff] }
 0x231   : > { %v6213_v61 = vld [vmem:[#allocation3 + $0x112] sm:$0xff]  ;;  %5773 = vst.msk [vmem:[#allocation4 + $0x4a0] sm:$0x1f] %vm4229_vm4, %v5710_v58  ;;  %v10972_v44 = vpop.f32.mrb[162].mxu0 }
 0x232   : > { %6276 = vst.msk [vmem:[#allocation4 + $0x480] sm:$0xff] %vm2983_vm2, %v6213_v61  ;;  %4131 = vst.msk [vmem:[#allocation3 + $0x120] sm:$0xff] %vm2983_vm2, %v4061_v6  ;;  %v3414_v19 = vld [vmem:[#allocation2 + $0x4d0] ss:$2 sm:$0x7f]  ;;  %v4062_v24 = vadd.f32 %v13084_v38, %v3986_v17  ;;  %v2414_v45 = vpop.f32.mrb[163].mxu0 }
 0x233   : > { %v3690_v20 = vld [vmem:[#allocation2 + $0x4d1] ss:$2 sm:$0x7f]  ;;  %5131 = vst.msk [vmem:[#allocation4 + $0x2d8] sm:$0xff] %vm4606_vm5, %v4961_v23  ;;  %v4963_v32 = vpop.permute.xlu0 %4962  ;;  %v3416_v61 = vld [vmem:[#allocation2 + $0x4e0] ss:$2 sm:$0xff] }
 0x234   : > { %v3888_v22 = vmax.f32 %v3414_v19, %v3690_v20  ;;  %3145 = vst.msk [vmem:[#allocation2 + $0x508] sm:$0xff] %vm2983_vm2, %v10969_v29  ;;  %4132 = vst.msk [vmem:[#allocation3 + $0x128] sm:$0xff] %vm2983_vm2, %v4062_v24  ;;  %v4460_v34 = vpop.permute.xlu1 %4459  ;;  %v6401_v51 = vld [vmem:[#allocation4 + $0x2d0] sm:$0xff]  ;;  %v3889_v23 = vmax.f32 %v3416_v61, %v3692_v62  ;;  %v6411_v29 = vld [vmem:[#allocation4 + $0x320] sm:$0xff] }
 0x235   : > { %3144 = vst.msk [vmem:[#allocation2 + $0x500] sm:$0xff] %vm2983_vm2, %v2404_v30  ;;  %3147 = vst.msk [vmem:[#allocation2 + $0x518] sm:$0xff] %vm2983_vm2, %v10972_v44  ;;  %v10975_v56 = vpop.f32.mrb[164].mxu0 }
 0x236   : > { %v3987_v25 = vmax.f32 %v3885_v21, %v3888_v22  ;;  %5132 = vst.msk [vmem:[#allocation4 + $0x300] sm:$0xff] %vm4606_vm5, %v4963_v32  ;;  %4629 = vst.msk [vmem:[#allocation4 + $0x348] sm:$0xff] %vm4606_vm5, %v4460_v34  ;;  %v2424_v0 = vpop.f32.mrb[165].mxu0  ;;  %v3418_v24 = vld [vmem:[#allocation2 + $0x4f0] ss:$2 sm:$0xff] }
 0x237   : > { %3146 = vst.msk [vmem:[#allocation2 + $0x510] sm:$0xff] %vm2983_vm2, %v2414_v45  ;;  %v4965_v48 = vpop.permute.xlu0 %4964  ;;  %3149 = vst.msk [vmem:[#allocation2 + $0x528] sm:$0xff] %vm2983_vm2, %v10975_v56 }
 0x238   : > { %v4063_v31 = vadd.f32 %v13084_v38, %v3987_v25  ;;  %v4462_v49 = vpop.permute.xlu1 %4461  ;;  %5133 = vst.msk [vmem:[#allocation4 + $0x328] sm:$0x1f] %vm4609_vm6, %v4965_v48 }
 0x239   : > { %v4831_v41 = vld [vmem:[#allocation3 + $0x120] sm:$0xff]  ;;  %4630 = vst.msk [vmem:[#allocation4 + $0x370] sm:$0xff] %vm4606_vm5, %v4462_v49  ;;  %v10978_v17 = vpop.f32.mrb[166].mxu0 }
 0x23a   : > { %v5711_v43 = vld [vmem:[#allocation3 + $0x120] sm:$0xff]  ;;  %4990 = vrot.lane.b32.xlu0 %v4831_v41, %s11993_s29  ;;  %4133 = vst.msk [vmem:[#allocation3 + $0x130] sm:$0x7f] %vm4096_vm3, %v4063_v31  ;;  %v2434_v22 = vpop.f32.mrb[167].mxu0  ;;  %v3694_v31 = vld [vmem:[#allocation2 + $0x4f1] ss:$2 sm:$0xff] }
 0x23b   : > { %4264 = vst.msk [vmem:[#allocation4 + $0x5a0] sm:$0xff] %vm2983_vm2, %v4831_v41  ;;  %5774 = vst.msk [vmem:[#allocation4 + $0x4c8] sm:$0xff] %vm2983_vm2, %v5711_v43  ;;  %v6402_v46 = vld [vmem:[#allocation4 + $0x2d8] sm:$0xff]  ;;  %v4832_v53 = vld [vmem:[#allocation3 + $0x128] sm:$0xff]  ;;  %v3890_v61 = vmax.f32 %v3418_v24, %v3694_v31 }
 0x23c   : > { %7041 = vmatprep.mubr.f32.mxu1 %v6402_v46  ;;  %v4327_v55 = vld [vmem:[#allocation3 + $0x121] sm:$0xff]  ;;  %4265 = vst.msk [vmem:[#allocation4 + $0x5c8] sm:$0xff] %vm2983_vm2, %v4832_v53  ;;  %3148 = vst.msk [vmem:[#allocation2 + $0x520] sm:$0xff] %vm2983_vm2, %v2424_v0  ;;  %v4464_v7 = vpop.permute.xlu1 %4463 }
 0x23d   : > { %7042 = vmatmul.mubr.f32.gmra.mrb[12].mxu1 %v6401_v51  ;;  %v4707_v58 = vld [vmem:[#allocation3 + $0x122] sm:$0xff]  ;;  %4489 = vrot.lane.b32.xlu1 %v4327_v55, %s11993_s29  ;;  %4631 = vst.msk [vmem:[#allocation4 + $0x398] sm:$0x1f] %vm4609_vm6, %v4464_v7  ;;  %v10981_v44 = vpop.f32.mrb[168].mxu0 }
 0x23e   : > { %4992 = vrot.lane.b32.xlu0 %v4832_v53, %s11993_s29  ;;  %4770 = vst.msk [vmem:[#allocation4 + $0x5a8] sm:$0xff] %vm2983_vm2, %v4707_v58  ;;  %v13322_v1 = vld [vmem:[#allocation3 + $0x121] sm:$0xff]  ;;  %v3422_v20 = vld [vmem:[#allocation2 + $0x510] ss:$2 sm:$0xff]  ;;  %v3698_v21 = vld [vmem:[#allocation2 + $0x511] ss:$2 sm:$0xff] }
 0x23f   : > { %v5712_v6 = vld [vmem:[#allocation3 + $0x128] sm:$0xff]  ;;  %5272 = vst.msk [vmem:[#allocation4 + $0x538] sm:$0xff] %vm2983_vm2, %v13322_v1  ;;  %3151 = vst.msk [vmem:[#allocation2 + $0x538] sm:$0xff] %vm2983_vm2, %v10978_v17  ;;  %v3892_v25 = vmax.f32 %v3422_v20, %v3698_v21  ;;  %v6412_v32 = vld [vmem:[#allocation4 + $0x328] sm:$0xff]  ;;  %v2444_v48 = vpop.f32.mrb[169].mxu0 }
 0x240   : > { %v6407_v8 = vld [vmem:[#allocation4 + $0x300] sm:$0xff]  ;;  %5775 = vst.msk [vmem:[#allocation4 + $0x4f0] sm:$0xff] %vm2983_vm2, %v5712_v6  ;;  %3150 = vst.msk [vmem:[#allocation2 + $0x530] sm:$0xff] %vm2983_vm2, %v2434_v22  ;;  %v13356_v20 = vld [vmem:[%s15399_s3] ss:$0 sm:$0xff] }
 0x241   : > { %v4833_v10 = vld [vmem:[#allocation3 + $0x130] sm:$0x1f]  ;;  %7046 = vmatprep.mubr.f32.mxu1 %v6407_v8  ;;  %v3988_v41 = vmax.f32 %v3889_v23, %v3892_v25  ;;  %v6215_v46 = vld [vmem:[#allocation3 + $0x122] sm:$0xff]  ;;  %3153 = vst.msk [vmem:[#allocation2 + $0x548] sm:$0xff] %vm2983_vm2, %v10981_v44  ;;  %3152 = vst.msk [vmem:[#allocation2 + $0x540] sm:$0xff] %vm2983_vm2, %v2444_v48  ;;  %v10984_v7 = vpop.f32.mrb[170].mxu0 }
 0x242   : > { %v4328_v13 = vld [vmem:[#allocation3 + $0x129] sm:$0xff]  ;;  %7047 = vmatmul.mubr.f32.gmra.mrb[14].mxu1 %v6406_v16  ;;  %4994 = vrot.lane.b32.xlu0 %v4833_v10, %s11993_s29  ;;  %v4709_v30 = vld [vmem:[#allocation3 + $0x132] sm:$0x1f]  ;;  %6278 = vst.msk [vmem:[#allocation4 + $0x4d0] sm:$0xff] %vm2983_vm2, %v6215_v46  ;;  %3155 = vst.msk [vmem:[#allocation2 + $0x558] sm:$0xff] %vm2983_vm2, %v10984_v7  ;;  %v2454_v17 = vpop.f32.mrb[171].mxu0 }
 0x243   : > { %v4202_v19 = vld [vmem:[#allocation3 + $0x130] sm:$0x1f]  ;;  %4491 = vrot.lane.b32.xlu1 %v4328_v13, %s11993_s29  ;;  %4772 = vst.msk [vmem:[#allocation4 + $0x5f8] sm:$0x1f] %vm4229_vm4, %v4709_v30  ;;  %7051 = vmatprep.mubr.f32.mxu1 %v6412_v32  ;;  %v3424_v55 = vld [vmem:[#allocation2 + $0x520] ss:$2 sm:$0xff]  ;;  %v4064_v58 = vadd.f32 %v13084_v38, %v3988_v41 }
 0x244   : > { %4266 = vst.msk [vmem:[#allocation4 + $0x5f0] sm:$0x1f] %vm4229_vm4, %v4202_v19  ;;  %v4708_v18 = vld [vmem:[#allocation3 + $0x12a] sm:$0xff]  ;;  %v6217_v53 = vld [vmem:[#allocation3 + $0x132] sm:$0x1f] }
 0x245   : > { %4771 = vst.msk [vmem:[#allocation4 + $0x5d0] sm:$0xff] %vm2983_vm2, %v4708_v18  ;;  %v13336_v34 = vld [vmem:[#allocation3 + $0x129] sm:$0xff]  ;;  %v4329_v43 = vld [vmem:[#allocation3 + $0x131] sm:$0x1f]  ;;  %4134 = vst.msk [vmem:[#allocation3 + $0x138] sm:$0xff] %vm2983_vm2, %v4064_v58  ;;  %v10987_v18 = vpop.f32.mrb[172].mxu0 }
 0x246   : > { %5273 = vst.msk [vmem:[#allocation4 + $0x560] sm:$0xff] %vm2983_vm2, %v13336_v34  ;;  %v5211_v45 = vld [vmem:[#allocation3 + $0x131] sm:$0x1f]  ;;  %7052 = vmatmul.mubr.f32.gmra.mrb[16].mxu1 %v6411_v29  ;;  %v3700_v56 = vld [vmem:[#allocation2 + $0x521] ss:$2 sm:$0xff]  ;;  %3154 = vst.msk [vmem:[#allocation2 + $0x550] sm:$0xff] %vm2983_vm2, %v2454_v17 }
 0x247   : > { %5274 = vst.msk [vmem:[#allocation4 + $0x588] sm:$0x1f] %vm4229_vm4, %v5211_v45  ;;  %v5713_v49 = vld [vmem:[#allocation3 + $0x130] sm:$0x1f]  ;;  %4493 = vrot.lane.b32.xlu1 %v4329_v43, %s11993_s29  ;;  %6280 = vst.msk [vmem:[#allocation4 + $0x520] sm:$0x1f] %vm4229_vm4, %v6217_v53  ;;  %v3893_v6 = vmax.f32 %v3424_v55, %v3700_v56  ;;  %v4967_v19 = vpop.permute.xlu0 %4966 }
 0x248   : > { %v6216_v51 = vld [vmem:[#allocation3 + $0x12a] sm:$0xff]  ;;  %5776 = vst.msk [vmem:[#allocation4 + $0x518] sm:$0x1f] %vm4229_vm4, %v5713_v49  ;;  %v2464_v23 = vpop.f32.mrb[173].mxu0 }
 0x249   : > { %6279 = vst.msk [vmem:[#allocation4 + $0x4f8] sm:$0xff] %vm2983_vm2, %v6216_v51  ;;  %v3420_v62 = vld [vmem:[#allocation2 + $0x500] ss:$2 sm:$0x7f]  ;;  %v3989_v8 = vmax.f32 %v3890_v61, %v3893_v6  ;;  %3157 = vst.msk [vmem:[#allocation2 + $0x568] sm:$0xff] %vm2983_vm2, %v10987_v18  ;;  %v10990_v32 = vpop.f32.mrb[174].mxu0 }
 0x24a   : > { %v3696_v0 = vld [vmem:[#allocation2 + $0x501] ss:$2 sm:$0x7f]  ;;  %v3426_v10 = vld [vmem:[#allocation2 + $0x530] ss:$2 sm:$0x7f] }
 0x24b   : > { %v3702_v13 = vld [vmem:[#allocation2 + $0x531] ss:$2 sm:$0x7f]  ;;  %v3891_v16 = vmax.f32 %v3420_v62, %v3696_v0  ;;  %5134 = vst.msk [vmem:[#allocation4 + $0x350] sm:$0xff] %vm4606_vm5, %v4967_v19  ;;  %v4065_v21 = vadd.f32 %v13356_v20, %v3989_v8  ;;  %v2474_v41 = vpop.f32.mrb[175].mxu0  ;;  %v6658_v61 = vld [vmem:[%s15400_s4 + $0x100] sm:$0xff] }
 0x24c   : > { %v3894_v38 = vmax.f32 %v3426_v10, %v3702_v13  ;;  %3156 = vst.msk [vmem:[#allocation2 + $0x560] sm:$0xff] %vm2983_vm2, %v2464_v23  ;;  %v4969_v25 = vpop.permute.xlu0 %4968  ;;  %v4834_v30 = vld [vmem:[#allocation3 + $0x138] sm:$0xff]  ;;  %3159 = vst.msk [vmem:[#allocation2 + $0x578] sm:$0xff] %vm2983_vm2, %v10990_v32  ;;  %v6416_v46 = vld [vmem:[#allocation4 + $0x348] sm:$0xff] }
 0x24d   : > { %4135 = vst.msk [vmem:[#allocation3 + $0x140] sm:$0xff] %vm2983_vm2, %v4065_v21  ;;  %v4466_v29 = vpop.permute.xlu1 %4465  ;;  %v5714_v31 = vld [vmem:[#allocation3 + $0x138] sm:$0xff]  ;;  %4996 = vrot.lane.b32.xlu0 %v4834_v30, %s11993_s29  ;;  %4267 = vst.msk [vmem:[#allocation4 + $0x618] sm:$0xff] %vm2983_vm2, %v4834_v30  ;;  %v10993_v51 = vpop.f32.mrb[176].mxu0  ;;  %v3428_v55 = vld [vmem:[#allocation2 + $0x540] ss:$2 sm:$0xff] }
 0x24e   : > { %v3990_v22 = vmax.f32 %v3891_v16, %v3894_v38  ;;  %5135 = vst.msk [vmem:[#allocation4 + $0x378] sm:$0xff] %vm4606_vm5, %v4969_v25  ;;  %4632 = vst.msk [vmem:[#allocation4 + $0x3c0] sm:$0xff] %vm4606_vm5, %v4466_v29  ;;  %v3704_v56 = vld [vmem:[#allocation2 + $0x541] ss:$2 sm:$0xff]  ;;  %v2484_v58 = vpop.f32.mrb[177].mxu0  ;;  %v6421_v13 = vld [vmem:[#allocation4 + $0x370] sm:$0xff] }
 0x24f   : > { %5777 = vst.msk [vmem:[#allocation4 + $0x540] sm:$0xff] %vm2983_vm2, %v5714_v31  ;;  %3158 = vst.msk [vmem:[#allocation2 + $0x570] sm:$0xff] %vm2983_vm2, %v2474_v41  ;;  %v6659_v62 = vld [vmem:[%s15400_s4 + $0x108] sm:$0xff]  ;;  %v3895_v18 = vmax.f32 %v3428_v55, %v3704_v56  ;;  %v3430_v23 = vld [vmem:[#allocation2 + $0x550] ss:$2 sm:$0xff] }
 0x250   : > { %v4066_v24 = vadd.f32 %v13356_v20, %v3990_v22  ;;  %v4971_v44 = vpop.permute.xlu0 %4970  ;;  %3161 = vst.msk [vmem:[#allocation2 + $0x588] sm:$0xff] %vm2983_vm2, %v10993_v51  ;;  %3160 = vst.msk [vmem:[#allocation2 + $0x580] sm:$0xff] %vm2983_vm2, %v2484_v58  ;;  %v11464_v10 = vpack.c.bf16 %v6659_v62, %v6658_v61  ;;  %v6426_v25 = vld [vmem:[#allocation4 + $0x398] sm:$0xff]  ;;  %v3706_v30 = vld [vmem:[#allocation2 + $0x551] ss:$2 sm:$0xff] }
 0x251   : > { %v4468_v45 = vpop.permute.xlu1 %4467  ;;  %5136 = vst.msk [vmem:[#allocation4 + $0x3a0] sm:$0x1f] %vm4609_vm6, %v4971_v44  ;;  %v10996_v16 = vpop.f32.mrb[178].mxu0 }
 0x252   : > { %4136 = vst.msk [vmem:[#allocation3 + $0x148] sm:$0x7f] %vm4096_vm3, %v4066_v24  ;;  %v6417_v43 = vld [vmem:[#allocation4 + $0x350] sm:$0xff]  ;;  %v2494_v21 = vpop.f32.mrb[179].mxu0  ;;  %11465 = vmatpush1.bf16.msra.mxu1 %v11464_v10 }
 0x253   : > { %7056 = vmatprep.mubr.f32.mxu1 %v6417_v43  ;;  %4633 = vst.msk [vmem:[#allocation4 + $0x3e8] sm:$0xff] %vm4606_vm5, %v4468_v45  ;;  %11466 = vmatprep.subr.bf16.mxu1 %v15409_v54 }
 0x254   : > { %7057 = vmatmul.mubr.f32.gmra.mrb[18].mxu1 %v6416_v46  ;;  %v4835_v48 = vld [vmem:[#allocation3 + $0x140] sm:$0xff]  ;;  %3163 = vst.msk [vmem:[#allocation2 + $0x598] sm:$0xff] %vm2983_vm2, %v10996_v16  ;;  %3162 = vst.msk [vmem:[#allocation2 + $0x590] sm:$0xff] %vm2983_vm2, %v2494_v21 }
 0x255   : > { %v4330_v49 = vld [vmem:[#allocation3 + $0x139] sm:$0xff]  ;;  %4998 = vrot.lane.b32.xlu0 %v4835_v48, %s11993_s29  ;;  %4268 = vst.msk [vmem:[#allocation4 + $0x640] sm:$0xff] %vm2983_vm2, %v4835_v48  ;;  %v4470_v0 = vpop.permute.xlu1 %4469  ;;  %v10999_v44 = vpop.f32.mrb[180].mxu0 }
 0x256   : > { %v4710_v53 = vld [vmem:[#allocation3 + $0x13a] sm:$0xff]  ;;  %4495 = vrot.lane.b32.xlu1 %v4330_v49, %s11993_s29  ;;  %4634 = vst.msk [vmem:[#allocation4 + $0x410] sm:$0x1f] %vm4609_vm6, %v4470_v0  ;;  %v2504_v49 = vpop.f32.mrb[181].mxu0  ;;  %v3896_v0 = vmax.f32 %v3430_v23, %v3706_v30 }
 0x257   : > { %4773 = vst.msk [vmem:[#allocation4 + $0x620] sm:$0xff] %vm2983_vm2, %v4710_v53  ;;  %v6422_v6 = vld [vmem:[#allocation4 + $0x378] sm:$0xff]  ;;  %v3434_v17 = vld [vmem:[#allocation2 + $0x570] ss:$2 sm:$0xff]  ;;  %v3710_v19 = vld [vmem:[#allocation2 + $0x571] ss:$2 sm:$0xff] }
 0x258   : > { %7061 = vmatprep.mubr.f32.mxu1 %v6422_v6  ;;  %v3898_v24 = vmax.f32 %v3434_v17, %v3710_v19  ;;  %v6427_v31 = vld [vmem:[#allocation4 + $0x3a0] sm:$0xff]  ;;  %v13394_v32 = vld [vmem:[#allocation3 + $0x139] sm:$0xff]  ;;  %3165 = vst.msk [vmem:[#allocation2 + $0x5a8] sm:$0xff] %vm2983_vm2, %v10999_v44  ;;  %3164 = vst.msk [vmem:[#allocation2 + $0x5a0] sm:$0xff] %vm2983_vm2, %v2504_v49 }
 0x259   : > { %v4836_v7 = vld [vmem:[#allocation3 + $0x148] sm:$0x1f]  ;;  %7062 = vmatmul.mubr.f32.gmra.mrb[20].mxu1 %v6421_v13  ;;  %5275 = vst.msk [vmem:[#allocation4 + $0x5b0] sm:$0xff] %vm2983_vm2, %v13394_v32  ;;  %v5715_v51 = vld [vmem:[#allocation3 + $0x140] sm:$0xff]  ;;  %v11002_v10 = vpop.f32.mrb[182].mxu0 }
 0x25a   : > { %v4331_v8 = vld [vmem:[#allocation3 + $0x141] sm:$0xff]  ;;  %5000 = vrot.lane.b32.xlu0 %v4836_v7, %s11993_s29  ;;  %v4712_v29 = vld [vmem:[#allocation3 + $0x14a] sm:$0x1f]  ;;  %v3991_v41 = vmax.f32 %v3895_v18, %v3898_v24  ;;  %7066 = vmatprep.mubr.f32.mxu1 %v6427_v31  ;;  %5778 = vst.msk [vmem:[#allocation4 + $0x568] sm:$0xff] %vm2983_vm2, %v5715_v51  ;;  %3167 = vst.msk [vmem:[#allocation2 + $0x5b8] sm:$0xff] %vm2983_vm2, %v11002_v10  ;;  %v2514_v21 = vpop.f32.mrb[183].mxu0 }
 0x25b   : > { %v4205_v38 = vld [vmem:[#allocation3 + $0x148] sm:$0x1f]  ;;  %4497 = vrot.lane.b32.xlu1 %v4331_v8, %s11993_s29  ;;  %4775 = vst.msk [vmem:[#allocation4 + $0x670] sm:$0x1f] %vm4229_vm4, %v4712_v29  ;;  %v6218_v55 = vld [vmem:[#allocation3 + $0x13a] sm:$0xff] }
 0x25c   : > { %4269 = vst.msk [vmem:[#allocation4 + $0x668] sm:$0x1f] %vm4229_vm4, %v4205_v38  ;;  %v4711_v22 = vld [vmem:[#allocation3 + $0x142] sm:$0xff]  ;;  %v4067_v61 = vadd.f32 %v13356_v20, %v3991_v41  ;;  %v6220_v8 = vld [vmem:[#allocation3 + $0x14a] sm:$0x1f]  ;;  %v6661_v29 = vld [vmem:[%s15400_s4 + $0x118] sm:$0xff] }
 0x25d   : > { %4774 = vst.msk [vmem:[#allocation4 + $0x648] sm:$0xff] %vm2983_vm2, %v4711_v22  ;;  %v4332_v43 = vld [vmem:[#allocation3 + $0x149] sm:$0x1f]  ;;  %v13396_v45 = vld [vmem:[#allocation3 + $0x141] sm:$0xff]  ;;  %7067 = vmatmul.mubr.f32.gmra.mrb[22].mxu1 %v6426_v25  ;;  %6281 = vst.msk [vmem:[#allocation4 + $0x548] sm:$0xff] %vm2983_vm2, %v6218_v55  ;;  %v11005_v24 = vpop.f32.mrb[184].mxu0 }
 0x25e   : > { %v5214_v46 = vld [vmem:[#allocation3 + $0x149] sm:$0x1f]  ;;  %5276 = vst.msk [vmem:[#allocation4 + $0x5d8] sm:$0xff] %vm2983_vm2, %v13396_v45  ;;  %4137 = vst.msk [vmem:[#allocation3 + $0x150] sm:$0xff] %vm2983_vm2, %v4067_v61  ;;  %v6660_v25 = vld [vmem:[%s15400_s4 + $0x110] sm:$0xff]  ;;  %v2524_v30 = vpop.f32.mrb[185].mxu0 }
 0x25f   : > { %v3432_v48 = vld [vmem:[#allocation2 + $0x560] ss:$2 sm:$0x7f]  ;;  %5277 = vst.msk [vmem:[#allocation4 + $0x600] sm:$0x1f] %vm4229_vm4, %v5214_v46  ;;  %4499 = vrot.lane.b32.xlu1 %v4332_v43, %s11993_s29  ;;  %v4973_v22 = vpop.permute.xlu0 %4972  ;;  %v11467_v31 = vpack.c.bf16 %v6661_v29, %v6660_v25 }
 0x260   : > { %v5716_v53 = vld [vmem:[#allocation3 + $0x148] sm:$0x1f]  ;;  %6283 = vst.msk [vmem:[#allocation4 + $0x598] sm:$0x1f] %vm4229_vm4, %v6220_v8 }
 0x261   : > { %v3436_v56 = vld [vmem:[#allocation2 + $0x580] ss:$2 sm:$0xff]  ;;  %v3712_v58 = vld [vmem:[#allocation2 + $0x581] ss:$2 sm:$0xff]  ;;  %5779 = vst.msk [vmem:[#allocation4 + $0x590] sm:$0x1f] %vm4229_vm4, %v5716_v53  ;;  %11468 = vmatpush1.bf16.msra.mxu1 %v11467_v31 }
 0x262   : > { %v6219_v62 = vld [vmem:[#allocation3 + $0x142] sm:$0xff]  ;;  %v3899_v7 = vmax.f32 %v3436_v56, %v3712_v58  ;;  %v3438_v16 = vld [vmem:[#allocation2 + $0x590] ss:$2 sm:$0x7f]  ;;  %3166 = vst.msk [vmem:[#allocation2 + $0x5b0] sm:$0xff] %vm2983_vm2, %v2514_v21  ;;  %3169 = vst.msk [vmem:[#allocation2 + $0x5c8] sm:$0xff] %vm2983_vm2, %v11005_v24  ;;  %11469 = vmatprep.subr.bf16.mxu1 %v15409_v54 }
 0x263   : > { %v3708_v6 = vld [vmem:[#allocation2 + $0x561] ss:$2 sm:$0x7f]  ;;  %6282 = vst.msk [vmem:[#allocation4 + $0x570] sm:$0xff] %vm2983_vm2, %v6219_v62  ;;  %3168 = vst.msk [vmem:[#allocation2 + $0x5c0] sm:$0xff] %vm2983_vm2, %v2524_v30  ;;  %v11008_v49 = vpop.f32.mrb[186].mxu0 }
 0x264   : > { %v3992_v13 = vmax.f32 %v3896_v0, %v3899_v7  ;;  %v3714_v38 = vld [vmem:[#allocation2 + $0x591] ss:$2 sm:$0x7f]  ;;  %v3897_v17 = vmax.f32 %v3432_v48, %v3708_v6  ;;  %5137 = vst.msk [vmem:[#allocation4 + $0x3c8] sm:$0xff] %vm4606_vm5, %v4973_v22  ;;  %v4975_v43 = vpop.permute.xlu0 %4974  ;;  %v2534_v51 = vpop.f32.mrb[187].mxu0  ;;  %v6431_v58 = vld [vmem:[#allocation4 + $0x3c0] sm:$0xff] }
 0x265   : > { %v3900_v19 = vmax.f32 %v3438_v16, %v3714_v38  ;;  %v4472_v44 = vpop.permute.xlu1 %4471  ;;  %v4837_v46 = vld [vmem:[#allocation3 + $0x150] sm:$0xff]  ;;  %5138 = vst.msk [vmem:[#allocation4 + $0x3f0] sm:$0xff] %vm4606_vm5, %v4975_v43  ;;  %v11011_v0 = vpop.f32.mrb[188].mxu0  ;;  %v3440_v7 = vld [vmem:[#allocation2 + $0x5a0] ss:$2 sm:$0xff] }
 0x266   : > { %v4068_v18 = vadd.f32 %v13356_v20, %v3992_v13  ;;  %v5717_v48 = vld [vmem:[#allocation3 + $0x150] sm:$0xff]  ;;  %4635 = vst.msk [vmem:[#allocation4 + $0x438] sm:$0xff] %vm4606_vm5, %v4472_v44  ;;  %5002 = vrot.lane.b32.xlu0 %v4837_v46, %s11993_s29  ;;  %v3716_v8 = vld [vmem:[#allocation2 + $0x5a1] ss:$2 sm:$0xff]  ;;  %v2544_v10 = vpop.f32.mrb[189].mxu0 }
 0x267   : > { %v3993_v23 = vmax.f32 %v3897_v17, %v3900_v19  ;;  %4270 = vst.msk [vmem:[#allocation4 + $0x690] sm:$0xff] %vm2983_vm2, %v4837_v46  ;;  %5780 = vst.msk [vmem:[#allocation4 + $0x5b8] sm:$0xff] %vm2983_vm2, %v5717_v48  ;;  %v6436_v22 = vld [vmem:[#allocation4 + $0x3e8] sm:$0xff]  ;;  %v3901_v31 = vmax.f32 %v3440_v7, %v3716_v8  ;;  %v6662_v43 = vld [vmem:[%s15400_s4 + $0x120] sm:$0xff] }
 0x268   : > { %4138 = vst.msk [vmem:[#allocation3 + $0x158] sm:$0xff] %vm2983_vm2, %v4068_v18  ;;  %3171 = vst.msk [vmem:[#allocation2 + $0x5d8] sm:$0xff] %vm2983_vm2, %v11008_v49  ;;  %v4977_v55 = vpop.permute.xlu0 %4976  ;;  %v6663_v44 = vld [vmem:[%s15400_s4 + $0x128] sm:$0xff] }
 0x269   : > { %v4069_v41 = vadd.f32 %v13356_v20, %v3993_v23  ;;  %3170 = vst.msk [vmem:[#allocation2 + $0x5d0] sm:$0xff] %vm2983_vm2, %v2534_v51  ;;  %v4474_v56 = vpop.permute.xlu1 %4473  ;;  %3173 = vst.msk [vmem:[#allocation2 + $0x5e8] sm:$0xff] %vm2983_vm2, %v11011_v0  ;;  %v11014_v18 = vpop.f32.mrb[190].mxu0  ;;  %v3442_v48 = vld [vmem:[#allocation2 + $0x5b0] ss:$2 sm:$0xff] }
 0x26a   : > { %5139 = vst.msk [vmem:[#allocation4 + $0x418] sm:$0x1f] %vm4609_vm6, %v4977_v55  ;;  %v2554_v29 = vpop.f32.mrb[191].mxu0  ;;  %v6441_v51 = vld [vmem:[#allocation4 + $0x410] sm:$0xff] }
 0x26b   : > { %4139 = vst.msk [vmem:[#allocation3 + $0x160] sm:$0x7f] %vm4096_vm3, %v4069_v41  ;;  %v6432_v53 = vld [vmem:[#allocation4 + $0x3c8] sm:$0xff]  ;;  %v3444_v0 = vld [vmem:[#allocation2 + $0x5c0] ss:$2 sm:$0x7f] }
 0x26c   : > { %7071 = vmatprep.mubr.f32.mxu1 %v6432_v53  ;;  %4636 = vst.msk [vmem:[#allocation4 + $0x460] sm:$0xff] %vm4606_vm5, %v4474_v56  ;;  %v6437_v17 = vld [vmem:[#allocation4 + $0x3f0] sm:$0xff]  ;;  %v11470_v53 = vpack.c.bf16 %v6663_v44, %v6662_v43 }
 0x26d   : > { %7072 = vmatmul.mubr.f32.gmra.mrb[24].mxu1 %v6431_v58  ;;  %3172 = vst.msk [vmem:[#allocation2 + $0x5e0] sm:$0xff] %vm2983_vm2, %v2544_v10  ;;  %v4476_v38 = vpop.permute.xlu1 %4475  ;;  %3175 = vst.msk [vmem:[#allocation2 + $0x5f8] sm:$0xff] %vm2983_vm2, %v11014_v18  ;;  %v3718_v55 = vld [vmem:[#allocation2 + $0x5b1] ss:$2 sm:$0xff] }
 0x26e   : > { %4637 = vst.msk [vmem:[#allocation4 + $0x488] sm:$0x1f] %vm4609_vm6, %v4476_v38  ;;  %7076 = vmatprep.mubr.f32.mxu1 %v6437_v17  ;;  %11471 = vmatpush1.bf16.msra.mxu1 %v11470_v53  ;;  %v6665_v53 = vld [vmem:[%s15400_s4 + $0x138] sm:$0xff] }
 0x26f   : > { %v4838_v61 = vld [vmem:[#allocation3 + $0x158] sm:$0xff]  ;;  %3174 = vst.msk [vmem:[#allocation2 + $0x5f0] sm:$0xff] %vm2983_vm2, %v2554_v29  ;;  %11472 = vmatprep.subr.bf16.mxu1 %v15409_v54 }
 0x270   : > { %v4333_v62 = vld [vmem:[#allocation3 + $0x151] sm:$0xff]  ;;  %5004 = vrot.lane.b32.xlu0 %v4838_v61, %s11993_s29  ;;  %4271 = vst.msk [vmem:[#allocation4 + $0x6b8] sm:$0xff] %vm2983_vm2, %v4838_v61  ;;  %v11017_v61 = vpop.f32.mrb[192].mxu0 }
 0x271   : > { %v4713_v6 = vld [vmem:[#allocation3 + $0x152] sm:$0xff]  ;;  %4501 = vrot.lane.b32.xlu1 %v4333_v62, %s11993_s29  ;;  %7077 = vmatmul.mubr.f32.gmra.mrb[26].mxu1 %v6436_v22  ;;  %v6442_v49 = vld [vmem:[#allocation4 + $0x418] sm:$0xff]  ;;  %3177 = vst.msk [vmem:[#allocation2 + $0x608] sm:$0xff] %vm2983_vm2, %v11017_v61 }
 0x272   : > { %4776 = vst.msk [vmem:[#allocation4 + $0x698] sm:$0xff] %vm2983_vm2, %v4713_v6  ;;  %v13443_v13 = vld [vmem:[#allocation3 + $0x151] sm:$0xff]  ;;  %v4839_v19 = vld [vmem:[#allocation3 + $0x160] sm:$0x1f]  ;;  %7081 = vmatprep.mubr.f32.mxu1 %v6442_v49  ;;  %v2564_v6 = vpop.f32.mrb[193].mxu0 }
 0x273   : > { %v5718_v16 = vld [vmem:[#allocation3 + $0x158] sm:$0xff]  ;;  %5278 = vst.msk [vmem:[#allocation4 + $0x628] sm:$0xff] %vm2983_vm2, %v13443_v13  ;;  %v4208_v23 = vld [vmem:[#allocation3 + $0x160] sm:$0x1f]  ;;  %3176 = vst.msk [vmem:[#allocation2 + $0x600] sm:$0xff] %vm2983_vm2, %v2564_v6 }
 0x274   : > { %v4334_v21 = vld [vmem:[#allocation3 + $0x159] sm:$0xff]  ;;  %5781 = vst.msk [vmem:[#allocation4 + $0x5e0] sm:$0xff] %vm2983_vm2, %v5718_v16  ;;  %5006 = vrot.lane.b32.xlu0 %v4839_v19, %s11993_s29  ;;  %v4715_v46 = vld [vmem:[#allocation3 + $0x162] sm:$0x1f] }
 0x275   : > { %v3446_v24 = vld [vmem:[#allocation2 + $0x5d0] ss:$2 sm:$0xff]  ;;  %v3722_v25 = vld [vmem:[#allocation2 + $0x5d1] ss:$2 sm:$0xff]  ;;  %4272 = vst.msk [vmem:[#allocation4 + $0x6e0] sm:$0x1f] %vm4229_vm4, %v4208_v23  ;;  %4503 = vrot.lane.b32.xlu1 %v4334_v21, %s11993_s29  ;;  %7082 = vmatmul.mubr.f32.gmra.mrb[28].mxu1 %v6441_v51  ;;  %v3902_v21 = vmax.f32 %v3442_v48, %v3718_v55 }
 0x276   : > { %v4714_v30 = vld [vmem:[#allocation3 + $0x15a] sm:$0xff]  ;;  %v3904_v41 = vmax.f32 %v3446_v24, %v3722_v25  ;;  %4778 = vst.msk [vmem:[#allocation4 + $0x6e8] sm:$0x1f] %vm4229_vm4, %v4715_v46  ;;  %v6221_v10 = vld [vmem:[#allocation3 + $0x152] sm:$0xff]  ;;  %v6223_v23 = vld [vmem:[#allocation3 + $0x162] sm:$0x1f] }
 0x277   : > { %4777 = vst.msk [vmem:[#allocation4 + $0x6c0] sm:$0xff] %vm2983_vm2, %v4714_v30  ;;  %v4335_v58 = vld [vmem:[#allocation3 + $0x161] sm:$0x1f]  ;;  %v13463_v62 = vld [vmem:[#allocation3 + $0x159] sm:$0xff]  ;;  %6284 = vst.msk [vmem:[#allocation4 + $0x5c0] sm:$0xff] %vm2983_vm2, %v6221_v10  ;;  %v11020_v24 = vpop.f32.mrb[194].mxu0 }
 0x278   : > { %v3994_v56 = vmax.f32 %v3901_v31, %v3904_v41  ;;  %5279 = vst.msk [vmem:[#allocation4 + $0x650] sm:$0xff] %vm2983_vm2, %v13463_v62  ;;  %v5217_v7 = vld [vmem:[#allocation3 + $0x161] sm:$0x1f]  ;;  %v3450_v29 = vld [vmem:[#allocation2 + $0x5f0] ss:$2 sm:$0x7f]  ;;  %v4979_v44 = vpop.permute.xlu0 %4978 }
 0x279   : > { %v5719_v8 = vld [vmem:[#allocation3 + $0x160] sm:$0x1f]  ;;  %4505 = vrot.lane.b32.xlu1 %v4335_v58, %s11993_s29  ;;  %5280 = vst.msk [vmem:[#allocation4 + $0x678] sm:$0x1f] %vm4229_vm4, %v5217_v7  ;;  %6286 = vst.msk [vmem:[#allocation4 + $0x610] sm:$0x1f] %vm4229_vm4, %v6223_v23 }
 0x27a   : > { %v3448_v16 = vld [vmem:[#allocation2 + $0x5e0] ss:$2 sm:$0xff]  ;;  %v3724_v38 = vld [vmem:[#allocation2 + $0x5e1] ss:$2 sm:$0xff]  ;;  %v4070_v17 = vadd.f32 %v13356_v20, %v3994_v56  ;;  %5782 = vst.msk [vmem:[#allocation4 + $0x608] sm:$0x1f] %vm4229_vm4, %v5719_v8 }
 0x27b   : > { %v6222_v19 = vld [vmem:[#allocation3 + $0x15a] sm:$0xff]  ;;  %v3905_v18 = vmax.f32 %v3448_v16, %v3724_v38  ;;  %3179 = vst.msk [vmem:[#allocation2 + $0x618] sm:$0xff] %vm2983_vm2, %v11020_v24  ;;  %v2574_v43 = vpop.f32.mrb[195].mxu0  ;;  %v6664_v51 = vld [vmem:[%s15400_s4 + $0x130] sm:$0xff]  ;;  %v689_v23 = vld [vmem:[%s12090_s18 + $0x848] sm:$0xff] }
 0x27c   : > { %v3720_v22 = vld [vmem:[#allocation2 + $0x5c1] ss:$2 sm:$0x7f]  ;;  %6285 = vst.msk [vmem:[#allocation4 + $0x5e8] sm:$0xff] %vm2983_vm2, %v6222_v19  ;;  %4140 = vst.msk [vmem:[#allocation3 + $0x168] sm:$0xff] %vm2983_vm2, %v4070_v17  ;;  %v11023_v49 = vpop.f32.mrb[196].mxu0  ;;  %v11473_v56 = vpack.c.bf16 %v6665_v53, %v6664_v51  ;;  %v4981_v61 = vpop.permute.xlu0 %4980 }
 0x27d   : > { %v3995_v25 = vmax.f32 %v3902_v21, %v3905_v18  ;;  %v3726_v30 = vld [vmem:[#allocation2 + $0x5f1] ss:$2 sm:$0x7f]  ;;  %v3903_v31 = vmax.f32 %v3444_v0, %v3720_v22  ;;  %3178 = vst.msk [vmem:[#allocation2 + $0x610] sm:$0xff] %vm2983_vm2, %v2574_v43  ;;  %3181 = vst.msk [vmem:[#allocation2 + $0x628] sm:$0xff] %vm2983_vm2, %v11023_v49  ;;  %v2584_v55 = vpop.f32.mrb[197].mxu0  ;;  %v4478_v0 = vpop.permute.xlu1 %4477 }
 0x27e   : > { %v3906_v41 = vmax.f32 %v3450_v29, %v3726_v30  ;;  %5140 = vst.msk [vmem:[#allocation4 + $0x440] sm:$0xff] %vm4606_vm5, %v4979_v44  ;;  %11474 = vmatpush1.bf16.msra.mxu1 %v11473_v56  ;;  %5141 = vst.msk [vmem:[#allocation4 + $0x468] sm:$0xff] %vm4606_vm5, %v4981_v61  ;;  %v11026_v8 = vpop.f32.mrb[198].mxu0  ;;  %v6446_v19 = vld [vmem:[#allocation4 + $0x438] sm:$0xff]  ;;  %v691_v56 = vld [vmem:[%s12090_s18 + $0x858] sm:$0xff] }
 0x27f   : > { %v4071_v46 = vadd.f32 %v13356_v20, %v3995_v25  ;;  %3180 = vst.msk [vmem:[#allocation2 + $0x620] sm:$0xff] %vm2983_vm2, %v2584_v55  ;;  %11475 = vmatprep.subr.bf16.mxu1 %v15409_v54  ;;  %3183 = vst.msk [vmem:[#allocation2 + $0x638] sm:$0xff] %vm2983_vm2, %v11026_v8  ;;  %v2594_v10 = vpop.f32.mrb[199].mxu0  ;;  %v688_v21 = vld [vmem:[%s12090_s18 + $0x840] sm:$0xff]  ;;  %v6451_v25 = vld [vmem:[#allocation4 + $0x460] sm:$0xff] }
 0x280   : > { %v3996_v48 = vmax.f32 %v3903_v31, %v3906_v41  ;;  %4638 = vst.msk [vmem:[#allocation4 + $0x4b0] sm:$0xff] %vm4606_vm5, %v4478_v0  ;;  %v4983_v38 = vpop.permute.xlu0 %4982  ;;  %11123 = vmatprep.mubr.msk.f32.mxu0 %vm705_vm0, %v688_v21  ;;  %v11029_v24 = vpop.f32.mrb[200].mxu0  ;;  %v3728_v49 = vld [vmem:[#allocation2 + $0x601] ss:$2 sm:$0xff]  ;;  %v690_v55 = vld [vmem:[%s12090_s18 + $0x850] sm:$0xff] }
 0x281   : > { %4141 = vst.msk [vmem:[#allocation3 + $0x170] sm:$0xff] %vm2983_vm2, %v4071_v46  ;;  %3182 = vst.msk [vmem:[#allocation2 + $0x630] sm:$0xff] %vm2983_vm2, %v2594_v10  ;;  %v4480_v17 = vpop.permute.xlu1 %4479  ;;  %11124 = vmatmul.mubr.msk.f32.gmra.mrb[8].mxu0 %vm705_vm0, %v689_v23  ;;  %v2604_v31 = vpop.f32.mrb[201].mxu0  ;;  %v6666_v8 = vld [vmem:[%s15400_s4 + $0x140] sm:$0xff]  ;;  %v6667_v21 = vld [vmem:[%s15400_s4 + $0x148] sm:$0xff] }
 0x282   : > { %v4072_v58 = vadd.f32 %v13356_v20, %v3996_v48  ;;  %5142 = vst.msk [vmem:[#allocation4 + $0x490] sm:$0x1f] %vm4609_vm6, %v4983_v38  ;;  %v3452_v48 = vld [vmem:[#allocation2 + $0x600] ss:$2 sm:$0xff]  ;;  %v11032_v53 = vpop.f32.mrb[202].mxu0  ;;  %11126 = vmatprep.mubr.msk.f32.mxu0 %vm705_vm0, %v690_v55 }
 0x283   : > { %v4840_v6 = vld [vmem:[#allocation3 + $0x168] sm:$0xff]  ;;  %4639 = vst.msk [vmem:[#allocation4 + $0x4d8] sm:$0xff] %vm4606_vm5, %v4480_v17  ;;  %v3907_v10 = vmax.f32 %v3452_v48, %v3728_v49  ;;  %v6669_v49 = vld [vmem:[%s15400_s4 + $0x158] sm:$0xff] }
 0x284   : > { %v5720_v7 = vld [vmem:[#allocation3 + $0x168] sm:$0xff]  ;;  %5008 = vrot.lane.b32.xlu0 %v4840_v6, %s11993_s29  ;;  %4142 = vst.msk [vmem:[#allocation3 + $0x178] sm:$0x7f] %vm4096_vm3, %v4072_v58  ;;  %v3730_v38 = vld [vmem:[#allocation2 + $0x611] ss:$2 sm:$0xff] }
 0x285   : > { %4273 = vst.msk [vmem:[#allocation4 + $0x708] sm:$0xff] %vm2983_vm2, %v4840_v6  ;;  %5783 = vst.msk [vmem:[#allocation4 + $0x630] sm:$0xff] %vm2983_vm2, %v5720_v7  ;;  %v6447_v16 = vld [vmem:[#allocation4 + $0x440] sm:$0xff]  ;;  %v4482_v41 = vpop.permute.xlu1 %4481  ;;  %v6452_v43 = vld [vmem:[#allocation4 + $0x468] sm:$0xff]  ;;  %v2614_v6 = vpop.f32.mrb[203].mxu0  ;;  %11127 = vmatmul.mubr.msk.f32.gmra.mrb[10].mxu0 %vm705_vm0, %v691_v56 }
 0x286   : > { %7086 = vmatprep.mubr.f32.mxu1 %v6447_v16  ;;  %3185 = vst.msk [vmem:[#allocation2 + $0x648] sm:$0xff] %vm2983_vm2, %v11029_v24  ;;  %3184 = vst.msk [vmem:[#allocation2 + $0x640] sm:$0xff] %vm2983_vm2, %v2604_v31  ;;  %v6456_v7 = vld [vmem:[#allocation4 + $0x488] sm:$0xff]  ;;  %v693_v23 = vld [vmem:[%s12090_s18 + $0x868] sm:$0xff]  ;;  %v11035_v31 = vpop.f32.mrb[204].mxu0 }
 0x287   : > { %7087 = vmatmul.mubr.f32.gmra.mrb[30].mxu1 %v6446_v19  ;;  %4640 = vst.msk [vmem:[#allocation4 + $0x500] sm:$0x1f] %vm4609_vm6, %v4482_v41  ;;  %v3454_v16 = vld [vmem:[#allocation2 + $0x610] ss:$2 sm:$0xff]  ;;  %v2624_v48 = vpop.f32.mrb[205].mxu0 }
 0x288   : > { %v4841_v22 = vld [vmem:[#allocation3 + $0x170] sm:$0xff]  ;;  %7091 = vmatprep.mubr.f32.mxu1 %v6452_v43  ;;  %3187 = vst.msk [vmem:[#allocation2 + $0x658] sm:$0xff] %vm2983_vm2, %v11032_v53  ;;  %3186 = vst.msk [vmem:[#allocation2 + $0x650] sm:$0xff] %vm2983_vm2, %v2614_v6 }
 0x289   : > { %v4336_v18 = vld [vmem:[#allocation3 + $0x169] sm:$0xff]  ;;  %5010 = vrot.lane.b32.xlu0 %v4841_v22, %s11993_s29  ;;  %4274 = vst.msk [vmem:[#allocation4 + $0x730] sm:$0xff] %vm2983_vm2, %v4841_v22  ;;  %v3734_v0 = vld [vmem:[#allocation2 + $0x631] ss:$2 sm:$0xff]  ;;  %v11476_v22 = vpack.c.bf16 %v6667_v21, %v6666_v8  ;;  %3189 = vst.msk [vmem:[#allocation2 + $0x668] sm:$0xff] %vm2983_vm2, %v11035_v31 }
 0x28a   : > { %4507 = vrot.lane.b32.xlu1 %v4336_v18, %s11993_s29  ;;  %v4716_v29 = vld [vmem:[#allocation3 + $0x16a] sm:$0xff]  ;;  %v6457_v19 = vld [vmem:[#allocation4 + $0x490] sm:$0xff]  ;;  %v692_v18 = vld [vmem:[%s12090_s18 + $0x860] sm:$0xff]  ;;  %3188 = vst.msk [vmem:[#allocation2 + $0x660] sm:$0xff] %vm2983_vm2, %v2624_v48  ;;  %v11038_v8 = vpop.f32.mrb[206].mxu0 }
 0x28b   : > { %v13510_v30 = vld [vmem:[#allocation3 + $0x169] sm:$0xff]  ;;  %v4842_v44 = vld [vmem:[#allocation3 + $0x178] sm:$0x1f]  ;;  %4779 = vst.msk [vmem:[#allocation4 + $0x710] sm:$0xff] %vm2983_vm2, %v4716_v29  ;;  %7092 = vmatmul.mubr.f32.gmra.mrb[32].mxu1 %v6451_v25  ;;  %11129 = vmatprep.mubr.msk.f32.mxu0 %vm705_vm0, %v692_v18  ;;  %3191 = vst.msk [vmem:[#allocation2 + $0x678] sm:$0xff] %vm2983_vm2, %v11038_v8 }
 0x28c   : > { %v4337_v46 = vld [vmem:[#allocation3 + $0x171] sm:$0xff]  ;;  %5281 = vst.msk [vmem:[#allocation4 + $0x6a0] sm:$0xff] %vm2983_vm2, %v13510_v30  ;;  %7096 = vmatprep.mubr.f32.mxu1 %v6457_v19  ;;  %v4718_v24 = vld [vmem:[#allocation3 + $0x17a] sm:$0x1f]  ;;  %11477 = vmatpush1.bf16.msra.mxu1 %v11476_v22 }
 0x28d   : > { %v4211_v51 = vld [vmem:[#allocation3 + $0x178] sm:$0x1f]  ;;  %5012 = vrot.lane.b32.xlu0 %v4842_v44, %s11993_s29  ;;  %v694_v41 = vld [vmem:[%s12090_s18 + $0x870] sm:$0xff]  ;;  %4781 = vst.msk [vmem:[#allocation4 + $0x760] sm:$0x1f] %vm4229_vm4, %v4718_v24  ;;  %11130 = vmatmul.mubr.msk.f32.gmra.mrb[12].mxu0 %vm705_vm0, %v693_v23  ;;  %v2634_v23 = vpop.f32.mrb[207].mxu0 }
 0x28e   : > { %4275 = vst.msk [vmem:[#allocation4 + $0x758] sm:$0x1f] %vm4229_vm4, %v4211_v51  ;;  %v4717_v58 = vld [vmem:[#allocation3 + $0x172] sm:$0xff]  ;;  %4509 = vrot.lane.b32.xlu1 %v4337_v46, %s11993_s29  ;;  %v3456_v44 = vld [vmem:[#allocation2 + $0x620] ss:$2 sm:$0x7f]  ;;  %11478 = vmatprep.subr.bf16.mxu1 %v15409_v54 }
 0x28f   : > { %v3458_v61 = vld [vmem:[#allocation2 + $0x630] ss:$2 sm:$0xff]  ;;  %4780 = vst.msk [vmem:[#allocation4 + $0x738] sm:$0xff] %vm2983_vm2, %v4717_v58  ;;  %7097 = vmatmul.mubr.f32.gmra.mrb[34].mxu1 %v6456_v7  ;;  %v3732_v46 = vld [vmem:[#allocation2 + $0x621] ss:$2 sm:$0x7f]  ;;  %v3908_v58 = vmax.f32 %v3454_v16, %v3730_v38  ;;  %11132 = vmatprep.mubr.msk.f32.mxu0 %vm705_vm0, %v694_v41 }
 0x290   : > { %v3910_v17 = vmax.f32 %v3458_v61, %v3734_v0  ;;  %v4338_v29 = vld [vmem:[#allocation3 + $0x179] sm:$0x1f]  ;;  %v6668_v43 = vld [vmem:[%s15400_s4 + $0x150] sm:$0xff]  ;;  %v3460_v51 = vld [vmem:[#allocation2 + $0x640] ss:$2 sm:$0xff]  ;;  %v3909_v22 = vmax.f32 %v3456_v44, %v3732_v46  ;;  %3190 = vst.msk [vmem:[#allocation2 + $0x670] sm:$0xff] %vm2983_vm2, %v2634_v23 }
 0x291   : > { %v3736_v53 = vld [vmem:[#allocation2 + $0x641] ss:$2 sm:$0xff]  ;;  %v11479_v56 = vpack.c.bf16 %v6669_v49, %v6668_v43  ;;  %v695_v0 = vld [vmem:[%s12090_s18 + $0x878] sm:$0xff]  ;;  %v4985_v38 = vpop.permute.xlu0 %4984  ;;  %v11041_v46 = vpop.f32.mrb[208].mxu0  ;;  %v698_v48 = vld [vmem:[%s12090_s18 + $0x890] sm:$0xff] }
 0x292   : > { %v3997_v25 = vmax.f32 %v3907_v10, %v3910_v17  ;;  %4511 = vrot.lane.b32.xlu1 %v4338_v29, %s11993_s29  ;;  %v3911_v61 = vmax.f32 %v3460_v51, %v3736_v53  ;;  %v13553_v6 = vld [vmem:[#allocation3 + $0x171] sm:$0xff]  ;;  %v5220_v7 = vld [vmem:[#allocation3 + $0x179] sm:$0x1f]  ;;  %v696_v10 = vld [vmem:[%s12090_s18 + $0x880] sm:$0xff]  ;;  %5143 = vst.msk [vmem:[#allocation4 + $0x4b8] sm:$0xff] %vm4606_vm5, %v4985_v38  ;;  %11133 = vmatmul.mubr.msk.f32.gmra.mrb[14].mxu0 %vm705_vm0, %v695_v0  ;;  %v2644_v49 = vpop.f32.mrb[209].mxu0 }
 0x293   : > { %5282 = vst.msk [vmem:[#allocation4 + $0x6c8] sm:$0xff] %vm2983_vm2, %v13553_v6  ;;  %v5721_v17 = vld [vmem:[#allocation3 + $0x170] sm:$0xff]  ;;  %11480 = vmatpush1.bf16.msra.mxu1 %v11479_v56  ;;  %v5722_v24 = vld [vmem:[#allocation3 + $0x178] sm:$0x1f]  ;;  %11135 = vmatprep.mubr.msk.f32.mxu0 %vm705_vm0, %v696_v10  ;;  %v697_v41 = vld [vmem:[%s12090_s18 + $0x888] sm:$0xff] }
 0x294   : > { %v4073_v55 = vadd.f32 %v13356_v20, %v3997_v25  ;;  %5283 = vst.msk [vmem:[#allocation4 + $0x6f0] sm:$0x1f] %vm4229_vm4, %v5220_v7  ;;  %v3998_v19 = vmax.f32 %v3908_v58, %v3911_v61  ;;  %v3462_v21 = vld [vmem:[#allocation2 + $0x650] ss:$2 sm:$0x7f]  ;;  %11481 = vmatprep.subr.bf16.mxu1 %v15409_v54  ;;  %v11044_v7 = vpop.f32.mrb[210].mxu0 }
 0x295   : > { %v3738_v16 = vld [vmem:[#allocation2 + $0x651] ss:$2 sm:$0x7f]  ;;  %5784 = vst.msk [vmem:[#allocation4 + $0x658] sm:$0xff] %vm2983_vm2, %v5721_v17  ;;  %3193 = vst.msk [vmem:[#allocation2 + $0x688] sm:$0xff] %vm2983_vm2, %v11041_v46  ;;  %v2654_v8 = vpop.f32.mrb[211].mxu0 }
 0x296   : > { %4143 = vst.msk [vmem:[#allocation3 + $0x180] sm:$0xff] %vm2983_vm2, %v4073_v55  ;;  %v3912_v18 = vmax.f32 %v3462_v21, %v3738_v16  ;;  %v6224_v25 = vld [vmem:[#allocation3 + $0x16a] sm:$0xff]  ;;  %v6225_v29 = vld [vmem:[#allocation3 + $0x172] sm:$0xff]  ;;  %v4074_v31 = vadd.f32 %v13356_v20, %v3998_v19  ;;  %v6226_v43 = vld [vmem:[#allocation3 + $0x17a] sm:$0x1f]  ;;  %11136 = vmatmul.mubr.msk.f32.gmra.mrb[16].mxu0 %vm705_vm0, %v697_v41  ;;  %v11047_v23 = vpop.f32.mrb[212].mxu0 }
 0x297   : > { %5785 = vst.msk [vmem:[#allocation4 + $0x680] sm:$0x1f] %vm4229_vm4, %v5722_v24  ;;  %6289 = vst.msk [vmem:[#allocation4 + $0x688] sm:$0x1f] %vm4229_vm4, %v6226_v43  ;;  %v4987_v51 = vpop.permute.xlu0 %4986  ;;  %v699_v56 = vld [vmem:[%s12090_s18 + $0x898] sm:$0xff]  ;;  %11138 = vmatprep.mubr.msk.f32.mxu0 %vm705_vm0, %v698_v48  ;;  %v6670_v21 = vld [vmem:[%s15400_s4 + $0x160] sm:$0xff]  ;;  %s415_s18 = scalar_lea.vmem %s15396_s0, %s15437_s22 }
 0x298   : > { %6287 = vst.msk [vmem:[#allocation4 + $0x638] sm:$0xff] %vm2983_vm2, %v6224_v25  ;;  %6288 = vst.msk [vmem:[#allocation4 + $0x660] sm:$0xff] %vm2983_vm2, %v6225_v29  ;;  %v3999_v44 = vmax.f32 %v3909_v22, %v3912_v18  ;;  %v4484_v53 = vpop.permute.xlu1 %4483  ;;  %v6461_v19 = vld [vmem:[#allocation4 + $0x4b0] sm:$0xff]  ;;  %v6671_v38 = vld [vmem:[%s15400_s4 + $0x168] sm:$0xff]  ;;  %v2664_v41 = vpop.f32.mrb[213].mxu0 }
 0x299   : > { %4144 = vst.msk [vmem:[#allocation3 + $0x188] sm:$0xff] %vm2983_vm2, %v4074_v31  ;;  %3192 = vst.msk [vmem:[#allocation2 + $0x680] sm:$0xff] %vm2983_vm2, %v2644_v49  ;;  %v6462_v10 = vld [vmem:[#allocation4 + $0x4b8] sm:$0xff]  ;;  %v11482_v25 = vpack.c.bf16 %v6671_v38, %v6670_v21  ;;  %v6471_v21 = vld [vmem:[#allocation4 + $0x500] sm:$0xff] }
 0x29a   : > { %v4075_v55 = vadd.f32 %v13356_v20, %v3999_v44  ;;  %5144 = vst.msk [vmem:[#allocation4 + $0x4e0] sm:$0xff] %vm4606_vm5, %v4987_v51  ;;  %4641 = vst.msk [vmem:[#allocation4 + $0x528] sm:$0xff] %vm4606_vm5, %v4484_v53  ;;  %7101 = vmatprep.mubr.f32.mxu1 %v6462_v10  ;;  %11139 = vmatmul.mubr.msk.f32.gmra.mrb[18].mxu0 %vm705_vm0, %v699_v56  ;;  %v6466_v29 = vld [vmem:[#allocation4 + $0x4d8] sm:$0xff]  ;;  %v11050_v53 = vpop.f32.mrb[214].mxu0  ;;  %v3466_v10 = vld [vmem:[#allocation2 + $0x670] ss:$2 sm:$0xff] }
 0x29b   : > { %3195 = vst.msk [vmem:[#allocation2 + $0x698] sm:$0xff] %vm2983_vm2, %v11044_v7  ;;  %3194 = vst.msk [vmem:[#allocation2 + $0x690] sm:$0xff] %vm2983_vm2, %v2654_v8  ;;  %v4989_v17 = vpop.permute.xlu0 %4988  ;;  %7102 = vmatmul.mubr.f32.gmra.mrb[36].mxu1 %v6461_v19  ;;  %v3464_v31 = vld [vmem:[#allocation2 + $0x660] ss:$2 sm:$0xff]  ;;  %v3740_v46 = vld [vmem:[#allocation2 + $0x661] ss:$2 sm:$0xff] }
 0x29c   : > { %4145 = vst.msk [vmem:[#allocation3 + $0x190] sm:$0x7f] %vm4096_vm3, %v4075_v55  ;;  %11483 = vmatpush1.bf16.msra.mxu1 %v11482_v25  ;;  %v2674_v7 = vpop.f32.mrb[215].mxu0  ;;  %v3913_v8 = vmax.f32 %v3464_v31, %v3740_v46 }
 0x29d   : > { %v4843_v58 = vld [vmem:[#allocation3 + $0x180] sm:$0xff]  ;;  %5145 = vst.msk [vmem:[#allocation4 + $0x508] sm:$0x1f] %vm4609_vm6, %v4989_v17  ;;  %v4486_v16 = vpop.permute.xlu1 %4485  ;;  %11484 = vmatprep.subr.bf16.mxu1 %v15409_v54 }
 0x29e   : > { %v4212_v61 = vld [vmem:[#allocation3 + $0x180] sm:$0xff]  ;;  %5014 = vrot.lane.b32.xlu0 %v4843_v58, %s11993_s29  ;;  %4642 = vst.msk [vmem:[#allocation4 + $0x550] sm:$0xff] %vm4606_vm5, %v4486_v16  ;;  %v3742_v16 = vld [vmem:[#allocation2 + $0x671] ss:$2 sm:$0xff] }
 0x29f   : > { %v5723_v0 = vld [vmem:[#allocation3 + $0x180] sm:$0xff]  ;;  %4276 = vst.msk [vmem:[#allocation4 + $0x780] sm:$0xff] %vm2983_vm2, %v4212_v61  ;;  %3197 = vst.msk [vmem:[#allocation2 + $0x6a8] sm:$0xff] %vm2983_vm2, %v11047_v23 }
 0x2a0   : > { %5786 = vst.msk [vmem:[#allocation4 + $0x6a8] sm:$0xff] %vm2983_vm2, %v5723_v0  ;;  %v4844_v22 = vld [vmem:[#allocation3 + $0x188] sm:$0xff]  ;;  %3196 = vst.msk [vmem:[#allocation2 + $0x6a0] sm:$0xff] %vm2983_vm2, %v2664_v41 }
 0x2a1   : > { %v4339_v18 = vld [vmem:[#allocation3 + $0x181] sm:$0xff]  ;;  %v4488_v48 = vpop.permute.xlu1 %4487  ;;  %3199 = vst.msk [vmem:[#allocation2 + $0x6b8] sm:$0xff] %vm2983_vm2, %v11050_v53  ;;  %3198 = vst.msk [vmem:[#allocation2 + $0x6b0] sm:$0xff] %vm2983_vm2, %v2674_v7  ;;  %v3914_v53 = vmax.f32 %v3466_v10, %v3742_v16 }
 0x2a2   : > { %v4213_v24 = vld [vmem:[#allocation3 + $0x188] sm:$0xff]  ;;  %5016 = vrot.lane.b32.xlu0 %v4844_v22, %s11993_s29  ;;  %4513 = vrot.lane.b32.xlu1 %v4339_v18, %s11993_s29  ;;  %4643 = vst.msk [vmem:[#allocation4 + $0x578] sm:$0x1f] %vm4609_vm6, %v4488_v48  ;;  %v3470_v61 = vld [vmem:[#allocation2 + $0x690] ss:$2 sm:$0xff] }
 0x2a3   : > { %4277 = vst.msk [vmem:[#allocation4 + $0x7a8] sm:$0xff] %vm2983_vm2, %v4213_v24  ;;  %v6467_v43 = vld [vmem:[#allocation4 + $0x4e0] sm:$0xff]  ;;  %v4845_v49 = vld [vmem:[#allocation3 + $0x190] sm:$0x1f]  ;;  %v11053_v24 = vpop.f32.mrb[216].mxu0 }
 0x2a4   : > { %v4719_v44 = vld [vmem:[#allocation3 + $0x182] sm:$0xff]  ;;  %7106 = vmatprep.mubr.f32.mxu1 %v6467_v43  ;;  %v4214_v55 = vld [vmem:[#allocation3 + $0x190] sm:$0x1f]  ;;  %3201 = vst.msk [vmem:[#allocation2 + $0x6c8] sm:$0xff] %vm2983_vm2, %v11053_v24  ;;  %v2684_v41 = vpop.f32.mrb[217].mxu0 }
 0x2a5   : > { %v4340_v51 = vld [vmem:[#allocation3 + $0x189] sm:$0xff]  ;;  %4782 = vst.msk [vmem:[#allocation4 + $0x788] sm:$0xff] %vm2983_vm2, %v4719_v44  ;;  %7107 = vmatmul.mubr.f32.gmra.mrb[38].mxu1 %v6466_v29  ;;  %v4721_v58 = vld [vmem:[#allocation3 + $0x192] sm:$0x1f]  ;;  %v13613_v38 = vld [vmem:[#allocation3 + $0x181] sm:$0xff] }
 0x2a6   : > { %v4720_v56 = vld [vmem:[#allocation3 + $0x18a] sm:$0xff]  ;;  %5018 = vrot.lane.b32.xlu0 %v4845_v49, %s11993_s29  ;;  %4515 = vrot.lane.b32.xlu1 %v4340_v51, %s11993_s29  ;;  %4278 = vst.msk [vmem:[#allocation4 + $0x7d0] sm:$0x1f] %vm4229_vm4, %v4214_v55  ;;  %4784 = vst.msk [vmem:[#allocation4 + $0x7d8] sm:$0x1f] %vm4229_vm4, %v4721_v58  ;;  %v6227_v44 = vld [vmem:[#allocation3 + $0x182] sm:$0xff] }
 0x2a7   : > { %v3746_v0 = vld [vmem:[#allocation2 + $0x691] ss:$2 sm:$0xff]  ;;  %4783 = vst.msk [vmem:[#allocation4 + $0x7b0] sm:$0xff] %vm2983_vm2, %v4720_v56  ;;  %v13615_v22 = vld [vmem:[#allocation3 + $0x189] sm:$0xff]  ;;  %5284 = vst.msk [vmem:[#allocation4 + $0x718] sm:$0xff] %vm2983_vm2, %v13613_v38 }
 0x2a8   : > { %v3916_v17 = vmax.f32 %v3470_v61, %v3746_v0  ;;  %v6472_v19 = vld [vmem:[#allocation4 + $0x508] sm:$0xff]  ;;  %5285 = vst.msk [vmem:[#allocation4 + $0x740] sm:$0xff] %vm2983_vm2, %v13615_v22  ;;  %v5724_v29 = vld [vmem:[#allocation3 + $0x188] sm:$0xff]  ;;  %3200 = vst.msk [vmem:[#allocation2 + $0x6c0] sm:$0xff] %vm2983_vm2, %v2684_v41  ;;  %v11056_v0 = vpop.f32.mrb[218].mxu0 }
 0x2a9   : > { %7111 = vmatprep.mubr.f32.mxu1 %v6472_v19  ;;  %v4341_v23 = vld [vmem:[#allocation3 + $0x191] sm:$0x1f]  ;;  %v3468_v31 = vld [vmem:[#allocation2 + $0x680] ss:$2 sm:$0x7f]  ;;  %5787 = vst.msk [vmem:[#allocation4 + $0x6d0] sm:$0xff] %vm2983_vm2, %v5724_v29 }
 0x2aa   : > { %v4000_v18 = vmax.f32 %v3913_v8, %v3916_v17  ;;  %7112 = vmatmul.mubr.f32.gmra.mrb[40].mxu1 %v6471_v21  ;;  %v5223_v25 = vld [vmem:[#allocation3 + $0x191] sm:$0x1f]  ;;  %4517 = vrot.lane.b32.xlu1 %v4341_v23, %s11993_s29  ;;  %v3472_v46 = vld [vmem:[#allocation2 + $0x6a0] ss:$2 sm:$0xff]  ;;  %v3748_v48 = vld [vmem:[#allocation2 + $0x6a1] ss:$2 sm:$0xff] }
 0x2ab   : > { %5286 = vst.msk [vmem:[#allocation4 + $0x768] sm:$0x1f] %vm4229_vm4, %v5223_v25  ;;  %v5725_v43 = vld [vmem:[#allocation3 + $0x190] sm:$0x1f]  ;;  %v3917_v56 = vmax.f32 %v3472_v46, %v3748_v48  ;;  %v6673_v58 = vld [vmem:[%s15400_s4 + $0x178] sm:$0xff] }
 0x2ac   : > { %v4076_v49 = vadd.f32 %v13356_v20, %v4000_v18  ;;  %v6672_v51 = vld [vmem:[%s15400_s4 + $0x170] sm:$0xff]  ;;  %5788 = vst.msk [vmem:[#allocation4 + $0x6f8] sm:$0x1f] %vm4229_vm4, %v5725_v43  ;;  %v3744_v55 = vld [vmem:[#allocation2 + $0x681] ss:$2 sm:$0x7f]  ;;  %v4991_v10 = vpop.permute.xlu0 %4990 }
 0x2ad   : > { %6290 = vst.msk [vmem:[#allocation4 + $0x6b0] sm:$0xff] %vm2983_vm2, %v6227_v44  ;;  %v6228_v61 = vld [vmem:[#allocation3 + $0x18a] sm:$0xff]  ;;  %v11485_v20 = vpack.c.bf16 %v6673_v58, %v6672_v51  ;;  %v6229_v7 = vld [vmem:[#allocation3 + $0x192] sm:$0x1f]  ;;  %v4001_v8 = vmax.f32 %v3914_v53, %v3917_v56  ;;  %3203 = vst.msk [vmem:[#allocation2 + $0x6d8] sm:$0xff] %vm2983_vm2, %v11056_v0  ;;  %v3915_v21 = vmax.f32 %v3468_v31, %v3744_v55  ;;  %v2694_v18 = vpop.f32.mrb[219].mxu0 }
 0x2ae   : > { %4146 = vst.msk [vmem:[#allocation3 + $0x198] sm:$0xff] %vm2983_vm2, %v4076_v49  ;;  %6291 = vst.msk [vmem:[#allocation4 + $0x6d8] sm:$0xff] %vm2983_vm2, %v6228_v61  ;;  %v3474_v17 = vld [vmem:[#allocation2 + $0x6b0] ss:$2 sm:$0x7f]  ;;  %v11059_v29 = vpop.f32.mrb[220].mxu0 }
 0x2af   : > { %v3750_v19 = vld [vmem:[#allocation2 + $0x6b1] ss:$2 sm:$0x7f]  ;;  %6292 = vst.msk [vmem:[#allocation4 + $0x700] sm:$0x1f] %vm4229_vm4, %v6229_v7  ;;  %11486 = vmatpush1.bf16.msra.mxu1 %v11485_v20  ;;  %v2704_v31 = vpop.f32.mrb[221].mxu0  ;;  %v4490_v43 = vpop.permute.xlu1 %4489 }
 0x2b0   : > { %v3918_v16 = vmax.f32 %v3474_v17, %v3750_v19  ;;  %5146 = vst.msk [vmem:[#allocation4 + $0x530] sm:$0xff] %vm4606_vm5, %v4991_v10  ;;  %v13644_v23 = vld [vmem:[%s15399_s3] ss:$0 sm:$0xff]  ;;  %11487 = vmatprep.subr.bf16.mxu1 %v15409_v54  ;;  %v4993_v41 = vpop.permute.xlu0 %4992  ;;  %4644 = vst.msk [vmem:[#allocation4 + $0x5a0] sm:$0xff] %vm4606_vm5, %v4490_v43  ;;  %v11062_v51 = vpop.f32.mrb[222].mxu0  ;;  %v6476_v58 = vld [vmem:[#allocation4 + $0x528] sm:$0xff] }
 0x2b1   : > { %3202 = vst.msk [vmem:[#allocation2 + $0x6d0] sm:$0xff] %vm2983_vm2, %v2694_v18  ;;  %v4077_v24 = vadd.f32 %v13644_v23, %v4001_v8  ;;  %3205 = vst.msk [vmem:[#allocation2 + $0x6e8] sm:$0xff] %vm2983_vm2, %v11059_v29  ;;  %v2714_v53 = vpop.f32.mrb[223].mxu0  ;;  %v6674_v61 = vld [vmem:[%s15400_s4 + $0x180] sm:$0xff]  ;;  %v6675_v20 = vld [vmem:[%s15400_s4 + $0x188] sm:$0xff] }
 0x2b2   : > { %v4002_v25 = vmax.f32 %v3915_v21, %v3918_v16  ;;  %3204 = vst.msk [vmem:[#allocation2 + $0x6e0] sm:$0xff] %vm2983_vm2, %v2704_v31  ;;  %3207 = vst.msk [vmem:[#allocation2 + $0x6f8] sm:$0xff] %vm2983_vm2, %v11062_v51  ;;  %v11065_v17 = vpop.f32.mrb[224].mxu0  ;;  %v11488_v10 = vpack.c.bf16 %v6675_v20, %v6674_v61  ;;  %v6481_v21 = vld [vmem:[#allocation4 + $0x550] sm:$0xff]  ;;  %v3476_v16 = vld [vmem:[#allocation2 + $0x6c0] ss:$2 sm:$0xff] }
 0x2b3   : > { %4147 = vst.msk [vmem:[#allocation3 + $0x1a0] sm:$0xff] %vm2983_vm2, %v4077_v24  ;;  %3206 = vst.msk [vmem:[#allocation2 + $0x6f0] sm:$0xff] %vm2983_vm2, %v2714_v53  ;;  %v2724_v18 = vpop.f32.mrb[225].mxu0  ;;  %v3752_v29 = vld [vmem:[#allocation2 + $0x6c1] ss:$2 sm:$0xff] }
 0x2b4   : > { %v4078_v44 = vadd.f32 %v13644_v23, %v4002_v25  ;;  %5147 = vst.msk [vmem:[#allocation4 + $0x558] sm:$0xff] %vm4606_vm5, %v4993_v41  ;;  %v4995_v56 = vpop.permute.xlu0 %4994  ;;  %11489 = vmatpush1.bf16.msra.mxu1 %v11488_v10 }
 0x2b5   : > { %v4846_v46 = vld [vmem:[#allocation3 + $0x198] sm:$0xff]  ;;  %5148 = vst.msk [vmem:[#allocation4 + $0x580] sm:$0x1f] %vm4609_vm6, %v4995_v56  ;;  %v4492_v0 = vpop.permute.xlu1 %4491  ;;  %11490 = vmatprep.subr.bf16.mxu1 %v15409_v54  ;;  %v6486_v56 = vld [vmem:[#allocation4 + $0x578] sm:$0xff] }
 0x2b6   : > { %v4215_v48 = vld [vmem:[#allocation3 + $0x198] sm:$0xff]  ;;  %5020 = vrot.lane.b32.xlu0 %v4846_v46, %s11993_s29  ;;  %4148 = vst.msk [vmem:[#allocation3 + $0x1a8] sm:$0x7f] %vm4096_vm3, %v4078_v44  ;;  %v11068_v44 = vpop.f32.mrb[226].mxu0 }
 0x2b7   : > { %v5726_v49 = vld [vmem:[#allocation3 + $0x198] sm:$0xff]  ;;  %4279 = vst.msk [vmem:[#allocation4 + $0x7f8] sm:$0xff] %vm2983_vm2, %v4215_v48  ;;  %3209 = vst.msk [vmem:[#allocation2 + $0x708] sm:$0xff] %vm2983_vm2, %v11065_v17 }
 0x2b8   : > { %5789 = vst.msk [vmem:[#allocation4 + $0x720] sm:$0xff] %vm2983_vm2, %v5726_v49  ;;  %v6477_v55 = vld [vmem:[#allocation4 + $0x530] sm:$0xff]  ;;  %3208 = vst.msk [vmem:[#allocation2 + $0x700] sm:$0xff] %vm2983_vm2, %v2724_v18 }
 0x2b9   : > { %7116 = vmatprep.mubr.f32.mxu1 %v6477_v55  ;;  %4645 = vst.msk [vmem:[#allocation4 + $0x5c8] sm:$0xff] %vm4606_vm5, %v4492_v0  ;;  %v4494_v31 = vpop.permute.xlu1 %4493  ;;  %v2734_v55 = vpop.f32.mrb[227].mxu0  ;;  %v3478_v61 = vld [vmem:[#allocation2 + $0x6d0] ss:$2 sm:$0xff] }
 0x2ba   : > { %7117 = vmatmul.mubr.f32.gmra.mrb[42].mxu1 %v6476_v58  ;;  %v4847_v7 = vld [vmem:[#allocation3 + $0x1a0] sm:$0xff]  ;;  %4646 = vst.msk [vmem:[#allocation4 + $0x5f0] sm:$0x1f] %vm4609_vm6, %v4494_v31  ;;  %v3482_v51 = vld [vmem:[#allocation2 + $0x6f0] ss:$2 sm:$0xff]  ;;  %v3919_v58 = vmax.f32 %v3476_v16, %v3752_v29 }
 0x2bb   : > { %v4342_v8 = vld [vmem:[#allocation3 + $0x199] sm:$0xff]  ;;  %5022 = vrot.lane.b32.xlu0 %v4847_v7, %s11993_s29  ;;  %3211 = vst.msk [vmem:[#allocation2 + $0x718] sm:$0xff] %vm2983_vm2, %v11068_v44  ;;  %3210 = vst.msk [vmem:[#allocation2 + $0x710] sm:$0xff] %vm2983_vm2, %v2734_v55 }
 0x2bc   : > { %v4216_v19 = vld [vmem:[#allocation3 + $0x1a0] sm:$0xff]  ;;  %4519 = vrot.lane.b32.xlu1 %v4342_v8, %s11993_s29  ;;  %v3758_v53 = vld [vmem:[#allocation2 + $0x6f1] ss:$2 sm:$0xff]  ;;  %v6487_v20 = vld [vmem:[#allocation4 + $0x580] sm:$0xff] }
 0x2bd   : > { %4280 = vst.msk [vmem:[#allocation4 + $0x820] sm:$0xff] %vm2983_vm2, %v4216_v19  ;;  %v6482_v24 = vld [vmem:[#allocation4 + $0x558] sm:$0xff]  ;;  %v4848_v41 = vld [vmem:[#allocation3 + $0x1a8] sm:$0x1f]  ;;  %v3922_v0 = vmax.f32 %v3482_v51, %v3758_v53  ;;  %v3754_v8 = vld [vmem:[#allocation2 + $0x6d1] ss:$2 sm:$0xff] }
 0x2be   : > { %v13672_v25 = vld [vmem:[#allocation3 + $0x19a] sm:$0xff]  ;;  %7121 = vmatprep.mubr.f32.mxu1 %v6482_v24  ;;  %v4217_v46 = vld [vmem:[#allocation3 + $0x1a8] sm:$0x1f] }
 0x2bf   : > { %v4343_v43 = vld [vmem:[#allocation3 + $0x1a1] sm:$0xff]  ;;  %4785 = vst.msk [vmem:[#allocation4 + $0x800] sm:$0xff] %vm2983_vm2, %v13672_v25  ;;  %7122 = vmatmul.mubr.f32.gmra.mrb[44].mxu1 %v6481_v21  ;;  %v4724_v49 = vld [vmem:[#allocation3 + $0x1aa] sm:$0x1f]  ;;  %5024 = vrot.lane.b32.xlu0 %v4848_v41, %s11993_s29  ;;  %v13686_v7 = vld [vmem:[#allocation3 + $0x199] sm:$0xff]  ;;  %v4003_v10 = vmax.f32 %v3919_v58, %v3922_v0  ;;  %v11071_v21 = vpop.f32.mrb[228].mxu0 }
 0x2c0   : > { %v4723_v48 = vld [vmem:[#allocation3 + $0x1a2] sm:$0xff]  ;;  %4521 = vrot.lane.b32.xlu1 %v4343_v43, %s11993_s29  ;;  %4281 = vst.msk [vmem:[#allocation4 + $0x848] sm:$0x1f] %vm4229_vm4, %v4217_v46  ;;  %4787 = vst.msk [vmem:[#allocation4 + $0x850] sm:$0x1f] %vm4229_vm4, %v4724_v49  ;;  %7126 = vmatprep.mubr.f32.mxu1 %v6487_v20  ;;  %v2744_v29 = vpop.f32.mrb[229].mxu0  ;;  %v3920_v49 = vmax.f32 %v3478_v61, %v3754_v8  ;;  %v4997_v61 = vpop.permute.xlu0 %4996 }
 0x2c1   : > { %4786 = vst.msk [vmem:[#allocation4 + $0x828] sm:$0xff] %vm2983_vm2, %v4723_v48  ;;  %v4344_v17 = vld [vmem:[#allocation3 + $0x1a9] sm:$0x1f]  ;;  %v13688_v19 = vld [vmem:[#allocation3 + $0x1a1] sm:$0xff]  ;;  %5287 = vst.msk [vmem:[#allocation4 + $0x790] sm:$0xff] %vm2983_vm2, %v13686_v7  ;;  %v4079_v48 = vadd.f32 %v13644_v23, %v4003_v10 }
 0x2c2   : > { %5288 = vst.msk [vmem:[#allocation4 + $0x7b8] sm:$0xff] %vm2983_vm2, %v13688_v19  ;;  %v5226_v16 = vld [vmem:[#allocation3 + $0x1a9] sm:$0x1f]  ;;  %v5727_v18 = vld [vmem:[#allocation3 + $0x1a0] sm:$0xff]  ;;  %3213 = vst.msk [vmem:[#allocation2 + $0x728] sm:$0xff] %vm2983_vm2, %v11071_v21 }
 0x2c3   : > { %7127 = vmatmul.mubr.f32.gmra.mrb[46].mxu1 %v6486_v56  ;;  %v5728_v24 = vld [vmem:[#allocation3 + $0x1a8] sm:$0x1f]  ;;  %5289 = vst.msk [vmem:[#allocation4 + $0x7e0] sm:$0x1f] %vm4229_vm4, %v5226_v16  ;;  %v6230_v31 = vld [vmem:[#allocation3 + $0x19a] sm:$0xff]  ;;  %v11074_v56 = vpop.f32.mrb[230].mxu0 }
 0x2c4   : > { %4523 = vrot.lane.b32.xlu1 %v4344_v17, %s11993_s29  ;;  %5790 = vst.msk [vmem:[#allocation4 + $0x748] sm:$0xff] %vm2983_vm2, %v5727_v18  ;;  %v6231_v41 = vld [vmem:[#allocation3 + $0x1a2] sm:$0xff]  ;;  %v6232_v43 = vld [vmem:[#allocation3 + $0x1aa] sm:$0x1f]  ;;  %3212 = vst.msk [vmem:[#allocation2 + $0x720] sm:$0xff] %vm2983_vm2, %v2744_v29  ;;  %v2754_v18 = vpop.f32.mrb[231].mxu0 }
 0x2c5   : > { %5791 = vst.msk [vmem:[#allocation4 + $0x770] sm:$0x1f] %vm4229_vm4, %v5728_v24  ;;  %v3484_v44 = vld [vmem:[#allocation2 + $0x700] ss:$2 sm:$0xff]  ;;  %v3760_v46 = vld [vmem:[#allocation2 + $0x701] ss:$2 sm:$0xff] }
 0x2c6   : > { %6293 = vst.msk [vmem:[#allocation4 + $0x728] sm:$0xff] %vm2983_vm2, %v6230_v31  ;;  %6294 = vst.msk [vmem:[#allocation4 + $0x750] sm:$0xff] %vm2983_vm2, %v6231_v41  ;;  %v3480_v51 = vld [vmem:[#allocation2 + $0x6e0] ss:$2 sm:$0x7f]  ;;  %v3923_v55 = vmax.f32 %v3484_v44, %v3760_v46  ;;  %v6676_v58 = vld [vmem:[%s15400_s4 + $0x190] sm:$0xff] }
 0x2c7   : > { %6295 = vst.msk [vmem:[#allocation4 + $0x778] sm:$0x1f] %vm4229_vm4, %v6232_v43  ;;  %v3756_v53 = vld [vmem:[#allocation2 + $0x6e1] ss:$2 sm:$0x7f]  ;;  %v6677_v0 = vld [vmem:[%s15400_s4 + $0x198] sm:$0xff]  ;;  %v4999_v43 = vpop.permute.xlu0 %4998 }
 0x2c8   : > { %4149 = vst.msk [vmem:[#allocation3 + $0x1b0] sm:$0xff] %vm2983_vm2, %v4079_v48  ;;  %v4004_v20 = vmax.f32 %v3920_v49, %v3923_v55  ;;  %v3486_v17 = vld [vmem:[#allocation2 + $0x710] ss:$2 sm:$0x7f]  ;;  %3215 = vst.msk [vmem:[#allocation2 + $0x738] sm:$0xff] %vm2983_vm2, %v11074_v56  ;;  %v11491_v8 = vpack.c.bf16 %v6677_v0, %v6676_v58  ;;  %v3921_v21 = vmax.f32 %v3480_v51, %v3756_v53  ;;  %v11077_v31 = vpop.f32.mrb[232].mxu0  ;;  %v4496_v44 = vpop.permute.xlu1 %4495 }
 0x2c9   : > { %v3762_v10 = vld [vmem:[#allocation2 + $0x711] ss:$2 sm:$0x7f]  ;;  %5149 = vst.msk [vmem:[#allocation4 + $0x5a8] sm:$0xff] %vm4606_vm5, %v4997_v61  ;;  %v2764_v41 = vpop.f32.mrb[233].mxu0  ;;  %5150 = vst.msk [vmem:[#allocation4 + $0x5d0] sm:$0xff] %vm4606_vm5, %v4999_v43 }
 0x2ca   : > { %v3924_v16 = vmax.f32 %v3486_v17, %v3762_v10  ;;  %3214 = vst.msk [vmem:[#allocation2 + $0x730] sm:$0xff] %vm2983_vm2, %v2754_v18  ;;  %v4080_v24 = vadd.f32 %v13644_v23, %v4004_v20  ;;  %11492 = vmatpush1.bf16.msra.mxu1 %v11491_v8  ;;  %3217 = vst.msk [vmem:[#allocation2 + $0x748] sm:$0xff] %vm2983_vm2, %v11077_v31  ;;  %v11080_v51 = vpop.f32.mrb[234].mxu0  ;;  %v6491_v58 = vld [vmem:[#allocation4 + $0x5a0] sm:$0xff]  ;;  %v6496_v8 = vld [vmem:[#allocation4 + $0x5c8] sm:$0xff] }
 0x2cb   : > { %11493 = vmatprep.subr.bf16.mxu1 %v15409_v54  ;;  %3216 = vst.msk [vmem:[#allocation2 + $0x740] sm:$0xff] %vm2983_vm2, %v2764_v41  ;;  %3219 = vst.msk [vmem:[#allocation2 + $0x758] sm:$0xff] %vm2983_vm2, %v11080_v51  ;;  %v2774_v53 = vpop.f32.mrb[235].mxu0 }
 0x2cc   : > { %v4005_v29 = vmax.f32 %v3921_v21, %v3924_v16  ;;  %4150 = vst.msk [vmem:[#allocation3 + $0x1b8] sm:$0xff] %vm2983_vm2, %v4080_v24  ;;  %3218 = vst.msk [vmem:[#allocation2 + $0x750] sm:$0xff] %vm2983_vm2, %v2774_v53  ;;  %v5001_v56 = vpop.permute.xlu0 %5000  ;;  %v11083_v10 = vpop.f32.mrb[236].mxu0  ;;  %v3488_v21 = vld [vmem:[#allocation2 + $0x720] ss:$2 sm:$0xff] }
 0x2cd   : > { %4647 = vst.msk [vmem:[#allocation4 + $0x618] sm:$0xff] %vm4606_vm5, %v4496_v44  ;;  %v4498_v0 = vpop.permute.xlu1 %4497  ;;  %v2784_v16 = vpop.f32.mrb[237].mxu0  ;;  %v6678_v24 = vld [vmem:[%s15400_s4 + $0x1a0] sm:$0xff] }
 0x2ce   : > { %v4081_v46 = vadd.f32 %v13644_v23, %v4005_v29  ;;  %5151 = vst.msk [vmem:[#allocation4 + $0x5f8] sm:$0x1f] %vm4609_vm6, %v5001_v56  ;;  %v3764_v29 = vld [vmem:[#allocation2 + $0x721] ss:$2 sm:$0xff]  ;;  %v11086_v44 = vpop.f32.mrb[238].mxu0  ;;  %v6501_v56 = vld [vmem:[#allocation4 + $0x5f0] sm:$0xff] }
 0x2cf   : > { %v4849_v48 = vld [vmem:[#allocation3 + $0x1b0] sm:$0xff]  ;;  %4648 = vst.msk [vmem:[#allocation4 + $0x640] sm:$0xff] %vm4606_vm5, %v4498_v0 }
 0x2d0   : > { %v5729_v49 = vld [vmem:[#allocation3 + $0x1b0] sm:$0xff]  ;;  %5026 = vrot.lane.b32.xlu0 %v4849_v48, %s11993_s29  ;;  %4151 = vst.msk [vmem:[#allocation3 + $0x1c0] sm:$0x7f] %vm4096_vm3, %v4081_v46  ;;  %v6497_v18 = vld [vmem:[#allocation4 + $0x5d0] sm:$0xff] }
 0x2d1   : > { %4282 = vst.msk [vmem:[#allocation4 + $0x870] sm:$0xff] %vm2983_vm2, %v4849_v48  ;;  %5792 = vst.msk [vmem:[#allocation4 + $0x798] sm:$0xff] %vm2983_vm2, %v5729_v49  ;;  %v6492_v55 = vld [vmem:[#allocation4 + $0x5a8] sm:$0xff]  ;;  %v4500_v31 = vpop.permute.xlu1 %4499  ;;  %v6679_v48 = vld [vmem:[%s15400_s4 + $0x1a8] sm:$0xff] }
 0x2d2   : > { %7131 = vmatprep.mubr.f32.mxu1 %v6492_v55  ;;  %3221 = vst.msk [vmem:[#allocation2 + $0x768] sm:$0xff] %vm2983_vm2, %v11083_v10  ;;  %3220 = vst.msk [vmem:[#allocation2 + $0x760] sm:$0xff] %vm2983_vm2, %v2784_v16  ;;  %v2794_v55 = vpop.f32.mrb[239].mxu0 }
 0x2d3   : > { %7132 = vmatmul.mubr.f32.gmra.mrb[48].mxu1 %v6491_v58  ;;  %v4850_v20 = vld [vmem:[#allocation3 + $0x1b8] sm:$0xff]  ;;  %4649 = vst.msk [vmem:[#allocation4 + $0x668] sm:$0x1f] %vm4609_vm6, %v4500_v31  ;;  %v11494_v58 = vpack.c.bf16 %v6679_v48, %v6678_v24 }
 0x2d4   : > { %v4345_v17 = vld [vmem:[#allocation3 + $0x1b1] sm:$0xff]  ;;  %5028 = vrot.lane.b32.xlu0 %v4850_v20, %s11993_s29  ;;  %4283 = vst.msk [vmem:[#allocation4 + $0x898] sm:$0xff] %vm2983_vm2, %v4850_v20  ;;  %7136 = vmatprep.mubr.f32.mxu1 %v6497_v18  ;;  %3223 = vst.msk [vmem:[#allocation2 + $0x778] sm:$0xff] %vm2983_vm2, %v11086_v44  ;;  %v3925_v20 = vmax.f32 %v3488_v21, %v3764_v29  ;;  %v11089_v21 = vpop.f32.mrb[240].mxu0 }
 0x2d5   : > { %v13730_v61 = vld [vmem:[#allocation3 + $0x1b2] sm:$0xff]  ;;  %4525 = vrot.lane.b32.xlu1 %v4345_v17, %s11993_s29  ;;  %3222 = vst.msk [vmem:[#allocation2 + $0x770] sm:$0xff] %vm2983_vm2, %v2794_v55  ;;  %11495 = vmatpush1.bf16.msra.mxu1 %v11494_v58  ;;  %3225 = vst.msk [vmem:[#allocation2 + $0x788] sm:$0xff] %vm2983_vm2, %v11089_v21 }
 0x2d6   : > { %4788 = vst.msk [vmem:[#allocation4 + $0x878] sm:$0xff] %vm2983_vm2, %v13730_v61  ;;  %v3494_v51 = vld [vmem:[#allocation2 + $0x750] ss:$2 sm:$0xff]  ;;  %v3770_v53 = vld [vmem:[#allocation2 + $0x751] ss:$2 sm:$0xff]  ;;  %11496 = vmatprep.subr.bf16.mxu1 %v15409_v54 }
 0x2d7   : > { %v4851_v41 = vld [vmem:[#allocation3 + $0x1c0] sm:$0x1f]  ;;  %7137 = vmatmul.mubr.f32.gmra.mrb[50].mxu1 %v6496_v8  ;;  %v13754_v0 = vld [vmem:[#allocation3 + $0x1b1] sm:$0xff]  ;;  %v3928_v10 = vmax.f32 %v3494_v51, %v3770_v53 }
 0x2d8   : > { %v4346_v43 = vld [vmem:[#allocation3 + $0x1b9] sm:$0xff]  ;;  %5030 = vrot.lane.b32.xlu0 %v4851_v41, %s11993_s29  ;;  %v4727_v16 = vld [vmem:[#allocation3 + $0x1c2] sm:$0x1f]  ;;  %5290 = vst.msk [vmem:[#allocation4 + $0x808] sm:$0xff] %vm2983_vm2, %v13754_v0 }
 0x2d9   : > { %v4220_v46 = vld [vmem:[#allocation3 + $0x1c0] sm:$0x1f]  ;;  %4527 = vrot.lane.b32.xlu1 %v4346_v43, %s11993_s29  ;;  %v3490_v17 = vld [vmem:[#allocation2 + $0x730] ss:$2 sm:$0xff]  ;;  %v3766_v18 = vld [vmem:[#allocation2 + $0x731] ss:$2 sm:$0xff]  ;;  %v4006_v41 = vmax.f32 %v3925_v20, %v3928_v10 }
 0x2da   : > { %v13746_v49 = vld [vmem:[#allocation3 + $0x1ba] sm:$0xff]  ;;  %4284 = vst.msk [vmem:[#allocation4 + $0x8c0] sm:$0x1f] %vm4229_vm4, %v4220_v46  ;;  %4790 = vst.msk [vmem:[#allocation4 + $0x8c8] sm:$0x1f] %vm4229_vm4, %v4727_v16  ;;  %v2804_v46 = vpop.f32.mrb[241].mxu0  ;;  %v3926_v20 = vmax.f32 %v3490_v17, %v3766_v18 }
 0x2db   : > { %4789 = vst.msk [vmem:[#allocation4 + $0x8a0] sm:$0xff] %vm2983_vm2, %v13746_v49  ;;  %v6502_v8 = vld [vmem:[#allocation4 + $0x5f8] sm:$0xff]  ;;  %v5730_v43 = vld [vmem:[#allocation3 + $0x1b8] sm:$0xff]  ;;  %3224 = vst.msk [vmem:[#allocation2 + $0x780] sm:$0xff] %vm2983_vm2, %v2804_v46  ;;  %v4082_v58 = vadd.f32 %v13644_v23, %v4006_v41 }
 0x2dc   : > { %7141 = vmatprep.mubr.f32.mxu1 %v6502_v8  ;;  %v4347_v31 = vld [vmem:[#allocation3 + $0x1c1] sm:$0x1f]  ;;  %v13760_v24 = vld [vmem:[#allocation3 + $0x1b9] sm:$0xff]  ;;  %5793 = vst.msk [vmem:[#allocation4 + $0x7c0] sm:$0xff] %vm2983_vm2, %v5730_v43  ;;  %v6680_v17 = vld [vmem:[%s15400_s4 + $0x1b0] sm:$0xff] }
 0x2dd   : > { %7142 = vmatmul.mubr.f32.gmra.mrb[52].mxu1 %v6501_v56  ;;  %5291 = vst.msk [vmem:[#allocation4 + $0x830] sm:$0xff] %vm2983_vm2, %v13760_v24  ;;  %v5229_v29 = vld [vmem:[#allocation3 + $0x1c1] sm:$0x1f]  ;;  %4529 = vrot.lane.b32.xlu1 %v4347_v31, %s11993_s29  ;;  %v6233_v48 = vld [vmem:[#allocation3 + $0x1b2] sm:$0xff]  ;;  %v11092_v31 = vpop.f32.mrb[242].mxu0  ;;  %4152 = vst.msk [vmem:[#allocation3 + $0x1c8] sm:$0xff] %vm2983_vm2, %v4082_v58 }
 0x2de   : > { %v5731_v44 = vld [vmem:[#allocation3 + $0x1c0] sm:$0x1f]  ;;  %5292 = vst.msk [vmem:[#allocation4 + $0x858] sm:$0x1f] %vm4229_vm4, %v5229_v29  ;;  %v6681_v18 = vld [vmem:[%s15400_s4 + $0x1b8] sm:$0xff] }
 0x2df   : > { %5794 = vst.msk [vmem:[#allocation4 + $0x7e8] sm:$0x1f] %vm4229_vm4, %v5731_v44  ;;  %v6234_v51 = vld [vmem:[#allocation3 + $0x1ba] sm:$0xff]  ;;  %v6235_v53 = vld [vmem:[#allocation3 + $0x1c2] sm:$0x1f]  ;;  %v5003_v44 = vpop.permute.xlu0 %5002 }
 0x2e0   : > { %v3496_v55 = vld [vmem:[#allocation2 + $0x760] ss:$2 sm:$0xff]  ;;  %v3772_v56 = vld [vmem:[#allocation2 + $0x761] ss:$2 sm:$0xff]  ;;  %6296 = vst.msk [vmem:[#allocation4 + $0x7a0] sm:$0xff] %vm2983_vm2, %v6233_v48  ;;  %6297 = vst.msk [vmem:[#allocation4 + $0x7c8] sm:$0xff] %vm2983_vm2, %v6234_v51 }
 0x2e1   : > { %6298 = vst.msk [vmem:[#allocation4 + $0x7f0] sm:$0x1f] %vm4229_vm4, %v6235_v53  ;;  %v3492_v10 = vld [vmem:[#allocation2 + $0x740] ss:$2 sm:$0x7f]  ;;  %v3929_v16 = vmax.f32 %v3496_v55, %v3772_v56  ;;  %v2814_v48 = vpop.f32.mrb[243].mxu0  ;;  %v11497_v53 = vpack.c.bf16 %v6681_v18, %v6680_v17 }
 0x2e2   : > { %v3768_v8 = vld [vmem:[#allocation2 + $0x741] ss:$2 sm:$0x7f]  ;;  %v3498_v29 = vld [vmem:[#allocation2 + $0x770] ss:$2 sm:$0x7f] }
 0x2e3   : > { %v4007_v21 = vmax.f32 %v3926_v20, %v3929_v16  ;;  %v3774_v43 = vld [vmem:[#allocation2 + $0x771] ss:$2 sm:$0x7f]  ;;  %3227 = vst.msk [vmem:[#allocation2 + $0x798] sm:$0xff] %vm2983_vm2, %v11092_v31  ;;  %v3927_v41 = vmax.f32 %v3492_v10, %v3768_v8  ;;  %3226 = vst.msk [vmem:[#allocation2 + $0x790] sm:$0xff] %vm2983_vm2, %v2814_v48  ;;  %v11095_v56 = vpop.f32.mrb[244].mxu0  ;;  %11498 = vmatpush1.bf16.msra.mxu1 %v11497_v53  ;;  %v5005_v20 = vpop.permute.xlu0 %5004 }
 0x2e4   : > { %v3930_v46 = vmax.f32 %v3498_v29, %v3774_v43  ;;  %5152 = vst.msk [vmem:[#allocation4 + $0x620] sm:$0xff] %vm4606_vm5, %v5003_v44  ;;  %v2824_v58 = vpop.f32.mrb[245].mxu0  ;;  %v4502_v10 = vpop.permute.xlu1 %4501  ;;  %11499 = vmatprep.subr.bf16.mxu1 %v15409_v54  ;;  %5153 = vst.msk [vmem:[#allocation4 + $0x648] sm:$0xff] %vm4606_vm5, %v5005_v20  ;;  %v4852_v16 = vld [vmem:[#allocation3 + $0x1c8] sm:$0xff]  ;;  %v6682_v20 = vld [vmem:[%s15400_s4 + $0x1c0] sm:$0xff] }
 0x2e5   : > { %v4083_v51 = vadd.f32 %v13644_v23, %v4007_v21  ;;  %3229 = vst.msk [vmem:[#allocation2 + $0x7a8] sm:$0xff] %vm2983_vm2, %v11095_v56  ;;  %3228 = vst.msk [vmem:[#allocation2 + $0x7a0] sm:$0xff] %vm2983_vm2, %v2824_v58  ;;  %v5732_v31 = vld [vmem:[#allocation3 + $0x1c8] sm:$0xff]  ;;  %5032 = vrot.lane.b32.xlu0 %v4852_v16, %s11993_s29  ;;  %v11098_v21 = vpop.f32.mrb[246].mxu0 }
 0x2e6   : > { %v4008_v55 = vmax.f32 %v3927_v41, %v3930_v46  ;;  %4650 = vst.msk [vmem:[#allocation4 + $0x690] sm:$0xff] %vm4606_vm5, %v4502_v10  ;;  %v2834_v29 = vpop.f32.mrb[247].mxu0  ;;  %v6506_v41 = vld [vmem:[#allocation4 + $0x618] sm:$0xff]  ;;  %v6511_v53 = vld [vmem:[#allocation4 + $0x640] sm:$0xff] }
 0x2e7   : > { %4153 = vst.msk [vmem:[#allocation3 + $0x1d0] sm:$0xff] %vm2983_vm2, %v4083_v51  ;;  %4285 = vst.msk [vmem:[#allocation4 + $0x8e8] sm:$0xff] %vm2983_vm2, %v4852_v16  ;;  %v5007_v44 = vpop.permute.xlu0 %5006  ;;  %v11101_v18 = vpop.f32.mrb[248].mxu0  ;;  %v3776_v10 = vld [vmem:[#allocation2 + $0x781] ss:$2 sm:$0xff] }
 0x2e8   : > { %v4084_v8 = vadd.f32 %v13644_v23, %v4008_v55  ;;  %5795 = vst.msk [vmem:[#allocation4 + $0x810] sm:$0xff] %vm2983_vm2, %v5732_v31  ;;  %3231 = vst.msk [vmem:[#allocation2 + $0x7b8] sm:$0xff] %vm2983_vm2, %v11098_v21  ;;  %v4504_v46 = vpop.permute.xlu1 %4503  ;;  %v3500_v55 = vld [vmem:[#allocation2 + $0x780] ss:$2 sm:$0xff]  ;;  %v2844_v56 = vpop.f32.mrb[249].mxu0 }
 0x2e9   : > { %3230 = vst.msk [vmem:[#allocation2 + $0x7b0] sm:$0xff] %vm2983_vm2, %v2834_v29  ;;  %3233 = vst.msk [vmem:[#allocation2 + $0x7c8] sm:$0xff] %vm2983_vm2, %v11101_v18  ;;  %v11104_v21 = vpop.f32.mrb[250].mxu0 }
 0x2ea   : > { %4154 = vst.msk [vmem:[#allocation3 + $0x1d8] sm:$0x7f] %vm4096_vm3, %v4084_v8 }
 0x2eb   : > { %v6507_v43 = vld [vmem:[#allocation4 + $0x620] sm:$0xff]  ;;  %5154 = vst.msk [vmem:[#allocation4 + $0x670] sm:$0x1f] %vm4609_vm6, %v5007_v44  ;;  %v6512_v58 = vld [vmem:[#allocation4 + $0x648] sm:$0xff] }
 0x2ec   : > { %7146 = vmatprep.mubr.f32.mxu1 %v6507_v43  ;;  %4651 = vst.msk [vmem:[#allocation4 + $0x6b8] sm:$0xff] %vm4606_vm5, %v4504_v46  ;;  %v4506_v8 = vpop.permute.xlu1 %4505  ;;  %v6683_v43 = vld [vmem:[%s15400_s4 + $0x1c8] sm:$0xff] }
 0x2ed   : > { %7147 = vmatmul.mubr.f32.gmra.mrb[54].mxu1 %v6506_v41  ;;  %3232 = vst.msk [vmem:[#allocation2 + $0x7c0] sm:$0xff] %vm2983_vm2, %v2844_v56  ;;  %3235 = vst.msk [vmem:[#allocation2 + $0x7d8] sm:$0xff] %vm2983_vm2, %v11104_v21  ;;  %v11500_v18 = vpack.c.bf16 %v6683_v43, %v6682_v20  ;;  %v3931_v56 = vmax.f32 %v3500_v55, %v3776_v10  ;;  %v15425_v10 = vmov 0.0|0.0  }
 0x2ee   : > { %v4853_v48 = vld [vmem:[#allocation3 + $0x1d0] sm:$0xff]  ;;  %7151 = vmatprep.mubr.f32.mxu1 %v6512_v58  ;;  %4652 = vst.msk [vmem:[#allocation4 + $0x6e0] sm:$0x1f] %vm4609_vm6, %v4506_v8 }
 0x2ef   : > { %v4348_v17 = vld [vmem:[#allocation3 + $0x1c9] sm:$0xff]  ;;  %5034 = vrot.lane.b32.xlu0 %v4853_v48, %s11993_s29  ;;  %4286 = vst.msk [vmem:[#allocation4 + $0x910] sm:$0xff] %vm2983_vm2, %v4853_v48  ;;  %v2854_v48 = vpop.f32.mrb[251].mxu0  ;;  %11501 = vmatpush1.bf16.msra.mxu1 %v11500_v18 }
 0x2f0   : > { %v13801_v51 = vld [vmem:[#allocation3 + $0x1ca] sm:$0xff]  ;;  %4531 = vrot.lane.b32.xlu1 %v4348_v17, %s11993_s29  ;;  %3234 = vst.msk [vmem:[#allocation2 + $0x7d0] sm:$0xff] %vm2983_vm2, %v2854_v48  ;;  %v11107_v55 = vpop.f32.mrb[252].mxu0  ;;  %11502 = vmatprep.subr.bf16.mxu1 %v15425_v10 }
 0x2f1   : > { %4791 = vst.msk [vmem:[#allocation4 + $0x8f0] sm:$0xff] %vm2983_vm2, %v13801_v51  ;;  %v4854_v16 = vld [vmem:[#allocation3 + $0x1d8] sm:$0x1f]  ;;  %7152 = vmatmul.mubr.f32.gmra.mrb[56].mxu1 %v6511_v53  ;;  %v6516_v17 = vld [vmem:[#allocation4 + $0x668] sm:$0xff]  ;;  %3237 = vst.msk [vmem:[#allocation2 + $0x7e8] sm:$0xff] %vm2983_vm2, %v11107_v55  ;;  %v2864_v48 = vpop.f32.mrb[253].mxu0 }
 0x2f2   : > { %v4349_v31 = vld [vmem:[#allocation3 + $0x1d1] sm:$0xff]  ;;  %v13825_v53 = vld [vmem:[#allocation3 + $0x1c9] sm:$0xff]  ;;  %v4730_v54 = vld [vmem:[#allocation3 + $0x1da] sm:$0x1f]  ;;  %3236 = vst.msk [vmem:[#allocation2 + $0x7e0] sm:$0xff] %vm2983_vm2, %v2864_v48 }
 0x2f3   : > { %v4223_v29 = vld [vmem:[#allocation3 + $0x1d8] sm:$0x1f]  ;;  %5036 = vrot.lane.b32.xlu0 %v4854_v16, %s11993_s29  ;;  %5293 = vst.msk [vmem:[#allocation4 + $0x880] sm:$0xff] %vm2983_vm2, %v13825_v53  ;;  %v3504_v55 = vld [vmem:[#allocation2 + $0x7a0] ss:$2 sm:$0x7f] }
 0x2f4   : > { %v13817_v44 = vld [vmem:[#allocation3 + $0x1d2] sm:$0xff]  ;;  %4533 = vrot.lane.b32.xlu1 %v4349_v31, %s11993_s29  ;;  %4287 = vst.msk [vmem:[#allocation4 + $0x938] sm:$0x1f] %vm4229_vm4, %v4223_v29  ;;  %4793 = vst.msk [vmem:[#allocation4 + $0x940] sm:$0x1f] %vm4229_vm4, %v4730_v54  ;;  %v6236_v54 = vld [vmem:[#allocation3 + $0x1ca] sm:$0xff] }
 0x2f5   : > { %v3506_v41 = vld [vmem:[#allocation2 + $0x7b0] ss:$2 sm:$0xff]  ;;  %v3782_v46 = vld [vmem:[#allocation2 + $0x7b1] ss:$2 sm:$0xff]  ;;  %4792 = vst.msk [vmem:[#allocation4 + $0x918] sm:$0xff] %vm2983_vm2, %v13817_v44  ;;  %6299 = vst.msk [vmem:[#allocation4 + $0x818] sm:$0xff] %vm2983_vm2, %v6236_v54 }
 0x2f6   : > { %v3502_v58 = vld [vmem:[#allocation2 + $0x790] ss:$2 sm:$0xff]  ;;  %v3934_v8 = vmax.f32 %v3506_v41, %v3782_v46  ;;  %v3778_v31 = vld [vmem:[#allocation2 + $0x791] ss:$2 sm:$0xff]  ;;  %v5009_v48 = vpop.permute.xlu0 %5008 }
 0x2f7   : > { %v6517_v16 = vld [vmem:[#allocation4 + $0x670] sm:$0xff]  ;;  %v5733_v41 = vld [vmem:[#allocation3 + $0x1d0] sm:$0xff]  ;;  %5155 = vst.msk [vmem:[#allocation4 + $0x698] sm:$0xff] %vm4606_vm5, %v5009_v48 }
 0x2f8   : > { %7156 = vmatprep.mubr.f32.mxu1 %v6517_v16  ;;  %v4350_v21 = vld [vmem:[#allocation3 + $0x1d9] sm:$0x1f]  ;;  %v13831_v20 = vld [vmem:[#allocation3 + $0x1d1] sm:$0xff]  ;;  %v4009_v29 = vmax.f32 %v3931_v56, %v3934_v8  ;;  %5796 = vst.msk [vmem:[#allocation4 + $0x838] sm:$0xff] %vm2983_vm2, %v5733_v41  ;;  %v3508_v56 = vld [vmem:[#allocation2 + $0x7c0] ss:$2 sm:$0xff] }
 0x2f9   : > { %7157 = vmatmul.mubr.f32.gmra.mrb[58].mxu1 %v6516_v17  ;;  %5294 = vst.msk [vmem:[#allocation4 + $0x8a8] sm:$0xff] %vm2983_vm2, %v13831_v20  ;;  %v5232_v43 = vld [vmem:[#allocation3 + $0x1d9] sm:$0x1f]  ;;  %4535 = vrot.lane.b32.xlu1 %v4350_v21, %s11993_s29  ;;  %v3784_v8 = vld [vmem:[#allocation2 + $0x7c1] ss:$2 sm:$0xff]  ;;  %v3932_v21 = vmax.f32 %v3502_v58, %v3778_v31  ;;  %v6684_v58 = vld [vmem:[%s15400_s4 + $0x1d0] sm:$0xff] }
 0x2fa   : > { %v5734_v46 = vld [vmem:[#allocation3 + $0x1d8] sm:$0x1f]  ;;  %5295 = vst.msk [vmem:[#allocation4 + $0x8d0] sm:$0x1f] %vm4229_vm4, %v5232_v43  ;;  %v4085_v16 = vadd.f32 %v13644_v23, %v4009_v29  ;;  %v3935_v41 = vmax.f32 %v3508_v56, %v3784_v8 }
 0x2fb   : > { %5797 = vst.msk [vmem:[#allocation4 + $0x860] sm:$0x1f] %vm4229_vm4, %v5734_v46  ;;  %v6237_v17 = vld [vmem:[#allocation3 + $0x1d2] sm:$0xff]  ;;  %v6238_v18 = vld [vmem:[#allocation3 + $0x1da] sm:$0x1f]  ;;  %v11110_v46 = vpop.f32.mrb[254].mxu0 }
 0x2fc   : > { %6300 = vst.msk [vmem:[#allocation4 + $0x840] sm:$0xff] %vm2983_vm2, %v6237_v17  ;;  %v3780_v43 = vld [vmem:[#allocation2 + $0x7a1] ss:$2 sm:$0x7f]  ;;  %4155 = vst.msk [vmem:[#allocation3 + $0x1e0] sm:$0xff] %vm2983_vm2, %v4085_v16  ;;  %v4010_v33 = vmax.f32 %v3932_v21, %v3935_v41  ;;  %v2874_v54 = vpop.f32.mrb[255].mxu0  ;;  %v4508_v16 = vpop.permute.xlu1 %4507 }
 0x2fd   : > { %6301 = vst.msk [vmem:[#allocation4 + $0x868] sm:$0x1f] %vm4229_vm4, %v6238_v18  ;;  %v3510_v57 = vld [vmem:[#allocation2 + $0x7d0] ss:$2 sm:$0x7f]  ;;  %v3933_v29 = vmax.f32 %v3504_v55, %v3780_v43  ;;  %v11113_v8 = vpop.f32.mrb[0].mxu0 }
 0x2fe   : > { %v3786_v9 = vld [vmem:[#allocation2 + $0x7d1] ss:$2 sm:$0x7f]  ;;  %3239 = vst.msk [vmem:[#allocation2 + $0x7f8] sm:$0xff] %vm2983_vm2, %v11110_v46  ;;  %3238 = vst.msk [vmem:[#allocation2 + $0x7f0] sm:$0xff] %vm2983_vm2, %v2874_v54  ;;  %v4086_v17 = vadd.f32 %v13644_v23, %v4010_v33  ;;  %v6522_v41 = vld [vmem:[#allocation4 + $0x698] sm:$0xff] }
 0x2ff   : > { %v3936_v35 = vmax.f32 %v3510_v57, %v3786_v9  ;;  %v6685_v31 = vld [vmem:[%s15400_s4 + $0x1d8] sm:$0xff]  ;;  %3241 = vst.msk [vmem:[#allocation2 + $0x808] sm:$0xff] %vm2983_vm2, %v11113_v8  ;;  %v2884_v9 = vpop.f32.mrb[1].mxu0  ;;  %v5011_v57 = vpop.permute.xlu0 %5010  ;;  %7161 = vmatprep.mubr.f32.mxu1 %v6522_v41  ;;  %v6686_v41 = vld [vmem:[%s15400_s4 + $0x1e0] sm:$0xff] }
 0x300   : > { %v11503_v18 = vpack.c.bf16 %v6685_v31, %v6684_v58  ;;  %4156 = vst.msk [vmem:[#allocation3 + $0x1e8] sm:$0xff] %vm2983_vm2, %v4086_v17  ;;  %3240 = vst.msk [vmem:[#allocation2 + $0x800] sm:$0xff] %vm2983_vm2, %v2884_v9  ;;  %v11116_v55 = vpop.f32.mrb[2].mxu0  ;;  %v6521_v48 = vld [vmem:[#allocation4 + $0x690] sm:$0xff] }
 0x301   : > { %v4011_v56 = vmax.f32 %v3933_v29, %v3936_v35  ;;  %5156 = vst.msk [vmem:[#allocation4 + $0x6c0] sm:$0xff] %vm4606_vm5, %v5011_v57  ;;  %4653 = vst.msk [vmem:[#allocation4 + $0x708] sm:$0xff] %vm4606_vm5, %v4508_v16  ;;  %v2894_v43 = vpop.f32.mrb[3].mxu0  ;;  %v4510_v29 = vpop.permute.xlu1 %4509  ;;  %7162 = vmatmul.mubr.f32.gmra.mrb[60].mxu1 %v6521_v48  ;;  %v3788_v16 = vld [vmem:[#allocation2 + $0x7e1] ss:$2 sm:$0xff] }
 0x302   : > { %11504 = vmatpush1.bf16.msra.mxu1 %v11503_v18  ;;  %3243 = vst.msk [vmem:[#allocation2 + $0x818] sm:$0xff] %vm2983_vm2, %v11116_v55  ;;  %3242 = vst.msk [vmem:[#allocation2 + $0x810] sm:$0xff] %vm2983_vm2, %v2894_v43  ;;  %v11119_v31 = vpop.f32.mrb[4].mxu0  ;;  %v6526_v18 = vld [vmem:[#allocation4 + $0x6b8] sm:$0xff] }
 0x303   : > { %v4087_v21 = vadd.f32 %v13644_v23, %v4011_v56  ;;  %11505 = vmatprep.subr.bf16.mxu1 %v15425_v10  ;;  %v4855_v35 = vld [vmem:[#allocation3 + $0x1e0] sm:$0xff]  ;;  %v5013_v46 = vpop.permute.xlu0 %5012  ;;  %4654 = vst.msk [vmem:[#allocation4 + $0x730] sm:$0xff] %vm4606_vm5, %v4510_v29  ;;  %v2904_v8 = vpop.f32.mrb[5].mxu0 }
 0x304   : > { %v5735_v33 = vld [vmem:[#allocation3 + $0x1e0] sm:$0xff]  ;;  %5038 = vrot.lane.b32.xlu0 %v4855_v35, %s11993_s29  ;;  %4288 = vst.msk [vmem:[#allocation4 + $0x960] sm:$0xff] %vm2983_vm2, %v4855_v35  ;;  %3245 = vst.msk [vmem:[#allocation2 + $0x828] sm:$0xff] %vm2983_vm2, %v11119_v31  ;;  %v11122_v55 = vpop.f32.mrb[6].mxu0 }
 0x305   : > { %4157 = vst.msk [vmem:[#allocation3 + $0x1f0] sm:$0x7f] %vm4096_vm3, %v4087_v21  ;;  %v3512_v56 = vld [vmem:[#allocation2 + $0x7e0] ss:$2 sm:$0xff]  ;;  %v4512_v21 = vpop.permute.xlu1 %4511 }
 0x306   : > { %5798 = vst.msk [vmem:[#allocation4 + $0x888] sm:$0xff] %vm2983_vm2, %v5735_v33  ;;  %3244 = vst.msk [vmem:[#allocation2 + $0x820] sm:$0xff] %vm2983_vm2, %v2904_v8  ;;  %v3937_v8 = vmax.f32 %v3512_v56, %v3788_v16 }
 0x307   : > { %5157 = vst.msk [vmem:[#allocation4 + $0x6e8] sm:$0x1f] %vm4609_vm6, %v5013_v46  ;;  %v4856_v54 = vld [vmem:[#allocation3 + $0x1e8] sm:$0xff]  ;;  %4655 = vst.msk [vmem:[#allocation4 + $0x758] sm:$0x1f] %vm4609_vm6, %v4512_v21 }
 0x308   : > { %v4351_v58 = vld [vmem:[#allocation3 + $0x1e1] sm:$0xff]  ;;  %5040 = vrot.lane.b32.xlu0 %v4856_v54, %s11993_s29  ;;  %4289 = vst.msk [vmem:[#allocation4 + $0x988] sm:$0xff] %vm2983_vm2, %v4856_v54  ;;  %3247 = vst.msk [vmem:[#allocation2 + $0x838] sm:$0xff] %vm2983_vm2, %v11122_v55  ;;  %v2914_v54 = vpop.f32.mrb[7].mxu0 }
 0x309   : > { %v13872_v17 = vld [vmem:[#allocation3 + $0x1e2] sm:$0xff]  ;;  %4537 = vrot.lane.b32.xlu1 %v4351_v58, %s11993_s29  ;;  %v3518_v48 = vld [vmem:[#allocation2 + $0x810] ss:$2 sm:$0xff]  ;;  %v3794_v29 = vld [vmem:[#allocation2 + $0x811] ss:$2 sm:$0xff]  ;;  %3246 = vst.msk [vmem:[#allocation2 + $0x830] sm:$0xff] %vm2983_vm2, %v2914_v54 }
 0x30a   : > { %4794 = vst.msk [vmem:[#allocation4 + $0x968] sm:$0xff] %vm2983_vm2, %v13872_v17  ;;  %v6527_v9 = vld [vmem:[#allocation4 + $0x6c0] sm:$0xff]  ;;  %v3940_v21 = vmax.f32 %v3518_v48, %v3794_v29 }
 0x30b   : > { %v13880_v57 = vld [vmem:[#allocation3 + $0x1e1] sm:$0xff]  ;;  %7166 = vmatprep.mubr.f32.mxu1 %v6527_v9  ;;  %v3514_v9 = vld [vmem:[#allocation2 + $0x7f0] ss:$2 sm:$0xff] }
 0x30c   : > { %15426 = vst [vmem:[#allocation18_spill] sm:$0xff] %v13880_v57  ;;  %v4857_v35 = vld [vmem:[#allocation3 + $0x1f0] sm:$0x1f]  ;;  %5296 = vst.msk [vmem:[#allocation4 + $0x8f8] sm:$0xff] %vm2983_vm2, %v13880_v57  ;;  %7167 = vmatmul.mubr.f32.gmra.mrb[62].mxu1 %v6526_v18  ;;  %v6687_v46 = vld [vmem:[%s15400_s4 + $0x1e8] sm:$0xff] }
 0x30d   : > { %v4352_v33 = vld [vmem:[#allocation3 + $0x1e9] sm:$0xff]  ;;  %5042 = vrot.lane.b32.xlu0 %v4857_v35, %s11993_s29  ;;  %v11506_v31 = vpack.c.bf16 %v6687_v46, %v6686_v41  ;;  %v4733_v35 = vld [vmem:[#allocation3 + $0x1f2] sm:$0x1f]  ;;  %v4012_v41 = vmax.f32 %v3937_v8, %v3940_v21 }
 0x30e   : > { %v4226_v43 = vld [vmem:[#allocation3 + $0x1f0] sm:$0x1f]  ;;  %4539 = vrot.lane.b32.xlu1 %v4352_v33, %s11993_s29  ;;  %v6531_v58 = vld [vmem:[#allocation4 + $0x6e0] sm:$0xff]  ;;  %4796 = vst.msk [vmem:[#allocation4 + $0x9b8] sm:$0x1f] %vm4229_vm4, %v4733_v35 }
 0x30f   : > { %4290 = vst.msk [vmem:[#allocation4 + $0x9b0] sm:$0x1f] %vm4229_vm4, %v4226_v43  ;;  %v13896_v18 = vld [vmem:[#allocation3 + $0x1ea] sm:$0xff]  ;;  %11507 = vmatpush1.bf16.msra.mxu1 %v11506_v31  ;;  %v6241_v29 = vld [vmem:[#allocation3 + $0x1f2] sm:$0x1f]  ;;  %v4088_v31 = vadd.f32 %v13644_v23, %v4012_v41 }
 0x310   : > { %v6532_v50 = vld [vmem:[#allocation4 + $0x6e8] sm:$0xff]  ;;  %4795 = vst.msk [vmem:[#allocation4 + $0x990] sm:$0xff] %vm2983_vm2, %v13896_v18  ;;  %11508 = vmatprep.subr.bf16.mxu1 %v15425_v10  ;;  %v5736_v16 = vld [vmem:[#allocation3 + $0x1e8] sm:$0xff]  ;;  %v5015_v57 = vpop.permute.xlu0 %5014 }
 0x311   : > { %v3790_v33 = vld [vmem:[#allocation2 + $0x7f1] ss:$2 sm:$0xff]  ;;  %7171 = vmatprep.mubr.f32.mxu1 %v6532_v50  ;;  %v13902_v43 = vld [vmem:[#allocation3 + $0x1e9] sm:$0xff]  ;;  %5799 = vst.msk [vmem:[#allocation4 + $0x8b0] sm:$0xff] %vm2983_vm2, %v5736_v16  ;;  %4158 = vst.msk [vmem:[#allocation3 + $0x1f8] sm:$0xff] %vm2983_vm2, %v4088_v31 }
 0x312   : > { %v4353_v55 = vld [vmem:[#allocation3 + $0x1f1] sm:$0x1f]  ;;  %15427 = vst [vmem:[#allocation19_spill] sm:$0xff] %v13902_v43  ;;  %7172 = vmatmul.mubr.f32.gmra.mrb[64].mxu1 %v6531_v58  ;;  %5297 = vst.msk [vmem:[#allocation4 + $0x920] sm:$0xff] %vm2983_vm2, %v13902_v43  ;;  %v6239_v50 = vld [vmem:[#allocation3 + $0x1e2] sm:$0xff]  ;;  %v3938_v8 = vmax.f32 %v3514_v9, %v3790_v33 }
 0x313   : > { %v5235_v56 = vld [vmem:[#allocation3 + $0x1f1] sm:$0x1f]  ;;  %4541 = vrot.lane.b32.xlu1 %v4353_v55, %s11993_s29  ;;  %v3520_v54 = vld [vmem:[#allocation2 + $0x820] ss:$2 sm:$0xff]  ;;  %v3796_v58 = vld [vmem:[#allocation2 + $0x821] ss:$2 sm:$0xff] }
 0x314   : > { %v5737_v46 = vld [vmem:[#allocation3 + $0x1f0] sm:$0x1f]  ;;  %5298 = vst.msk [vmem:[#allocation4 + $0x948] sm:$0x1f] %vm4229_vm4, %v5235_v56  ;;  %6304 = vst.msk [vmem:[#allocation4 + $0x8e0] sm:$0x1f] %vm4229_vm4, %v6241_v29  ;;  %v3941_v55 = vmax.f32 %v3520_v54, %v3796_v58  ;;  %v4514_v58 = vpop.permute.xlu1 %4513 }
 0x315   : > { %5800 = vst.msk [vmem:[#allocation4 + $0x8d8] sm:$0x1f] %vm4229_vm4, %v5737_v46  ;;  %v6240_v48 = vld [vmem:[#allocation3 + $0x1ea] sm:$0xff]  ;;  %v5302_v56 = vld [vmem:[#allocation3 + $0x1a] sm:$0xff]  ;;  %v5303_v9 = vld [vmem:[#allocation3 + $0x22] sm:$0xff] }
 0x316   : > { %6302 = vst.msk [vmem:[#allocation4 + $0x890] sm:$0xff] %vm2983_vm2, %v6239_v50  ;;  %6303 = vst.msk [vmem:[#allocation4 + $0x8b8] sm:$0xff] %vm2983_vm2, %v6240_v48  ;;  %v3516_v21 = vld [vmem:[#allocation2 + $0x800] ss:$2 sm:$0x7f]  ;;  %v4013_v16 = vmax.f32 %v3938_v8, %v3941_v55  ;;  %v6688_v33 = vld [vmem:[%s15400_s4 + $0x1f0] sm:$0xff] }
 0x317   : > { %v3792_v35 = vld [vmem:[#allocation2 + $0x801] ss:$2 sm:$0x7f]  ;;  %v3522_v46 = vld [vmem:[#allocation2 + $0x830] ss:$2 sm:$0x7f]  ;;  %5428 = vrot.lane.b32.xlu1 %v5302_v56, %s11993_s29 }
 0x318   : > { %v3798_v40 = vld [vmem:[#allocation2 + $0x831] ss:$2 sm:$0x7f]  ;;  %v3939_v43 = vmax.f32 %v3516_v21, %v3792_v35  ;;  %5158 = vst.msk [vmem:[#allocation4 + $0x710] sm:$0xff] %vm4606_vm5, %v5015_v57  ;;  %v4089_v50 = vadd.f32 %v13644_v23, %v4013_v16  ;;  %v5017_v57 = vpop.permute.xlu0 %5016  ;;  %4656 = vst.msk [vmem:[#allocation4 + $0x780] sm:$0xff] %vm4606_vm5, %v4514_v58  ;;  %v4516_v35 = vpop.permute.xlu1 %4515 }
 0x319   : > { %v3942_v41 = vmax.f32 %v3522_v46, %v3798_v40  ;;  %v6689_v29 = vld [vmem:[%s15400_s4 + $0x1f8] sm:$0xff]  ;;  %5159 = vst.msk [vmem:[#allocation4 + $0x738] sm:$0xff] %vm4606_vm5, %v5017_v57  ;;  %v5304_v8 = vld [vmem:[#allocation3 + $0x2a] sm:$0x1f]  ;;  %v6536_v55 = vld [vmem:[#allocation4 + $0x708] sm:$0xff] }
 0x31a   : > { %4159 = vst.msk [vmem:[#allocation3 + $0x200] sm:$0xff] %vm2983_vm2, %v4089_v50  ;;  %v11509_v54 = vpack.c.bf16 %v6689_v29, %v6688_v33  ;;  %v4858_v31 = vld [vmem:[#allocation3 + $0x1f8] sm:$0xff] }
 0x31b   : > { %v4014_v48 = vmax.f32 %v3939_v43, %v3942_v41  ;;  %5430 = vrot.lane.b32.xlu1 %v5303_v9, %s11993_s29  ;;  %v5738_v43 = vld [vmem:[#allocation3 + $0x1f8] sm:$0xff]  ;;  %5044 = vrot.lane.b32.xlu0 %v4858_v31, %s11993_s29  ;;  %4657 = vst.msk [vmem:[#allocation4 + $0x7a8] sm:$0xff] %vm4606_vm5, %v4516_v35  ;;  %v5308_v35 = vld [vmem:[#allocation3 + $0x4a] sm:$0xff] }
 0x31c   : > { %11510 = vmatpush1.bf16.msra.mxu1 %v11509_v54  ;;  %5801 = vst.msk [vmem:[#allocation4 + $0x900] sm:$0xff] %vm2983_vm2, %v5738_v43  ;;  %v5019_v21 = vpop.permute.xlu0 %5018  ;;  %v5305_v56 = vld [vmem:[#allocation3 + $0x32] sm:$0xff] }
 0x31d   : > { %v4090_v40 = vadd.f32 %v13644_v23, %v4014_v48  ;;  %11511 = vmatprep.subr.bf16.mxu1 %v15425_v10  ;;  %5160 = vst.msk [vmem:[#allocation4 + $0x760] sm:$0x1f] %vm4609_vm6, %v5019_v21  ;;  %v4518_v48 = vpop.permute.xlu1 %4517  ;;  %v6541_v29 = vld [vmem:[#allocation4 + $0x730] sm:$0xff]  ;;  %v5307_v21 = vld [vmem:[#allocation3 + $0x42] sm:$0x1f] }
 0x31e   : > { %4658 = vst.msk [vmem:[#allocation4 + $0x7d0] sm:$0x1f] %vm4609_vm6, %v4518_v48 }
 0x31f   : > { %4160 = vst.msk [vmem:[#allocation3 + $0x208] sm:$0x7f] %vm4096_vm3, %v4090_v40  ;;  %5432 = vrot.lane.b32.xlu1 %v5304_v8, %s11993_s29  ;;  %v6537_v23 = vld [vmem:[#allocation4 + $0x710] sm:$0xff] }
 0x320   : > { %7176 = vmatprep.mubr.f32.mxu1 %v6537_v23  ;;  %v6542_v9 = vld [vmem:[#allocation4 + $0x738] sm:$0xff] }
 0x321   : > { %7177 = vmatmul.mubr.f32.gmra.mrb[66].mxu1 %v6536_v55  ;;  %v4859_v16 = vld [vmem:[#allocation3 + $0x200] sm:$0xff] }
 0x322   : > { %v13937_v46 = vld [vmem:[#allocation3 + $0x1f9] sm:$0xff]  ;;  %5046 = vrot.lane.b32.xlu0 %v4859_v16, %s11993_s29  ;;  %7181 = vmatprep.mubr.f32.mxu1 %v6542_v9  ;;  %v5809_v16 = vld [vmem:[#allocation3 + $0x41] sm:$0x1f] }
 0x323   : > { %5434 = vrot.lane.b32.xlu1 %v5305_v56, %s11993_s29  ;;  %5299 = vst.msk [vmem:[#allocation4 + $0x970] sm:$0xff] %vm2983_vm2, %v13937_v46  ;;  %v5739_v41 = vld [vmem:[#allocation3 + $0x200] sm:$0xff]  ;;  %v5309_v56 = vld [vmem:[#allocation3 + $0x52] sm:$0xff] }
 0x324   : > { %v6242_v50 = vld [vmem:[#allocation3 + $0x1fa] sm:$0xff]  ;;  %5802 = vst.msk [vmem:[#allocation4 + $0x928] sm:$0xff] %vm2983_vm2, %v5739_v41  ;;  %v6547_v43 = vld [vmem:[#allocation4 + $0x760] sm:$0xff] }
 0x325   : > { %6305 = vst.msk [vmem:[#allocation4 + $0x908] sm:$0xff] %vm2983_vm2, %v6242_v50  ;;  %v5306_v40 = vld [vmem:[#allocation3 + $0x3a] sm:$0xff]  ;;  %7182 = vmatmul.mubr.f32.gmra.mrb[68].mxu1 %v6541_v29  ;;  %v5311_v29 = vld [vmem:[#allocation3 + $0x62] sm:$0xff] }
 0x326   : > { %v4860_v33 = vld [vmem:[#allocation3 + $0x208] sm:$0x1f]  ;;  %7186 = vmatprep.mubr.f32.mxu1 %v6547_v43  ;;  %v6546_v23 = vld [vmem:[#allocation4 + $0x758] sm:$0xff] }
 0x327   : > { %v13946_v54 = vld [vmem:[#allocation3 + $0x201] sm:$0xff]  ;;  %5436 = vrot.lane.b32.xlu1 %v5306_v40, %s11993_s29  ;;  %v5238_v57 = vld [vmem:[#allocation3 + $0x209] sm:$0x1f]  ;;  %5048 = vrot.lane.b32.xlu0 %v4860_v33, %s11993_s29 }
 0x328   : > { %5300 = vst.msk [vmem:[#allocation4 + $0x998] sm:$0xff] %vm2983_vm2, %v13946_v54  ;;  %v5740_v58 = vld [vmem:[#allocation3 + $0x208] sm:$0x1f]  ;;  %v5021_v55 = vpop.permute.xlu0 %5020 }
 0x329   : > { %5301 = vst.msk [vmem:[#allocation4 + $0x9c0] sm:$0x1f] %vm4229_vm4, %v5238_v57  ;;  %5803 = vst.msk [vmem:[#allocation4 + $0x950] sm:$0x1f] %vm4229_vm4, %v5740_v58  ;;  %v6243_v31 = vld [vmem:[#allocation3 + $0x202] sm:$0xff]  ;;  %7187 = vmatmul.mubr.f32.gmra.mrb[70].mxu1 %v6546_v23  ;;  %v5312_v58 = vld [vmem:[#allocation3 + $0x6a] sm:$0xff] }
 0x32a   : > { %6306 = vst.msk [vmem:[#allocation4 + $0x930] sm:$0xff] %vm2983_vm2, %v6243_v31  ;;  %v6244_v8 = vld [vmem:[#allocation3 + $0x20a] sm:$0x1f]  ;;  %v5812_v31 = vld [vmem:[#allocation3 + $0x59] sm:$0x1f] }
 0x32b   : > { %6307 = vst.msk [vmem:[#allocation4 + $0x958] sm:$0x1f] %vm4229_vm4, %v6244_v8  ;;  %5438 = vrot.lane.b32.xlu1 %v5307_v21, %s11993_s29  ;;  %5933 = vrot.lane.b32.xlu0 %v12489_v42, %s11993_s29  ;;  %v5310_v42 = vld [vmem:[#allocation3 + $0x5a] sm:$0x1f]  ;;  %v6551_v33 = vld [vmem:[#allocation4 + $0x780] sm:$0xff] }
 0x32c   : > { %5161 = vst.msk [vmem:[#allocation4 + $0x788] sm:$0xff] %vm4606_vm5, %v5021_v55  ;;  %v6561_v8 = vld [vmem:[#allocation4 + $0x7d0] sm:$0xff]  ;;  %v5313_v23 = vld [vmem:[#allocation3 + $0x72] sm:$0x1f] }
 0x32d   : > { %v5023_v41 = vpop.permute.xlu0 %5022  ;;  %v5815_v55 = vld [vmem:[#allocation3 + $0x71] sm:$0x1f] }
 0x32e   : > { %v4520_v50 = vpop.permute.xlu1 %4519  ;;  %5162 = vst.msk [vmem:[#allocation4 + $0x7b0] sm:$0xff] %vm4606_vm5, %v5023_v41 }
 0x32f   : > { %5440 = vrot.lane.b32.xlu1 %v5308_v35, %s11993_s29  ;;  %5935 = vrot.lane.b32.xlu0 %v12505_v52, %s11993_s29  ;;  %4659 = vst.msk [vmem:[#allocation4 + $0x7f8] sm:$0xff] %vm4606_vm5, %v4520_v50  ;;  %v5315_v35 = vld [vmem:[#allocation3 + $0x82] sm:$0xff] }
 0x331   : > { %v5025_v48 = vpop.permute.xlu0 %5024 }
 0x332   : > { %v4522_v9 = vpop.permute.xlu1 %4521  ;;  %5163 = vst.msk [vmem:[#allocation4 + $0x7d8] sm:$0x1f] %vm4609_vm6, %v5025_v48 }
 0x333   : > { %5442 = vrot.lane.b32.xlu1 %v5309_v56, %s11993_s29  ;;  %5937 = vrot.lane.b32.xlu0 %v5809_v16, %s11993_s29  ;;  %v6552_v52 = vld [vmem:[#allocation4 + $0x788] sm:$0xff]  ;;  %4660 = vst.msk [vmem:[#allocation4 + $0x820] sm:$0xff] %vm4606_vm5, %v4522_v9 }
 0x334   : > { %7191 = vmatprep.mubr.f32.mxu1 %v6552_v52  ;;  %v5317_v52 = vld [vmem:[#allocation3 + $0x92] sm:$0xff] }
 0x335   : > { %7192 = vmatmul.mubr.f32.gmra.mrb[72].mxu1 %v6551_v33  ;;  %v6557_v57 = vld [vmem:[#allocation4 + $0x7b0] sm:$0xff] }
 0x336   : > { %v4524_v40 = vpop.permute.xlu1 %4523  ;;  %7196 = vmatprep.mubr.f32.mxu1 %v6557_v57  ;;  %v5318_v33 = vld [vmem:[#allocation3 + $0x9a] sm:$0xff] }
 0x337   : > { %5444 = vrot.lane.b32.xlu1 %v5310_v42, %s11993_s29  ;;  %5939 = vrot.lane.b32.xlu0 %v12605_v2, %s11993_s29  ;;  %4661 = vst.msk [vmem:[#allocation4 + $0x848] sm:$0x1f] %vm4609_vm6, %v4524_v40  ;;  %v6556_v2 = vld [vmem:[#allocation4 + $0x7a8] sm:$0xff]  ;;  %v6566_v42 = vld [vmem:[#allocation4 + $0x7f8] sm:$0xff] }
 0x339   : > { %7197 = vmatmul.mubr.f32.gmra.mrb[74].mxu1 %v6556_v2  ;;  %v6562_v43 = vld [vmem:[#allocation4 + $0x7d8] sm:$0xff] }
 0x33a   : > { %7201 = vmatprep.mubr.f32.mxu1 %v6562_v43  ;;  %v5319_v2 = vld [vmem:[#allocation3 + $0xa2] sm:$0x1f] }
 0x33b   : > { %5446 = vrot.lane.b32.xlu1 %v5311_v29, %s11993_s29  ;;  %5941 = vrot.lane.b32.xlu0 %v12623_v12, %s11993_s29  ;;  %v5314_v12 = vld [vmem:[#allocation3 + $0x7a] sm:$0xff]  ;;  %v5818_v29 = vld [vmem:[#allocation3 + $0x89] sm:$0x1f] }
 0x33c   : > { %v5821_v43 = vld [vmem:[#allocation3 + $0xa1] sm:$0x1f] }
 0x33d   : > { %7202 = vmatmul.mubr.f32.gmra.mrb[76].mxu1 %v6561_v8 }
 0x33e   : > { %v6576_v57 = vld [vmem:[#allocation4 + $0x848] sm:$0xff] }
 0x33f   : > { %5448 = vrot.lane.b32.xlu1 %v5312_v58, %s11993_s29  ;;  %5943 = vrot.lane.b32.xlu0 %v5812_v31, %s11993_s29  ;;  %v5321_v31 = vld [vmem:[#allocation3 + $0xb2] sm:$0xff] }
 0x342   : > { %v5027_v21 = vpop.permute.xlu0 %5026 }
 0x343   : > { %5450 = vrot.lane.b32.xlu1 %v5313_v23, %s11993_s29  ;;  %5945 = vrot.lane.b32.xlu0 %v12753_v3, %s11993_s29  ;;  %5164 = vst.msk [vmem:[#allocation4 + $0x800] sm:$0xff] %vm4606_vm5, %v5027_v21  ;;  %v5316_v3 = vld [vmem:[#allocation3 + $0x8a] sm:$0x1f] }
 0x346   : > { %v5029_v56 = vpop.permute.xlu0 %5028 }
 0x347   : > { %5452 = vrot.lane.b32.xlu1 %v5314_v12, %s11993_s29  ;;  %5947 = vrot.lane.b32.xlu0 %v12755_v4, %s11993_s29  ;;  %v4526_v16 = vpop.permute.xlu1 %4525  ;;  %5165 = vst.msk [vmem:[#allocation4 + $0x828] sm:$0xff] %vm4606_vm5, %v5029_v56 }
 0x348   : > { %4662 = vst.msk [vmem:[#allocation4 + $0x870] sm:$0xff] %vm4606_vm5, %v4526_v16 }
 0x34a   : > { %v6567_v4 = vld [vmem:[#allocation4 + $0x800] sm:$0xff]  ;;  %v5031_v41 = vpop.permute.xlu0 %5030 }
 0x34b   : > { %5454 = vrot.lane.b32.xlu1 %v5315_v35, %s11993_s29  ;;  %5949 = vrot.lane.b32.xlu0 %v5815_v55, %s11993_s29  ;;  %v4528_v50 = vpop.permute.xlu1 %4527  ;;  %5166 = vst.msk [vmem:[#allocation4 + $0x850] sm:$0x1f] %vm4609_vm6, %v5031_v41  ;;  %v5323_v55 = vld [vmem:[#allocation3 + $0xc2] sm:$0xff] }
 0x34c   : > { %7206 = vmatprep.mubr.f32.mxu1 %v6567_v4  ;;  %4663 = vst.msk [vmem:[#allocation4 + $0x898] sm:$0xff] %vm4606_vm5, %v4528_v50  ;;  %v5324_v50 = vld [vmem:[#allocation3 + $0xca] sm:$0xff] }
 0x34d   : > { %7207 = vmatmul.mubr.f32.gmra.mrb[78].mxu1 %v6566_v42  ;;  %v5824_v42 = vld [vmem:[#allocation3 + $0xb9] sm:$0x1f] }
 0x34e   : > { %v6572_v9 = vld [vmem:[#allocation4 + $0x828] sm:$0xff] }
 0x34f   : > { %5456 = vrot.lane.b32.xlu1 %v5316_v3, %s11993_s29  ;;  %5951 = vrot.lane.b32.xlu0 %v12843_v27, %s11993_s29  ;;  %v4530_v48 = vpop.permute.xlu1 %4529  ;;  %v6571_v27 = vld [vmem:[#allocation4 + $0x820] sm:$0xff]  ;;  %v6581_v35 = vld [vmem:[#allocation4 + $0x870] sm:$0xff] }
 0x350   : > { %4664 = vst.msk [vmem:[#allocation4 + $0x8c0] sm:$0x1f] %vm4609_vm6, %v4530_v48  ;;  %7211 = vmatprep.mubr.f32.mxu1 %v6572_v9 }
 0x351   : > { %7212 = vmatmul.mubr.f32.gmra.mrb[80].mxu1 %v6571_v27 }
 0x352   : > { %v6577_v40 = vld [vmem:[#allocation4 + $0x850] sm:$0xff] }
 0x353   : > { %5458 = vrot.lane.b32.xlu1 %v5317_v52, %s11993_s29  ;;  %5953 = vrot.lane.b32.xlu0 %v12845_v28, %s11993_s29  ;;  %v5320_v28 = vld [vmem:[#allocation3 + $0xaa] sm:$0xff]  ;;  %v6586_v41 = vld [vmem:[#allocation4 + $0x898] sm:$0xff] }
 0x354   : > { %7216 = vmatprep.mubr.f32.mxu1 %v6577_v40  ;;  %v11125_v56 = vpop.f32.mrb[8].mxu0 }
 0x355   : > { %7217 = vmatmul.mubr.f32.gmra.mrb[82].mxu1 %v6576_v57  ;;  %3249 = vst.msk [vmem:[#allocation2 + $0x848] sm:$0xff] %vm2983_vm2, %v11125_v56  ;;  %v5326_v57 = vld [vmem:[#allocation3 + $0xda] sm:$0xff] }
 0x357   : > { %5460 = vrot.lane.b32.xlu1 %v5318_v33, %s11993_s29  ;;  %5955 = vrot.lane.b32.xlu0 %v5818_v29, %s11993_s29  ;;  %v5033_v58 = vpop.permute.xlu0 %5032  ;;  %v6591_v27 = vld [vmem:[#allocation4 + $0x8c0] sm:$0xff]  ;;  %v5325_v33 = vld [vmem:[#allocation3 + $0xd2] sm:$0x1f] }
 0x358   : > { %5167 = vst.msk [vmem:[#allocation4 + $0x878] sm:$0xff] %vm4606_vm5, %v5033_v58 }
 0x35b   : > { %5462 = vrot.lane.b32.xlu1 %v5319_v2, %s11993_s29  ;;  %5957 = vrot.lane.b32.xlu0 %v12915_v59, %s11993_s29  ;;  %v5322_v59 = vld [vmem:[#allocation3 + $0xba] sm:$0x1f] }
 0x35f   : > { %5464 = vrot.lane.b32.xlu1 %v5320_v28, %s11993_s29  ;;  %5959 = vrot.lane.b32.xlu0 %v12917_v60, %s11993_s29  ;;  %v6582_v60 = vld [vmem:[#allocation4 + $0x878] sm:$0xff] }
 0x360   : > { %7221 = vmatprep.mubr.f32.mxu1 %v6582_v60 }
 0x361   : > { %v5035_v8 = vpop.permute.xlu0 %5034  ;;  %7222 = vmatmul.mubr.f32.gmra.mrb[84].mxu1 %v6581_v35 }
 0x362   : > { %v4532_v23 = vpop.permute.xlu1 %4531  ;;  %5168 = vst.msk [vmem:[#allocation4 + $0x8a0] sm:$0xff] %vm4606_vm5, %v5035_v8 }
 0x363   : > { %5466 = vrot.lane.b32.xlu1 %v5321_v31, %s11993_s29  ;;  %5961 = vrot.lane.b32.xlu0 %v5821_v43, %s11993_s29  ;;  %4665 = vst.msk [vmem:[#allocation4 + $0x8e8] sm:$0xff] %vm4606_vm5, %v4532_v23  ;;  %v5827_v31 = vld [vmem:[#allocation3 + $0xd1] sm:$0x1f] }
 0x365   : > { %v5037_v12 = vpop.permute.xlu0 %5036 }
 0x366   : > { %v4534_v21 = vpop.permute.xlu1 %4533  ;;  %5169 = vst.msk [vmem:[#allocation4 + $0x8c8] sm:$0x1f] %vm4609_vm6, %v5037_v12 }
 0x367   : > { %5468 = vrot.lane.b32.xlu1 %v5322_v59, %s11993_s29  ;;  %5963 = vrot.lane.b32.xlu0 %v12970_v5, %s11993_s29  ;;  %4666 = vst.msk [vmem:[#allocation4 + $0x910] sm:$0xff] %vm4606_vm5, %v4534_v21  ;;  %v2924_v5 = vpop.f32.mrb[9].mxu0  ;;  %v5328_v59 = vld [vmem:[#allocation3 + $0xea] sm:$0x1f] }
 0x368   : > { %3248 = vst.msk [vmem:[#allocation2 + $0x840] sm:$0xff] %vm2983_vm2, %v2924_v5  ;;  %v11128_v4 = vpop.f32.mrb[10].mxu0 }
 0x369   : > { %v6587_v3 = vld [vmem:[#allocation4 + $0x8a0] sm:$0xff]  ;;  %3251 = vst.msk [vmem:[#allocation2 + $0x858] sm:$0xff] %vm2983_vm2, %v11128_v4 }
 0x36a   : > { %7226 = vmatprep.mubr.f32.mxu1 %v6587_v3 }
 0x36b   : > { %5470 = vrot.lane.b32.xlu1 %v5323_v55, %s11993_s29  ;;  %5965 = vrot.lane.b32.xlu0 %v12987_v26, %s11993_s29  ;;  %v4536_v16 = vpop.permute.xlu1 %4535  ;;  %v2934_v26 = vpop.f32.mrb[11].mxu0 }
 0x36c   : > { %4667 = vst.msk [vmem:[#allocation4 + $0x938] sm:$0x1f] %vm4609_vm6, %v4536_v16  ;;  %7227 = vmatmul.mubr.f32.gmra.mrb[86].mxu1 %v6586_v41  ;;  %v11131_v52 = vpop.f32.mrb[12].mxu0 }
 0x36d   : > { %3250 = vst.msk [vmem:[#allocation2 + $0x850] sm:$0xff] %vm2983_vm2, %v2934_v26  ;;  %v6592_v48 = vld [vmem:[#allocation4 + $0x8c8] sm:$0xff]  ;;  %3253 = vst.msk [vmem:[#allocation2 + $0x868] sm:$0xff] %vm2983_vm2, %v11131_v52  ;;  %v2944_v9 = vpop.f32.mrb[13].mxu0 }
 0x36e   : > { %7231 = vmatprep.mubr.f32.mxu1 %v6592_v48  ;;  %3252 = vst.msk [vmem:[#allocation2 + $0x860] sm:$0xff] %vm2983_vm2, %v2944_v9  ;;  %v11134_v29 = vpop.f32.mrb[14].mxu0 }
 0x36f   : > { %5472 = vrot.lane.b32.xlu1 %v5324_v50, %s11993_s29  ;;  %5967 = vrot.lane.b32.xlu0 %v5824_v42, %s11993_s29  ;;  %3255 = vst.msk [vmem:[#allocation2 + $0x878] sm:$0xff] %vm2983_vm2, %v11134_v29  ;;  %v2954_v40 = vpop.f32.mrb[15].mxu0  ;;  %v3524_v60 = vld [vmem:[#allocation2 + $0x840] ss:$2 sm:$0xff]  ;;  %v3800_v12 = vld [vmem:[#allocation2 + $0x841] ss:$2 sm:$0xff] }
 0x370   : > { %7232 = vmatmul.mubr.f32.gmra.mrb[88].mxu1 %v6591_v27  ;;  %3254 = vst.msk [vmem:[#allocation2 + $0x870] sm:$0xff] %vm2983_vm2, %v2954_v40  ;;  %v11137_v2 = vpop.f32.mrb[16].mxu0  ;;  %v6596_v50 = vld [vmem:[#allocation4 + $0x8e8] sm:$0xff]  ;;  %v3943_v26 = vmax.f32 %v3524_v60, %v3800_v12  ;;  %v11982_v12 = vld [vmem:[%s15399_s3] ss:$0 sm:$0xff] }
 0x371   : > { %3257 = vst.msk [vmem:[#allocation2 + $0x888] sm:$0xff] %vm2983_vm2, %v11137_v2  ;;  %v2964_v58 = vpop.f32.mrb[17].mxu0  ;;  %v5329_v42 = vld [vmem:[#allocation3 + $0xf2] sm:$0xff] }
 0x372   : > { %3256 = vst.msk [vmem:[#allocation2 + $0x880] sm:$0xff] %vm2983_vm2, %v2964_v58  ;;  %v11140_v43 = vpop.f32.mrb[18].mxu0  ;;  %v6601_v2 = vld [vmem:[#allocation4 + $0x910] sm:$0xff] }
 0x373   : > { %5474 = vrot.lane.b32.xlu1 %v5325_v33, %s11993_s29  ;;  %5969 = vrot.lane.b32.xlu0 %v13039_v37, %s11993_s29  ;;  %v5327_v37 = vld [vmem:[#allocation3 + $0xe2] sm:$0xff]  ;;  %3259 = vst.msk [vmem:[#allocation2 + $0x898] sm:$0xff] %vm2983_vm2, %v11140_v43  ;;  %v2974_v8 = vpop.f32.mrb[19].mxu0 }
 0x374   : > { %3258 = vst.msk [vmem:[#allocation2 + $0x890] sm:$0xff] %vm2983_vm2, %v2974_v8  ;;  %v3526_v21 = vld [vmem:[#allocation2 + $0x850] ss:$2 sm:$0xff]  ;;  %v3802_v35 = vld [vmem:[#allocation2 + $0x851] ss:$2 sm:$0xff] }
 0x375   : > { %v3944_v52 = vmax.f32 %v3526_v21, %v3802_v35  ;;  %v3804_v27 = vld [vmem:[#allocation2 + $0x861] ss:$2 sm:$0x7f] }
 0x376   : > { %v5039_v28 = vpop.permute.xlu0 %5038  ;;  %v5830_v8 = vld [vmem:[#allocation3 + $0xe9] sm:$0x1f] }
 0x377   : > { %5476 = vrot.lane.b32.xlu1 %v5326_v57, %s11993_s29  ;;  %5971 = vrot.lane.b32.xlu0 %v13056_v63, %s11993_s29  ;;  %5170 = vst.msk [vmem:[#allocation4 + $0x8f0] sm:$0xff] %vm4606_vm5, %v5039_v28  ;;  %v3530_v55 = vld [vmem:[#allocation2 + $0x870] ss:$2 sm:$0xff]  ;;  %v3806_v56 = vld [vmem:[#allocation2 + $0x871] ss:$2 sm:$0xff] }
 0x378   : > { %v3946_v48 = vmax.f32 %v3530_v55, %v3806_v56  ;;  %v5330_v28 = vld [vmem:[#allocation3 + $0xfa] sm:$0xff]  ;;  %v5332_v56 = vld [vmem:[#allocation3 + $0x10a] sm:$0xff] }
 0x379   : > { %v3532_v16 = vld [vmem:[#allocation2 + $0x880] ss:$2 sm:$0xff]  ;;  %v3808_v3 = vld [vmem:[#allocation2 + $0x881] ss:$2 sm:$0xff] }
 0x37a   : > { %v5041_v23 = vpop.permute.xlu0 %5040  ;;  %v3947_v9 = vmax.f32 %v3532_v16, %v3808_v3 }
 0x37b   : > { %5478 = vrot.lane.b32.xlu1 %v5327_v37, %s11993_s29  ;;  %5973 = vrot.lane.b32.xlu0 %v5827_v31, %s11993_s29  ;;  %v4538_v63 = vpop.permute.xlu1 %4537  ;;  %5171 = vst.msk [vmem:[#allocation4 + $0x918] sm:$0xff] %vm4606_vm5, %v5041_v23  ;;  %v3534_v33 = vld [vmem:[#allocation2 + $0x890] ss:$2 sm:$0x7f]  ;;  %v4015_v37 = vmax.f32 %v3943_v26, %v3946_v48 }
 0x37c   : > { %4668 = vst.msk [vmem:[#allocation4 + $0x960] sm:$0xff] %vm4606_vm5, %v4538_v63  ;;  %v3810_v29 = vld [vmem:[#allocation2 + $0x891] ss:$2 sm:$0x7f]  ;;  %v4016_v31 = vmax.f32 %v3944_v52, %v3947_v9  ;;  %v6606_v63 = vld [vmem:[#allocation4 + $0x938] sm:$0xff] }
 0x37d   : > { %v3948_v43 = vmax.f32 %v3534_v33, %v3810_v29  ;;  %v4091_v21 = vadd.f32 %v11982_v12, %v4015_v37  ;;  %v5337_v37 = vld [vmem:[#allocation3 + $0x132] sm:$0x1f] }
 0x37e   : > { %v6597_v5 = vld [vmem:[#allocation4 + $0x8f0] sm:$0xff]  ;;  %v4092_v35 = vadd.f32 %v11982_v12, %v4016_v31  ;;  %v6690_v31 = vld [vmem:[%s15400_s4 + $0x200] sm:$0xff] }
 0x37f   : > { %5480 = vrot.lane.b32.xlu1 %v5328_v59, %s11993_s29  ;;  %5975 = vrot.lane.b32.xlu0 %v13113_v15, %s11993_s29  ;;  %v5043_v4 = vpop.permute.xlu0 %5042  ;;  %v3528_v15 = vld [vmem:[#allocation2 + $0x860] ss:$2 sm:$0x7f]  ;;  %4161 = vst.msk [vmem:[#allocation3 + $0x210] sm:$0xff] %vm2983_vm2, %v4091_v21 }
 0x380   : > { %v4540_v41 = vpop.permute.xlu1 %4539  ;;  %7236 = vmatprep.mubr.f32.mxu1 %v6597_v5  ;;  %5172 = vst.msk [vmem:[#allocation4 + $0x940] sm:$0x1f] %vm4609_vm6, %v5043_v4  ;;  %v3945_v58 = vmax.f32 %v3528_v15, %v3804_v27  ;;  %v5331_v59 = vld [vmem:[#allocation3 + $0x102] sm:$0x1f] }
 0x381   : > { %4669 = vst.msk [vmem:[#allocation4 + $0x988] sm:$0xff] %vm4606_vm5, %v4540_v41  ;;  %7237 = vmatmul.mubr.f32.gmra.mrb[90].mxu1 %v6596_v50  ;;  %v5833_v4 = vld [vmem:[#allocation3 + $0x101] sm:$0x1f] }
 0x382   : > { %v6602_v57 = vld [vmem:[#allocation4 + $0x918] sm:$0xff]  ;;  %v4017_v60 = vmax.f32 %v3945_v58, %v3948_v43  ;;  %4162 = vst.msk [vmem:[#allocation3 + $0x218] sm:$0xff] %vm2983_vm2, %v4092_v35  ;;  %v5836_v58 = vld [vmem:[#allocation3 + $0x119] sm:$0x1f] }
 0x383   : > { %5482 = vrot.lane.b32.xlu1 %v5329_v42, %s11993_s29  ;;  %5977 = vrot.lane.b32.xlu0 %v13130_v39, %s11993_s29  ;;  %v6611_v48 = vld [vmem:[#allocation4 + $0x960] sm:$0xff] }
 0x384   : > { %7241 = vmatprep.mubr.f32.mxu1 %v6602_v57  ;;  %v4093_v5 = vadd.f32 %v11982_v12, %v4017_v60  ;;  %v5335_v27 = vld [vmem:[#allocation3 + $0x122] sm:$0xff]  ;;  %v5336_v57 = vld [vmem:[#allocation3 + $0x12a] sm:$0xff]  ;;  %v5338_v60 = vld [vmem:[#allocation3 + $0x13a] sm:$0xff] }
 0x385   : > { %v4542_v40 = vpop.permute.xlu1 %4541  ;;  %7242 = vmatmul.mubr.f32.gmra.mrb[92].mxu1 %v6601_v2 }
 0x386   : > { %4670 = vst.msk [vmem:[#allocation4 + $0x9b0] sm:$0x1f] %vm4609_vm6, %v4542_v40  ;;  %v5741_v42 = vld [vmem:[#allocation3 + $0x210] sm:$0xff] }
 0x387   : > { %5484 = vrot.lane.b32.xlu1 %v5330_v28, %s11993_s29  ;;  %5979 = vrot.lane.b32.xlu0 %v5830_v8, %s11993_s29  ;;  %v6607_v23 = vld [vmem:[#allocation4 + $0x940] sm:$0xff]  ;;  %4163 = vst.msk [vmem:[#allocation3 + $0x220] sm:$0x7f] %vm4096_vm3, %v4093_v5 }
 0x388   : > { %7246 = vmatprep.mubr.f32.mxu1 %v6607_v23  ;;  %5804 = vst.msk [vmem:[#allocation4 + $0x978] sm:$0xff] %vm2983_vm2, %v5741_v42  ;;  %v6616_v2 = vld [vmem:[#allocation4 + $0x988] sm:$0xff] }
 0x389   : > { %v5429_v39 = vpop.permute.xlu1 %5428  ;;  %7247 = vmatmul.mubr.f32.gmra.mrb[94].mxu1 %v6606_v63  ;;  %v5742_v9 = vld [vmem:[#allocation3 + $0x218] sm:$0xff]  ;;  %v5839_v42 = vld [vmem:[#allocation3 + $0x131] sm:$0x1f] }
 0x38a   : > { %5617 = vst.msk [vmem:[#allocation4 + $0x10] sm:$0xff] %vm4606_vm5, %v5429_v39  ;;  %v6245_v28 = vld [vmem:[#allocation3 + $0x212] sm:$0xff]  ;;  %v6691_v39 = vld [vmem:[%s15400_s4 + $0x208] sm:$0xff] }
 0x38b   : > { %5486 = vrot.lane.b32.xlu1 %v5331_v59, %s11993_s29  ;;  %5981 = vrot.lane.b32.xlu0 %v13202_v14, %s11993_s29  ;;  %v5333_v14 = vld [vmem:[#allocation3 + $0x112] sm:$0xff]  ;;  %5805 = vst.msk [vmem:[#allocation4 + $0x9a0] sm:$0xff] %vm2983_vm2, %v5742_v9  ;;  %6308 = vst.msk [vmem:[#allocation4 + $0x980] sm:$0xff] %vm2983_vm2, %v6245_v28  ;;  %v11512_v12 = vpack.c.bf16 %v6691_v39, %v6690_v31 }
 0x38d   : > { %v5431_v55 = vpop.permute.xlu1 %5430  ;;  %v5045_v16 = vpop.permute.xlu0 %5044  ;;  %v6621_v63 = vld [vmem:[#allocation4 + $0x9b0] sm:$0xff] }
 0x38e   : > { %5618 = vst.msk [vmem:[#allocation4 + $0x38] sm:$0xff] %vm4606_vm5, %v5431_v55  ;;  %5173 = vst.msk [vmem:[#allocation4 + $0x968] sm:$0xff] %vm4606_vm5, %v5045_v16  ;;  %v5743_v29 = vld [vmem:[#allocation3 + $0x220] sm:$0x1f]  ;;  %v6692_v55 = vld [vmem:[%s15400_s4 + $0x210] sm:$0xff] }
 0x38f   : > { %5488 = vrot.lane.b32.xlu1 %v5332_v56, %s11993_s29  ;;  %5983 = vrot.lane.b32.xlu0 %v13204_v36, %s11993_s29  ;;  %v5334_v36 = vld [vmem:[#allocation3 + $0x11a] sm:$0x1f]  ;;  %5806 = vst.msk [vmem:[#allocation4 + $0x9c8] sm:$0x1f] %vm4229_vm4, %v5743_v29  ;;  %v6247_v5 = vld [vmem:[#allocation3 + $0x222] sm:$0x1f] }
 0x390   : > { %v6246_v23 = vld [vmem:[#allocation3 + $0x21a] sm:$0xff]  ;;  %6310 = vst.msk [vmem:[#allocation4 + $0x9d0] sm:$0x1f] %vm4229_vm4, %v6247_v5 }
 0x391   : > { %v5433_v3 = vpop.permute.xlu1 %5432  ;;  %6309 = vst.msk [vmem:[#allocation4 + $0x9a8] sm:$0xff] %vm2983_vm2, %v6246_v23  ;;  %v6693_v56 = vld [vmem:[%s15400_s4 + $0x218] sm:$0xff] }
 0x392   : > { %5619 = vst.msk [vmem:[#allocation4 + $0x60] sm:$0x1f] %vm4609_vm6, %v5433_v3  ;;  %v5339_v3 = vld [vmem:[#allocation3 + $0x142] sm:$0xff] }
 0x393   : > { %5490 = vrot.lane.b32.xlu1 %v5333_v14, %s11993_s29  ;;  %5985 = vrot.lane.b32.xlu0 %v5833_v4, %s11993_s29  ;;  %v11515_v14 = vpack.c.bf16 %v6693_v56, %v6692_v55  ;;  %v5345_v55 = vld [vmem:[#allocation3 + $0x172] sm:$0xff]  ;;  %v5845_v56 = vld [vmem:[#allocation3 + $0x161] sm:$0x1f] }
 0x394   : > { %v5047_v50 = vpop.permute.xlu0 %5046 }
 0x395   : > { %v5435_v41 = vpop.permute.xlu1 %5434  ;;  %5174 = vst.msk [vmem:[#allocation4 + $0x990] sm:$0xff] %vm4606_vm5, %v5047_v50  ;;  %v6612_v26 = vld [vmem:[#allocation4 + $0x968] sm:$0xff]  ;;  %v6694_v50 = vld [vmem:[%s15400_s4 + $0x220] sm:$0xff] }
 0x396   : > { %5620 = vst.msk [vmem:[#allocation4 + $0x88] sm:$0xff] %vm4606_vm5, %v5435_v41  ;;  %7251 = vmatprep.mubr.f32.mxu1 %v6612_v26 }
 0x397   : > { %5492 = vrot.lane.b32.xlu1 %v5334_v36, %s11993_s29  ;;  %5987 = vrot.lane.b32.xlu0 %v13265_v11, %s11993_s29  ;;  %v6318_v36 = vld [vmem:[#allocation4 + $0x38] sm:$0xff] }
 0x398   : > { %7252 = vmatmul.mubr.f32.gmra.mrb[96].mxu1 %v6611_v48 }
 0x399   : > { %v5437_v52 = vpop.permute.xlu1 %5436  ;;  %v5049_v15 = vpop.permute.xlu0 %5048 }
 0x39a   : > { %5621 = vst.msk [vmem:[#allocation4 + $0xb0] sm:$0xff] %vm4606_vm5, %v5437_v52 }
 0x39b   : > { %5175 = vst.msk [vmem:[#allocation4 + $0x9b8] sm:$0x1f] %vm4609_vm6, %v5049_v15  ;;  %5494 = vrot.lane.b32.xlu1 %v5335_v27, %s11993_s29  ;;  %5989 = vrot.lane.b32.xlu0 %v13284_v47, %s11993_s29  ;;  %v5340_v15 = vld [vmem:[#allocation3 + $0x14a] sm:$0x1f] }
 0x39c   : > { %v6617_v33 = vld [vmem:[#allocation4 + $0x990] sm:$0xff]  ;;  %v6323_v27 = vld [vmem:[#allocation4 + $0x60] sm:$0xff] }
 0x39d   : > { %v5439_v11 = vpop.permute.xlu1 %5438  ;;  %v5934_v40 = vpop.permute.xlu0 %5933  ;;  %7256 = vmatprep.mubr.f32.mxu1 %v6617_v33 }
 0x39e   : > { %5622 = vst.msk [vmem:[#allocation4 + $0xd8] sm:$0x1f] %vm4609_vm6, %v5439_v11  ;;  %7257 = vmatmul.mubr.f32.gmra.mrb[98].mxu1 %v6616_v2 }
 0x39f   : > { %6122 = vst.msk [vmem:[#allocation4 + $0x18] sm:$0xff] %vm4606_vm5, %v5934_v40  ;;  %5496 = vrot.lane.b32.xlu1 %v5336_v57, %s11993_s29  ;;  %5991 = vrot.lane.b32.xlu0 %v5836_v58, %s11993_s29  ;;  %v5341_v40 = vld [vmem:[#allocation3 + $0x152] sm:$0xff]  ;;  %v5342_v58 = vld [vmem:[#allocation3 + $0x15a] sm:$0xff] }
 0x3a0   : > { %v6328_v57 = vld [vmem:[#allocation4 + $0x88] sm:$0xff] }
 0x3a1   : > { %v5441_v47 = vpop.permute.xlu1 %5440  ;;  %v5936_v43 = vpop.permute.xlu0 %5935 }
 0x3a2   : > { %5623 = vst.msk [vmem:[#allocation4 + $0x100] sm:$0xff] %vm4606_vm5, %v5441_v47  ;;  %v6622_v8 = vld [vmem:[#allocation4 + $0x9b8] sm:$0xff]  ;;  %6123 = vst.msk [vmem:[#allocation4 + $0x40] sm:$0xff] %vm4606_vm5, %v5936_v43  ;;  %v5842_v47 = vld [vmem:[#allocation3 + $0x149] sm:$0x1f] }
 0x3a3   : > { %7261 = vmatprep.mubr.f32.mxu1 %v6622_v8  ;;  %5498 = vrot.lane.b32.xlu1 %v5337_v37, %s11993_s29  ;;  %v6333_v37 = vld [vmem:[#allocation4 + $0xb0] sm:$0xff]  ;;  %v5343_v8 = vld [vmem:[#allocation3 + $0x162] sm:$0x1f] }
 0x3a4   : > { %5993 = vrot.lane.b32.xlu0 %v13322_v1, %s11993_s29  ;;  %7262 = vmatmul.mubr.f32.gmra.mrb[100].mxu1 %v6621_v63  ;;  %v6313_v1 = vld [vmem:[#allocation4 + $0x10] sm:$0xff] }
 0x3a5   : > { %v5443_v59 = vpop.permute.xlu1 %5442  ;;  %v5938_v21 = vpop.permute.xlu0 %5937  ;;  %v6338_v39 = vld [vmem:[#allocation4 + $0xd8] sm:$0xff] }
 0x3a6   : > { %5624 = vst.msk [vmem:[#allocation4 + $0x128] sm:$0xff] %vm4606_vm5, %v5443_v59  ;;  %v6314_v35 = vld [vmem:[#allocation4 + $0x18] sm:$0xff] }
 0x3a7   : > { %6124 = vst.msk [vmem:[#allocation4 + $0x68] sm:$0x1f] %vm4609_vm6, %v5938_v21  ;;  %7331 = vmatprep.mubr.f32.mxu1 %v6314_v35  ;;  %5500 = vrot.lane.b32.xlu1 %v5338_v60, %s11993_s29  ;;  %v5344_v60 = vld [vmem:[#allocation3 + $0x16a] sm:$0xff] }
 0x3a8   : > { %5995 = vrot.lane.b32.xlu0 %v13336_v34, %s11993_s29  ;;  %7332 = vmatmul.mubr.f32.vlgmr.msra.gmra.mrb[102].mxu1 %v6313_v1  ;;  %v6695_v34 = vld [vmem:[%s15400_s4 + $0x228] sm:$0xff] }
 0x3a9   : > { %11513 = vmatpush3.bf16.msra.mxu1 %v11512_v12  ;;  %v5445_v16 = vpop.permute.xlu1 %5444  ;;  %v5940_v4 = vpop.permute.xlu0 %5939  ;;  %v6319_v41 = vld [vmem:[#allocation4 + $0x40] sm:$0xff]  ;;  %v11518_v52 = vpack.c.bf16 %v6695_v34, %v6694_v50 }
 0x3aa   : > { %5625 = vst.msk [vmem:[#allocation4 + $0x150] sm:$0x1f] %vm4609_vm6, %v5445_v16  ;;  %11514 = vmatprep.subr.bf16.mxu1 %v15425_v10  ;;  %7336 = vmatprep.mubr.f32.mxu1 %v6319_v41  ;;  %v6343_v12 = vld [vmem:[#allocation4 + $0x100] sm:$0xff] }
 0x3ab   : > { %6125 = vst.msk [vmem:[#allocation4 + $0x90] sm:$0xff] %vm4606_vm5, %v5940_v4  ;;  %5502 = vrot.lane.b32.xlu1 %v5339_v3, %s11993_s29  ;;  %v5346_v3 = vld [vmem:[#allocation3 + $0x17a] sm:$0x1f]  ;;  %v5347_v34 = vld [vmem:[#allocation3 + $0x182] sm:$0xff] }
 0x3ac   : > { %5997 = vrot.lane.b32.xlu0 %v5839_v42, %s11993_s29  ;;  %7337 = vmatmul.mubr.f32.gmra.mrb[104].mxu1 %v6318_v36 }
 0x3ad   : > { %v5447_v26 = vpop.permute.xlu1 %5446  ;;  %11516 = vmatpush3.bf16.msra.mxu1 %v11515_v14  ;;  %v5942_v48 = vpop.permute.xlu0 %5941  ;;  %v6348_v1 = vld [vmem:[#allocation4 + $0x128] sm:$0xff] }
 0x3ae   : > { %5626 = vst.msk [vmem:[#allocation4 + $0x178] sm:$0xff] %vm4606_vm5, %v5447_v26  ;;  %v6324_v9 = vld [vmem:[#allocation4 + $0x68] sm:$0xff]  ;;  %11517 = vmatprep.subr.bf16.mxu1 %v15425_v10  ;;  %6126 = vst.msk [vmem:[#allocation4 + $0xb8] sm:$0xff] %vm4606_vm5, %v5942_v48  ;;  %v5848_v48 = vld [vmem:[#allocation3 + $0x179] sm:$0x1f] }
 0x3af   : > { %7341 = vmatprep.mubr.f32.mxu1 %v6324_v9  ;;  %5504 = vrot.lane.b32.xlu1 %v5340_v15, %s11993_s29 }
 0x3b0   : > { %5999 = vrot.lane.b32.xlu0 %v13394_v32, %s11993_s29  ;;  %7342 = vmatmul.mubr.f32.gmra.mrb[106].mxu1 %v6323_v27 }
 0x3b1   : > { %v5449_v11 = vpop.permute.xlu1 %5448  ;;  %11519 = vmatpush3.bf16.msra.mxu1 %v11518_v52  ;;  %v5944_v33 = vpop.permute.xlu0 %5943  ;;  %v6353_v14 = vld [vmem:[#allocation4 + $0x150] sm:$0xff]  ;;  %v5348_v52 = vld [vmem:[#allocation3 + $0x18a] sm:$0xff] }
 0x3b2   : > { %5627 = vst.msk [vmem:[#allocation4 + $0x1a0] sm:$0xff] %vm4606_vm5, %v5449_v11  ;;  %v6329_v29 = vld [vmem:[#allocation4 + $0x90] sm:$0xff]  ;;  %11520 = vmatprep.subr.bf16.mxu1 %v15425_v10  ;;  %v5349_v11 = vld [vmem:[#allocation3 + $0x192] sm:$0x1f] }
 0x3b3   : > { %6127 = vst.msk [vmem:[#allocation4 + $0xe0] sm:$0x1f] %vm4609_vm6, %v5944_v33  ;;  %7346 = vmatprep.mubr.f32.mxu1 %v6329_v29  ;;  %5506 = vrot.lane.b32.xlu1 %v5341_v40, %s11993_s29 }
 0x3b4   : > { %6001 = vrot.lane.b32.xlu0 %v13396_v45, %s11993_s29  ;;  %7347 = vmatmul.mubr.f32.gmra.mrb[108].mxu1 %v6328_v57 }
 0x3b5   : > { %v5451_v32 = vpop.permute.xlu1 %5450  ;;  %v5946_v2 = vpop.permute.xlu0 %5945  ;;  %v6334_v28 = vld [vmem:[#allocation4 + $0xb8] sm:$0xff] }
 0x3b6   : > { %5628 = vst.msk [vmem:[#allocation4 + $0x1c8] sm:$0x1f] %vm4609_vm6, %v5451_v32  ;;  %7351 = vmatprep.mubr.f32.mxu1 %v6334_v28  ;;  %v6358_v42 = vld [vmem:[#allocation4 + $0x178] sm:$0xff] }
 0x3b7   : > { %6128 = vst.msk [vmem:[#allocation4 + $0x108] sm:$0xff] %vm4606_vm5, %v5946_v2  ;;  %5508 = vrot.lane.b32.xlu1 %v5342_v58, %s11993_s29  ;;  %v5351_v58 = vld [vmem:[#allocation3 + $0x1a2] sm:$0xff] }
 0x3b8   : > { %6003 = vrot.lane.b32.xlu0 %v5842_v47, %s11993_s29  ;;  %7352 = vmatmul.mubr.f32.gmra.mrb[110].mxu1 %v6333_v37  ;;  %v5851_v47 = vld [vmem:[#allocation3 + $0x191] sm:$0x1f] }
 0x3b9   : > { %v5453_v31 = vpop.permute.xlu1 %5452  ;;  %v5948_v45 = vpop.permute.xlu0 %5947  ;;  %v6363_v9 = vld [vmem:[#allocation4 + $0x1a0] sm:$0xff] }
 0x3ba   : > { %5629 = vst.msk [vmem:[#allocation4 + $0x1f0] sm:$0xff] %vm4606_vm5, %v5453_v31  ;;  %v6339_v43 = vld [vmem:[#allocation4 + $0xe0] sm:$0xff]  ;;  %6129 = vst.msk [vmem:[#allocation4 + $0x130] sm:$0xff] %vm4606_vm5, %v5948_v45 }
 0x3bb   : > { %7356 = vmatprep.mubr.f32.mxu1 %v6339_v43  ;;  %5510 = vrot.lane.b32.xlu1 %v5343_v8, %s11993_s29  ;;  %v5352_v45 = vld [vmem:[#allocation3 + $0x1aa] sm:$0x1f] }
 0x3bc   : > { %6005 = vrot.lane.b32.xlu0 %v13443_v13, %s11993_s29  ;;  %7357 = vmatmul.mubr.f32.gmra.mrb[112].mxu1 %v6338_v39 }
 0x3bd   : > { %v5455_v23 = vpop.permute.xlu1 %5454  ;;  %v5950_v63 = vpop.permute.xlu0 %5949  ;;  %v6368_v33 = vld [vmem:[#allocation4 + $0x1c8] sm:$0xff] }
 0x3be   : > { %5630 = vst.msk [vmem:[#allocation4 + $0x218] sm:$0xff] %vm4606_vm5, %v5455_v23  ;;  %v6344_v59 = vld [vmem:[#allocation4 + $0x108] sm:$0xff] }
 0x3bf   : > { %6130 = vst.msk [vmem:[#allocation4 + $0x158] sm:$0x1f] %vm4609_vm6, %v5950_v63  ;;  %7361 = vmatprep.mubr.f32.mxu1 %v6344_v59  ;;  %5512 = vrot.lane.b32.xlu1 %v5344_v60, %s11993_s29  ;;  %v6697_v59 = vld [vmem:[%s15400_s4 + $0x238] sm:$0xff] }
 0x3c0   : > { %6007 = vrot.lane.b32.xlu0 %v13463_v62, %s11993_s29  ;;  %7362 = vmatmul.mubr.f32.gmra.mrb[114].mxu1 %v6343_v12 }
 0x3c1   : > { %v5457_v21 = vpop.permute.xlu1 %5456  ;;  %v5952_v13 = vpop.permute.xlu0 %5951  ;;  %v6349_v35 = vld [vmem:[#allocation4 + $0x130] sm:$0xff] }
 0x3c2   : > { %5631 = vst.msk [vmem:[#allocation4 + $0x240] sm:$0x1f] %vm4609_vm6, %v5457_v21  ;;  %7366 = vmatprep.mubr.f32.mxu1 %v6349_v35  ;;  %v6373_v32 = vld [vmem:[#allocation4 + $0x1f0] sm:$0xff] }
 0x3c3   : > { %6131 = vst.msk [vmem:[#allocation4 + $0x180] sm:$0xff] %vm4606_vm5, %v5952_v13  ;;  %5514 = vrot.lane.b32.xlu1 %v5345_v55, %s11993_s29 }
 0x3c4   : > { %6009 = vrot.lane.b32.xlu0 %v5845_v56, %s11993_s29  ;;  %7367 = vmatmul.mubr.f32.gmra.mrb[116].mxu1 %v6348_v1  ;;  %v5355_v1 = vld [vmem:[#allocation3 + $0x1c2] sm:$0x1f] }
 0x3c5   : > { %v5459_v5 = vpop.permute.xlu1 %5458  ;;  %v5954_v62 = vpop.permute.xlu0 %5953  ;;  %v6378_v37 = vld [vmem:[#allocation4 + $0x218] sm:$0xff] }
 0x3c6   : > { %5632 = vst.msk [vmem:[#allocation4 + $0x268] sm:$0xff] %vm4606_vm5, %v5459_v5  ;;  %v6354_v16 = vld [vmem:[#allocation4 + $0x158] sm:$0xff]  ;;  %6132 = vst.msk [vmem:[#allocation4 + $0x1a8] sm:$0xff] %vm4606_vm5, %v5954_v62 }
 0x3c7   : > { %7371 = vmatprep.mubr.f32.mxu1 %v6354_v16  ;;  %5516 = vrot.lane.b32.xlu1 %v5346_v3, %s11993_s29 }
 0x3c8   : > { %6011 = vrot.lane.b32.xlu0 %v13510_v30, %s11993_s29  ;;  %7372 = vmatmul.mubr.f32.gmra.mrb[118].mxu1 %v6353_v14 }
 0x3c9   : > { %v5461_v4 = vpop.permute.xlu1 %5460  ;;  %v5956_v41 = vpop.permute.xlu0 %5955  ;;  %v6383_v43 = vld [vmem:[#allocation4 + $0x240] sm:$0xff] }
 0x3ca   : > { %5633 = vst.msk [vmem:[#allocation4 + $0x290] sm:$0xff] %vm4606_vm5, %v5461_v4  ;;  %v6359_v50 = vld [vmem:[#allocation4 + $0x180] sm:$0xff] }
 0x3cb   : > { %6133 = vst.msk [vmem:[#allocation4 + $0x1d0] sm:$0x1f] %vm4609_vm6, %v5956_v41  ;;  %7376 = vmatprep.mubr.f32.mxu1 %v6359_v50  ;;  %5518 = vrot.lane.b32.xlu1 %v5347_v34, %s11993_s29  ;;  %v5857_v41 = vld [vmem:[#allocation3 + $0x1c1] sm:$0x1f] }
 0x3cc   : > { %6013 = vrot.lane.b32.xlu0 %v13553_v6, %s11993_s29  ;;  %7377 = vmatmul.mubr.f32.gmra.mrb[120].mxu1 %v6358_v42  ;;  %v5358_v42 = vld [vmem:[#allocation3 + $0x1da] sm:$0x1f] }
 0x3cd   : > { %v5463_v36 = vpop.permute.xlu1 %5462  ;;  %v5958_v30 = vpop.permute.xlu0 %5957  ;;  %v6364_v26 = vld [vmem:[#allocation4 + $0x1a8] sm:$0xff] }
 0x3ce   : > { %5634 = vst.msk [vmem:[#allocation4 + $0x2b8] sm:$0x1f] %vm4609_vm6, %v5463_v36  ;;  %7381 = vmatprep.mubr.f32.mxu1 %v6364_v26  ;;  %v6388_v63 = vld [vmem:[#allocation4 + $0x268] sm:$0xff] }
 0x3cf   : > { %6134 = vst.msk [vmem:[#allocation4 + $0x1f8] sm:$0xff] %vm4606_vm5, %v5958_v30  ;;  %5520 = vrot.lane.b32.xlu1 %v5348_v52, %s11993_s29 }
 0x3d0   : > { %6015 = vrot.lane.b32.xlu0 %v5848_v48, %s11993_s29  ;;  %7382 = vmatmul.mubr.f32.gmra.mrb[122].mxu1 %v6363_v9 }
 0x3d1   : > { %v5465_v15 = vpop.permute.xlu1 %5464  ;;  %v5960_v6 = vpop.permute.xlu0 %5959 }
 0x3d2   : > { %5635 = vst.msk [vmem:[#allocation4 + $0x2e0] sm:$0xff] %vm4606_vm5, %v5465_v15  ;;  %v6369_v27 = vld [vmem:[#allocation4 + $0x1d0] sm:$0xff]  ;;  %6135 = vst.msk [vmem:[#allocation4 + $0x220] sm:$0xff] %vm4606_vm5, %v5960_v6 }
 0x3d3   : > { %7386 = vmatprep.mubr.f32.mxu1 %v6369_v27  ;;  %5522 = vrot.lane.b32.xlu1 %v5349_v11, %s11993_s29  ;;  %v5860_v15 = vld [vmem:[#allocation3 + $0x1d9] sm:$0x1f]  ;;  %v5361_v11 = vld [vmem:[#allocation3 + $0x1f2] sm:$0x1f] }
 0x3d4   : > { %6017 = vrot.lane.b32.xlu0 %v13613_v38, %s11993_s29  ;;  %7387 = vmatmul.mubr.f32.gmra.mrb[124].mxu1 %v6368_v33 }
 0x3d5   : > { %v5467_v29 = vpop.permute.xlu1 %5466  ;;  %v5962_v40 = vpop.permute.xlu0 %5961  ;;  %v6398_v5 = vld [vmem:[#allocation4 + $0x2b8] sm:$0xff] }
 0x3d6   : > { %5636 = vst.msk [vmem:[#allocation4 + $0x308] sm:$0xff] %vm4606_vm5, %v5467_v29  ;;  %v6374_v57 = vld [vmem:[#allocation4 + $0x1f8] sm:$0xff]  ;;  %v15428_v29 = vld [vmem:[#allocation18_spill] sm:$0xff] }
 0x3d7   : > { %6136 = vst.msk [vmem:[#allocation4 + $0x248] sm:$0x1f] %vm4609_vm6, %v5962_v40  ;;  %7391 = vmatprep.mubr.f32.mxu1 %v6374_v57  ;;  %5524 = vrot.lane.b32.xlu1 %v13672_v25, %s11993_s29 }
 0x3d8   : > { %6019 = vrot.lane.b32.xlu0 %v13615_v22, %s11993_s29  ;;  %7392 = vmatmul.mubr.f32.gmra.mrb[0].mxu1 %v6373_v32  ;;  %v5362_v32 = vld [vmem:[#allocation3 + $0x1fa] sm:$0xff] }
 0x3d9   : > { %v5469_v2 = vpop.permute.xlu1 %5468  ;;  %v5964_v38 = vpop.permute.xlu0 %5963  ;;  %v6379_v28 = vld [vmem:[#allocation4 + $0x220] sm:$0xff] }
 0x3da   : > { %5637 = vst.msk [vmem:[#allocation4 + $0x330] sm:$0x1f] %vm4609_vm6, %v5469_v2  ;;  %7396 = vmatprep.mubr.f32.mxu1 %v6379_v28  ;;  %v6403_v3 = vld [vmem:[#allocation4 + $0x2e0] sm:$0xff] }
 0x3db   : > { %6137 = vst.msk [vmem:[#allocation4 + $0x270] sm:$0xff] %vm4606_vm5, %v5964_v38  ;;  %5526 = vrot.lane.b32.xlu1 %v5351_v58, %s11993_s29  ;;  %v15429_v38 = vld [vmem:[#allocation19_spill] sm:$0xff] }
 0x3dc   : > { %6021 = vrot.lane.b32.xlu0 %v5851_v47, %s11993_s29  ;;  %7397 = vmatmul.mubr.f32.gmra.mrb[2].mxu1 %v6378_v37  ;;  %v5363_v37 = vld [vmem:[#allocation3 + $0x202] sm:$0xff] }
 0x3dd   : > { %v5471_v25 = vpop.permute.xlu1 %5470  ;;  %v5966_v22 = vpop.permute.xlu0 %5965  ;;  %v6408_v50 = vld [vmem:[#allocation4 + $0x308] sm:$0xff] }
 0x3de   : > { %5638 = vst.msk [vmem:[#allocation4 + $0x358] sm:$0xff] %vm4606_vm5, %v5471_v25  ;;  %v6384_v31 = vld [vmem:[#allocation4 + $0x248] sm:$0xff]  ;;  %6138 = vst.msk [vmem:[#allocation4 + $0x298] sm:$0xff] %vm4606_vm5, %v5966_v22 }
 0x3df   : > { %7401 = vmatprep.mubr.f32.mxu1 %v6384_v31  ;;  %5528 = vrot.lane.b32.xlu1 %v5352_v45, %s11993_s29  ;;  %v5863_v25 = vld [vmem:[#allocation3 + $0x1f1] sm:$0x1f] }
 0x3e0   : > { %6023 = vrot.lane.b32.xlu0 %v13686_v7, %s11993_s29  ;;  %7402 = vmatmul.mubr.f32.gmra.mrb[4].mxu1 %v6383_v43  ;;  %v6696_v7 = vld [vmem:[%s15400_s4 + $0x230] sm:$0xff] }
 0x3e1   : > { %v5473_v8 = vpop.permute.xlu1 %5472  ;;  %v5968_v39 = vpop.permute.xlu0 %5967  ;;  %v11521_v12 = vpack.c.bf16 %v6697_v59, %v6696_v7  ;;  %v6413_v36 = vld [vmem:[#allocation4 + $0x330] sm:$0xff]  ;;  %v4291_v59 = vld [vmem:[#allocation3 + $0x1] sm:$0xff] }
 0x3e2   : > { %5639 = vst.msk [vmem:[#allocation4 + $0x380] sm:$0xff] %vm4606_vm5, %v5473_v8  ;;  %v6389_v23 = vld [vmem:[#allocation4 + $0x270] sm:$0xff]  ;;  %v5364_v8 = vld [vmem:[#allocation3 + $0x20a] sm:$0x1f] }
 0x3e3   : > { %6139 = vst.msk [vmem:[#allocation4 + $0x2c0] sm:$0x1f] %vm4609_vm6, %v5968_v39  ;;  %7406 = vmatprep.mubr.f32.mxu1 %v6389_v23  ;;  %5530 = vrot.lane.b32.xlu1 %v13730_v61, %s11993_s29  ;;  %v6393_v61 = vld [vmem:[#allocation4 + $0x290] sm:$0xff] }
 0x3e4   : > { %6025 = vrot.lane.b32.xlu0 %v13688_v19, %s11993_s29  ;;  %7407 = vmatmul.mubr.f32.gmra.mrb[6].mxu1 %v6388_v63  ;;  %v5854_v19 = vld [vmem:[#allocation3 + $0x1a9] sm:$0x1f] }
 0x3e5   : > { %v5475_v60 = vpop.permute.xlu1 %5474  ;;  %v5970_v21 = vpop.permute.xlu0 %5969  ;;  %v6394_v13 = vld [vmem:[#allocation4 + $0x298] sm:$0xff]  ;;  %11522 = vmatpush3.bf16.msra.mxu1 %v11521_v12 }
 0x3e6   : > { %5640 = vst.msk [vmem:[#allocation4 + $0x3a8] sm:$0x1f] %vm4609_vm6, %v5475_v60  ;;  %7411 = vmatprep.mubr.f32.mxu1 %v6394_v13  ;;  %v6418_v52 = vld [vmem:[#allocation4 + $0x358] sm:$0xff]  ;;  %v4292_v13 = vld [vmem:[#allocation3 + $0x9] sm:$0xff] }
 0x3e7   : > { %6140 = vst.msk [vmem:[#allocation4 + $0x2e8] sm:$0xff] %vm4606_vm5, %v5970_v21  ;;  %5532 = vrot.lane.b32.xlu1 %v13746_v49, %s11993_s29 }
 0x3e8   : > { %6027 = vrot.lane.b32.xlu0 %v5854_v19, %s11993_s29  ;;  %7412 = vmatmul.mubr.f32.gmra.mrb[8].mxu1 %v6393_v61  ;;  %v5866_v19 = vld [vmem:[#allocation3 + $0x209] sm:$0x1f] }
 0x3e9   : > { %v5477_v35 = vpop.permute.xlu1 %5476  ;;  %v5972_v55 = vpop.permute.xlu0 %5971  ;;  %v6423_v6 = vld [vmem:[#allocation4 + $0x380] sm:$0xff] }
 0x3ea   : > { %5641 = vst.msk [vmem:[#allocation4 + $0x3d0] sm:$0xff] %vm4606_vm5, %v5477_v35  ;;  %v6399_v56 = vld [vmem:[#allocation4 + $0x2c0] sm:$0xff]  ;;  %6141 = vst.msk [vmem:[#allocation4 + $0x310] sm:$0xff] %vm4606_vm5, %v5972_v55 }
 0x3eb   : > { %7416 = vmatprep.mubr.f32.mxu1 %v6399_v56  ;;  %5534 = vrot.lane.b32.xlu1 %v5355_v1, %s11993_s29  ;;  %v4293_v56 = vld [vmem:[#allocation3 + $0x11] sm:$0x1f] }
 0x3ec   : > { %6029 = vrot.lane.b32.xlu0 %v13754_v0, %s11993_s29  ;;  %7417 = vmatmul.mubr.f32.gmra.mrb[10].mxu1 %v6398_v5  ;;  %v5867_v5 = vld [vmem:[#allocation3 + $0x211] sm:$0xff] }
 0x3ed   : > { %v5479_v49 = vpop.permute.xlu1 %5478  ;;  %v5974_v62 = vpop.permute.xlu0 %5973  ;;  %v6428_v33 = vld [vmem:[#allocation4 + $0x3a8] sm:$0xff] }
 0x3ee   : > { %5642 = vst.msk [vmem:[#allocation4 + $0x3f8] sm:$0xff] %vm4606_vm5, %v5479_v49  ;;  %v6404_v16 = vld [vmem:[#allocation4 + $0x2e8] sm:$0xff] }
 0x3ef   : > { %6142 = vst.msk [vmem:[#allocation4 + $0x338] sm:$0x1f] %vm4609_vm6, %v5974_v62  ;;  %7421 = vmatprep.mubr.f32.mxu1 %v6404_v16  ;;  %5536 = vrot.lane.b32.xlu1 %v13801_v51, %s11993_s29 }
 0x3f0   : > { %6031 = vrot.lane.b32.xlu0 %v13760_v24, %s11993_s29  ;;  %7422 = vmatmul.mubr.f32.gmra.mrb[12].mxu1 %v6403_v3  ;;  %v4294_v3 = vld [vmem:[#allocation3 + $0x19] sm:$0xff] }
 0x3f1   : > { %v5481_v14 = vpop.permute.xlu1 %5480  ;;  %v5976_v0 = vpop.permute.xlu0 %5975  ;;  %v6409_v4 = vld [vmem:[#allocation4 + $0x310] sm:$0xff] }
 0x3f2   : > { %5643 = vst.msk [vmem:[#allocation4 + $0x420] sm:$0x1f] %vm4609_vm6, %v5481_v14  ;;  %7426 = vmatprep.mubr.f32.mxu1 %v6409_v4  ;;  %v6433_v2 = vld [vmem:[#allocation4 + $0x3d0] sm:$0xff] }
 0x3f3   : > { %6143 = vst.msk [vmem:[#allocation4 + $0x360] sm:$0xff] %vm4606_vm5, %v5976_v0  ;;  %5538 = vrot.lane.b32.xlu1 %v13817_v44, %s11993_s29  ;;  %v5868_v0 = vld [vmem:[#allocation3 + $0x219] sm:$0xff] }
 0x3f4   : > { %6033 = vrot.lane.b32.xlu0 %v5857_v41, %s11993_s29  ;;  %7427 = vmatmul.mubr.f32.gmra.mrb[14].mxu1 %v6408_v50 }
 0x3f5   : > { %v5483_v51 = vpop.permute.xlu1 %5482  ;;  %v5978_v24 = vpop.permute.xlu0 %5977  ;;  %v6438_v22 = vld [vmem:[#allocation4 + $0x3f8] sm:$0xff] }
 0x3f6   : > { %5644 = vst.msk [vmem:[#allocation4 + $0x448] sm:$0xff] %vm4606_vm5, %v5483_v51  ;;  %v6414_v34 = vld [vmem:[#allocation4 + $0x338] sm:$0xff]  ;;  %6144 = vst.msk [vmem:[#allocation4 + $0x388] sm:$0xff] %vm4606_vm5, %v5978_v24 }
 0x3f7   : > { %7431 = vmatprep.mubr.f32.mxu1 %v6414_v34  ;;  %5540 = vrot.lane.b32.xlu1 %v5358_v42, %s11993_s29  ;;  %v4295_v51 = vld [vmem:[#allocation3 + $0x21] sm:$0xff] }
 0x3f8   : > { %6035 = vrot.lane.b32.xlu0 %v13825_v53, %s11993_s29  ;;  %7432 = vmatmul.mubr.f32.gmra.mrb[16].mxu1 %v6413_v36  ;;  %v5869_v34 = vld [vmem:[#allocation3 + $0x221] sm:$0x1f] }
 0x3f9   : > { %v5485_v44 = vpop.permute.xlu1 %5484  ;;  %v5980_v30 = vpop.permute.xlu0 %5979  ;;  %v6443_v39 = vld [vmem:[#allocation4 + $0x420] sm:$0xff] }
 0x3fa   : > { %5645 = vst.msk [vmem:[#allocation4 + $0x470] sm:$0xff] %vm4606_vm5, %v5485_v44  ;;  %v6419_v26 = vld [vmem:[#allocation4 + $0x360] sm:$0xff] }
 0x3fb   : > { %6145 = vst.msk [vmem:[#allocation4 + $0x3b0] sm:$0x1f] %vm4609_vm6, %v5980_v30  ;;  %7436 = vmatprep.mubr.f32.mxu1 %v6419_v26  ;;  %5542 = vrot.lane.b32.xlu1 %v13872_v17, %s11993_s29  ;;  %v4296_v30 = vld [vmem:[#allocation3 + $0x29] sm:$0x1f] }
 0x3fc   : > { %6037 = vrot.lane.b32.xlu0 %v13831_v20, %s11993_s29  ;;  %7437 = vmatmul.mubr.f32.gmra.mrb[18].mxu1 %v6418_v52  ;;  %v15430_v52 = vld [vmem:[#allocation12_spill] sm:$0xff] }
 0x3fd   : > { %v5487_v48 = vpop.permute.xlu1 %5486  ;;  %v5982_v53 = vpop.permute.xlu0 %5981  ;;  %v6424_v9 = vld [vmem:[#allocation4 + $0x388] sm:$0xff] }
 0x3fe   : > { %5646 = vst.msk [vmem:[#allocation4 + $0x498] sm:$0x1f] %vm4609_vm6, %v5487_v48  ;;  %7441 = vmatprep.mubr.f32.mxu1 %v6424_v9  ;;  %v6448_v60 = vld [vmem:[#allocation4 + $0x448] sm:$0xff] }
 0x3ff   : > { %6146 = vst.msk [vmem:[#allocation4 + $0x3d8] sm:$0xff] %vm4606_vm5, %v5982_v53  ;;  %5544 = vrot.lane.b32.xlu1 %v13896_v18, %s11993_s29 }
 0x400   : > { %6039 = vrot.lane.b32.xlu0 %v5860_v15, %s11993_s29  ;;  %7442 = vmatmul.mubr.f32.gmra.mrb[20].mxu1 %v6423_v6  ;;  %v4297_v15 = vld [vmem:[#allocation3 + $0x31] sm:$0xff] }
 0x401   : > { %v5489_v17 = vpop.permute.xlu1 %5488  ;;  %v5984_v20 = vpop.permute.xlu0 %5983  ;;  %v6453_v61 = vld [vmem:[#allocation4 + $0x470] sm:$0xff] }
 0x402   : > { %5647 = vst.msk [vmem:[#allocation4 + $0x4c0] sm:$0xff] %vm4606_vm5, %v5489_v17  ;;  %v6429_v27 = vld [vmem:[#allocation4 + $0x3b0] sm:$0xff]  ;;  %6147 = vst.msk [vmem:[#allocation4 + $0x400] sm:$0xff] %vm4606_vm5, %v5984_v20  ;;  %v15431_v17 = vld [vmem:[#allocation13_spill] sm:$0xff] }
 0x403   : > { %7446 = vmatprep.mubr.f32.mxu1 %v6429_v27  ;;  %5546 = vrot.lane.b32.xlu1 %v5361_v11, %s11993_s29 }
 0x404   : > { %6041 = vrot.lane.b32.xlu0 %v15428_v29, %s11993_s29  ;;  %7447 = vmatmul.mubr.f32.gmra.mrb[22].mxu1 %v6428_v33  ;;  %v4298_v33 = vld [vmem:[#allocation3 + $0x39] sm:$0xff] }
 0x405   : > { %v5491_v18 = vpop.permute.xlu1 %5490  ;;  %v5986_v40 = vpop.permute.xlu0 %5985  ;;  %v6458_v1 = vld [vmem:[#allocation4 + $0x498] sm:$0xff] }
 0x406   : > { %5648 = vst.msk [vmem:[#allocation4 + $0x4e8] sm:$0xff] %vm4606_vm5, %v5491_v18  ;;  %v6434_v57 = vld [vmem:[#allocation4 + $0x3d8] sm:$0xff]  ;;  %v4800_v18 = vld [vmem:[#allocation3 + $0x28] sm:$0x1f] }
 0x407   : > { %6148 = vst.msk [vmem:[#allocation4 + $0x428] sm:$0x1f] %vm4609_vm6, %v5986_v40  ;;  %7451 = vmatprep.mubr.f32.mxu1 %v6434_v57  ;;  %5548 = vrot.lane.b32.xlu1 %v5362_v32, %s11993_s29 }
 0x408   : > { %6043 = vrot.lane.b32.xlu0 %v15429_v38, %s11993_s29  ;;  %7452 = vmatmul.mubr.f32.gmra.mrb[24].mxu1 %v6433_v2  ;;  %v4299_v2 = vld [vmem:[#allocation3 + $0x41] sm:$0x1f] }
 0x409   : > { %v5493_v28 = vpop.permute.xlu1 %5492  ;;  %v5988_v58 = vpop.permute.xlu0 %5987  ;;  %v6439_v47 = vld [vmem:[#allocation4 + $0x400] sm:$0xff] }
 0x40a   : > { %5649 = vst.msk [vmem:[#allocation4 + $0x510] sm:$0x1f] %vm4609_vm6, %v5493_v28  ;;  %7456 = vmatprep.mubr.f32.mxu1 %v6439_v47  ;;  %v6463_v14 = vld [vmem:[#allocation4 + $0x4c0] sm:$0xff] }
 0x40b   : > { %6149 = vst.msk [vmem:[#allocation4 + $0x450] sm:$0xff] %vm4606_vm5, %v5988_v58  ;;  %5550 = vrot.lane.b32.xlu1 %v5363_v37, %s11993_s29  ;;  %v15432_v28 = vld [vmem:[#allocation14_spill] sm:$0xff] }
 0x40c   : > { %6045 = vrot.lane.b32.xlu0 %v5863_v25, %s11993_s29  ;;  %7457 = vmatmul.mubr.f32.gmra.mrb[26].mxu1 %v6438_v22  ;;  %v4300_v25 = vld [vmem:[#allocation3 + $0x49] sm:$0xff] }
 0x40d   : > { %v5495_v31 = vpop.permute.xlu1 %5494  ;;  %v5990_v45 = vpop.permute.xlu0 %5989  ;;  %v6468_v24 = vld [vmem:[#allocation4 + $0x4e8] sm:$0xff] }
 0x40e   : > { %5650 = vst.msk [vmem:[#allocation4 + $0x538] sm:$0xff] %vm4606_vm5, %v5495_v31  ;;  %v6444_v43 = vld [vmem:[#allocation4 + $0x428] sm:$0xff]  ;;  %6150 = vst.msk [vmem:[#allocation4 + $0x478] sm:$0xff] %vm4606_vm5, %v5990_v45 }
 0x40f   : > { %7461 = vmatprep.mubr.f32.mxu1 %v6444_v43  ;;  %5552 = vrot.lane.b32.xlu1 %v5364_v8, %s11993_s29  ;;  %v15433_v31 = vld [vmem:[#allocation15_spill] sm:$0xff] }
 0x410   : > { %6047 = vrot.lane.b32.xlu0 %v13937_v46, %s11993_s29  ;;  %7462 = vmatmul.mubr.f32.gmra.mrb[28].mxu1 %v6443_v39  ;;  %v4301_v39 = vld [vmem:[#allocation3 + $0x51] sm:$0xff] }
 0x411   : > { %v5497_v23 = vpop.permute.xlu1 %5496  ;;  %v5992_v63 = vpop.permute.xlu0 %5991  ;;  %v6473_v26 = vld [vmem:[#allocation4 + $0x510] sm:$0xff] }
 0x412   : > { %5651 = vst.msk [vmem:[#allocation4 + $0x560] sm:$0xff] %vm4606_vm5, %v5497_v23  ;;  %v6449_v7 = vld [vmem:[#allocation4 + $0x450] sm:$0xff] }
 0x413   : > { %6151 = vst.msk [vmem:[#allocation4 + $0x4a0] sm:$0x1f] %vm4609_vm6, %v5992_v63  ;;  %7466 = vmatprep.mubr.f32.mxu1 %v6449_v7  ;;  %4417 = vrot.lane.b32.xlu1 %v4291_v59, %s11993_s29  ;;  %v4803_v63 = vld [vmem:[#allocation3 + $0x40] sm:$0x1f] }
 0x414   : > { %6049 = vrot.lane.b32.xlu0 %v13946_v54, %s11993_s29  ;;  %7467 = vmatmul.mubr.f32.gmra.mrb[30].mxu1 %v6448_v60 }
 0x415   : > { %v5499_v12 = vpop.permute.xlu1 %5498  ;;  %v6454_v21 = vld [vmem:[#allocation4 + $0x478] sm:$0xff] }
 0x416   : > { %5652 = vst.msk [vmem:[#allocation4 + $0x588] sm:$0x1f] %vm4609_vm6, %v5499_v12  ;;  %v5994_v46 = vpop.permute.xlu0 %5993  ;;  %7471 = vmatprep.mubr.f32.mxu1 %v6454_v21  ;;  %v6478_v6 = vld [vmem:[#allocation4 + $0x538] sm:$0xff]  ;;  %v4302_v12 = vld [vmem:[#allocation3 + $0x59] sm:$0x1f] }
 0x417   : > { %6152 = vst.msk [vmem:[#allocation4 + $0x4c8] sm:$0xff] %vm4606_vm5, %v5994_v46  ;;  %4419 = vrot.lane.b32.xlu1 %v4292_v13, %s11993_s29  ;;  %v15434_v21 = vld [vmem:[#allocation16_spill] sm:$0xff] }
 0x418   : > { %6051 = vrot.lane.b32.xlu0 %v5866_v19, %s11993_s29  ;;  %7472 = vmatmul.mubr.f32.gmra.mrb[32].mxu1 %v6453_v61 }
 0x419   : > { %v5501_v35 = vpop.permute.xlu1 %5500  ;;  %v6483_v29 = vld [vmem:[#allocation4 + $0x560] sm:$0xff] }
 0x41a   : > { %5653 = vst.msk [vmem:[#allocation4 + $0x5b0] sm:$0xff] %vm4606_vm5, %v5501_v35  ;;  %v5996_v54 = vpop.permute.xlu0 %5995  ;;  %v6459_v55 = vld [vmem:[#allocation4 + $0x4a0] sm:$0xff] }
 0x41b   : > { %6153 = vst.msk [vmem:[#allocation4 + $0x4f0] sm:$0xff] %vm4606_vm5, %v5996_v54  ;;  %7476 = vmatprep.mubr.f32.mxu1 %v6459_v55  ;;  %4421 = vrot.lane.b32.xlu1 %v4293_v56, %s11993_s29  ;;  %v15435_v54 = vld [vmem:[#allocation17_spill] sm:$0xff] }
 0x41c   : > { %7477 = vmatmul.mubr.f32.gmra.mrb[34].mxu1 %v6458_v1  ;;  %6053 = vrot.lane.b32.xlu0 %v5867_v5, %s11993_s29 }
 0x41d   : > { %v5503_v49 = vpop.permute.xlu1 %5502  ;;  %v6488_v38 = vld [vmem:[#allocation4 + $0x588] sm:$0xff] }
 0x41e   : > { %5654 = vst.msk [vmem:[#allocation4 + $0x5d8] sm:$0xff] %vm4606_vm5, %v5503_v49  ;;  %v5998_v62 = vpop.permute.xlu0 %5997  ;;  %v6464_v16 = vld [vmem:[#allocation4 + $0x4c8] sm:$0xff]  ;;  %v4806_v49 = vld [vmem:[#allocation3 + $0x58] sm:$0x1f] }
 0x41f   : > { %6154 = vst.msk [vmem:[#allocation4 + $0x518] sm:$0x1f] %vm4609_vm6, %v5998_v62  ;;  %7481 = vmatprep.mubr.f32.mxu1 %v6464_v16  ;;  %4423 = vrot.lane.b32.xlu1 %v4294_v3, %s11993_s29 }
 0x420   : > { %7482 = vmatmul.mubr.f32.gmra.mrb[36].mxu1 %v6463_v14  ;;  %6055 = vrot.lane.b32.xlu0 %v5868_v0, %s11993_s29  ;;  %v4807_v0 = vld [vmem:[#allocation3 + $0x60] sm:$0xff] }
 0x421   : > { %v5505_v4 = vpop.permute.xlu1 %5504  ;;  %v6493_v22 = vld [vmem:[#allocation4 + $0x5b0] sm:$0xff] }
 0x422   : > { %5655 = vst.msk [vmem:[#allocation4 + $0x600] sm:$0x1f] %vm4609_vm6, %v5505_v4  ;;  %v6000_v41 = vpop.permute.xlu0 %5999  ;;  %v6469_v50 = vld [vmem:[#allocation4 + $0x4f0] sm:$0xff] }
 0x423   : > { %6155 = vst.msk [vmem:[#allocation4 + $0x540] sm:$0xff] %vm4606_vm5, %v6000_v41  ;;  %7486 = vmatprep.mubr.f32.mxu1 %v6469_v50  ;;  %4425 = vrot.lane.b32.xlu1 %v4295_v51, %s11993_s29 }
 0x424   : > { %7487 = vmatmul.mubr.f32.gmra.mrb[38].mxu1 %v6468_v24  ;;  %6057 = vrot.lane.b32.xlu0 %v5869_v34, %s11993_s29  ;;  %v4808_v24 = vld [vmem:[#allocation3 + $0x68] sm:$0xff] }
 0x425   : > { %v5507_v42 = vpop.permute.xlu1 %5506  ;;  %v6498_v23 = vld [vmem:[#allocation4 + $0x5d8] sm:$0xff] }
 0x426   : > { %5656 = vst.msk [vmem:[#allocation4 + $0x628] sm:$0xff] %vm4606_vm5, %v5507_v42  ;;  %v6002_v36 = vpop.permute.xlu0 %6001  ;;  %v6474_v44 = vld [vmem:[#allocation4 + $0x518] sm:$0xff] }
 0x427   : > { %6156 = vst.msk [vmem:[#allocation4 + $0x568] sm:$0xff] %vm4606_vm5, %v6002_v36  ;;  %7491 = vmatprep.mubr.f32.mxu1 %v6474_v44  ;;  %4427 = vrot.lane.b32.xlu1 %v4296_v30, %s11993_s29  ;;  %v4809_v30 = vld [vmem:[#allocation3 + $0x70] sm:$0x1f] }
 0x428   : > { %7492 = vmatmul.mubr.f32.gmra.mrb[40].mxu1 %v6473_v26  ;;  %4924 = vrot.lane.b32.xlu0 %v15430_v52, %s11993_s29 }
 0x429   : > { %v5509_v48 = vpop.permute.xlu1 %5508  ;;  %v6503_v46 = vld [vmem:[#allocation4 + $0x600] sm:$0xff] }
 0x42a   : > { %5657 = vst.msk [vmem:[#allocation4 + $0x650] sm:$0xff] %vm4606_vm5, %v5509_v48  ;;  %v6004_v53 = vpop.permute.xlu0 %6003  ;;  %v6479_v9 = vld [vmem:[#allocation4 + $0x540] sm:$0xff] }
 0x42b   : > { %6157 = vst.msk [vmem:[#allocation4 + $0x590] sm:$0x1f] %vm4609_vm6, %v6004_v53  ;;  %7496 = vmatprep.mubr.f32.mxu1 %v6479_v9  ;;  %4429 = vrot.lane.b32.xlu1 %v4297_v15, %s11993_s29 }
 0x42c   : > { %7497 = vmatmul.mubr.f32.gmra.mrb[42].mxu1 %v6478_v6  ;;  %4926 = vrot.lane.b32.xlu0 %v15431_v17, %s11993_s29 }
 0x42d   : > { %v5511_v20 = vpop.permute.xlu1 %5510  ;;  %v6508_v35 = vld [vmem:[#allocation4 + $0x628] sm:$0xff] }
 0x42e   : > { %5658 = vst.msk [vmem:[#allocation4 + $0x678] sm:$0x1f] %vm4609_vm6, %v5511_v20  ;;  %v6006_v27 = vpop.permute.xlu0 %6005  ;;  %v6484_v11 = vld [vmem:[#allocation4 + $0x568] sm:$0xff] }
 0x42f   : > { %6158 = vst.msk [vmem:[#allocation4 + $0x5b8] sm:$0xff] %vm4606_vm5, %v6006_v27  ;;  %7501 = vmatprep.mubr.f32.mxu1 %v6484_v11  ;;  %4431 = vrot.lane.b32.xlu1 %v4298_v33, %s11993_s29 }
 0x430   : > { %7502 = vmatmul.mubr.f32.gmra.mrb[44].mxu1 %v6483_v29  ;;  %4928 = vrot.lane.b32.xlu0 %v4800_v18, %s11993_s29 }
 0x431   : > { %v5513_v40 = vpop.permute.xlu1 %5512  ;;  %v6513_v5 = vld [vmem:[#allocation4 + $0x650] sm:$0xff] }
 0x432   : > { %5659 = vst.msk [vmem:[#allocation4 + $0x6a0] sm:$0xff] %vm4606_vm5, %v5513_v40  ;;  %v6008_v57 = vpop.permute.xlu0 %6007  ;;  %v6489_v32 = vld [vmem:[#allocation4 + $0x590] sm:$0xff] }
 0x433   : > { %6159 = vst.msk [vmem:[#allocation4 + $0x5e0] sm:$0xff] %vm4606_vm5, %v6008_v57  ;;  %7506 = vmatprep.mubr.f32.mxu1 %v6489_v32  ;;  %4433 = vrot.lane.b32.xlu1 %v4299_v2, %s11993_s29 }
 0x434   : > { %7507 = vmatmul.mubr.f32.gmra.mrb[46].mxu1 %v6488_v38  ;;  %4930 = vrot.lane.b32.xlu0 %v15432_v28, %s11993_s29 }
 0x435   : > { %v5515_v58 = vpop.permute.xlu1 %5514  ;;  %v6518_v14 = vld [vmem:[#allocation4 + $0x678] sm:$0xff] }
 0x436   : > { %5660 = vst.msk [vmem:[#allocation4 + $0x6c8] sm:$0xff] %vm4606_vm5, %v5515_v58  ;;  %v6010_v47 = vpop.permute.xlu0 %6009  ;;  %v6494_v37 = vld [vmem:[#allocation4 + $0x5b8] sm:$0xff] }
 0x437   : > { %6160 = vst.msk [vmem:[#allocation4 + $0x608] sm:$0x1f] %vm4609_vm6, %v6010_v47  ;;  %7511 = vmatprep.mubr.f32.mxu1 %v6494_v37  ;;  %4435 = vrot.lane.b32.xlu1 %v4300_v25, %s11993_s29 }
 0x438   : > { %7512 = vmatmul.mubr.f32.gmra.mrb[48].mxu1 %v6493_v22  ;;  %4932 = vrot.lane.b32.xlu0 %v15433_v31, %s11993_s29 }
 0x439   : > { %v5517_v45 = vpop.permute.xlu1 %5516  ;;  %v6523_v51 = vld [vmem:[#allocation4 + $0x6a0] sm:$0xff] }
 0x43a   : > { %5661 = vst.msk [vmem:[#allocation4 + $0x6f0] sm:$0x1f] %vm4609_vm6, %v5517_v45  ;;  %v6012_v43 = vpop.permute.xlu0 %6011  ;;  %v6499_v8 = vld [vmem:[#allocation4 + $0x5e0] sm:$0xff] }
 0x43b   : > { %6161 = vst.msk [vmem:[#allocation4 + $0x630] sm:$0xff] %vm4606_vm5, %v6012_v43  ;;  %7516 = vmatprep.mubr.f32.mxu1 %v6499_v8  ;;  %4437 = vrot.lane.b32.xlu1 %v4301_v39, %s11993_s29 }
 0x43c   : > { %7517 = vmatmul.mubr.f32.gmra.mrb[50].mxu1 %v6498_v23  ;;  %4934 = vrot.lane.b32.xlu0 %v4803_v63, %s11993_s29 }
 0x43d   : > { %v5519_v7 = vpop.permute.xlu1 %5518  ;;  %v6528_v44 = vld [vmem:[#allocation4 + $0x6c8] sm:$0xff] }
 0x43e   : > { %5662 = vst.msk [vmem:[#allocation4 + $0x718] sm:$0xff] %vm4606_vm5, %v5519_v7  ;;  %v6014_v59 = vpop.permute.xlu0 %6013  ;;  %v6504_v60 = vld [vmem:[#allocation4 + $0x608] sm:$0xff] }
 0x43f   : > { %6162 = vst.msk [vmem:[#allocation4 + $0x658] sm:$0xff] %vm4606_vm5, %v6014_v59  ;;  %7521 = vmatprep.mubr.f32.mxu1 %v6504_v60  ;;  %4439 = vrot.lane.b32.xlu1 %v4302_v12, %s11993_s29 }
 0x440   : > { %7522 = vmatmul.mubr.f32.gmra.mrb[52].mxu1 %v6503_v46  ;;  %4936 = vrot.lane.b32.xlu0 %v15434_v21, %s11993_s29 }
 0x441   : > { %v5521_v13 = vpop.permute.xlu1 %5520  ;;  %v6533_v53 = vld [vmem:[#allocation4 + $0x6f0] sm:$0xff] }
 0x442   : > { %5663 = vst.msk [vmem:[#allocation4 + $0x740] sm:$0xff] %vm4606_vm5, %v5521_v13  ;;  %v6016_v19 = vpop.permute.xlu0 %6015  ;;  %v6509_v61 = vld [vmem:[#allocation4 + $0x630] sm:$0xff] }
 0x443   : > { %6163 = vst.msk [vmem:[#allocation4 + $0x680] sm:$0x1f] %vm4609_vm6, %v6016_v19  ;;  %7526 = vmatprep.mubr.f32.mxu1 %v6509_v61 }
 0x444   : > { %7527 = vmatmul.mubr.f32.gmra.mrb[54].mxu1 %v6508_v35  ;;  %4938 = vrot.lane.b32.xlu0 %v15435_v54, %s11993_s29 }
 0x445   : > { %v5523_v55 = vpop.permute.xlu1 %5522  ;;  %v6538_v17 = vld [vmem:[#allocation4 + $0x718] sm:$0xff] }
 0x446   : > { %5664 = vst.msk [vmem:[#allocation4 + $0x768] sm:$0x1f] %vm4609_vm6, %v5523_v55  ;;  %v6018_v56 = vpop.permute.xlu0 %6017  ;;  %v6514_v1 = vld [vmem:[#allocation4 + $0x658] sm:$0xff] }
 0x447   : > { %6164 = vst.msk [vmem:[#allocation4 + $0x6a8] sm:$0xff] %vm4606_vm5, %v6018_v56  ;;  %7531 = vmatprep.mubr.f32.mxu1 %v6514_v1 }
 0x448   : > { %7532 = vmatmul.mubr.f32.gmra.mrb[56].mxu1 %v6513_v5  ;;  %4940 = vrot.lane.b32.xlu0 %v4806_v49, %s11993_s29 }
 0x449   : > { %v5525_v62 = vpop.permute.xlu1 %5524  ;;  %v6543_v33 = vld [vmem:[#allocation4 + $0x740] sm:$0xff] }
 0x44a   : > { %5665 = vst.msk [vmem:[#allocation4 + $0x790] sm:$0xff] %vm4606_vm5, %v5525_v62  ;;  %v6020_v16 = vpop.permute.xlu0 %6019  ;;  %v6519_v3 = vld [vmem:[#allocation4 + $0x680] sm:$0xff] }
 0x44b   : > { %6165 = vst.msk [vmem:[#allocation4 + $0x6d0] sm:$0xff] %vm4606_vm5, %v6020_v16  ;;  %7536 = vmatprep.mubr.f32.mxu1 %v6519_v3 }
 0x44c   : > { %7537 = vmatmul.mubr.f32.gmra.mrb[58].mxu1 %v6518_v14  ;;  %4942 = vrot.lane.b32.xlu0 %v4807_v0, %s11993_s29 }
 0x44d   : > { %v5527_v4 = vpop.permute.xlu1 %5526  ;;  %v6548_v57 = vld [vmem:[#allocation4 + $0x768] sm:$0xff] }
 0x44e   : > { %5666 = vst.msk [vmem:[#allocation4 + $0x7b8] sm:$0xff] %vm4606_vm5, %v5527_v4  ;;  %v6022_v41 = vpop.permute.xlu0 %6021  ;;  %v6524_v50 = vld [vmem:[#allocation4 + $0x6a8] sm:$0xff] }
 0x44f   : > { %6166 = vst.msk [vmem:[#allocation4 + $0x6f8] sm:$0x1f] %vm4609_vm6, %v6022_v41  ;;  %7541 = vmatprep.mubr.f32.mxu1 %v6524_v50 }
 0x450   : > { %7542 = vmatmul.mubr.f32.gmra.mrb[60].mxu1 %v6523_v51  ;;  %4944 = vrot.lane.b32.xlu0 %v4808_v24, %s11993_s29 }
 0x451   : > { %v5529_v34 = vpop.permute.xlu1 %5528  ;;  %v6553_v28 = vld [vmem:[#allocation4 + $0x790] sm:$0xff] }
 0x452   : > { %5667 = vst.msk [vmem:[#allocation4 + $0x7e0] sm:$0x1f] %vm4609_vm6, %v5529_v34  ;;  %v6024_v42 = vpop.permute.xlu0 %6023  ;;  %v6529_v36 = vld [vmem:[#allocation4 + $0x6d0] sm:$0xff] }
 0x453   : > { %6167 = vst.msk [vmem:[#allocation4 + $0x720] sm:$0xff] %vm4606_vm5, %v6024_v42  ;;  %7546 = vmatprep.mubr.f32.mxu1 %v6529_v36 }
 0x454   : > { %7547 = vmatmul.mubr.f32.gmra.mrb[62].mxu1 %v6528_v44  ;;  %4946 = vrot.lane.b32.xlu0 %v4809_v30, %s11993_s29 }
 0x455   : > { %v5531_v26 = vpop.permute.xlu1 %5530  ;;  %v6558_v25 = vld [vmem:[#allocation4 + $0x7b8] sm:$0xff] }
 0x456   : > { %5668 = vst.msk [vmem:[#allocation4 + $0x808] sm:$0xff] %vm4606_vm5, %v5531_v26  ;;  %v6026_v52 = vpop.permute.xlu0 %6025  ;;  %v6534_v48 = vld [vmem:[#allocation4 + $0x6f8] sm:$0xff] }
 0x457   : > { %6168 = vst.msk [vmem:[#allocation4 + $0x748] sm:$0xff] %vm4606_vm5, %v6026_v52  ;;  %7551 = vmatprep.mubr.f32.mxu1 %v6534_v48 }
 0x458   : > { %7552 = vmatmul.mubr.f32.gmra.mrb[64].mxu1 %v6533_v53 }
 0x459   : > { %v5533_v9 = vpop.permute.xlu1 %5532  ;;  %v6563_v43 = vld [vmem:[#allocation4 + $0x7e0] sm:$0xff] }
 0x45a   : > { %5669 = vst.msk [vmem:[#allocation4 + $0x830] sm:$0xff] %vm4606_vm5, %v5533_v9  ;;  %v6028_v15 = vpop.permute.xlu0 %6027  ;;  %v6539_v6 = vld [vmem:[#allocation4 + $0x720] sm:$0xff] }
 0x45b   : > { %6169 = vst.msk [vmem:[#allocation4 + $0x770] sm:$0x1f] %vm4609_vm6, %v6028_v15  ;;  %7556 = vmatprep.mubr.f32.mxu1 %v6539_v6 }
 0x45c   : > { %7557 = vmatmul.mubr.f32.gmra.mrb[66].mxu1 %v6538_v17 }
 0x45d   : > { %v5535_v20 = vpop.permute.xlu1 %5534  ;;  %v6568_v63 = vld [vmem:[#allocation4 + $0x808] sm:$0xff] }
 0x45e   : > { %5670 = vst.msk [vmem:[#allocation4 + $0x858] sm:$0x1f] %vm4609_vm6, %v5535_v20  ;;  %v6030_v27 = vpop.permute.xlu0 %6029  ;;  %v6544_v11 = vld [vmem:[#allocation4 + $0x748] sm:$0xff] }
 0x45f   : > { %6170 = vst.msk [vmem:[#allocation4 + $0x798] sm:$0xff] %vm4606_vm5, %v6030_v27  ;;  %7561 = vmatprep.mubr.f32.mxu1 %v6544_v11 }
 0x460   : > { %7562 = vmatmul.mubr.f32.gmra.mrb[68].mxu1 %v6543_v33 }
 0x461   : > { %v5537_v29 = vpop.permute.xlu1 %5536  ;;  %v6573_v12 = vld [vmem:[#allocation4 + $0x830] sm:$0xff] }
 0x462   : > { %5671 = vst.msk [vmem:[#allocation4 + $0x880] sm:$0xff] %vm4606_vm5, %v5537_v29  ;;  %v6032_v18 = vpop.permute.xlu0 %6031  ;;  %v6549_v40 = vld [vmem:[#allocation4 + $0x770] sm:$0xff] }
 0x463   : > { %6171 = vst.msk [vmem:[#allocation4 + $0x7c0] sm:$0xff] %vm4606_vm5, %v6032_v18  ;;  %7566 = vmatprep.mubr.f32.mxu1 %v6549_v40  ;;  %v11995_v40 = vmov 0.0  }
 0x464   : > { %7567 = vmatmul.mubr.f32.gmra.mrb[70].mxu1 %v6548_v57 }
 0x465   : > { %v5539_v32 = vpop.permute.xlu1 %5538  ;;  %v6578_v19 = vld [vmem:[#allocation4 + $0x858] sm:$0xff] }
 0x466   : > { %5672 = vst.msk [vmem:[#allocation4 + $0x8a8] sm:$0xff] %vm4606_vm5, %v5539_v32  ;;  %v6034_v2 = vpop.permute.xlu0 %6033  ;;  %v6554_v38 = vld [vmem:[#allocation4 + $0x798] sm:$0xff] }
 0x467   : > { %6172 = vst.msk [vmem:[#allocation4 + $0x7e8] sm:$0x1f] %vm4609_vm6, %v6034_v2  ;;  %7571 = vmatprep.mubr.f32.mxu1 %v6554_v38  ;;  %v6315_v38 = vld [vmem:[#allocation4 + $0x20] sm:$0xff] }
 0x468   : > { %7572 = vmatmul.mubr.f32.gmra.mrb[72].mxu1 %v6553_v28 }
 0x469   : > { %v5541_v58 = vpop.permute.xlu1 %5540  ;;  %v6583_v55 = vld [vmem:[#allocation4 + $0x880] sm:$0xff] }
 0x46a   : > { %5673 = vst.msk [vmem:[#allocation4 + $0x8d0] sm:$0x1f] %vm4609_vm6, %v5541_v58  ;;  %v6036_v47 = vpop.permute.xlu0 %6035  ;;  %v6559_v37 = vld [vmem:[#allocation4 + $0x7c0] sm:$0xff] }
 0x46b   : > { %6173 = vst.msk [vmem:[#allocation4 + $0x810] sm:$0xff] %vm4606_vm5, %v6036_v47  ;;  %7576 = vmatprep.mubr.f32.mxu1 %v6559_v37 }
 0x46c   : > { %7577 = vmatmul.mubr.f32.gmra.mrb[74].mxu1 %v6558_v25  ;;  %v6320_v25 = vld [vmem:[#allocation4 + $0x48] sm:$0xff] }
 0x46d   : > { %v5543_v22 = vpop.permute.xlu1 %5542  ;;  %v6588_v49 = vld [vmem:[#allocation4 + $0x8a8] sm:$0xff] }
 0x46e   : > { %5674 = vst.msk [vmem:[#allocation4 + $0x8f8] sm:$0xff] %vm4606_vm5, %v5543_v22  ;;  %v6038_v31 = vpop.permute.xlu0 %6037  ;;  %v6564_v45 = vld [vmem:[#allocation4 + $0x7e8] sm:$0xff] }
 0x46f   : > { %6174 = vst.msk [vmem:[#allocation4 + $0x838] sm:$0xff] %vm4606_vm5, %v6038_v31  ;;  %7581 = vmatprep.mubr.f32.mxu1 %v6564_v45 }
 0x470   : > { %7582 = vmatmul.mubr.f32.gmra.mrb[76].mxu1 %v6563_v43 }
 0x471   : > { %v5545_v8 = vpop.permute.xlu1 %5544  ;;  %v6593_v14 = vld [vmem:[#allocation4 + $0x8d0] sm:$0xff] }
 0x472   : > { %5675 = vst.msk [vmem:[#allocation4 + $0x920] sm:$0xff] %vm4606_vm5, %v5545_v8  ;;  %v6040_v39 = vpop.permute.xlu0 %6039  ;;  %v6569_v23 = vld [vmem:[#allocation4 + $0x810] sm:$0xff] }
 0x473   : > { %6175 = vst.msk [vmem:[#allocation4 + $0x860] sm:$0x1f] %vm4609_vm6, %v6040_v39  ;;  %7586 = vmatprep.mubr.f32.mxu1 %v6569_v23  ;;  %v6325_v8 = vld [vmem:[#allocation4 + $0x70] sm:$0xff] }
 0x474   : > { %7587 = vmatmul.mubr.f32.gmra.mrb[78].mxu1 %v6568_v63 }
 0x475   : > { %v5547_v7 = vpop.permute.xlu1 %5546  ;;  %v6598_v50 = vld [vmem:[#allocation4 + $0x8f8] sm:$0xff] }
 0x476   : > { %5676 = vst.msk [vmem:[#allocation4 + $0x948] sm:$0x1f] %vm4609_vm6, %v5547_v7  ;;  %v6042_v59 = vpop.permute.xlu0 %6041  ;;  %v6574_v60 = vld [vmem:[#allocation4 + $0x838] sm:$0xff] }
 0x477   : > { %6176 = vst.msk [vmem:[#allocation4 + $0x888] sm:$0xff] %vm4606_vm5, %v6042_v59  ;;  %7591 = vmatprep.mubr.f32.mxu1 %v6574_v60  ;;  %v6330_v59 = vld [vmem:[#allocation4 + $0x98] sm:$0xff] }
 0x478   : > { %7592 = vmatmul.mubr.f32.gmra.mrb[80].mxu1 %v6573_v12 }
 0x479   : > { %v5549_v46 = vpop.permute.xlu1 %5548  ;;  %v6603_v42 = vld [vmem:[#allocation4 + $0x920] sm:$0xff] }
 0x47a   : > { %5677 = vst.msk [vmem:[#allocation4 + $0x970] sm:$0xff] %vm4606_vm5, %v5549_v46  ;;  %v6044_v21 = vpop.permute.xlu0 %6043  ;;  %v6579_v13 = vld [vmem:[#allocation4 + $0x860] sm:$0xff] }
 0x47b   : > { %6177 = vst.msk [vmem:[#allocation4 + $0x8b0] sm:$0xff] %vm4606_vm5, %v6044_v21  ;;  %7596 = vmatprep.mubr.f32.mxu1 %v6579_v13  ;;  %v6335_v13 = vld [vmem:[#allocation4 + $0xc0] sm:$0xff] }
 0x47c   : > { %7597 = vmatmul.mubr.f32.gmra.mrb[82].mxu1 %v6578_v19 }
 0x47d   : > { %v5551_v61 = vpop.permute.xlu1 %5550  ;;  %v6608_v26 = vld [vmem:[#allocation4 + $0x948] sm:$0xff] }
 0x47e   : > { %5678 = vst.msk [vmem:[#allocation4 + $0x998] sm:$0xff] %vm4606_vm5, %v5551_v61  ;;  %v6046_v35 = vpop.permute.xlu0 %6045  ;;  %v6584_v54 = vld [vmem:[#allocation4 + $0x888] sm:$0xff] }
 0x47f   : > { %6178 = vst.msk [vmem:[#allocation4 + $0x8d8] sm:$0x1f] %vm4609_vm6, %v6046_v35  ;;  %7601 = vmatprep.mubr.f32.mxu1 %v6584_v54  ;;  %v6340_v54 = vld [vmem:[#allocation4 + $0xe8] sm:$0xff] }
 0x480   : > { %7602 = vmatmul.mubr.f32.gmra.mrb[84].mxu1 %v6583_v55 }
 0x481   : > { %v5553_v56 = vpop.permute.xlu1 %5552  ;;  %v6613_v9 = vld [vmem:[#allocation4 + $0x970] sm:$0xff] }
 0x482   : > { %5679 = vst.msk [vmem:[#allocation4 + $0x9c0] sm:$0x1f] %vm4609_vm6, %v5553_v56  ;;  %v6048_v1 = vpop.permute.xlu0 %6047  ;;  %v6589_v5 = vld [vmem:[#allocation4 + $0x8b0] sm:$0xff] }
 0x483   : > { %6179 = vst.msk [vmem:[#allocation4 + $0x900] sm:$0xff] %vm4606_vm5, %v6048_v1  ;;  %7606 = vmatprep.mubr.f32.mxu1 %v6589_v5  ;;  %v6345_v5 = vld [vmem:[#allocation4 + $0x110] sm:$0xff] }
 0x484   : > { %7607 = vmatmul.mubr.f32.gmra.mrb[86].mxu1 %v6588_v49 }
 0x485   : > { %v4418_v62 = vpop.permute.xlu1 %4417  ;;  %v6618_v20 = vld [vmem:[#allocation4 + $0x998] sm:$0xff] }
 0x486   : > { %4607 = vst.msk [vmem:[#allocation4] sm:$0xff] %vm4606_vm5, %v4418_v62  ;;  %v6050_v16 = vpop.permute.xlu0 %6049  ;;  %v6594_v3 = vld [vmem:[#allocation4 + $0x8d8] sm:$0xff] }
 0x487   : > { %6180 = vst.msk [vmem:[#allocation4 + $0x928] sm:$0xff] %vm4606_vm5, %v6050_v16  ;;  %7611 = vmatprep.mubr.f32.mxu1 %v6594_v3  ;;  %v6350_v3 = vld [vmem:[#allocation4 + $0x138] sm:$0xff] }
 0x488   : > { %7612 = vmatmul.mubr.f32.gmra.mrb[88].mxu1 %v6593_v14 }
 0x489   : > { %v4420_v0 = vpop.permute.xlu1 %4419  ;;  %v6623_v29 = vld [vmem:[#allocation4 + $0x9c0] sm:$0xff] }
 0x48a   : > { %4608 = vst.msk [vmem:[#allocation4 + $0x28] sm:$0xff] %vm4606_vm5, %v4420_v0  ;;  %v6052_v4 = vpop.permute.xlu0 %6051  ;;  %v6599_v41 = vld [vmem:[#allocation4 + $0x900] sm:$0xff] }
 0x48b   : > { %6181 = vst.msk [vmem:[#allocation4 + $0x950] sm:$0x1f] %vm4609_vm6, %v6052_v4  ;;  %7616 = vmatprep.mubr.f32.mxu1 %v6599_v41  ;;  %v6355_v41 = vld [vmem:[#allocation4 + $0x160] sm:$0xff] }
 0x48c   : > { %7617 = vmatmul.mubr.f32.gmra.mrb[90].mxu1 %v6598_v50 }
 0x48d   : > { %v4422_v51 = vpop.permute.xlu1 %4421  ;;  %v6311_v2 = vld [vmem:[#allocation4] sm:$0xff] }
 0x48e   : > { %4610 = vst.msk [vmem:[#allocation4 + $0x50] sm:$0x1f] %vm4609_vm6, %v4422_v51  ;;  %v6054_v24 = vpop.permute.xlu0 %6053  ;;  %v6604_v34 = vld [vmem:[#allocation4 + $0x928] sm:$0xff] }
 0x48f   : > { %6182 = vst.msk [vmem:[#allocation4 + $0x978] sm:$0xff] %vm4606_vm5, %v6054_v24  ;;  %7621 = vmatprep.mubr.f32.mxu1 %v6604_v34  ;;  %v6360_v34 = vld [vmem:[#allocation4 + $0x188] sm:$0xff] }
 0x490   : > { %7622 = vmatmul.mubr.f32.gmra.mrb[92].mxu1 %v6603_v42 }
 0x491   : > { %v4424_v36 = vpop.permute.xlu1 %4423  ;;  %v6316_v37 = vld [vmem:[#allocation4 + $0x28] sm:$0xff] }
 0x492   : > { %4611 = vst.msk [vmem:[#allocation4 + $0x78] sm:$0xff] %vm4606_vm5, %v4424_v36  ;;  %v6056_v44 = vpop.permute.xlu0 %6055  ;;  %v6609_v30 = vld [vmem:[#allocation4 + $0x950] sm:$0xff] }
 0x493   : > { %6183 = vst.msk [vmem:[#allocation4 + $0x9a0] sm:$0xff] %vm4606_vm5, %v6056_v44  ;;  %7626 = vmatprep.mubr.f32.mxu1 %v6609_v30  ;;  %v6365_v44 = vld [vmem:[#allocation4 + $0x1b0] sm:$0xff] }
 0x494   : > { %7627 = vmatmul.mubr.f32.gmra.mrb[94].mxu1 %v6608_v26 }
 0x495   : > { %v4426_v52 = vpop.permute.xlu1 %4425  ;;  %v6321_v43 = vld [vmem:[#allocation4 + $0x50] sm:$0xff] }
 0x496   : > { %4612 = vst.msk [vmem:[#allocation4 + $0xa0] sm:$0xff] %vm4606_vm5, %v4426_v52  ;;  %v6058_v48 = vpop.permute.xlu0 %6057  ;;  %v6614_v53 = vld [vmem:[#allocation4 + $0x978] sm:$0xff] }
 0x497   : > { %6184 = vst.msk [vmem:[#allocation4 + $0x9c8] sm:$0x1f] %vm4609_vm6, %v6058_v48  ;;  %7631 = vmatprep.mubr.f32.mxu1 %v6614_v53  ;;  %v6370_v52 = vld [vmem:[#allocation4 + $0x1d8] sm:$0xff]  ;;  %v6375_v48 = vld [vmem:[#allocation4 + $0x200] sm:$0xff]  ;;  %v6380_v53 = vld [vmem:[#allocation4 + $0x228] sm:$0xff] }
 0x498   : > { %7632 = vmatmul.mubr.f32.gmra.mrb[96].mxu1 %v6613_v9  ;;  %v6385_v9 = vld [vmem:[#allocation4 + $0x250] sm:$0xff] }
 0x499   : > { %v4428_v15 = vpop.permute.xlu1 %4427  ;;  %v6326_v7 = vld [vmem:[#allocation4 + $0x78] sm:$0xff] }
 0x49a   : > { %4613 = vst.msk [vmem:[#allocation4 + $0xc8] sm:$0x1f] %vm4609_vm6, %v4428_v15  ;;  %v4925_v6 = vpop.permute.xlu0 %4924  ;;  %v6619_v17 = vld [vmem:[#allocation4 + $0x9a0] sm:$0xff]  ;;  %v6390_v15 = vld [vmem:[#allocation4 + $0x278] sm:$0xff] }
 0x49b   : > { %5113 = vst.msk [vmem:[#allocation4 + $0x8] sm:$0xff] %vm4606_vm5, %v4925_v6  ;;  %7636 = vmatprep.mubr.f32.mxu1 %v6619_v17  ;;  %v6395_v6 = vld [vmem:[#allocation4 + $0x2a0] sm:$0xff]  ;;  %v6400_v17 = vld [vmem:[#allocation4 + $0x2c8] sm:$0xff] }
 0x49c   : > { %7637 = vmatmul.mubr.f32.gmra.mrb[98].mxu1 %v6618_v20  ;;  %v6405_v20 = vld [vmem:[#allocation4 + $0x2f0] sm:$0xff] }
 0x49d   : > { %v4430_v27 = vpop.permute.xlu1 %4429  ;;  %v6331_v21 = vld [vmem:[#allocation4 + $0xa0] sm:$0xff] }
 0x49e   : > { %4614 = vst.msk [vmem:[#allocation4 + $0xf0] sm:$0xff] %vm4606_vm5, %v4430_v27  ;;  %v4927_v11 = vpop.permute.xlu0 %4926  ;;  %v6624_v33 = vld [vmem:[#allocation4 + $0x9c8] sm:$0xff]  ;;  %v6410_v27 = vld [vmem:[#allocation4 + $0x318] sm:$0xff] }
 0x49f   : > { %5114 = vst.msk [vmem:[#allocation4 + $0x30] sm:$0xff] %vm4606_vm5, %v4927_v11  ;;  %7641 = vmatprep.mubr.f32.mxu1 %v6624_v33  ;;  %v6415_v11 = vld [vmem:[#allocation4 + $0x340] sm:$0xff]  ;;  %v6420_v33 = vld [vmem:[#allocation4 + $0x368] sm:$0xff] }
 0x4a0   : > { %7642 = vmatmul.mubr.f32.gmra.mrb[100].mxu1 %v6623_v29  ;;  %v6425_v29 = vld [vmem:[#allocation4 + $0x390] sm:$0xff] }
 0x4a1   : > { %v4432_v18 = vpop.permute.xlu1 %4431  ;;  %11157 = vmatprep.mubr.msk.f32.mxu1 %vm11994_vm7, %v11995_v40  ;;  %v6336_v35 = vld [vmem:[#allocation4 + $0xc8] sm:$0xff] }
 0x4a2   : > { %4615 = vst.msk [vmem:[#allocation4 + $0x118] sm:$0xff] %vm4606_vm5, %v4432_v18  ;;  %v4929_v57 = vpop.permute.xlu0 %4928  ;;  %v6312_v32 = vld [vmem:[#allocation4 + $0x8] sm:$0xff]  ;;  %v6430_v18 = vld [vmem:[#allocation4 + $0x3b8] sm:$0xff] }
 0x4a3   : > { %5115 = vst.msk [vmem:[#allocation4 + $0x58] sm:$0x1f] %vm4609_vm6, %v4929_v57  ;;  %6951 = vmatprep.mubr.f32.mxu0 %v6312_v32  ;;  %v6435_v57 = vld [vmem:[#allocation4 + $0x3e0] sm:$0xff]  ;;  %v6440_v32 = vld [vmem:[#allocation4 + $0x408] sm:$0xff] }
 0x4a4   : > { %6952 = vmatmul.mubr.f32.vlgmr.msra.gmra.mrb[20].mxu0 %v6311_v2  ;;  %11158 = vmatmul.mubr.msk.f32.vlgmr.msra.gmra.mrb[102].mxu1 %vm2983_vm2, %v6315_v38  ;;  %v6445_v2 = vld [vmem:[#allocation4 + $0x430] sm:$0xff]  ;;  %v6450_v38 = vld [vmem:[#allocation4 + $0x458] sm:$0xff] }
 0x4a5   : > { %v4434_v28 = vpop.permute.xlu1 %4433  ;;  %11160 = vmatprep.mubr.msk.f32.mxu1 %vm11994_vm7, %v11995_v40  ;;  %v6341_v1 = vld [vmem:[#allocation4 + $0xf0] sm:$0xff] }
 0x4a6   : > { %4616 = vst.msk [vmem:[#allocation4 + $0x140] sm:$0x1f] %vm4609_vm6, %v4434_v28  ;;  %v4931_v58 = vpop.permute.xlu0 %4930  ;;  %v6317_v47 = vld [vmem:[#allocation4 + $0x30] sm:$0xff]  ;;  %v6455_v28 = vld [vmem:[#allocation4 + $0x480] sm:$0xff] }
 0x4a7   : > { %5116 = vst.msk [vmem:[#allocation4 + $0x80] sm:$0xff] %vm4606_vm5, %v4931_v58  ;;  %6956 = vmatprep.mubr.f32.mxu0 %v6317_v47  ;;  %v6460_v58 = vld [vmem:[#allocation4 + $0x4a8] sm:$0xff]  ;;  %v6465_v47 = vld [vmem:[#allocation4 + $0x4d0] sm:$0xff] }
 0x4a8   : > { %6957 = vmatmul.mubr.f32.gmra.mrb[22].mxu0 %v6316_v37  ;;  %11161 = vmatmul.mubr.msk.f32.gmra.mrb[104].mxu1 %vm2983_vm2, %v6320_v25  ;;  %v6470_v37 = vld [vmem:[#allocation4 + $0x4f8] sm:$0xff]  ;;  %v6475_v25 = vld [vmem:[#allocation4 + $0x520] sm:$0xff] }
 0x4a9   : > { %v4436_v22 = vpop.permute.xlu1 %4435  ;;  %11163 = vmatprep.mubr.msk.f32.mxu1 %vm11994_vm7, %v11995_v40  ;;  %v6346_v16 = vld [vmem:[#allocation4 + $0x118] sm:$0xff] }
 0x4aa   : > { %4617 = vst.msk [vmem:[#allocation4 + $0x168] sm:$0xff] %vm4606_vm5, %v4436_v22  ;;  %v4933_v31 = vpop.permute.xlu0 %4932  ;;  %v6322_v45 = vld [vmem:[#allocation4 + $0x58] sm:$0xff]  ;;  %v6480_v22 = vld [vmem:[#allocation4 + $0x548] sm:$0xff] }
 0x4ab   : > { %5117 = vst.msk [vmem:[#allocation4 + $0xa8] sm:$0xff] %vm4606_vm5, %v4933_v31  ;;  %6961 = vmatprep.mubr.f32.mxu0 %v6322_v45  ;;  %v6485_v31 = vld [vmem:[#allocation4 + $0x570] sm:$0xff]  ;;  %v6490_v45 = vld [vmem:[#allocation4 + $0x598] sm:$0xff] }
 0x4ac   : > { %6962 = vmatmul.mubr.f32.gmra.mrb[24].mxu0 %v6321_v43  ;;  %11164 = vmatmul.mubr.msk.f32.gmra.mrb[106].mxu1 %vm2983_vm2, %v6325_v8  ;;  %v6495_v43 = vld [vmem:[#allocation4 + $0x5c0] sm:$0xff]  ;;  %v6500_v8 = vld [vmem:[#allocation4 + $0x5e8] sm:$0xff] }
 0x4ad   : > { %v4438_v39 = vpop.permute.xlu1 %4437  ;;  %11166 = vmatprep.mubr.msk.f32.mxu1 %vm11994_vm7, %v11995_v40  ;;  %v6351_v4 = vld [vmem:[#allocation4 + $0x140] sm:$0xff] }
 0x4ae   : > { %4618 = vst.msk [vmem:[#allocation4 + $0x190] sm:$0xff] %vm4606_vm5, %v4438_v39  ;;  %v4935_v23 = vpop.permute.xlu0 %4934  ;;  %v6327_v63 = vld [vmem:[#allocation4 + $0x80] sm:$0xff]  ;;  %v6505_v39 = vld [vmem:[#allocation4 + $0x610] sm:$0xff] }
 0x4af   : > { %5118 = vst.msk [vmem:[#allocation4 + $0xd0] sm:$0x1f] %vm4609_vm6, %v4935_v23  ;;  %6966 = vmatprep.mubr.f32.mxu0 %v6327_v63  ;;  %v6510_v23 = vld [vmem:[#allocation4 + $0x638] sm:$0xff]  ;;  %v6515_v63 = vld [vmem:[#allocation4 + $0x660] sm:$0xff] }
 0x4b0   : > { %6967 = vmatmul.mubr.f32.gmra.mrb[26].mxu0 %v6326_v7  ;;  %11167 = vmatmul.mubr.msk.f32.gmra.mrb[108].mxu1 %vm2983_vm2, %v6330_v59  ;;  %v6520_v7 = vld [vmem:[#allocation4 + $0x688] sm:$0xff]  ;;  %v6525_v59 = vld [vmem:[#allocation4 + $0x6b0] sm:$0xff] }
 0x4b1   : > { %v4440_v60 = vpop.permute.xlu1 %4439  ;;  %11169 = vmatprep.mubr.msk.f32.mxu1 %vm11994_vm7, %v11995_v40  ;;  %v6356_v24 = vld [vmem:[#allocation4 + $0x168] sm:$0xff] }
 0x4b2   : > { %4619 = vst.msk [vmem:[#allocation4 + $0x1b8] sm:$0x1f] %vm4609_vm6, %v4440_v60  ;;  %v4937_v12 = vpop.permute.xlu0 %4936  ;;  %v6332_v46 = vld [vmem:[#allocation4 + $0xa8] sm:$0xff]  ;;  %v6530_v60 = vld [vmem:[#allocation4 + $0x6d8] sm:$0xff] }
 0x4b3   : > { %5119 = vst.msk [vmem:[#allocation4 + $0xf8] sm:$0xff] %vm4606_vm5, %v4937_v12  ;;  %6971 = vmatprep.mubr.f32.mxu0 %v6332_v46  ;;  %v6535_v12 = vld [vmem:[#allocation4 + $0x700] sm:$0xff]  ;;  %v6540_v46 = vld [vmem:[#allocation4 + $0x728] sm:$0xff] }
 0x4b4   : > { %6972 = vmatmul.mubr.f32.gmra.mrb[28].mxu0 %v6331_v21  ;;  %11170 = vmatmul.mubr.msk.f32.gmra.mrb[110].mxu1 %vm2983_vm2, %v6335_v13  ;;  %v6545_v21 = vld [vmem:[#allocation4 + $0x750] sm:$0xff]  ;;  %v6550_v13 = vld [vmem:[#allocation4 + $0x778] sm:$0xff] }
 0x4b5   : > { %11172 = vmatprep.mubr.msk.f32.mxu1 %vm11994_vm7, %v11995_v40  ;;  %v6361_v36 = vld [vmem:[#allocation4 + $0x190] sm:$0xff] }
 0x4b6   : > { %v4939_v19 = vpop.permute.xlu0 %4938  ;;  %v6337_v61 = vld [vmem:[#allocation4 + $0xd0] sm:$0xff] }
 0x4b7   : > { %5120 = vst.msk [vmem:[#allocation4 + $0x120] sm:$0xff] %vm4606_vm5, %v4939_v19  ;;  %6976 = vmatprep.mubr.f32.mxu0 %v6337_v61  ;;  %v6555_v19 = vld [vmem:[#allocation4 + $0x7a0] sm:$0xff]  ;;  %v6560_v61 = vld [vmem:[#allocation4 + $0x7c8] sm:$0xff] }
 0x4b8   : > { %6977 = vmatmul.mubr.f32.gmra.mrb[30].mxu0 %v6336_v35  ;;  %11173 = vmatmul.mubr.msk.f32.gmra.mrb[112].mxu1 %vm2983_vm2, %v6340_v54  ;;  %v6565_v35 = vld [vmem:[#allocation4 + $0x7f0] sm:$0xff]  ;;  %v6570_v54 = vld [vmem:[#allocation4 + $0x818] sm:$0xff] }
 0x4b9   : > { %11175 = vmatprep.mubr.msk.f32.mxu1 %vm11994_vm7, %v11995_v40  ;;  %v6366_v26 = vld [vmem:[#allocation4 + $0x1b8] sm:$0xff] }
 0x4ba   : > { %v4941_v55 = vpop.permute.xlu0 %4940  ;;  %v6342_v56 = vld [vmem:[#allocation4 + $0xf8] sm:$0xff] }
 0x4bb   : > { %5121 = vst.msk [vmem:[#allocation4 + $0x148] sm:$0x1f] %vm4609_vm6, %v4941_v55  ;;  %6981 = vmatprep.mubr.f32.mxu0 %v6342_v56  ;;  %v6575_v55 = vld [vmem:[#allocation4 + $0x840] sm:$0xff] }
 0x4bc   : > { %6982 = vmatmul.mubr.f32.gmra.mrb[32].mxu0 %v6341_v1  ;;  %11176 = vmatmul.mubr.msk.f32.gmra.mrb[114].mxu1 %vm2983_vm2, %v6345_v5  ;;  %v6580_v5 = vld [vmem:[#allocation4 + $0x868] sm:$0xff] }
 0x4bd   : > { %11178 = vmatprep.mubr.msk.f32.mxu1 %vm11994_vm7, %v11995_v40 }
 0x4be   : > { %v4943_v49 = vpop.permute.xlu0 %4942  ;;  %v6347_v62 = vld [vmem:[#allocation4 + $0x120] sm:$0xff] }
 0x4bf   : > { %5122 = vst.msk [vmem:[#allocation4 + $0x170] sm:$0xff] %vm4606_vm5, %v4943_v49  ;;  %6986 = vmatprep.mubr.f32.mxu0 %v6347_v62 }
 0x4c0   : > { %6987 = vmatmul.mubr.f32.gmra.mrb[34].mxu0 %v6346_v16  ;;  %11179 = vmatmul.mubr.msk.f32.gmra.mrb[116].mxu1 %vm2983_vm2, %v6350_v3 }
 0x4c1   : > { %11181 = vmatprep.mubr.msk.f32.mxu1 %vm11994_vm7, %v11995_v40 }
 0x4c2   : > { %v4945_v14 = vpop.permute.xlu0 %4944  ;;  %v6352_v0 = vld [vmem:[#allocation4 + $0x148] sm:$0xff] }
 0x4c3   : > { %5123 = vst.msk [vmem:[#allocation4 + $0x198] sm:$0xff] %vm4606_vm5, %v4945_v14  ;;  %6991 = vmatprep.mubr.f32.mxu0 %v6352_v0  ;;  %v6585_v0 = vld [vmem:[#allocation4 + $0x890] sm:$0xff] }
 0x4c4   : > { %6992 = vmatmul.mubr.f32.gmra.mrb[36].mxu0 %v6351_v4  ;;  %11182 = vmatmul.mubr.msk.f32.gmra.mrb[118].mxu1 %vm2983_vm2, %v6355_v41 }
 0x4c5   : > { %11184 = vmatprep.mubr.msk.f32.mxu1 %vm11994_vm7, %v11995_v40 }
 0x4c6   : > { %v4947_v50 = vpop.permute.xlu0 %4946  ;;  %v6357_v51 = vld [vmem:[#allocation4 + $0x170] sm:$0xff] }
 0x4c7   : > { %5124 = vst.msk [vmem:[#allocation4 + $0x1c0] sm:$0x1f] %vm4609_vm6, %v4947_v50  ;;  %6996 = vmatprep.mubr.f32.mxu0 %v6357_v51 }
 0x4c8   : > { %6997 = vmatmul.mubr.f32.gmra.mrb[38].mxu0 %v6356_v24  ;;  %11185 = vmatmul.mubr.msk.f32.gmra.mrb[120].mxu1 %vm2983_vm2, %v6360_v34  ;;  %v6590_v34 = vld [vmem:[#allocation4 + $0x8b8] sm:$0xff] }
 0x4c9   : > { %11187 = vmatprep.mubr.msk.f32.mxu1 %vm11994_vm7, %v11995_v40 }
 0x4ca   : > { %v6362_v42 = vld [vmem:[#allocation4 + $0x198] sm:$0xff] }
 0x4cb   : > { %7001 = vmatprep.mubr.f32.mxu0 %v6362_v42 }
 0x4cc   : > { %7002 = vmatmul.mubr.f32.gmra.mrb[40].mxu0 %v6361_v36  ;;  %11188 = vmatmul.mubr.msk.f32.gmra.mrb[122].mxu1 %vm2983_vm2, %v6365_v44 }
 0x4cd   : > { %11190 = vmatprep.mubr.msk.f32.mxu1 %vm11994_vm7, %v11995_v40 }
 0x4ce   : > { %v6367_v30 = vld [vmem:[#allocation4 + $0x1c0] sm:$0xff] }
 0x4cf   : > { %7006 = vmatprep.mubr.f32.mxu0 %v6367_v30 }
 0x4d0   : > { %7007 = vmatmul.mubr.f32.gmra.mrb[42].mxu0 %v6366_v26  ;;  %11191 = vmatmul.mubr.msk.f32.gmra.mrb[124].mxu1 %vm2983_vm2, %v6370_v52  ;;  %v6595_v52 = vld [vmem:[#allocation4 + $0x8e0] sm:$0xff] }
 0x4d1   : > { %11193 = vmatprep.mubr.msk.f32.mxu1 %vm11994_vm7, %v11995_v40 }
 0x4d4   : > { %11194 = vmatmul.mubr.msk.f32.gmra.mrb[0].mxu1 %vm2983_vm2, %v6375_v48 }
 0x4d5   : > { %11196 = vmatprep.mubr.msk.f32.mxu1 %vm11994_vm7, %v11995_v40 }
 0x4d8   : > { %11197 = vmatmul.mubr.msk.f32.gmra.mrb[2].mxu1 %vm2983_vm2, %v6380_v53 }
 0x4d9   : > { %11199 = vmatprep.mubr.msk.f32.mxu1 %vm11994_vm7, %v11995_v40 }
 0x4dc   : > { %11200 = vmatmul.mubr.msk.f32.gmra.mrb[4].mxu1 %vm2983_vm2, %v6385_v9 }
 0x4dd   : > { %11202 = vmatprep.mubr.msk.f32.mxu1 %vm11994_vm7, %v11995_v40 }
 0x4e0   : > { %11203 = vmatmul.mubr.msk.f32.gmra.mrb[6].mxu1 %vm2983_vm2, %v6390_v15 }
 0x4e1   : > { %11205 = vmatprep.mubr.msk.f32.mxu1 %vm11994_vm7, %v11995_v40 }
 0x4e4   : > { %11206 = vmatmul.mubr.msk.f32.gmra.mrb[8].mxu1 %vm2983_vm2, %v6395_v6 }
 0x4e5   : > { %11208 = vmatprep.mubr.msk.f32.mxu1 %vm11994_vm7, %v11995_v40 }
 0x4e8   : > { %11209 = vmatmul.mubr.msk.f32.gmra.mrb[10].mxu1 %vm2983_vm2, %v6400_v17  ;;  %v6600_v17 = vld [vmem:[#allocation4 + $0x908] sm:$0xff] }
 0x4e9   : > { %11211 = vmatprep.mubr.msk.f32.mxu1 %vm11994_vm7, %v11995_v40 }
 0x4ec   : > { %11212 = vmatmul.mubr.msk.f32.gmra.mrb[12].mxu1 %vm2983_vm2, %v6405_v20 }
 0x4ed   : > { %11214 = vmatprep.mubr.msk.f32.mxu1 %vm11994_vm7, %v11995_v40 }
 0x4f0   : > { %11215 = vmatmul.mubr.msk.f32.gmra.mrb[14].mxu1 %vm2983_vm2, %v6410_v27 }
 0x4f1   : > { %11217 = vmatprep.mubr.msk.f32.mxu1 %vm11994_vm7, %v11995_v40 }
 0x4f4   : > { %11218 = vmatmul.mubr.msk.f32.gmra.mrb[16].mxu1 %vm2983_vm2, %v6415_v11 }
 0x4f5   : > { %11220 = vmatprep.mubr.msk.f32.mxu1 %vm11994_vm7, %v11995_v40 }
 0x4f8   : > { %11221 = vmatmul.mubr.msk.f32.gmra.mrb[18].mxu1 %vm2983_vm2, %v6420_v33 }
 0x4f9   : > { %11223 = vmatprep.mubr.msk.f32.mxu1 %vm11994_vm7, %v11995_v40 }
 0x4fc   : > { %11224 = vmatmul.mubr.msk.f32.gmra.mrb[20].mxu1 %vm2983_vm2, %v6425_v29 }
 0x4fd   : > { %11226 = vmatprep.mubr.msk.f32.mxu1 %vm11994_vm7, %v11995_v40 }
 0x500   : > { %11227 = vmatmul.mubr.msk.f32.gmra.mrb[22].mxu1 %vm2983_vm2, %v6430_v18  ;;  %v6605_v18 = vld [vmem:[#allocation4 + $0x930] sm:$0xff] }
 0x501   : > { %11229 = vmatprep.mubr.msk.f32.mxu1 %vm11994_vm7, %v11995_v40 }
 0x504   : > { %11230 = vmatmul.mubr.msk.f32.gmra.mrb[24].mxu1 %vm2983_vm2, %v6435_v57 }
 0x505   : > { %11232 = vmatprep.mubr.msk.f32.mxu1 %vm11994_vm7, %v11995_v40 }
 0x508   : > { %11233 = vmatmul.mubr.msk.f32.gmra.mrb[26].mxu1 %vm2983_vm2, %v6440_v32 }
 0x509   : > { %11235 = vmatprep.mubr.msk.f32.mxu1 %vm11994_vm7, %v11995_v40 }
 0x50c   : > { %11236 = vmatmul.mubr.msk.f32.gmra.mrb[28].mxu1 %vm2983_vm2, %v6445_v2 }
 0x50d   : > { %11238 = vmatprep.mubr.msk.f32.mxu1 %vm11994_vm7, %v11995_v40 }
 0x510   : > { %11239 = vmatmul.mubr.msk.f32.gmra.mrb[30].mxu1 %vm2983_vm2, %v6450_v38  ;;  %v6610_v38 = vld [vmem:[#allocation4 + $0x958] sm:$0xff] }
 0x511   : > { %11241 = vmatprep.mubr.msk.f32.mxu1 %vm11994_vm7, %v11995_v40 }
 0x514   : > { %11242 = vmatmul.mubr.msk.f32.gmra.mrb[32].mxu1 %vm2983_vm2, %v6455_v28 }
 0x515   : > { %11244 = vmatprep.mubr.msk.f32.mxu1 %vm11994_vm7, %v11995_v40 }
 0x518   : > { %11245 = vmatmul.mubr.msk.f32.gmra.mrb[34].mxu1 %vm2983_vm2, %v6460_v58 }
 0x519   : > { %11247 = vmatprep.mubr.msk.f32.mxu1 %vm11994_vm7, %v11995_v40 }
 0x51c   : > { %11248 = vmatmul.mubr.msk.f32.gmra.mrb[36].mxu1 %vm2983_vm2, %v6465_v47 }
 0x51d   : > { %11250 = vmatprep.mubr.msk.f32.mxu1 %vm11994_vm7, %v11995_v40 }
 0x520   : > { %11251 = vmatmul.mubr.msk.f32.gmra.mrb[38].mxu1 %vm2983_vm2, %v6470_v37 }
 0x521   : > { %11253 = vmatprep.mubr.msk.f32.mxu1 %vm11994_vm7, %v11995_v40 }
 0x524   : > { %11254 = vmatmul.mubr.msk.f32.gmra.mrb[40].mxu1 %vm2983_vm2, %v6475_v25 }
 0x525   : > { %11256 = vmatprep.mubr.msk.f32.mxu1 %vm11994_vm7, %v11995_v40 }
 0x528   : > { %11257 = vmatmul.mubr.msk.f32.gmra.mrb[42].mxu1 %vm2983_vm2, %v6480_v22 }
 0x529   : > { %11259 = vmatprep.mubr.msk.f32.mxu1 %vm11994_vm7, %v11995_v40 }
 0x52c   : > { %11260 = vmatmul.mubr.msk.f32.gmra.mrb[44].mxu1 %vm2983_vm2, %v6485_v31 }
 0x52d   : > { %11262 = vmatprep.mubr.msk.f32.mxu1 %vm11994_vm7, %v11995_v40 }
 0x530   : > { %11263 = vmatmul.mubr.msk.f32.gmra.mrb[46].mxu1 %vm2983_vm2, %v6490_v45 }
 0x531   : > { %11265 = vmatprep.mubr.msk.f32.mxu1 %vm11994_vm7, %v11995_v40 }
 0x534   : > { %11266 = vmatmul.mubr.msk.f32.gmra.mrb[48].mxu1 %vm2983_vm2, %v6495_v43 }
 0x535   : > { %11268 = vmatprep.mubr.msk.f32.mxu1 %vm11994_vm7, %v11995_v40 }
 0x538   : > { %11269 = vmatmul.mubr.msk.f32.gmra.mrb[50].mxu1 %vm2983_vm2, %v6500_v8 }
 0x539   : > { %11271 = vmatprep.mubr.msk.f32.mxu1 %vm11994_vm7, %v11995_v40 }
 0x53c   : > { %11272 = vmatmul.mubr.msk.f32.gmra.mrb[52].mxu1 %vm2983_vm2, %v6505_v39 }
 0x53d   : > { %11274 = vmatprep.mubr.msk.f32.mxu1 %vm11994_vm7, %v11995_v40 }
 0x540   : > { %11275 = vmatmul.mubr.msk.f32.gmra.mrb[54].mxu1 %vm2983_vm2, %v6510_v23 }
 0x541   : > { %11277 = vmatprep.mubr.msk.f32.mxu1 %vm11994_vm7, %v11995_v40 }
 0x544   : > { %11278 = vmatmul.mubr.msk.f32.gmra.mrb[56].mxu1 %vm2983_vm2, %v6515_v63  ;;  %v14574_v63 = vld [vmem:[%s15401_s5] ss:$0 sm:$0xff] }
 0x545   : > { %11280 = vmatprep.mubr.msk.f32.mxu1 %vm11994_vm7, %v11995_v40 }
 0x548   : > { %11281 = vmatmul.mubr.msk.f32.gmra.mrb[58].mxu1 %vm2983_vm2, %v6520_v7 }
 0x549   : > { %11283 = vmatprep.mubr.msk.f32.mxu1 %vm11994_vm7, %v11995_v40 }
 0x54c   : > { %11284 = vmatmul.mubr.msk.f32.gmra.mrb[60].mxu1 %vm2983_vm2, %v6525_v59 }
 0x54d   : > { %11286 = vmatprep.mubr.msk.f32.mxu1 %vm11994_vm7, %v11995_v40 }
 0x550   : > { %11287 = vmatmul.mubr.msk.f32.gmra.mrb[62].mxu1 %vm2983_vm2, %v6530_v60 }
 0x551   : > { %11289 = vmatprep.mubr.msk.f32.mxu1 %vm11994_vm7, %v11995_v40 }
 0x554   : > { %11290 = vmatmul.mubr.msk.f32.gmra.mrb[64].mxu1 %vm2983_vm2, %v6535_v12  ;;  %v6615_v12 = vld [vmem:[#allocation4 + $0x980] sm:$0xff] }
 0x555   : > { %11292 = vmatprep.mubr.msk.f32.mxu1 %vm11994_vm7, %v11995_v40 }
 0x558   : > { %11293 = vmatmul.mubr.msk.f32.gmra.mrb[66].mxu1 %vm2983_vm2, %v6540_v46 }
 0x559   : > { %11295 = vmatprep.mubr.msk.f32.mxu1 %vm11994_vm7, %v11995_v40 }
 0x55c   : > { %11296 = vmatmul.mubr.msk.f32.gmra.mrb[68].mxu1 %vm2983_vm2, %v6545_v21 }
 0x55d   : > { %11298 = vmatprep.mubr.msk.f32.mxu1 %vm11994_vm7, %v11995_v40 }
 0x560   : > { %11299 = vmatmul.mubr.msk.f32.gmra.mrb[70].mxu1 %vm2983_vm2, %v6550_v13 }
 0x561   : > { %11301 = vmatprep.mubr.msk.f32.mxu1 %vm11994_vm7, %v11995_v40 }
 0x564   : > { %11302 = vmatmul.mubr.msk.f32.gmra.mrb[72].mxu1 %vm2983_vm2, %v6555_v19 }
 0x565   : > { %11304 = vmatprep.mubr.msk.f32.mxu1 %vm11994_vm7, %v11995_v40 }
 0x568   : > { %11305 = vmatmul.mubr.msk.f32.gmra.mrb[74].mxu1 %vm2983_vm2, %v6560_v61 }
 0x569   : > { %11307 = vmatprep.mubr.msk.f32.mxu1 %vm11994_vm7, %v11995_v40 }
 0x56c   : > { %11308 = vmatmul.mubr.msk.f32.gmra.mrb[76].mxu1 %vm2983_vm2, %v6565_v35 }
 0x56d   : > { %11310 = vmatprep.mubr.msk.f32.mxu1 %vm11994_vm7, %v11995_v40 }
 0x570   : > { %11311 = vmatmul.mubr.msk.f32.gmra.mrb[78].mxu1 %vm2983_vm2, %v6570_v54 }
 0x571   : > { %11313 = vmatprep.mubr.msk.f32.mxu1 %vm11994_vm7, %v11995_v40 }
 0x574   : > { %11314 = vmatmul.mubr.msk.f32.gmra.mrb[80].mxu1 %vm2983_vm2, %v6575_v55 }
 0x575   : > { %11316 = vmatprep.mubr.msk.f32.mxu1 %vm11994_vm7, %v11995_v40 }
 0x577   : > { %v6953_v56 = vpop.f32.mrb[20].mxu0  ;;  %v7713_v1 = vpop.f32.mrb[102].mxu1 }
 0x578   : > { %v11721_v49 = vadd.f32 %v7713_v1, %v6953_v56  ;;  %v6955_v62 = vpop.f32.mrb[21].mxu0  ;;  %v11159_v16 = vpop.f32.mrb[103].mxu1  ;;  %11317 = vmatmul.mubr.msk.f32.gmra.mrb[82].mxu1 %vm2983_vm2, %v6580_v5 }
 0x579   : > { %11319 = vmatprep.mubr.msk.f32.mxu1 %vm11994_vm7, %v11995_v40 }
 0x57a   : > { %8027 = vst.msk [vmem:[#allocation5] sm:$0xff] %vm2983_vm2, %v11721_v49  ;;  %v6620_v49 = vld [vmem:[#allocation4 + $0x9a8] sm:$0xff] }
 0x57b   : > { %v6958_v3 = vpop.f32.mrb[22].mxu0  ;;  %v7718_v14 = vpop.f32.mrb[104].mxu1 }
 0x57c   : > { %v11722_v4 = vadd.f32 %v7718_v14, %v6958_v3  ;;  %v6960_v41 = vpop.f32.mrb[23].mxu0  ;;  %v11162_v50 = vpop.f32.mrb[105].mxu1  ;;  %11320 = vmatmul.mubr.msk.f32.gmra.mrb[84].mxu1 %vm2983_vm2, %v6585_v0  ;;  %v8687_v0 = vld [vmem:[%s15402_s6 + $0x80] sm:$0xff] }
 0x57d   : > { %11322 = vmatprep.mubr.msk.f32.mxu1 %vm11994_vm7, %v11995_v40  ;;  %v8671_v41 = vld [vmem:[%s15402_s6] sm:$0xff] }
 0x57e   : > { %8028 = vst.msk [vmem:[#allocation5 + $0x8] sm:$0xff] %vm2983_vm2, %v11722_v4  ;;  %v8688_v4 = vld [vmem:[%s15402_s6 + $0x88] sm:$0xff] }
 0x57f   : > { %v6963_v51 = vpop.f32.mrb[24].mxu0  ;;  %v7723_v24 = vpop.f32.mrb[106].mxu1  ;;  %v11523_v50 = vpack.c.bf16 %v8688_v4, %v8687_v0  ;;  %v8695_v4 = vld [vmem:[%s15402_s6 + $0xc0] sm:$0xff] }
 0x580   : > { %v11723_v42 = vadd.f32 %v7723_v24, %v6963_v51  ;;  %v6965_v36 = vpop.f32.mrb[25].mxu0  ;;  %v11165_v44 = vpop.f32.mrb[107].mxu1  ;;  %11323 = vmatmul.mubr.msk.f32.gmra.mrb[86].mxu1 %vm2983_vm2, %v6590_v34  ;;  %v8672_v51 = vld [vmem:[%s15402_s6 + $0x8] sm:$0xff] }
 0x581   : > { %11325 = vmatprep.mubr.msk.f32.mxu1 %vm11994_vm7, %v11995_v40  ;;  %v11525_v34 = vpack.c.bf16 %v8672_v51, %v8671_v41  ;;  %v6625_v44 = vld [vmem:[#allocation4 + $0x9d0] sm:$0xff]  ;;  %11524 = vmatprep.subr.bf16.mxu0 %v11523_v50  ;;  %v8696_v41 = vld [vmem:[%s15402_s6 + $0xc8] sm:$0xff]  ;;  %v8679_v50 = vld [vmem:[%s15402_s6 + $0x40] sm:$0xff] }
 0x582   : > { %8029 = vst.msk [vmem:[#allocation5 + $0x10] sm:$0xff] %vm2983_vm2, %v11723_v42 }
 0x583   : > { %v6968_v30 = vpop.f32.mrb[26].mxu0  ;;  %v7728_v26 = vpop.f32.mrb[108].mxu1  ;;  %11526 = vmatpush3.bf16.msra.mxu0 %v11525_v34  ;;  %v8680_v34 = vld [vmem:[%s15402_s6 + $0x48] sm:$0xff] }
 0x584   : > { %v11724_v48 = vadd.f32 %v7728_v26, %v6968_v30  ;;  %v6970_v53 = vpop.f32.mrb[27].mxu0  ;;  %v11168_v9 = vpop.f32.mrb[109].mxu1  ;;  %11326 = vmatmul.mubr.msk.f32.gmra.mrb[88].mxu1 %vm2983_vm2, %v6595_v52 }
 0x585   : > { %11328 = vmatprep.mubr.msk.f32.mxu1 %vm11994_vm7, %v11995_v40  ;;  %v8090_v28 = vld [vmem:[#allocation5] ss:$2 sm:$0xff]  ;;  %v8170_v58 = vld [vmem:[#allocation5 + $0x1] ss:$2 sm:$0xff] }
 0x586   : > { %8030 = vst.msk [vmem:[#allocation5 + $0x18] sm:$0xff] %vm2983_vm2, %v11724_v48  ;;  %v8249_v8 = vmax.f32 %v8090_v28, %v8170_v58  ;;  %v8674_v28 = vld [vmem:[%s15402_s6 + $0x18] sm:$0xff] }
 0x587   : > { %v6973_v15 = vpop.f32.mrb[28].mxu0  ;;  %v7733_v6 = vpop.f32.mrb[110].mxu1 }
 0x588   : > { %v11725_v20 = vadd.f32 %v7733_v6, %v6973_v15  ;;  %v6975_v27 = vpop.f32.mrb[29].mxu0  ;;  %v11171_v11 = vpop.f32.mrb[111].mxu1  ;;  %11329 = vmatmul.mubr.msk.f32.gmra.mrb[90].mxu1 %vm2983_vm2, %v6600_v17 }
 0x589   : > { %11331 = vmatprep.mubr.msk.f32.mxu1 %vm11994_vm7, %v11995_v40  ;;  %v8092_v39 = vld [vmem:[#allocation5 + $0x10] ss:$2 sm:$0x3]  ;;  %v8172_v7 = vld [vmem:[#allocation5 + $0x11] ss:$2 sm:$0x3] }
 0x58a   : > { %8031 = vst.msk [vmem:[#allocation5 + $0x20] sm:$0xff] %vm2983_vm2, %v11725_v20  ;;  %v8250_v54 = vmax.f32 %v8092_v39, %v8172_v7  ;;  %v8676_v39 = vld [vmem:[%s15402_s6 + $0x28] sm:$0xff]  ;;  %v8694_v7 = vld [vmem:[%s15402_s6 + $0xb8] sm:$0xff] }
 0x58b   : > { %v6978_v33 = vpop.f32.mrb[30].mxu0  ;;  %v7738_v29 = vpop.f32.mrb[112].mxu1 }
 0x58c   : > { %v11726_v57 = vadd.f32 %v7738_v29, %v6978_v33  ;;  %v6980_v32 = vpop.f32.mrb[31].mxu0  ;;  %v11174_v2 = vpop.f32.mrb[113].mxu1  ;;  %11332 = vmatmul.mubr.msk.f32.gmra.mrb[92].mxu1 %vm2983_vm2, %v6605_v18  ;;  %v8689_v33 = vld [vmem:[%s15402_s6 + $0x90] sm:$0xff]  ;;  %v8690_v29 = vld [vmem:[%s15402_s6 + $0x98] sm:$0xff] }
 0x58d   : > { %11334 = vmatprep.mubr.msk.f32.mxu1 %vm11994_vm7, %v11995_v40  ;;  %v11527_v2 = vpack.c.bf16 %v8690_v29, %v8689_v33  ;;  %v8683_v33 = vld [vmem:[%s15402_s6 + $0x60] sm:$0xff]  ;;  %v8684_v29 = vld [vmem:[%s15402_s6 + $0x68] sm:$0xff] }
 0x58e   : > { %8032 = vst.msk [vmem:[#allocation5 + $0x28] sm:$0xff] %vm2983_vm2, %v11726_v57 }
 0x58f   : > { %v6983_v47 = vpop.f32.mrb[32].mxu0  ;;  %v7743_v37 = vpop.f32.mrb[114].mxu1  ;;  %11528 = vmatprep.subr.bf16.mxu0 %v11527_v2 }
 0x590   : > { %v11727_v25 = vadd.f32 %v7743_v37, %v6983_v47  ;;  %v6985_v22 = vpop.f32.mrb[33].mxu0  ;;  %v11177_v31 = vpop.f32.mrb[115].mxu1  ;;  %11335 = vmatmul.mubr.msk.f32.gmra.mrb[94].mxu1 %vm2983_vm2, %v6610_v38  ;;  %v8673_v38 = vld [vmem:[%s15402_s6 + $0x10] sm:$0xff] }
 0x591   : > { %v8094_v45 = vld [vmem:[#allocation5 + $0x18] ss:$2 sm:$0xff]  ;;  %v8174_v43 = vld [vmem:[#allocation5 + $0x19] ss:$2 sm:$0xff]  ;;  %11337 = vmatprep.mubr.msk.f32.mxu1 %vm11994_vm7, %v11995_v40  ;;  %v8692_v31 = vld [vmem:[%s15402_s6 + $0xa8] sm:$0xff] }
 0x592   : > { %v8251_v23 = vmax.f32 %v8094_v45, %v8174_v43  ;;  %8033 = vst.msk [vmem:[#allocation5 + $0x30] sm:$0xff] %vm2983_vm2, %v11727_v25  ;;  %v11529_v25 = vpack.c.bf16 %v8674_v28, %v8673_v38  ;;  %v8691_v22 = vld [vmem:[%s15402_s6 + $0xa0] sm:$0xff] }
 0x593   : > { %v6988_v59 = vpop.f32.mrb[34].mxu0  ;;  %v7748_v60 = vpop.f32.mrb[116].mxu1  ;;  %v8675_v45 = vld [vmem:[%s15402_s6 + $0x20] sm:$0xff] }
 0x594   : > { %v8289_v46 = vmax.f32 %v8249_v8, %v8251_v23  ;;  %v11728_v21 = vadd.f32 %v7748_v60, %v6988_v59  ;;  %v6990_v13 = vpop.f32.mrb[35].mxu0  ;;  %v11180_v19 = vpop.f32.mrb[117].mxu1  ;;  %11338 = vmatmul.mubr.msk.f32.gmra.mrb[96].mxu1 %vm2983_vm2, %v6615_v12  ;;  %11530 = vmatpush3.bf16.msra.mxu0 %v11529_v25  ;;  %v11531_v8 = vpack.c.bf16 %v8692_v31, %v8691_v22  ;;  %v8693_v23 = vld [vmem:[%s15402_s6 + $0xb0] sm:$0xff]  ;;  %v8686_v31 = vld [vmem:[%s15402_s6 + $0x78] sm:$0xff] }
 0x595   : > { %v8096_v61 = vld [vmem:[#allocation5 + $0x28] ss:$2 sm:$0x3]  ;;  %v8176_v35 = vld [vmem:[#allocation5 + $0x29] ss:$2 sm:$0x3]  ;;  %11340 = vmatprep.mubr.msk.f32.mxu1 %vm11994_vm7, %v11995_v40  ;;  %v11533_v60 = vpack.c.bf16 %v8676_v39, %v8675_v45  ;;  %v11535_v12 = vpack.c.bf16 %v8694_v7, %v8693_v23 }
 0x596   : > { %v8252_v55 = vmax.f32 %v8096_v61, %v8176_v35  ;;  %8034 = vst.msk [vmem:[#allocation5 + $0x38] sm:$0xff] %vm2983_vm2, %v11728_v21  ;;  %v8316_v56 = vadd.f32 %v14574_v63, %v8289_v46  ;;  %v8677_v46 = vld [vmem:[%s15402_s6 + $0x30] sm:$0xff]  ;;  %v8678_v21 = vld [vmem:[%s15402_s6 + $0x38] sm:$0xff]  ;;  %11532 = vmatprep.subr.bf16.mxu0 %v11531_v8 }
 0x597   : > { %v6993_v1 = vpop.f32.mrb[36].mxu0  ;;  %v7753_v5 = vpop.f32.mrb[118].mxu1  ;;  %v8685_v22 = vld [vmem:[%s15402_s6 + $0x70] sm:$0xff] }
 0x598   : > { %v8290_v62 = vmax.f32 %v8250_v54, %v8252_v55  ;;  %v11729_v16 = vadd.f32 %v7753_v5, %v6993_v1  ;;  %v6995_v3 = vpop.f32.mrb[37].mxu0  ;;  %v11183_v14 = vpop.f32.mrb[119].mxu1  ;;  %11341 = vmatmul.mubr.msk.f32.gmra.mrb[98].mxu1 %vm2983_vm2, %v6620_v49  ;;  %8336 = vst.msk [vmem:[#allocation6] sm:$0xff] %vm2983_vm2, %v8316_v56  ;;  %11534 = vmatpush3.bf16.msra.mxu0 %v11533_v60 }
 0x599   : > { %11343 = vmatprep.mubr.msk.f32.mxu1 %vm11994_vm7, %v11995_v40  ;;  %v11537_v1 = vpack.c.bf16 %v8678_v21, %v8677_v46  ;;  %11536 = vmatprep.subr.bf16.mxu0 %v11535_v12 }
 0x59a   : > { %8035 = vst.msk [vmem:[#allocation5 + $0x40] sm:$0xff] %vm2983_vm2, %v11729_v16  ;;  %v8317_v24 = vadd.f32 %v14574_v63, %v8290_v62 }
 0x59b   : > { %v6998_v42 = vpop.f32.mrb[38].mxu0  ;;  %v7758_v36 = vpop.f32.mrb[120].mxu1 }
 0x59c   : > { %v11730_v30 = vadd.f32 %v7758_v36, %v6998_v42  ;;  %v7000_v26 = vpop.f32.mrb[39].mxu0  ;;  %v11186_v52 = vpop.f32.mrb[121].mxu1  ;;  %11344 = vmatmul.mubr.msk.f32.gmra.mrb[100].mxu1 %vm2983_vm2, %v6625_v44  ;;  %8338 = vst.msk [vmem:[#allocation6 + $0x8] sm:$0x3] %vm8337_vm8, %v8317_v24  ;;  %11538 = vmatpush3.bf16.msra.mxu0 %v11537_v1  ;;  %v11539_v24 = vpack.c.bf16 %v8696_v41, %v8695_v4 }
 0x59d   : > { %v8098_v47 = vld [vmem:[#allocation5 + $0x30] ss:$2 sm:$0xff]  ;;  %v8178_v37 = vld [vmem:[#allocation5 + $0x31] ss:$2 sm:$0xff]  ;;  %v11541_v44 = vpack.c.bf16 %v8680_v34, %v8679_v50 }
 0x59e   : > { %8036 = vst.msk [vmem:[#allocation5 + $0x48] sm:$0xff] %vm2983_vm2, %v11730_v30  ;;  %v8253_v61 = vmax.f32 %v8098_v47, %v8178_v37  ;;  %v8697_v30 = vld [vmem:[%s15402_s6 + $0xd0] sm:$0xff]  ;;  %v8698_v26 = vld [vmem:[%s15402_s6 + $0xd8] sm:$0xff]  ;;  %11540 = vmatprep.subr.bf16.mxu0 %v11539_v24 }
 0x59f   : > { %v7003_v48 = vpop.f32.mrb[40].mxu0  ;;  %v7763_v53 = vpop.f32.mrb[122].mxu1  ;;  %v8357_v9 = vld [vmem:[#allocation6] sm:$0xff]  ;;  %v8681_v52 = vld [vmem:[%s15402_s6 + $0x50] sm:$0xff] }
 0x5a0   : > { %v11731_v15 = vadd.f32 %v7763_v53, %v7003_v48  ;;  %v7005_v6 = vpop.f32.mrb[41].mxu0  ;;  %v11189_v17 = vpop.f32.mrb[123].mxu1  ;;  %8365 = vst.msk [vmem:[#allocation7] sm:$0xff] %vm2983_vm2, %v8357_v9  ;;  %v11543_v48 = vpack.c.bf16 %v8698_v26, %v8697_v30  ;;  %v8682_v53 = vld [vmem:[%s15402_s6 + $0x58] sm:$0xff]  ;;  %v8699_v9 = vld [vmem:[%s15402_s6 + $0xe0] sm:$0xff]  ;;  %11542 = vmatpush3.bf16.msra.mxu0 %v11541_v44 }
 0x5a1   : > { %v8100_v35 = vld [vmem:[#allocation5 + $0x40] ss:$2 sm:$0x3]  ;;  %v8180_v55 = vld [vmem:[#allocation5 + $0x41] ss:$2 sm:$0x3] }
 0x5a2   : > { %8037 = vst.msk [vmem:[#allocation5 + $0x50] sm:$0xff] %vm2983_vm2, %v11731_v15  ;;  %v8254_v3 = vmax.f32 %v8100_v35, %v8180_v55  ;;  %v8700_v15 = vld [vmem:[%s15402_s6 + $0xe8] sm:$0xff]  ;;  %11544 = vmatprep.subr.bf16.mxu0 %v11543_v48  ;;  %v8702_v47 = vld [vmem:[%s15402_s6 + $0xf8] sm:$0xff] }
 0x5a3   : > { %v7008_v20 = vpop.f32.mrb[42].mxu0  ;;  %v7768_v27 = vpop.f32.mrb[124].mxu1  ;;  %v8373_v11 = vld [vmem:[#allocation6 + $0x1] sm:$0xff] }
 0x5a4   : > { %v11732_v18 = vadd.f32 %v7768_v27, %v7008_v20  ;;  %v7010_v57 = vpop.f32.mrb[43].mxu0  ;;  %8389 = vrot.lane.b32.xlu1 %v8373_v11, %s11993_s29  ;;  %v11192_v32 = vpop.f32.mrb[125].mxu1  ;;  %v8421_v58 = vld [vmem:[#allocation6 + $0x2] sm:$0xff]  ;;  %v11545_v20 = vpack.c.bf16 %v8682_v53, %v8681_v52  ;;  %v11547_v11 = vpack.c.bf16 %v8700_v15, %v8699_v9 }
 0x5a5   : > { %8429 = vst.msk [vmem:[#allocation7 + $0x8] sm:$0xff] %vm2983_vm2, %v8421_v58  ;;  %v8701_v58 = vld [vmem:[%s15402_s6 + $0xf0] sm:$0xff] }
 0x5a6   : > { %8038 = vst.msk [vmem:[#allocation5 + $0x58] sm:$0xff] %vm2983_vm2, %v11732_v18  ;;  %11546 = vmatpush3.bf16.msra.mxu0 %v11545_v20  ;;  %v11549_v18 = vpack.c.bf16 %v8684_v29, %v8683_v33  ;;  %v11551_v25 = vpack.c.bf16 %v8702_v47, %v8701_v58 }
 0x5a7   : > { %v7773_v43 = vpop.f32.mrb[0].mxu1  ;;  %11548 = vmatprep.subr.bf16.mxu0 %v11547_v11 }
 0x5a8   : > { %8039 = vst.msk [vmem:[#allocation5 + $0x60] sm:$0xff] %vm2983_vm2, %v7773_v43  ;;  %v11195_v59 = vpop.f32.mrb[1].mxu1  ;;  %v11553_v43 = vpack.c.bf16 %v8686_v31, %v8685_v22 }
 0x5a9   : > { %v8102_v13 = vld [vmem:[#allocation5 + $0x48] ss:$2 sm:$0xff]  ;;  %v8182_v19 = vld [vmem:[#allocation5 + $0x49] ss:$2 sm:$0xff] }
 0x5aa   : > { %v8255_v54 = vmax.f32 %v8102_v13, %v8182_v19  ;;  %11550 = vmatpush3.bf16.msra.mxu0 %v11549_v18 }
 0x5ab   : > { %v7778_v56 = vpop.f32.mrb[2].mxu1  ;;  %11552 = vmatprep.subr.bf16.mxu0 %v11551_v25 }
 0x5ac   : > { %v8291_v5 = vmax.f32 %v8253_v61, %v8255_v54  ;;  %8040 = vst.msk [vmem:[#allocation5 + $0x68] sm:$0xff] %vm2983_vm2, %v7778_v56  ;;  %v11198_v49 = vpop.f32.mrb[3].mxu1 }
 0x5ad   : > { %v8104_v62 = vld [vmem:[#allocation5 + $0x58] ss:$2 sm:$0x3]  ;;  %v8184_v16 = vld [vmem:[#allocation5 + $0x59] ss:$2 sm:$0x3] }
 0x5ae   : > { %v8256_v14 = vmax.f32 %v8104_v62, %v8184_v16  ;;  %v8318_v0 = vadd.f32 %v14574_v63, %v8291_v5  ;;  %11554 = vmatpush3.bf16.msra.mxu0 %v11553_v43 }
 0x5af   : > { %v7783_v51 = vpop.f32.mrb[4].mxu1 }
 0x5b0   : > { %v8292_v42 = vmax.f32 %v8254_v3, %v8256_v14  ;;  %8041 = vst.msk [vmem:[#allocation5 + $0x70] sm:$0xff] %vm2983_vm2, %v7783_v51  ;;  %v11201_v36 = vpop.f32.mrb[5].mxu1  ;;  %8339 = vst.msk [vmem:[#allocation6 + $0x10] sm:$0xff] %vm2983_vm2, %v8318_v0 }
 0x5b2   : > { %v8319_v6 = vadd.f32 %v14574_v63, %v8292_v42 }
 0x5b3   : > { %v7788_v17 = vpop.f32.mrb[6].mxu1  ;;  %v8106_v8 = vld [vmem:[#allocation5 + $0x60] ss:$2 sm:$0xff]  ;;  %v8186_v39 = vld [vmem:[#allocation5 + $0x61] ss:$2 sm:$0xff] }
 0x5b4   : > { %8042 = vst.msk [vmem:[#allocation5 + $0x78] sm:$0xff] %vm2983_vm2, %v7788_v17  ;;  %v11204_v27 = vpop.f32.mrb[7].mxu1  ;;  %v8257_v12 = vmax.f32 %v8106_v8, %v8186_v39 }
 0x5b5   : > { %8340 = vst.msk [vmem:[#allocation6 + $0x18] sm:$0x3] %vm8337_vm8, %v8319_v6 }
 0x5b7   : > { %v7793_v57 = vpop.f32.mrb[8].mxu1  ;;  %v8438_v32 = vld [vmem:[#allocation6 + $0x10] sm:$0xff]  ;;  %v8108_v46 = vld [vmem:[#allocation5 + $0x70] ss:$2 sm:$0x3] }
 0x5b8   : > { %8043 = vst.msk [vmem:[#allocation5 + $0x80] sm:$0xff] %vm2983_vm2, %v7793_v57  ;;  %8454 = vrot.lane.b32.xlu0 %v8438_v32, %s11993_s29  ;;  %v11207_v2 = vpop.f32.mrb[9].mxu1  ;;  %8366 = vst.msk [vmem:[#allocation7 + $0x28] sm:$0xff] %vm2983_vm2, %v8438_v32  ;;  %v8188_v21 = vld [vmem:[#allocation5 + $0x71] ss:$2 sm:$0x3] }
 0x5b9   : > { %v8258_v54 = vmax.f32 %v8108_v46, %v8188_v21 }
 0x5bb   : > { %v7798_v38 = vpop.f32.mrb[10].mxu1 }
 0x5bc   : > { %v8374_v28 = vld [vmem:[#allocation6 + $0x11] sm:$0xff]  ;;  %8044 = vst.msk [vmem:[#allocation5 + $0x88] sm:$0xff] %vm2983_vm2, %v7798_v38  ;;  %v11210_v37 = vpop.f32.mrb[11].mxu1 }
 0x5bd   : > { %8391 = vrot.lane.b32.xlu1 %v8374_v28, %s11993_s29  ;;  %v14704_v45 = vld [vmem:[#allocation6 + $0x12] sm:$0xff]  ;;  %8494 = vst.msk [vmem:[#allocation7 + $0x10] sm:$0xff] %vm2983_vm2, %v8374_v28 }
 0x5be   : > { %8430 = vst.msk [vmem:[#allocation7 + $0x30] sm:$0xff] %vm2983_vm2, %v14704_v45 }
 0x5bf   : > { %v7803_v23 = vpop.f32.mrb[12].mxu1  ;;  %v8110_v7 = vld [vmem:[#allocation5 + $0x78] ss:$2 sm:$0xff]  ;;  %v8190_v59 = vld [vmem:[#allocation5 + $0x79] ss:$2 sm:$0xff] }
 0x5c0   : > { %8045 = vst.msk [vmem:[#allocation5 + $0x90] sm:$0xff] %vm2983_vm2, %v7803_v23  ;;  %v11213_v60 = vpop.f32.mrb[13].mxu1  ;;  %v8259_v13 = vmax.f32 %v8110_v7, %v8190_v59 }
 0x5c2   : > { %v8293_v19 = vmax.f32 %v8257_v12, %v8259_v13 }
 0x5c3   : > { %v8112_v61 = vld [vmem:[#allocation5 + $0x88] ss:$2 sm:$0x3]  ;;  %v8192_v35 = vld [vmem:[#allocation5 + $0x89] ss:$2 sm:$0x3] }
 0x5c4   : > { %v8260_v55 = vmax.f32 %v8112_v61, %v8192_v35  ;;  %v7808_v56 = vpop.f32.mrb[14].mxu1  ;;  %v8320_v5 = vadd.f32 %v14574_v63, %v8293_v19 }
 0x5c5   : > { %8046 = vst.msk [vmem:[#allocation5 + $0x98] sm:$0xff] %vm2983_vm2, %v7808_v56  ;;  %v11216_v1 = vpop.f32.mrb[15].mxu1 }
 0x5c6   : > { %v8294_v49 = vmax.f32 %v8258_v54, %v8260_v55  ;;  %8341 = vst.msk [vmem:[#allocation6 + $0x20] sm:$0xff] %vm2983_vm2, %v8320_v5 }
 0x5c7   : > { %v7813_v62 = vpop.f32.mrb[16].mxu1 }
 0x5c8   : > { %8047 = vst.msk [vmem:[#allocation5 + $0xa0] sm:$0xff] %vm2983_vm2, %v7813_v62  ;;  %v11219_v16 = vpop.f32.mrb[17].mxu1  ;;  %v8321_v3 = vadd.f32 %v14574_v63, %v8294_v49 }
 0x5ca   : > { %8342 = vst.msk [vmem:[#allocation6 + $0x28] sm:$0x3] %vm8337_vm8, %v8321_v3 }
 0x5cb   : > { %v7818_v14 = vpop.f32.mrb[18].mxu1 }
 0x5cc   : > { %8048 = vst.msk [vmem:[#allocation5 + $0xa8] sm:$0xff] %vm2983_vm2, %v7818_v14  ;;  %v11222_v0 = vpop.f32.mrb[19].mxu1  ;;  %v8114_v44 = vld [vmem:[#allocation5 + $0x90] ss:$2 sm:$0xff]  ;;  %v8194_v30 = vld [vmem:[#allocation5 + $0x91] ss:$2 sm:$0xff] }
 0x5cd   : > { %v8439_v4 = vld [vmem:[#allocation6 + $0x20] sm:$0xff]  ;;  %v8261_v9 = vmax.f32 %v8114_v44, %v8194_v30 }
 0x5ce   : > { %v8551_v41 = vld [vmem:[#allocation6 + $0x20] sm:$0xff]  ;;  %8456 = vrot.lane.b32.xlu0 %v8439_v4, %s11993_s29  ;;  %8367 = vst.msk [vmem:[#allocation7 + $0x50] sm:$0xff] %vm2983_vm2, %v8439_v4 }
 0x5cf   : > { %8559 = vst.msk [vmem:[#allocation7 + $0x18] sm:$0xff] %vm2983_vm2, %v8551_v41  ;;  %v7823_v50 = vpop.f32.mrb[20].mxu1  ;;  %v8116_v15 = vld [vmem:[#allocation5 + $0xa0] ss:$2 sm:$0x3] }
 0x5d0   : > { %8049 = vst.msk [vmem:[#allocation5 + $0xb0] sm:$0xff] %vm2983_vm2, %v7823_v50  ;;  %v11225_v51 = vpop.f32.mrb[21].mxu1  ;;  %v8196_v6 = vld [vmem:[#allocation5 + $0xa1] ss:$2 sm:$0x3] }
 0x5d1   : > { %v14721_v24 = vld [vmem:[#allocation6 + $0x21] sm:$0xff]  ;;  %v8262_v33 = vmax.f32 %v8116_v15, %v8196_v6 }
 0x5d2   : > { %v14723_v34 = vld [vmem:[#allocation6 + $0x22] sm:$0xff]  ;;  %8393 = vrot.lane.b32.xlu1 %v14721_v24, %s11993_s29  ;;  %8495 = vst.msk [vmem:[#allocation7 + $0x38] sm:$0xff] %vm2983_vm2, %v14721_v24 }
 0x5d3   : > { %8431 = vst.msk [vmem:[#allocation7 + $0x58] sm:$0xff] %vm2983_vm2, %v14723_v34  ;;  %8623 = vst.msk [vmem:[#allocation7 + $0x20] sm:$0xff] %vm2983_vm2, %v14723_v34  ;;  %v7828_v42 = vpop.f32.mrb[22].mxu1 }
 0x5d4   : > { %8050 = vst.msk [vmem:[#allocation5 + $0xb8] sm:$0xff] %vm2983_vm2, %v7828_v42  ;;  %v11228_v36 = vpop.f32.mrb[23].mxu1 }
 0x5d7   : > { %v7833_v26 = vpop.f32.mrb[24].mxu1  ;;  %v8118_v52 = vld [vmem:[#allocation5 + $0xa8] ss:$2 sm:$0xff]  ;;  %v8198_v48 = vld [vmem:[#allocation5 + $0xa9] ss:$2 sm:$0xff] }
 0x5d8   : > { %8051 = vst.msk [vmem:[#allocation5 + $0xc0] sm:$0xff] %vm2983_vm2, %v7833_v26  ;;  %v11231_v53 = vpop.f32.mrb[25].mxu1  ;;  %v8263_v17 = vmax.f32 %v8118_v52, %v8198_v48 }
 0x5da   : > { %v8295_v20 = vmax.f32 %v8261_v9, %v8263_v17 }
 0x5db   : > { %v8120_v27 = vld [vmem:[#allocation5 + $0xb8] ss:$2 sm:$0x3]  ;;  %v8200_v11 = vld [vmem:[#allocation5 + $0xb9] ss:$2 sm:$0x3] }
 0x5dc   : > { %v8264_v29 = vmax.f32 %v8120_v27, %v8200_v11  ;;  %v7838_v18 = vpop.f32.mrb[26].mxu1  ;;  %v8322_v32 = vadd.f32 %v14574_v63, %v8295_v20 }
 0x5dd   : > { %8052 = vst.msk [vmem:[#allocation5 + $0xc8] sm:$0xff] %vm2983_vm2, %v7838_v18  ;;  %v11234_v57 = vpop.f32.mrb[27].mxu1 }
 0x5de   : > { %v8296_v2 = vmax.f32 %v8262_v33, %v8264_v29  ;;  %8343 = vst.msk [vmem:[#allocation6 + $0x30] sm:$0xff] %vm2983_vm2, %v8322_v32 }
 0x5df   : > { %v7843_v38 = vpop.f32.mrb[28].mxu1 }
 0x5e0   : > { %8053 = vst.msk [vmem:[#allocation5 + $0xd0] sm:$0xff] %vm2983_vm2, %v7843_v38  ;;  %v11237_v28 = vpop.f32.mrb[29].mxu1  ;;  %v8323_v58 = vadd.f32 %v14574_v63, %v8296_v2 }
 0x5e2   : > { %8344 = vst.msk [vmem:[#allocation6 + $0x38] sm:$0x3] %vm8337_vm8, %v8323_v58 }
 0x5e3   : > { %v7848_v47 = vpop.f32.mrb[30].mxu1 }
 0x5e4   : > { %8054 = vst.msk [vmem:[#allocation5 + $0xd8] sm:$0xff] %vm2983_vm2, %v7848_v47  ;;  %v11240_v37 = vpop.f32.mrb[31].mxu1  ;;  %v8122_v7 = vld [vmem:[#allocation5 + $0xc0] ss:$2 sm:$0xff]  ;;  %v8202_v59 = vld [vmem:[#allocation5 + $0xc1] ss:$2 sm:$0xff] }
 0x5e5   : > { %v8440_v25 = vld [vmem:[#allocation6 + $0x30] sm:$0xff]  ;;  %v8265_v13 = vmax.f32 %v8122_v7, %v8202_v59 }
 0x5e6   : > { %8458 = vrot.lane.b32.xlu0 %v8440_v25, %s11993_s29  ;;  %8368 = vst.msk [vmem:[#allocation7 + $0x78] sm:$0xff] %vm2983_vm2, %v8440_v25  ;;  %8560 = vst.msk [vmem:[#allocation7 + $0x40] sm:$0xff] %vm2983_vm2, %v8440_v25 }
 0x5e7   : > { %v7853_v22 = vpop.f32.mrb[32].mxu1  ;;  %v8124_v19 = vld [vmem:[#allocation5 + $0xd0] ss:$2 sm:$0x3] }
 0x5e8   : > { %8055 = vst.msk [vmem:[#allocation5 + $0xe0] sm:$0xff] %vm2983_vm2, %v7853_v22  ;;  %v11243_v31 = vpop.f32.mrb[33].mxu1  ;;  %v8204_v61 = vld [vmem:[#allocation5 + $0xd1] ss:$2 sm:$0x3] }
 0x5e9   : > { %v14746_v43 = vld [vmem:[#allocation6 + $0x31] sm:$0xff]  ;;  %v8266_v1 = vmax.f32 %v8124_v19, %v8204_v61 }
 0x5ea   : > { %v14748_v8 = vld [vmem:[#allocation6 + $0x32] sm:$0xff]  ;;  %8395 = vrot.lane.b32.xlu1 %v14746_v43, %s11993_s29  ;;  %8496 = vst.msk [vmem:[#allocation7 + $0x60] sm:$0xff] %vm2983_vm2, %v14746_v43 }
 0x5eb   : > { %8432 = vst.msk [vmem:[#allocation7 + $0x80] sm:$0xff] %vm2983_vm2, %v14748_v8  ;;  %8624 = vst.msk [vmem:[#allocation7 + $0x48] sm:$0xff] %vm2983_vm2, %v14748_v8  ;;  %v7858_v39 = vpop.f32.mrb[34].mxu1 }
 0x5ec   : > { %8056 = vst.msk [vmem:[#allocation5 + $0xe8] sm:$0xff] %vm2983_vm2, %v7858_v39  ;;  %v11246_v23 = vpop.f32.mrb[35].mxu1 }
 0x5ef   : > { %v7863_v60 = vpop.f32.mrb[36].mxu1  ;;  %v8126_v12 = vld [vmem:[#allocation5 + $0xd8] ss:$2 sm:$0xff]  ;;  %v8206_v46 = vld [vmem:[#allocation5 + $0xd9] ss:$2 sm:$0xff] }
 0x5f0   : > { %8057 = vst.msk [vmem:[#allocation5 + $0xf0] sm:$0xff] %vm2983_vm2, %v7863_v60  ;;  %v11249_v21 = vpop.f32.mrb[37].mxu1  ;;  %v8267_v35 = vmax.f32 %v8126_v12, %v8206_v46 }
 0x5f2   : > { %v8297_v54 = vmax.f32 %v8265_v13, %v8267_v35 }
 0x5f3   : > { %v8128_v55 = vld [vmem:[#allocation5 + $0xe8] ss:$2 sm:$0x3]  ;;  %v8208_v56 = vld [vmem:[#allocation5 + $0xe9] ss:$2 sm:$0x3] }
 0x5f4   : > { %v8268_v5 = vmax.f32 %v8128_v55, %v8208_v56  ;;  %v7868_v49 = vpop.f32.mrb[38].mxu1  ;;  %v8324_v16 = vadd.f32 %v14574_v63, %v8297_v54 }
 0x5f5   : > { %8058 = vst.msk [vmem:[#allocation5 + $0xf8] sm:$0xff] %vm2983_vm2, %v7868_v49  ;;  %v11252_v62 = vpop.f32.mrb[39].mxu1 }
 0x5f6   : > { %v8298_v3 = vmax.f32 %v8266_v1, %v8268_v5  ;;  %8345 = vst.msk [vmem:[#allocation6 + $0x40] sm:$0xff] %vm2983_vm2, %v8324_v16 }
 0x5f7   : > { %v7873_v14 = vpop.f32.mrb[40].mxu1 }
 0x5f8   : > { %8059 = vst.msk [vmem:[#allocation5 + $0x100] sm:$0xff] %vm2983_vm2, %v7873_v14  ;;  %v11255_v0 = vpop.f32.mrb[41].mxu1  ;;  %v8325_v4 = vadd.f32 %v14574_v63, %v8298_v3 }
 0x5fa   : > { %8346 = vst.msk [vmem:[#allocation6 + $0x48] sm:$0x3] %vm8337_vm8, %v8325_v4 }
 0x5fb   : > { %v7878_v41 = vpop.f32.mrb[42].mxu1 }
 0x5fc   : > { %8060 = vst.msk [vmem:[#allocation5 + $0x108] sm:$0xff] %vm2983_vm2, %v7878_v41  ;;  %v11258_v50 = vpop.f32.mrb[43].mxu1  ;;  %v8130_v48 = vld [vmem:[#allocation5 + $0xf0] ss:$2 sm:$0xff]  ;;  %v8210_v53 = vld [vmem:[#allocation5 + $0xf1] ss:$2 sm:$0xff] }
 0x5fd   : > { %v8441_v51 = vld [vmem:[#allocation6 + $0x40] sm:$0xff]  ;;  %v8269_v20 = vmax.f32 %v8130_v48, %v8210_v53 }
 0x5fe   : > { %8460 = vrot.lane.b32.xlu0 %v8441_v51, %s11993_s29  ;;  %8369 = vst.msk [vmem:[#allocation7 + $0xa0] sm:$0xff] %vm2983_vm2, %v8441_v51  ;;  %8561 = vst.msk [vmem:[#allocation7 + $0x68] sm:$0xff] %vm2983_vm2, %v8441_v51 }
 0x5ff   : > { %v7883_v42 = vpop.f32.mrb[44].mxu1  ;;  %v8132_v27 = vld [vmem:[#allocation5 + $0x100] ss:$2 sm:$0x3] }
 0x600   : > { %8061 = vst.msk [vmem:[#allocation5 + $0x110] sm:$0xff] %vm2983_vm2, %v7883_v42  ;;  %v11261_v36 = vpop.f32.mrb[45].mxu1  ;;  %v8212_v11 = vld [vmem:[#allocation5 + $0x101] ss:$2 sm:$0x3] }
 0x601   : > { %v14771_v44 = vld [vmem:[#allocation6 + $0x41] sm:$0xff]  ;;  %v8270_v32 = vmax.f32 %v8132_v27, %v8212_v11 }
 0x602   : > { %v14773_v30 = vld [vmem:[#allocation6 + $0x42] sm:$0xff]  ;;  %8397 = vrot.lane.b32.xlu1 %v14771_v44, %s11993_s29  ;;  %8497 = vst.msk [vmem:[#allocation7 + $0x88] sm:$0xff] %vm2983_vm2, %v14771_v44 }
 0x603   : > { %8433 = vst.msk [vmem:[#allocation7 + $0xa8] sm:$0xff] %vm2983_vm2, %v14773_v30  ;;  %8625 = vst.msk [vmem:[#allocation7 + $0x70] sm:$0xff] %vm2983_vm2, %v14773_v30  ;;  %v7888_v26 = vpop.f32.mrb[46].mxu1 }
 0x604   : > { %8062 = vst.msk [vmem:[#allocation5 + $0x118] sm:$0xff] %vm2983_vm2, %v7888_v26  ;;  %v11264_v52 = vpop.f32.mrb[47].mxu1 }
 0x607   : > { %v7893_v9 = vpop.f32.mrb[48].mxu1  ;;  %v8134_v15 = vld [vmem:[#allocation5 + $0x108] ss:$2 sm:$0xff]  ;;  %v8214_v6 = vld [vmem:[#allocation5 + $0x109] ss:$2 sm:$0xff] }
 0x608   : > { %8063 = vst.msk [vmem:[#allocation5 + $0x120] sm:$0xff] %vm2983_vm2, %v7893_v9  ;;  %v11267_v17 = vpop.f32.mrb[49].mxu1  ;;  %v8271_v33 = vmax.f32 %v8134_v15, %v8214_v6 }
 0x60a   : > { %v8299_v29 = vmax.f32 %v8269_v20, %v8271_v33 }
 0x60b   : > { %v8136_v18 = vld [vmem:[#allocation5 + $0x118] ss:$2 sm:$0x3]  ;;  %v8216_v57 = vld [vmem:[#allocation5 + $0x119] ss:$2 sm:$0x3] }
 0x60c   : > { %v8272_v2 = vmax.f32 %v8136_v18, %v8216_v57  ;;  %v7898_v38 = vpop.f32.mrb[50].mxu1  ;;  %v8326_v58 = vadd.f32 %v14574_v63, %v8299_v29 }
 0x60d   : > { %8064 = vst.msk [vmem:[#allocation5 + $0x128] sm:$0xff] %vm2983_vm2, %v7898_v38  ;;  %v11270_v28 = vpop.f32.mrb[51].mxu1 }
 0x60e   : > { %v8300_v47 = vmax.f32 %v8270_v32, %v8272_v2  ;;  %8347 = vst.msk [vmem:[#allocation6 + $0x50] sm:$0xff] %vm2983_vm2, %v8326_v58 }
 0x60f   : > { %v7903_v37 = vpop.f32.mrb[52].mxu1 }
 0x610   : > { %8065 = vst.msk [vmem:[#allocation5 + $0x130] sm:$0xff] %vm2983_vm2, %v7903_v37  ;;  %v11273_v25 = vpop.f32.mrb[53].mxu1  ;;  %v8327_v22 = vadd.f32 %v14574_v63, %v8300_v47 }
 0x612   : > { %8348 = vst.msk [vmem:[#allocation6 + $0x58] sm:$0x3] %vm8337_vm8, %v8327_v22 }
 0x613   : > { %v7908_v31 = vpop.f32.mrb[54].mxu1 }
 0x614   : > { %8066 = vst.msk [vmem:[#allocation5 + $0x138] sm:$0xff] %vm2983_vm2, %v7908_v31  ;;  %v11276_v39 = vpop.f32.mrb[55].mxu1  ;;  %v8138_v19 = vld [vmem:[#allocation5 + $0x120] ss:$2 sm:$0xff]  ;;  %v8218_v61 = vld [vmem:[#allocation5 + $0x121] ss:$2 sm:$0xff] }
 0x615   : > { %v8442_v7 = vld [vmem:[#allocation6 + $0x50] sm:$0xff]  ;;  %v8273_v1 = vmax.f32 %v8138_v19, %v8218_v61  ;;  %v8719_v61 = vld [vmem:[%s15402_s6 + $0x180] sm:$0xff] }
 0x616   : > { %v8390_v23 = vpop.permute.xlu1 %8389  ;;  %8462 = vrot.lane.b32.xlu0 %v8442_v7, %s11993_s29  ;;  %8370 = vst.msk [vmem:[#allocation7 + $0xc8] sm:$0xff] %vm2983_vm2, %v8442_v7  ;;  %8562 = vst.msk [vmem:[#allocation7 + $0x90] sm:$0xff] %vm2983_vm2, %v8442_v7 }
 0x617   : > { %8413 = vst.msk [vmem:[#allocation7] sm:$0xff] %vm4606_vm5, %v8390_v23  ;;  %v7913_v59 = vpop.f32.mrb[56].mxu1  ;;  %v8140_v5 = vld [vmem:[#allocation5 + $0x130] ss:$2 sm:$0x3] }
 0x618   : > { %8067 = vst.msk [vmem:[#allocation5 + $0x140] sm:$0xff] %vm2983_vm2, %v7913_v59  ;;  %v11279_v60 = vpop.f32.mrb[57].mxu1  ;;  %v8220_v49 = vld [vmem:[#allocation5 + $0x131] ss:$2 sm:$0x3] }
 0x619   : > { %v14797_v12 = vld [vmem:[#allocation6 + $0x51] sm:$0xff]  ;;  %v8274_v0 = vmax.f32 %v8140_v5, %v8220_v49 }
 0x61a   : > { %v14799_v46 = vld [vmem:[#allocation6 + $0x52] sm:$0xff]  ;;  %8399 = vrot.lane.b32.xlu1 %v14797_v12, %s11993_s29  ;;  %8498 = vst.msk [vmem:[#allocation7 + $0xb0] sm:$0xff] %vm2983_vm2, %v14797_v12 }
 0x61b   : > { %8434 = vst.msk [vmem:[#allocation7 + $0xd0] sm:$0xff] %vm2983_vm2, %v14799_v46  ;;  %8626 = vst.msk [vmem:[#allocation7 + $0x98] sm:$0xff] %vm2983_vm2, %v14799_v46  ;;  %v7918_v21 = vpop.f32.mrb[58].mxu1 }
 0x61c   : > { %8068 = vst.msk [vmem:[#allocation5 + $0x148] sm:$0xff] %vm2983_vm2, %v7918_v21  ;;  %v11282_v13 = vpop.f32.mrb[59].mxu1 }
 0x61e   : > { %v8631_v57 = vld [vmem:[#allocation7] sm:$0xff] }
 0x61f   : > { %v7923_v35 = vpop.f32.mrb[60].mxu1  ;;  %v8142_v54 = vld [vmem:[#allocation5 + $0x138] ss:$2 sm:$0xff]  ;;  %v8222_v55 = vld [vmem:[#allocation5 + $0x139] ss:$2 sm:$0xff] }
 0x620   : > { %8069 = vst.msk [vmem:[#allocation5 + $0x150] sm:$0xff] %vm2983_vm2, %v7923_v35  ;;  %v11285_v56 = vpop.f32.mrb[61].mxu1  ;;  %v8275_v62 = vmax.f32 %v8142_v54, %v8222_v55  ;;  %v8720_v35 = vld [vmem:[%s15402_s6 + $0x188] sm:$0xff]  ;;  %v8703_v54 = vld [vmem:[%s15402_s6 + $0x100] sm:$0xff] }
 0x621   : > { %v11555_v56 = vpack.c.bf16 %v8720_v35, %v8719_v61 }
 0x622   : > { %v8301_v16 = vmax.f32 %v8273_v1, %v8275_v62  ;;  %v8704_v1 = vld [vmem:[%s15402_s6 + $0x108] sm:$0xff] }
 0x623   : > { %v8144_v3 = vld [vmem:[#allocation5 + $0x148] ss:$2 sm:$0x3]  ;;  %v8224_v14 = vld [vmem:[#allocation5 + $0x149] ss:$2 sm:$0x3]  ;;  %v11557_v49 = vpack.c.bf16 %v8704_v1, %v8703_v54  ;;  %11556 = vmatprep.subr.bf16.mxu0 %v11555_v56 }
 0x624   : > { %v8276_v4 = vmax.f32 %v8144_v3, %v8224_v14  ;;  %v7928_v41 = vpop.f32.mrb[62].mxu1  ;;  %v8328_v51 = vadd.f32 %v14574_v63, %v8301_v16  ;;  %v8721_v14 = vld [vmem:[%s15402_s6 + $0x190] sm:$0xff] }
 0x625   : > { %8070 = vst.msk [vmem:[#allocation5 + $0x158] sm:$0xff] %vm2983_vm2, %v7928_v41  ;;  %v11288_v50 = vpop.f32.mrb[63].mxu1 }
 0x626   : > { %v8302_v42 = vmax.f32 %v8274_v0, %v8276_v4  ;;  %8349 = vst.msk [vmem:[#allocation6 + $0x60] sm:$0xff] %vm2983_vm2, %v8328_v51  ;;  %v8722_v0 = vld [vmem:[%s15402_s6 + $0x198] sm:$0xff] }
 0x627   : > { %v7933_v36 = vpop.f32.mrb[64].mxu1  ;;  %v11559_v41 = vpack.c.bf16 %v8722_v0, %v8721_v14  ;;  %v8706_v50 = vld [vmem:[%s15402_s6 + $0x118] sm:$0xff] }
 0x628   : > { %8071 = vst.msk [vmem:[#allocation5 + $0x160] sm:$0xff] %vm2983_vm2, %v7933_v36  ;;  %v11291_v26 = vpop.f32.mrb[65].mxu1  ;;  %v8329_v52 = vadd.f32 %v14574_v63, %v8302_v42 }
 0x629   : > { %v8723_v26 = vld [vmem:[%s15402_s6 + $0x1a0] sm:$0xff] }
 0x62a   : > { %8350 = vst.msk [vmem:[#allocation6 + $0x68] sm:$0x3] %vm8337_vm8, %v8329_v52  ;;  %v8455_v48 = vpop.permute.xlu0 %8454  ;;  %v8724_v52 = vld [vmem:[%s15402_s6 + $0x1a8] sm:$0xff] }
 0x62b   : > { %v7938_v53 = vpop.f32.mrb[66].mxu1  ;;  %8478 = vst.msk [vmem:[#allocation7 + $0x8] sm:$0xff] %vm4606_vm5, %v8455_v48  ;;  %v8707_v48 = vld [vmem:[%s15402_s6 + $0x120] sm:$0xff] }
 0x62c   : > { %8072 = vst.msk [vmem:[#allocation5 + $0x168] sm:$0xff] %vm2983_vm2, %v7938_v53  ;;  %v11294_v9 = vpop.f32.mrb[67].mxu1  ;;  %v8146_v32 = vld [vmem:[#allocation5 + $0x150] ss:$2 sm:$0xff]  ;;  %v8226_v2 = vld [vmem:[#allocation5 + $0x151] ss:$2 sm:$0xff] }
 0x62d   : > { %v8443_v6 = vld [vmem:[#allocation6 + $0x60] sm:$0xff]  ;;  %v8277_v37 = vmax.f32 %v8146_v32, %v8226_v2  ;;  %v11563_v9 = vpack.c.bf16 %v8724_v52, %v8723_v26  ;;  %v8725_v32 = vld [vmem:[%s15402_s6 + $0x1b0] sm:$0xff]  ;;  %v8731_v26 = vld [vmem:[%s15402_s6 + $0x1e0] sm:$0xff] }
 0x62e   : > { %8464 = vrot.lane.b32.xlu0 %v8443_v6, %s11993_s29  ;;  %8371 = vst.msk [vmem:[#allocation7 + $0xf0] sm:$0xff] %vm2983_vm2, %v8443_v6  ;;  %8563 = vst.msk [vmem:[#allocation7 + $0xb8] sm:$0xff] %vm2983_vm2, %v8443_v6  ;;  %v8726_v2 = vld [vmem:[%s15402_s6 + $0x1b8] sm:$0xff]  ;;  %v8732_v52 = vld [vmem:[%s15402_s6 + $0x1e8] sm:$0xff] }
 0x62f   : > { %v8392_v15 = vpop.permute.xlu1 %8391  ;;  %v7943_v17 = vpop.f32.mrb[68].mxu1  ;;  %v8148_v25 = vld [vmem:[#allocation5 + $0x160] ss:$2 sm:$0x3] }
 0x630   : > { %8414 = vst.msk [vmem:[#allocation7 + $0x28] sm:$0xff] %vm4606_vm5, %v8392_v15  ;;  %v11297_v20 = vpop.f32.mrb[69].mxu1  ;;  %v8228_v22 = vld [vmem:[#allocation5 + $0x161] ss:$2 sm:$0x3]  ;;  %v8708_v15 = vld [vmem:[%s15402_s6 + $0x128] sm:$0xff] }
 0x631   : > { %8073 = vst.msk [vmem:[#allocation5 + $0x170] sm:$0xff] %vm2983_vm2, %v7943_v17  ;;  %v14824_v27 = vld [vmem:[#allocation6 + $0x61] sm:$0xff]  ;;  %v8278_v59 = vmax.f32 %v8148_v25, %v8228_v22  ;;  %v11565_v20 = vpack.c.bf16 %v8708_v15, %v8707_v48 }
 0x632   : > { %v14826_v11 = vld [vmem:[#allocation6 + $0x62] sm:$0xff]  ;;  %8401 = vrot.lane.b32.xlu1 %v14824_v27, %s11993_s29  ;;  %8499 = vst.msk [vmem:[#allocation7 + $0xd8] sm:$0xff] %vm2983_vm2, %v14824_v27 }
 0x633   : > { %8435 = vst.msk [vmem:[#allocation7 + $0xf8] sm:$0xff] %vm2983_vm2, %v14826_v11  ;;  %8627 = vst.msk [vmem:[#allocation7 + $0xc0] sm:$0xff] %vm2983_vm2, %v14826_v11  ;;  %v7948_v33 = vpop.f32.mrb[70].mxu1  ;;  %v8632_v29 = vld [vmem:[#allocation7 + $0x8] sm:$0xff] }
 0x634   : > { %8074 = vst.msk [vmem:[#allocation5 + $0x178] sm:$0xff] %vm2983_vm2, %v7948_v33  ;;  %8831 = vmatprep.mubr.f32.mxu0 %v8632_v29  ;;  %v11300_v18 = vpop.f32.mrb[71].mxu1  ;;  %v8727_v22 = vld [vmem:[%s15402_s6 + $0x1c0] sm:$0xff] }
 0x635   : > { %8832 = vmatmul.mubr.f32.vlgmr.msra.gmra.mrb[44].mxu0 %v8631_v57  ;;  %v8715_v48 = vld [vmem:[%s15402_s6 + $0x160] sm:$0xff] }
 0x636   : > { %11558 = vmatpush3.bf16.msra.mxu0 %v11557_v49  ;;  %v8713_v49 = vld [vmem:[%s15402_s6 + $0x150] sm:$0xff] }
 0x637   : > { %v7953_v38 = vpop.f32.mrb[72].mxu1  ;;  %11560 = vmatprep.subr.bf16.mxu0 %v11559_v41  ;;  %v8636_v17 = vld [vmem:[#allocation7 + $0x28] sm:$0xff] }
 0x638   : > { %v8150_v28 = vld [vmem:[#allocation5 + $0x168] ss:$2 sm:$0xff]  ;;  %v8230_v58 = vld [vmem:[#allocation5 + $0x169] ss:$2 sm:$0xff]  ;;  %8075 = vst.msk [vmem:[#allocation5 + $0x180] sm:$0xff] %vm2983_vm2, %v7953_v38  ;;  %v11303_v47 = vpop.f32.mrb[73].mxu1 }
 0x639   : > { %v8279_v31 = vmax.f32 %v8150_v28, %v8230_v58  ;;  %v8709_v38 = vld [vmem:[%s15402_s6 + $0x130] sm:$0xff]  ;;  %v11567_v58 = vpack.c.bf16 %v8726_v2, %v8725_v32  ;;  %v8710_v47 = vld [vmem:[%s15402_s6 + $0x138] sm:$0xff] }
 0x63a   : > { %v11569_v25 = vpack.c.bf16 %v8710_v47, %v8709_v38  ;;  %v8717_v38 = vld [vmem:[%s15402_s6 + $0x170] sm:$0xff] }
 0x63b   : > { %v8303_v39 = vmax.f32 %v8277_v37, %v8279_v31  ;;  %v8152_v23 = vld [vmem:[#allocation5 + $0x178] ss:$2 sm:$0x3]  ;;  %v8232_v7 = vld [vmem:[#allocation5 + $0x179] ss:$2 sm:$0x3] }
 0x63c   : > { %v8280_v60 = vmax.f32 %v8152_v23, %v8232_v7  ;;  %v7958_v21 = vpop.f32.mrb[74].mxu1  ;;  %v8728_v31 = vld [vmem:[%s15402_s6 + $0x1c8] sm:$0xff] }
 0x63d   : > { %8076 = vst.msk [vmem:[#allocation5 + $0x188] sm:$0xff] %vm2983_vm2, %v7958_v21  ;;  %v11306_v13 = vpop.f32.mrb[75].mxu1  ;;  %v8330_v19 = vadd.f32 %v14574_v63, %v8303_v39  ;;  %v8711_v39 = vld [vmem:[%s15402_s6 + $0x140] sm:$0xff] }
 0x63e   : > { %v8304_v55 = vmax.f32 %v8278_v59, %v8280_v60  ;;  %v11571_v59 = vpack.c.bf16 %v8728_v31, %v8727_v22  ;;  %v8712_v60 = vld [vmem:[%s15402_s6 + $0x148] sm:$0xff] }
 0x63f   : > { %v7963_v5 = vpop.f32.mrb[76].mxu1  ;;  %8351 = vst.msk [vmem:[#allocation6 + $0x70] sm:$0xff] %vm2983_vm2, %v8330_v19  ;;  %v11573_v35 = vpack.c.bf16 %v8712_v60, %v8711_v39  ;;  %v8736_v22 = vld [vmem:[%s15402_s6 + $0x208] sm:$0xff] }
 0x640   : > { %8077 = vst.msk [vmem:[#allocation5 + $0x190] sm:$0xff] %vm2983_vm2, %v7963_v5  ;;  %v11309_v62 = vpop.f32.mrb[77].mxu1  ;;  %v8331_v16 = vadd.f32 %v14574_v63, %v8304_v55  ;;  %v8457_v3 = vpop.permute.xlu0 %8456  ;;  %v8705_v63 = vld [vmem:[%s15402_s6 + $0x110] sm:$0xff]  ;;  %v8730_v5 = vld [vmem:[%s15402_s6 + $0x1d8] sm:$0xff] }
 0x641   : > { %8479 = vst.msk [vmem:[#allocation7 + $0x30] sm:$0xff] %vm4606_vm5, %v8457_v3  ;;  %v11561_v36 = vpack.c.bf16 %v8706_v50, %v8705_v63  ;;  %v14945_v50 = vld [vmem:[%s15401_s5] ss:$0 sm:$0xff] }
 0x642   : > { %8352 = vst.msk [vmem:[#allocation6 + $0x78] sm:$0x3] %vm8337_vm8, %v8331_v16 }
 0x643   : > { %v7968_v4 = vpop.f32.mrb[78].mxu1  ;;  %11562 = vmatpush3.bf16.msra.mxu0 %v11561_v36 }
 0x644   : > { %8078 = vst.msk [vmem:[#allocation5 + $0x198] sm:$0xff] %vm2983_vm2, %v7968_v4  ;;  %v8394_v51 = vpop.permute.xlu1 %8393  ;;  %v11312_v42 = vpop.f32.mrb[79].mxu1  ;;  %11564 = vmatprep.subr.bf16.mxu0 %v11563_v9  ;;  %v8154_v23 = vld [vmem:[#allocation5 + $0x180] ss:$2 sm:$0xff]  ;;  %v8234_v7 = vld [vmem:[#allocation5 + $0x181] ss:$2 sm:$0xff]  ;;  %v11579_v9 = vpack.c.bf16 %v8732_v52, %v8731_v26 }
 0x645   : > { %8415 = vst.msk [vmem:[#allocation7 + $0x50] sm:$0xff] %vm4606_vm5, %v8394_v51  ;;  %v8281_v54 = vmax.f32 %v8154_v23, %v8234_v7 }
 0x646   : > { %v8444_v53 = vld [vmem:[#allocation6 + $0x70] sm:$0xff] }
 0x647   : > { %8466 = vrot.lane.b32.xlu0 %v8444_v53, %s11993_s29  ;;  %8372 = vst.msk [vmem:[#allocation7 + $0x118] sm:$0xff] %vm2983_vm2, %v8444_v53  ;;  %8564 = vst.msk [vmem:[#allocation7 + $0xe0] sm:$0xff] %vm2983_vm2, %v8444_v53  ;;  %v7973_v6 = vpop.f32.mrb[80].mxu1  ;;  %11566 = vmatpush3.bf16.msra.mxu0 %v11565_v20  ;;  %v8156_v55 = vld [vmem:[#allocation5 + $0x190] ss:$2 sm:$0x3] }
 0x648   : > { %8079 = vst.msk [vmem:[#allocation5 + $0x1a0] sm:$0xff] %vm2983_vm2, %v7973_v6  ;;  %v11315_v33 = vpop.f32.mrb[81].mxu1  ;;  %v8637_v29 = vld [vmem:[#allocation7 + $0x30] sm:$0xff]  ;;  %11568 = vmatprep.subr.bf16.mxu0 %v11567_v58  ;;  %v8236_v56 = vld [vmem:[#allocation5 + $0x191] ss:$2 sm:$0x3] }
 0x649   : > { %v14887_v18 = vld [vmem:[#allocation6 + $0x71] sm:$0xff]  ;;  %8836 = vmatprep.mubr.f32.mxu0 %v8637_v29  ;;  %v8282_v0 = vmax.f32 %v8156_v55, %v8236_v56  ;;  %v8734_v29 = vld [vmem:[%s15402_s6 + $0x1f8] sm:$0xff] }
 0x64a   : > { %v14889_v57 = vld [vmem:[#allocation6 + $0x72] sm:$0xff]  ;;  %8403 = vrot.lane.b32.xlu1 %v14887_v18, %s11993_s29  ;;  %8500 = vst.msk [vmem:[#allocation7 + $0x100] sm:$0xff] %vm2983_vm2, %v14887_v18  ;;  %8837 = vmatmul.mubr.f32.gmra.mrb[46].mxu0 %v8636_v17 }
 0x64b   : > { %8436 = vst.msk [vmem:[#allocation7 + $0x120] sm:$0xff] %vm2983_vm2, %v14889_v57  ;;  %8628 = vst.msk [vmem:[#allocation7 + $0xe8] sm:$0xff] %vm2983_vm2, %v14889_v57  ;;  %v7978_v28 = vpop.f32.mrb[82].mxu1  ;;  %11570 = vmatpush3.bf16.msra.mxu0 %v11569_v25  ;;  %v8733_v33 = vld [vmem:[%s15402_s6 + $0x1f0] sm:$0xff]  ;;  %v8735_v25 = vld [vmem:[%s15402_s6 + $0x200] sm:$0xff] }
 0x64c   : > { %8080 = vst.msk [vmem:[#allocation5 + $0x1a8] sm:$0xff] %vm2983_vm2, %v7978_v28  ;;  %v11318_v37 = vpop.f32.mrb[83].mxu1  ;;  %11572 = vmatprep.subr.bf16.mxu0 %v11571_v59  ;;  %v11583_v2 = vpack.c.bf16 %v8734_v29, %v8733_v33  ;;  %v14992_v31 = vpack.c.bf16 %v8736_v22, %v8735_v25  ;;  %v8641_v60 = vld [vmem:[#allocation7 + $0x50] sm:$0xff] }
 0x64e   : > { %8518 = vrot.lane.b32.xlu1 %v14704_v45, %s11993_s29  ;;  %v8729_v45 = vld [vmem:[%s15402_s6 + $0x1d0] sm:$0xff] }
 0x64f   : > { %v7983_v21 = vpop.f32.mrb[84].mxu1  ;;  %v8158_v13 = vld [vmem:[#allocation5 + $0x198] ss:$2 sm:$0xff]  ;;  %v8238_v19 = vld [vmem:[#allocation5 + $0x199] ss:$2 sm:$0xff]  ;;  %v11575_v14 = vpack.c.bf16 %v8730_v5, %v8729_v45  ;;  %11574 = vmatpush3.bf16.msra.mxu0 %v11573_v35 }
 0x650   : > { %8081 = vst.msk [vmem:[#allocation5 + $0x1b0] sm:$0xff] %vm2983_vm2, %v7983_v21  ;;  %v11321_v61 = vpop.f32.mrb[85].mxu1  ;;  %v8283_v1 = vmax.f32 %v8158_v13, %v8238_v19 }
 0x651   : > { %11576 = vmatprep.subr.bf16.mxu0 %v11575_v14 }
 0x652   : > { %8520 = vrot.lane.b32.xlu1 %v14723_v34, %s11993_s29  ;;  %v8305_v62 = vmax.f32 %v8281_v54, %v8283_v1  ;;  %v8714_v34 = vld [vmem:[%s15402_s6 + $0x158] sm:$0xff] }
 0x653   : > { %v8160_v16 = vld [vmem:[#allocation5 + $0x1a8] ss:$2 sm:$0x3]  ;;  %v8240_v3 = vld [vmem:[#allocation5 + $0x1a9] ss:$2 sm:$0x3]  ;;  %v11577_v42 = vpack.c.bf16 %v8714_v34, %v8713_v49 }
 0x654   : > { %v8284_v4 = vmax.f32 %v8160_v16, %v8240_v3  ;;  %v7988_v41 = vpop.f32.mrb[86].mxu1  ;;  %v8332_v51 = vadd.f32 %v14945_v50, %v8305_v62 }
 0x655   : > { %8082 = vst.msk [vmem:[#allocation5 + $0x1b8] sm:$0xff] %vm2983_vm2, %v7988_v41  ;;  %v11324_v63 = vpop.f32.mrb[87].mxu1  ;;  %11578 = vmatpush3.bf16.msra.mxu0 %v11577_v42 }
 0x656   : > { %v8306_v36 = vmax.f32 %v8282_v0, %v8284_v4  ;;  %8522 = vrot.lane.b32.xlu1 %v14748_v8, %s11993_s29  ;;  %8353 = vst.msk [vmem:[#allocation6 + $0x80] sm:$0xff] %vm2983_vm2, %v8332_v51  ;;  %v8716_v8 = vld [vmem:[%s15402_s6 + $0x168] sm:$0xff]  ;;  %11580 = vmatprep.subr.bf16.mxu0 %v11579_v9 }
 0x657   : > { %v7993_v53 = vpop.f32.mrb[88].mxu1  ;;  %v11581_v17 = vpack.c.bf16 %v8716_v8, %v8715_v48 }
 0x658   : > { %8083 = vst.msk [vmem:[#allocation5 + $0x1c0] sm:$0xff] %vm2983_vm2, %v7993_v53  ;;  %v11327_v15 = vpop.f32.mrb[89].mxu1  ;;  %v8333_v6 = vadd.f32 %v14945_v50, %v8306_v36  ;;  %v8459_v20 = vpop.permute.xlu0 %8458 }
 0x659   : > { %8480 = vst.msk [vmem:[#allocation7 + $0x58] sm:$0xff] %vm4606_vm5, %v8459_v20  ;;  %11582 = vmatpush3.bf16.msra.mxu0 %v11581_v17 }
 0x65a   : > { %8524 = vrot.lane.b32.xlu1 %v14773_v30, %s11993_s29  ;;  %8354 = vst.msk [vmem:[#allocation6 + $0x88] sm:$0x3] %vm8337_vm8, %v8333_v6  ;;  %v8718_v30 = vld [vmem:[%s15402_s6 + $0x178] sm:$0xff]  ;;  %11584 = vmatprep.subr.bf16.mxu0 %v11583_v2 }
 0x65b   : > { %v7998_v32 = vpop.f32.mrb[90].mxu1  ;;  %v11585_v47 = vpack.c.bf16 %v8718_v30, %v8717_v38 }
 0x65c   : > { %8084 = vst.msk [vmem:[#allocation5 + $0x1c8] sm:$0xff] %vm2983_vm2, %v7998_v32  ;;  %v8396_v28 = vpop.permute.xlu1 %8395  ;;  %v11330_v58 = vpop.f32.mrb[91].mxu1  ;;  %v8162_v19 = vld [vmem:[#allocation5 + $0x1b0] ss:$2 sm:$0xff]  ;;  %v8242_v61 = vld [vmem:[#allocation5 + $0x1b1] ss:$2 sm:$0xff] }
 0x65d   : > { %8416 = vst.msk [vmem:[#allocation7 + $0x78] sm:$0xff] %vm4606_vm5, %v8396_v28  ;;  %v8445_v37 = vld [vmem:[#allocation6 + $0x80] sm:$0xff]  ;;  %11586 = vmatpush3.bf16.msra.mxu0 %v11585_v47  ;;  %v8285_v56 = vmax.f32 %v8162_v19, %v8242_v61  ;;  %v8740_v19 = vld [vmem:[%s15402_s6 + $0x228] sm:$0xff] }
 0x65e   : > { %8526 = vrot.lane.b32.xlu1 %v14799_v46, %s11993_s29  ;;  %8468 = vrot.lane.b32.xlu0 %v8445_v37, %s11993_s29  ;;  %8565 = vst.msk [vmem:[#allocation7 + $0x108] sm:$0xff] %vm2983_vm2, %v8445_v37 }
 0x65f   : > { %v8003_v39 = vpop.f32.mrb[92].mxu1  ;;  %11588 = vmatprep.subr.bf16.mxu0 %v14992_v31  ;;  %v8164_v1 = vld [vmem:[#allocation5 + $0x1c0] ss:$2 sm:$0x3] }
 0x660   : > { %8085 = vst.msk [vmem:[#allocation5 + $0x1d0] sm:$0xff] %vm2983_vm2, %v8003_v39  ;;  %v11333_v46 = vpop.f32.mrb[93].mxu1  ;;  %v8642_v23 = vld [vmem:[#allocation7 + $0x58] sm:$0xff]  ;;  %v8244_v45 = vld [vmem:[#allocation5 + $0x1c1] ss:$2 sm:$0x3] }
 0x661   : > { %v8509_v7 = vld [vmem:[#allocation6 + $0x82] sm:$0xff]  ;;  %8841 = vmatprep.mubr.f32.mxu0 %v8642_v23  ;;  %v8737_v39 = vld [vmem:[%s15402_s6 + $0x210] sm:$0xff] }
 0x662   : > { %v8573_v59 = vld [vmem:[#allocation6 + $0x81] sm:$0xff]  ;;  %8528 = vrot.lane.b32.xlu1 %v14826_v11, %s11993_s29  ;;  %8629 = vst.msk [vmem:[#allocation7 + $0x110] sm:$0xff] %vm2983_vm2, %v8509_v7  ;;  %8842 = vmatmul.mubr.f32.gmra.mrb[48].mxu0 %v8641_v60 }
 0x663   : > { %8501 = vst.msk [vmem:[#allocation7 + $0x128] sm:$0xff] %vm2983_vm2, %v8573_v59  ;;  %8583 = vrot.lane.b32.xlu0 %v14721_v24, %s11993_s29  ;;  %v8008_v21 = vpop.f32.mrb[94].mxu1  ;;  %v8738_v46 = vld [vmem:[%s15402_s6 + $0x218] sm:$0xff] }
 0x664   : > { %8086 = vst.msk [vmem:[#allocation5 + $0x1d8] sm:$0xff] %vm2983_vm2, %v8008_v21  ;;  %v11336_v13 = vpop.f32.mrb[95].mxu1  ;;  %v11591_v60 = vpack.c.bf16 %v8738_v46, %v8737_v39 }
 0x665   : > { %v8739_v13 = vld [vmem:[%s15402_s6 + $0x220] sm:$0xff] }
 0x666   : > { %8530 = vrot.lane.b32.xlu1 %v14889_v57, %s11993_s29  ;;  %v8286_v57 = vmax.f32 %v8164_v1, %v8244_v45 }
 0x667   : > { %8585 = vrot.lane.b32.xlu0 %v14746_v43, %s11993_s29  ;;  %v8013_v11 = vpop.f32.mrb[96].mxu1  ;;  %v8166_v35 = vld [vmem:[#allocation5 + $0x1c8] ss:$2 sm:$0xff]  ;;  %v8246_v54 = vld [vmem:[#allocation5 + $0x1c9] ss:$2 sm:$0xff] }
 0x668   : > { %v11339_v55 = vpop.f32.mrb[97].mxu1  ;;  %v8287_v24 = vmax.f32 %v8166_v35, %v8246_v54  ;;  %v11595_v35 = vpack.c.bf16 %v8740_v19, %v8739_v13  ;;  %v9251_v13 = vld [vmem:[%s15404_s8 + $0xa8] sm:$0xff] }
 0x669   : > { %v8741_v55 = vld [vmem:[%s15402_s6 + $0x230] sm:$0xff] }
 0x66a   : > { %8532 = vrot.lane.b32.xlu1 %v8509_v7, %s11993_s29  ;;  %v8307_v5 = vmax.f32 %v8285_v56, %v8287_v24  ;;  %v8742_v56 = vld [vmem:[%s15402_s6 + $0x238] sm:$0xff] }
 0x66b   : > { %v8168_v49 = vld [vmem:[#allocation5 + $0x1d8] ss:$2 sm:$0x3]  ;;  %v8248_v62 = vld [vmem:[#allocation5 + $0x1d9] ss:$2 sm:$0x3]  ;;  %8587 = vrot.lane.b32.xlu0 %v14771_v44, %s11993_s29  ;;  %v11599_v45 = vpack.c.bf16 %v8742_v56, %v8741_v55 }
 0x66c   : > { %v8288_v16 = vmax.f32 %v8168_v49, %v8248_v62  ;;  %v8018_v3 = vpop.f32.mrb[98].mxu1  ;;  %v8334_v14 = vadd.f32 %v14945_v50, %v8307_v5  ;;  %v9252_v55 = vld [vmem:[%s15404_s8 + $0xb0] sm:$0xff]  ;;  %v9253_v56 = vld [vmem:[%s15404_s8 + $0xb8] sm:$0xff] }
 0x66d   : > { %v11342_v43 = vpop.f32.mrb[99].mxu1 }
 0x66e   : > { %v8308_v0 = vmax.f32 %v8286_v57, %v8288_v16  ;;  %8355 = vst.msk [vmem:[#allocation6 + $0x90] sm:$0xff] %vm2983_vm2, %v8334_v14 }
 0x66f   : > { %8589 = vrot.lane.b32.xlu0 %v14797_v12, %s11993_s29  ;;  %v8023_v4 = vpop.f32.mrb[100].mxu1 }
 0x670   : > { %v11345_v41 = vpop.f32.mrb[101].mxu1  ;;  %v8335_v34 = vadd.f32 %v14945_v50, %v8308_v0  ;;  %v8461_v63 = vpop.permute.xlu0 %8460  ;;  %v8646_v50 = vld [vmem:[#allocation7 + $0x78] sm:$0xff] }
 0x671   : > { %8481 = vst.msk [vmem:[#allocation7 + $0x80] sm:$0xff] %vm4606_vm5, %v8461_v63 }
 0x672   : > { %8356 = vst.msk [vmem:[#allocation6 + $0x98] sm:$0x3] %vm8337_vm8, %v8335_v34 }
 0x673   : > { %8591 = vrot.lane.b32.xlu0 %v14824_v27, %s11993_s29 }
 0x674   : > { %v8398_v44 = vpop.permute.xlu1 %8397 }
 0x675   : > { %8417 = vst.msk [vmem:[#allocation7 + $0xa0] sm:$0xff] %vm4606_vm5, %v8398_v44  ;;  %v8558_v51 = vld [vmem:[#allocation6 + $0x90] sm:$0xff]  ;;  %v8635_v44 = vld [vmem:[#allocation7 + $0x20] sm:$0xff] }
 0x676   : > { %8566 = vst.msk [vmem:[#allocation7 + $0x130] sm:$0xff] %vm2983_vm2, %v8558_v51  ;;  %v8640_v51 = vld [vmem:[#allocation7 + $0x48] sm:$0xff] }
 0x677   : > { %8593 = vrot.lane.b32.xlu0 %v14887_v18, %s11993_s29 }
 0x678   : > { %v8647_v12 = vld [vmem:[#allocation7 + $0x80] sm:$0xff] }
 0x679   : > { %v8622_v42 = vld [vmem:[#allocation6 + $0x92] sm:$0xff]  ;;  %8846 = vmatprep.mubr.f32.mxu0 %v8647_v12 }
 0x67a   : > { %8630 = vst.msk [vmem:[#allocation7 + $0x138] sm:$0xff] %vm2983_vm2, %v8622_v42  ;;  %8847 = vmatmul.mubr.f32.gmra.mrb[50].mxu0 %v8646_v50  ;;  %v8574_v36 = vld [vmem:[#allocation6 + $0x91] sm:$0xff]  ;;  %v8655_v50 = vld [vmem:[#allocation7 + $0xc0] sm:$0xff] }
 0x67b   : > { %8595 = vrot.lane.b32.xlu0 %v8573_v59, %s11993_s29  ;;  %v8645_v12 = vld [vmem:[#allocation7 + $0x70] sm:$0xff]  ;;  %v8650_v42 = vld [vmem:[#allocation7 + $0x98] sm:$0xff] }
 0x67c   : > { %v8651_v52 = vld [vmem:[#allocation7 + $0xa0] sm:$0xff] }
 0x67f   : > { %8597 = vrot.lane.b32.xlu0 %v8574_v36, %s11993_s29  ;;  %v8660_v36 = vld [vmem:[#allocation7 + $0xe8] sm:$0xff] }
 0x688   : > { %v8463_v27 = vpop.permute.xlu0 %8462 }
 0x689   : > { %8482 = vst.msk [vmem:[#allocation7 + $0xa8] sm:$0xff] %vm4606_vm5, %v8463_v27  ;;  %v8665_v27 = vld [vmem:[#allocation7 + $0x110] sm:$0xff] }
 0x68c   : > { %v8400_v26 = vpop.permute.xlu1 %8399 }
 0x68d   : > { %8418 = vst.msk [vmem:[#allocation7 + $0xc8] sm:$0xff] %vm4606_vm5, %v8400_v26 }
 0x690   : > { %v8652_v18 = vld [vmem:[#allocation7 + $0xa8] sm:$0xff] }
 0x691   : > { %8851 = vmatprep.mubr.f32.mxu0 %v8652_v18 }
 0x692   : > { %8852 = vmatmul.mubr.f32.gmra.mrb[52].mxu0 %v8651_v52 }
 0x694   : > { %v8656_v8 = vld [vmem:[#allocation7 + $0xc8] sm:$0xff] }
 0x6a0   : > { %v8465_v48 = vpop.permute.xlu0 %8464 }
 0x6a1   : > { %8483 = vst.msk [vmem:[#allocation7 + $0xd0] sm:$0xff] %vm4606_vm5, %v8465_v48  ;;  %v8670_v48 = vld [vmem:[#allocation7 + $0x138] sm:$0xff] }
 0x6a4   : > { %v8402_v53 = vpop.permute.xlu1 %8401 }
 0x6a5   : > { %8419 = vst.msk [vmem:[#allocation7 + $0xf0] sm:$0xff] %vm4606_vm5, %v8402_v53 }
 0x6a8   : > { %v8657_v9 = vld [vmem:[#allocation7 + $0xd0] sm:$0xff] }
 0x6a9   : > { %8856 = vmatprep.mubr.f32.mxu0 %v8657_v9 }
 0x6aa   : > { %8857 = vmatmul.mubr.f32.gmra.mrb[54].mxu0 %v8656_v8 }
 0x6ac   : > { %v8661_v33 = vld [vmem:[#allocation7 + $0xf0] sm:$0xff] }
 0x6b9   : > { %v8467_v15 = vpop.permute.xlu0 %8466 }
 0x6ba   : > { %8484 = vst.msk [vmem:[#allocation7 + $0xf8] sm:$0xff] %vm4606_vm5, %v8467_v15 }
 0x6bc   : > { %v8404_v6 = vpop.permute.xlu1 %8403 }
 0x6bd   : > { %8420 = vst.msk [vmem:[#allocation7 + $0x118] sm:$0xff] %vm4606_vm5, %v8404_v6 }
 0x6c0   : > { %v8519_v17 = vpop.permute.xlu1 %8518 }
 0x6c1   : > { %8542 = vst.msk [vmem:[#allocation7 + $0x10] sm:$0xff] %vm4606_vm5, %v8519_v17  ;;  %v8662_v20 = vld [vmem:[#allocation7 + $0xf8] sm:$0xff] }
 0x6c2   : > { %8861 = vmatprep.mubr.f32.mxu0 %v8662_v20 }
 0x6c3   : > { %8862 = vmatmul.mubr.f32.gmra.mrb[56].mxu0 %v8661_v33 }
 0x6c4   : > { %v8521_v29 = vpop.permute.xlu1 %8520  ;;  %v8666_v22 = vld [vmem:[#allocation7 + $0x118] sm:$0xff] }
 0x6c5   : > { %8543 = vst.msk [vmem:[#allocation7 + $0x38] sm:$0xff] %vm4606_vm5, %v8521_v29 }
 0x6c8   : > { %v8523_v32 = vpop.permute.xlu1 %8522  ;;  %v8633_v21 = vld [vmem:[#allocation7 + $0x10] sm:$0xff] }
 0x6c9   : > { %8544 = vst.msk [vmem:[#allocation7 + $0x60] sm:$0xff] %vm4606_vm5, %v8523_v32 }
 0x6cc   : > { %v8525_v2 = vpop.permute.xlu1 %8524  ;;  %v8638_v54 = vld [vmem:[#allocation7 + $0x38] sm:$0xff] }
 0x6cd   : > { %8545 = vst.msk [vmem:[#allocation7 + $0x88] sm:$0xff] %vm4606_vm5, %v8525_v2 }
 0x6d0   : > { %v8527_v38 = vpop.permute.xlu1 %8526  ;;  %v8469_v30 = vpop.permute.xlu0 %8468  ;;  %v8643_v24 = vld [vmem:[#allocation7 + $0x60] sm:$0xff] }
 0x6d1   : > { %8546 = vst.msk [vmem:[#allocation7 + $0xb0] sm:$0xff] %vm4606_vm5, %v8527_v38  ;;  %8485 = vst.msk [vmem:[#allocation7 + $0x120] sm:$0xff] %vm4606_vm5, %v8469_v30  ;;  %v9246_v30 = vld [vmem:[%s15404_s8 + $0x80] sm:$0xff] }
 0x6d4   : > { %v8529_v28 = vpop.permute.xlu1 %8528  ;;  %v8648_v62 = vld [vmem:[#allocation7 + $0x88] sm:$0xff] }
 0x6d5   : > { %8547 = vst.msk [vmem:[#allocation7 + $0xd8] sm:$0xff] %vm4606_vm5, %v8529_v28  ;;  %v8584_v58 = vpop.permute.xlu0 %8583  ;;  %v9247_v28 = vld [vmem:[%s15404_s8 + $0x88] sm:$0xff] }
 0x6d6   : > { %8607 = vst.msk [vmem:[#allocation7 + $0x18] sm:$0xff] %vm4606_vm5, %v8584_v58  ;;  %v9230_v58 = vld [vmem:[%s15404_s8] sm:$0xff] }
 0x6d8   : > { %v8531_v47 = vpop.permute.xlu1 %8530  ;;  %v8667_v25 = vld [vmem:[#allocation7 + $0x120] sm:$0xff]  ;;  %v8653_v3 = vld [vmem:[#allocation7 + $0xb0] sm:$0xff] }
 0x6d9   : > { %8548 = vst.msk [vmem:[#allocation7 + $0x100] sm:$0xff] %vm4606_vm5, %v8531_v47  ;;  %v8586_v37 = vpop.permute.xlu0 %8585  ;;  %8866 = vmatprep.mubr.f32.mxu0 %v8667_v25  ;;  %v11603_v47 = vpack.c.bf16 %v9247_v28, %v9246_v30  ;;  %v9248_v25 = vld [vmem:[%s15404_s8 + $0x90] sm:$0xff] }
 0x6da   : > { %8608 = vst.msk [vmem:[#allocation7 + $0x40] sm:$0xff] %vm4606_vm5, %v8586_v37  ;;  %8867 = vmatmul.mubr.f32.gmra.mrb[58].mxu0 %v8666_v22  ;;  %v9231_v37 = vld [vmem:[%s15404_s8 + $0x8] sm:$0xff]  ;;  %v9249_v22 = vld [vmem:[%s15404_s8 + $0x98] sm:$0xff] }
 0x6db   : > { %v11605_v46 = vpack.c.bf16 %v9231_v37, %v9230_v58 }
 0x6dc   : > { %v8533_v23 = vpop.permute.xlu1 %8532  ;;  %v8658_v0 = vld [vmem:[#allocation7 + $0xd8] sm:$0xff] }
 0x6dd   : > { %v8588_v7 = vpop.permute.xlu0 %8587  ;;  %8549 = vst.msk [vmem:[#allocation7 + $0x128] sm:$0xff] %vm4606_vm5, %v8533_v23  ;;  %v8634_v59 = vld [vmem:[#allocation7 + $0x18] sm:$0xff]  ;;  %v11607_v23 = vpack.c.bf16 %v9249_v22, %v9248_v25 }
 0x6de   : > { %8609 = vst.msk [vmem:[#allocation7 + $0x68] sm:$0xff] %vm4606_vm5, %v8588_v7  ;;  %8936 = vmatprep.mubr.f32.mxu0 %v8634_v59  ;;  %v9232_v7 = vld [vmem:[%s15404_s8 + $0x10] sm:$0xff]  ;;  %v9233_v59 = vld [vmem:[%s15404_s8 + $0x18] sm:$0xff] }
 0x6df   : > { %8937 = vmatmul.mubr.f32.vlgmr.msra.gmra.mrb[60].mxu0 %v8633_v21 }
 0x6e0   : > { %11590 = vmatpush3.bf16.msra.mxu0 %v14992_v31  ;;  %v8663_v41 = vld [vmem:[#allocation7 + $0x100] sm:$0xff] }
 0x6e1   : > { %v8590_v61 = vpop.permute.xlu0 %8589  ;;  %v8639_v11 = vld [vmem:[#allocation7 + $0x40] sm:$0xff]  ;;  %11592 = vmatprep.subr.bf16.mxu0 %v11591_v60 }
 0x6e2   : > { %8610 = vst.msk [vmem:[#allocation7 + $0x90] sm:$0xff] %vm4606_vm5, %v8590_v61  ;;  %8941 = vmatprep.mubr.f32.mxu0 %v8639_v11  ;;  %v11609_v61 = vpack.c.bf16 %v9233_v59, %v9232_v7 }
 0x6e3   : > { %8942 = vmatmul.mubr.f32.gmra.mrb[62].mxu0 %v8638_v54  ;;  %v9235_v54 = vld [vmem:[%s15404_s8 + $0x28] sm:$0xff] }
 0x6e4   : > { %11594 = vmatpush3.bf16.msra.mxu0 %v11591_v60  ;;  %v8668_v63 = vld [vmem:[#allocation7 + $0x128] sm:$0xff] }
 0x6e5   : > { %v8592_v1 = vpop.permute.xlu0 %8591  ;;  %v8644_v31 = vld [vmem:[#allocation7 + $0x68] sm:$0xff]  ;;  %11596 = vmatprep.subr.bf16.mxu0 %v11595_v35 }
 0x6e6   : > { %8611 = vst.msk [vmem:[#allocation7 + $0xb8] sm:$0xff] %vm4606_vm5, %v8592_v1  ;;  %8946 = vmatprep.mubr.f32.mxu0 %v8644_v31  ;;  %v9250_v60 = vld [vmem:[%s15404_s8 + $0xa0] sm:$0xff]  ;;  %v11615_v31 = vpack.c.bf16 %v9253_v56, %v9252_v55 }
 0x6e7   : > { %8947 = vmatmul.mubr.f32.gmra.mrb[64].mxu0 %v8643_v24  ;;  %v11611_v11 = vpack.c.bf16 %v9251_v13, %v9250_v60  ;;  %v9237_v24 = vld [vmem:[%s15404_s8 + $0x38] sm:$0xff] }
 0x6e8   : > { %11598 = vmatpush3.bf16.msra.mxu0 %v11595_v35  ;;  %v9234_v35 = vld [vmem:[%s15404_s8 + $0x20] sm:$0xff] }
 0x6e9   : > { %v8594_v5 = vpop.permute.xlu0 %8593  ;;  %v8649_v49 = vld [vmem:[#allocation7 + $0x90] sm:$0xff]  ;;  %11600 = vmatprep.subr.bf16.mxu0 %v11599_v45  ;;  %v11613_v1 = vpack.c.bf16 %v9235_v54, %v9234_v35 }
 0x6ea   : > { %8612 = vst.msk [vmem:[#allocation7 + $0xe0] sm:$0xff] %vm4606_vm5, %v8594_v5  ;;  %8951 = vmatprep.mubr.f32.mxu0 %v8649_v49  ;;  %v9254_v5 = vld [vmem:[%s15404_s8 + $0xc0] sm:$0xff]  ;;  %v9255_v49 = vld [vmem:[%s15404_s8 + $0xc8] sm:$0xff] }
 0x6eb   : > { %8952 = vmatmul.mubr.f32.gmra.mrb[66].mxu0 %v8648_v62 }
 0x6ec   : > { %11602 = vmatpush3.bf16.msra.mxu0 %v11599_v45  ;;  %v9236_v45 = vld [vmem:[%s15404_s8 + $0x30] sm:$0xff] }
 0x6ed   : > { %v8596_v57 = vpop.permute.xlu0 %8595  ;;  %v8654_v16 = vld [vmem:[#allocation7 + $0xb8] sm:$0xff]  ;;  %11604 = vmatprep.subr.bf16.mxu0 %v11603_v47  ;;  %v11617_v62 = vpack.c.bf16 %v9237_v24, %v9236_v45 }
 0x6ee   : > { %8613 = vst.msk [vmem:[#allocation7 + $0x108] sm:$0xff] %vm4606_vm5, %v8596_v57  ;;  %8956 = vmatprep.mubr.f32.mxu0 %v8654_v16  ;;  %v11619_v57 = vpack.c.bf16 %v9255_v49, %v9254_v5  ;;  %v9238_v16 = vld [vmem:[%s15404_s8 + $0x40] sm:$0xff] }
 0x6ef   : > { %8957 = vmatmul.mubr.f32.gmra.mrb[68].mxu0 %v8653_v3  ;;  %v9239_v3 = vld [vmem:[%s15404_s8 + $0x48] sm:$0xff] }
 0x6f1   : > { %v8598_v43 = vpop.permute.xlu0 %8597  ;;  %v8659_v14 = vld [vmem:[#allocation7 + $0xe0] sm:$0xff] }
 0x6f2   : > { %8614 = vst.msk [vmem:[#allocation7 + $0x130] sm:$0xff] %vm4606_vm5, %v8598_v43  ;;  %8961 = vmatprep.mubr.f32.mxu0 %v8659_v14  ;;  %v11621_v43 = vpack.c.bf16 %v9239_v3, %v9238_v16  ;;  %v9256_v3 = vld [vmem:[%s15404_s8 + $0xd0] sm:$0xff] }
 0x6f3   : > { %8962 = vmatmul.mubr.f32.gmra.mrb[70].mxu0 %v8658_v0 }
 0x6f5   : > { %v8664_v4 = vld [vmem:[#allocation7 + $0x108] sm:$0xff] }
 0x6f6   : > { %8966 = vmatprep.mubr.f32.mxu0 %v8664_v4 }
 0x6f7   : > { %8967 = vmatmul.mubr.f32.gmra.mrb[72].mxu0 %v8663_v41 }
 0x6f9   : > { %v8669_v34 = vld [vmem:[#allocation7 + $0x130] sm:$0xff] }
 0x6fa   : > { %8971 = vmatprep.mubr.f32.mxu0 %v8669_v34 }
 0x6fb   : > { %8972 = vmatmul.mubr.f32.gmra.mrb[74].mxu0 %v8668_v63 }
 0x6fc   : > { %11362 = vmatprep.mubr.msk.f32.mxu0 %vm2983_vm2, %v8635_v44 }
 0x6ff   : > { %11363 = vmatmul.mubr.msk.f32.vlgmr.msra.gmra.mrb[76].mxu0 %vm2983_vm2, %v8640_v51 }
 0x700   : > { %11365 = vmatprep.mubr.msk.f32.mxu0 %vm2983_vm2, %v8645_v12  ;;  %11606 = vmatpush3.bf16.msra.mxu0 %v11605_v46 }
 0x701   : > { %11608 = vmatprep.subr.bf16.mxu0 %v11607_v23 }
 0x703   : > { %11366 = vmatmul.mubr.msk.f32.gmra.mrb[78].mxu0 %vm2983_vm2, %v8650_v42 }
 0x704   : > { %11368 = vmatprep.mubr.msk.f32.mxu0 %vm2983_vm2, %v8655_v50  ;;  %11610 = vmatpush3.bf16.msra.mxu0 %v11609_v61 }
 0x705   : > { %11612 = vmatprep.subr.bf16.mxu0 %v11611_v11 }
 0x707   : > { %11369 = vmatmul.mubr.msk.f32.gmra.mrb[80].mxu0 %vm2983_vm2, %v8660_v36 }
 0x708   : > { %v10529_v26 = vpop.f32.mrb[44].mxu0  ;;  %11371 = vmatprep.mubr.msk.f32.mxu0 %vm2983_vm2, %v8665_v27  ;;  %11614 = vmatpush3.bf16.msra.mxu0 %v11613_v1 }
 0x709   : > { %v10530_v18 = vpop.f32.mrb[45].mxu0  ;;  %11616 = vmatprep.subr.bf16.mxu0 %v11615_v31 }
 0x70a   : > { %v15076_v52 = vadd.f32 %v10530_v18, %v10529_v26 }
 0x70b   : > { %11372 = vmatmul.mubr.msk.f32.gmra.mrb[82].mxu0 %vm2983_vm2, %v8670_v48 }
 0x70c   : > { %11618 = vmatpush3.bf16.msra.mxu0 %v11617_v62  ;;  %v15161_v62 = vld [vmem:[%s15403_s7] ss:$0 sm:$0xff] }
 0x70d   : > { %11620 = vmatprep.subr.bf16.mxu0 %v11619_v57 }
 0x710   : > { %11622 = vmatpush3.bf16.msra.mxu0 %v11621_v43  ;;  %v9257_v43 = vld [vmem:[%s15404_s8 + $0xd8] sm:$0xff] }
 0x71d   : > { %v10532_v53 = vpop.f32.mrb[46].mxu0 }
 0x71e   : > { %v10533_v9 = vpop.f32.mrb[47].mxu0 }
 0x71f   : > { %v15079_v8 = vadd.f32 %v10533_v9, %v10532_v53 }
 0x735   : > { %v10535_v15 = vpop.f32.mrb[48].mxu0 }
 0x736   : > { %v10536_v6 = vpop.f32.mrb[49].mxu0 }
 0x737   : > { %v15081_v17 = vadd.f32 %v10536_v6, %v10535_v15 }
 0x74d   : > { %v10538_v20 = vpop.f32.mrb[50].mxu0 }
 0x74e   : > { %v10539_v33 = vpop.f32.mrb[51].mxu0 }
 0x74f   : > { %v15083_v29 = vadd.f32 %v10539_v33, %v10538_v20 }
 0x765   : > { %v10541_v32 = vpop.f32.mrb[52].mxu0 }
 0x766   : > { %v10542_v2 = vpop.f32.mrb[53].mxu0 }
 0x767   : > { %v15085_v38 = vadd.f32 %v10542_v2, %v10541_v32 }
 0x77d   : > { %v10544_v39 = vpop.f32.mrb[54].mxu0 }
 0x77e   : > { %v10545_v21 = vpop.f32.mrb[55].mxu0 }
 0x77f   : > { %v10546_v19 = vadd.f32 %v10545_v21, %v10544_v39 }
 0x796   : > { %v10547_v14 = vpop.f32.mrb[56].mxu0 }
 0x797   : > { %v10548_v0 = vpop.f32.mrb[57].mxu0 }
 0x798   : > { %v10549_v4 = vadd.f32 %v10548_v0, %v10547_v14  ;;  %v9240_v14 = vld [vmem:[%s15404_s8 + $0x50] sm:$0xff] }
 0x7ad   : > { %v10550_v41 = vpop.f32.mrb[58].mxu0 }
 0x7ae   : > { %v10551_v34 = vpop.f32.mrb[59].mxu0 }
 0x7af   : > { %v10552_v63 = vadd.f32 %v10551_v34, %v10550_v41 }
 0x7b2   : > { %v10585_v44 = vpop.f32.mrb[60].mxu0 }
 0x7b3   : > { %v10586_v51 = vpop.f32.mrb[61].mxu0 }
 0x7b4   : > { %v10587_v12 = vadd.f32 %v10586_v51, %v10585_v44 }
 0x7b6   : > { %v10588_v42 = vpop.f32.mrb[62].mxu0  ;;  %v8939_v50 = vadd.f32 %v10587_v12, %v15076_v52 }
 0x7b7   : > { %v10589_v36 = vpop.f32.mrb[63].mxu0 }
 0x7b8   : > { %v10590_v27 = vadd.f32 %v10589_v36, %v10588_v42  ;;  %v9241_v36 = vld [vmem:[%s15404_s8 + $0x58] sm:$0xff] }
 0x7ba   : > { %v10591_v26 = vpop.f32.mrb[64].mxu0  ;;  %v8944_v18 = vadd.f32 %v10590_v27, %v15079_v8  ;;  %v11625_v27 = vpack.c.bf16 %v9241_v36, %v9240_v14 }
 0x7bb   : > { %v10592_v48 = vpop.f32.mrb[65].mxu0 }
 0x7bc   : > { %v10593_v53 = vadd.f32 %v10592_v48, %v10591_v26  ;;  %v9258_v26 = vld [vmem:[%s15404_s8 + $0xe0] sm:$0xff] }
 0x7bd   : > { %v9242_v48 = vld [vmem:[%s15404_s8 + $0x60] sm:$0xff] }
 0x7be   : > { %v10594_v9 = vpop.f32.mrb[66].mxu0  ;;  %v8949_v15 = vadd.f32 %v10593_v53, %v15081_v17 }
 0x7bf   : > { %v10595_v6 = vpop.f32.mrb[67].mxu0 }
 0x7c0   : > { %v10596_v20 = vadd.f32 %v10595_v6, %v10594_v9 }
 0x7c2   : > { %v10597_v33 = vpop.f32.mrb[68].mxu0  ;;  %v8954_v32 = vadd.f32 %v10596_v20, %v15083_v29 }
 0x7c3   : > { %v10598_v2 = vpop.f32.mrb[69].mxu0 }
 0x7c4   : > { %v10599_v30 = vadd.f32 %v10598_v2, %v10597_v33 }
 0x7c6   : > { %v10600_v28 = vpop.f32.mrb[70].mxu0  ;;  %v8959_v52 = vadd.f32 %v10599_v30, %v15085_v38 }
 0x7c7   : > { %v10601_v58 = vpop.f32.mrb[71].mxu0 }
 0x7c8   : > { %v10602_v47 = vadd.f32 %v10601_v58, %v10600_v28  ;;  %v9243_v28 = vld [vmem:[%s15404_s8 + $0x68] sm:$0xff]  ;;  %v9260_v58 = vld [vmem:[%s15404_s8 + $0xf0] sm:$0xff] }
 0x7ca   : > { %v10603_v37 = vpop.f32.mrb[72].mxu0  ;;  %v8964_v25 = vadd.f32 %v10602_v47, %v10546_v19  ;;  %v9261_v47 = vld [vmem:[%s15404_s8 + $0xf8] sm:$0xff] }
 0x7cb   : > { %v10604_v8 = vpop.f32.mrb[73].mxu0 }
 0x7cc   : > { %v10605_v22 = vadd.f32 %v10604_v8, %v10603_v37  ;;  %v9244_v37 = vld [vmem:[%s15404_s8 + $0x70] sm:$0xff] }
 0x7ce   : > { %v10606_v39 = vpop.f32.mrb[74].mxu0  ;;  %v8969_v46 = vadd.f32 %v10605_v22, %v10549_v4 }
 0x7cf   : > { %v10607_v23 = vpop.f32.mrb[75].mxu0 }
 0x7d0   : > { %v10608_v17 = vadd.f32 %v10607_v23, %v10606_v39  ;;  %v11631_v39 = vpack.c.bf16 %v9261_v47, %v9260_v58  ;;  %v9284_v47 = vld [vmem:[%s15404_s8 + $0x1b0] sm:$0xff] }
 0x7d2   : > { %v11364_v7 = vpop.f32.mrb[76].mxu0  ;;  %v8974_v59 = vadd.f32 %v10608_v17, %v10552_v63  ;;  %v11623_v63 = vpack.c.bf16 %v9257_v43, %v9256_v3 }
 0x7d3   : > { %v9049_v60 = vadd.f32 %v11364_v7, %v8944_v18  ;;  %v9043_v21 = vpop.f32.mrb[77].mxu0  ;;  %v9259_v18 = vld [vmem:[%s15404_s8 + $0xe8] sm:$0xff] }
 0x7d4   : > { %v9044_v29 = vadd.f32 %v9043_v21, %v8939_v50  ;;  %11624 = vmatprep.subr.bf16.mxu0 %v11623_v63  ;;  %v11627_v6 = vpack.c.bf16 %v9259_v18, %v9258_v26 }
 0x7d5   : > { %9083 = vst.msk [vmem:[#allocation8 + $0x8] sm:$0xff] %vm2983_vm2, %v9049_v60  ;;  %11626 = vmatpush3.bf16.msra.mxu0 %v11625_v27  ;;  %v9245_v60 = vld [vmem:[%s15404_s8 + $0x78] sm:$0xff] }
 0x7d6   : > { %9082 = vst.msk [vmem:[#allocation8] sm:$0xff] %vm2983_vm2, %v9044_v29  ;;  %v11367_v38 = vpop.f32.mrb[78].mxu0  ;;  %11628 = vmatprep.subr.bf16.mxu0 %v11627_v6  ;;  %v9282_v6 = vld [vmem:[%s15404_s8 + $0x1a0] sm:$0xff] }
 0x7d7   : > { %v9059_v13 = vadd.f32 %v11367_v38, %v8954_v32  ;;  %v9053_v61 = vpop.f32.mrb[79].mxu0 }
 0x7d8   : > { %v9054_v11 = vadd.f32 %v9053_v61, %v8949_v15 }
 0x7d9   : > { %9085 = vst.msk [vmem:[#allocation8 + $0x18] sm:$0xff] %vm2983_vm2, %v9059_v13  ;;  %v11633_v13 = vpack.c.bf16 %v9245_v60, %v9244_v37  ;;  %v9285_v37 = vld [vmem:[%s15404_s8 + $0x1b8] sm:$0xff]  ;;  %v9270_v60 = vld [vmem:[%s15404_s8 + $0x140] sm:$0xff] }
 0x7da   : > { %9084 = vst.msk [vmem:[#allocation8 + $0x10] sm:$0xff] %vm2983_vm2, %v9054_v11  ;;  %v11370_v19 = vpop.f32.mrb[80].mxu0  ;;  %v9278_v11 = vld [vmem:[%s15404_s8 + $0x180] sm:$0xff] }
 0x7db   : > { %v9069_v35 = vadd.f32 %v11370_v19, %v8964_v25  ;;  %v9063_v54 = vpop.f32.mrb[81].mxu0  ;;  %v9279_v19 = vld [vmem:[%s15404_s8 + $0x188] sm:$0xff] }
 0x7dc   : > { %v9092_v55 = vld [vmem:[#allocation8 + $0x8] ss:$2 sm:$0xf]  ;;  %v9108_v56 = vld [vmem:[#allocation8 + $0x9] ss:$2 sm:$0xf]  ;;  %v9064_v1 = vadd.f32 %v9063_v54, %v8959_v52  ;;  %v11629_v52 = vpack.c.bf16 %v9243_v28, %v9242_v48 }
 0x7dd   : > { %v9122_v31 = vmax.f32 %v9092_v55, %v9108_v56  ;;  %v9090_v45 = vld [vmem:[#allocation8] ss:$2 sm:$0xf]  ;;  %v9106_v24 = vld [vmem:[#allocation8 + $0x1] ss:$2 sm:$0xf] }
 0x7de   : > { %9087 = vst.msk [vmem:[#allocation8 + $0x28] sm:$0xff] %vm2983_vm2, %v9069_v35  ;;  %v9121_v5 = vmax.f32 %v9090_v45, %v9106_v24  ;;  %9086 = vst.msk [vmem:[#allocation8 + $0x20] sm:$0xff] %vm2983_vm2, %v9064_v1  ;;  %v11373_v49 = vpop.f32.mrb[82].mxu0  ;;  %11630 = vmatpush3.bf16.msra.mxu0 %v11629_v52  ;;  %v11635_v35 = vpack.c.bf16 %v9279_v19, %v9278_v11  ;;  %v9266_v28 = vld [vmem:[%s15404_s8 + $0x120] sm:$0xff]  ;;  %v9267_v52 = vld [vmem:[%s15404_s8 + $0x128] sm:$0xff] }
 0x7df   : > { %v9079_v57 = vadd.f32 %v11373_v49, %v8974_v59  ;;  %v9073_v16 = vpop.f32.mrb[83].mxu0  ;;  %11632 = vmatprep.subr.bf16.mxu0 %v11631_v39  ;;  %v9268_v39 = vld [vmem:[%s15404_s8 + $0x130] sm:$0xff]  ;;  %v9273_v19 = vld [vmem:[%s15404_s8 + $0x158] sm:$0xff] }
 0x7e0   : > { %v9129_v0 = vmax.f32 %v9121_v5, %v9122_v31  ;;  %v9096_v4 = vld [vmem:[#allocation8 + $0x18] ss:$2 sm:$0xf]  ;;  %v9112_v41 = vld [vmem:[#allocation8 + $0x19] ss:$2 sm:$0xf]  ;;  %v9074_v34 = vadd.f32 %v9073_v16, %v8969_v46 }
 0x7e1   : > { %v9124_v44 = vmax.f32 %v9096_v4, %v9112_v41  ;;  %v9094_v51 = vld [vmem:[#allocation8 + $0x10] ss:$2 sm:$0xf]  ;;  %v9110_v12 = vld [vmem:[#allocation8 + $0x11] ss:$2 sm:$0xf] }
 0x7e2   : > { %9089 = vst.msk [vmem:[#allocation8 + $0x38] sm:$0xff] %vm2983_vm2, %v9079_v57  ;;  %v9123_v42 = vmax.f32 %v9094_v51, %v9110_v12  ;;  %9088 = vst.msk [vmem:[#allocation8 + $0x30] sm:$0xff] %vm2983_vm2, %v9074_v34  ;;  %v9140_v50 = vadd.f32 %v15161_v62, %v9129_v0  ;;  %11634 = vmatpush3.bf16.msra.mxu0 %v11633_v13  ;;  %v9262_v51 = vld [vmem:[%s15404_s8 + $0x100] sm:$0xff]  ;;  %v9263_v12 = vld [vmem:[%s15404_s8 + $0x108] sm:$0xff] }
 0x7e3   : > { %11636 = vmatprep.subr.bf16.mxu0 %v11635_v35  ;;  %v11637_v36 = vpack.c.bf16 %v9263_v12, %v9262_v51  ;;  %v9272_v11 = vld [vmem:[%s15404_s8 + $0x150] sm:$0xff]  ;;  %v9290_v35 = vld [vmem:[%s15404_s8 + $0x1e0] sm:$0xff] }
 0x7e4   : > { %v9130_v53 = vmax.f32 %v9123_v42, %v9124_v44  ;;  %9145 = vst.msk [vmem:[#allocation9] sm:$0xf] %vm9144_vm9, %v9140_v50  ;;  %v9280_v42 = vld [vmem:[%s15404_s8 + $0x190] sm:$0xff]  ;;  %v9281_v50 = vld [vmem:[%s15404_s8 + $0x198] sm:$0xff] }
 0x7e5   : > { %v9100_v9 = vld [vmem:[#allocation8 + $0x28] ss:$2 sm:$0xf]  ;;  %v9116_v15 = vld [vmem:[#allocation8 + $0x29] ss:$2 sm:$0xf]  ;;  %v11639_v48 = vpack.c.bf16 %v9281_v50, %v9280_v42 }
 0x7e6   : > { %v9126_v20 = vmax.f32 %v9100_v9, %v9116_v15  ;;  %v9098_v33 = vld [vmem:[#allocation8 + $0x20] ss:$2 sm:$0xf]  ;;  %v9114_v32 = vld [vmem:[#allocation8 + $0x21] ss:$2 sm:$0xf]  ;;  %v9141_v30 = vadd.f32 %v15161_v62, %v9130_v53 }
 0x7e7   : > { %v9125_v2 = vmax.f32 %v9098_v33, %v9114_v32  ;;  %v9264_v53 = vld [vmem:[%s15404_s8 + $0x110] sm:$0xff]  ;;  %v9265_v9 = vld [vmem:[%s15404_s8 + $0x118] sm:$0xff] }
 0x7e8   : > { %9146 = vst.msk [vmem:[#allocation9 + $0x8] sm:$0xf] %vm9144_vm9, %v9141_v30  ;;  %v11641_v33 = vpack.c.bf16 %v9265_v9, %v9264_v53  ;;  %v9300_v50 = vld [vmem:[%s15404_s8 + $0x230] sm:$0xff]  ;;  %v9552_v53 = vld [vmem:[%s15406_s10 + $0x18] sm:$0xff] }
 0x7e9   : > { %v9131_v25 = vmax.f32 %v9125_v2, %v9126_v20  ;;  %v9104_v8 = vld [vmem:[#allocation8 + $0x38] ss:$2 sm:$0xf]  ;;  %v9120_v22 = vld [vmem:[#allocation8 + $0x39] ss:$2 sm:$0xf] }
 0x7ea   : > { %v9128_v46 = vmax.f32 %v9104_v8, %v9120_v22  ;;  %v9102_v23 = vld [vmem:[#allocation8 + $0x30] ss:$2 sm:$0xf]  ;;  %v9118_v17 = vld [vmem:[#allocation8 + $0x31] ss:$2 sm:$0xf]  ;;  %v11647_v22 = vpack.c.bf16 %v9285_v37, %v9284_v47 }
 0x7eb   : > { %v9127_v7 = vmax.f32 %v9102_v23, %v9118_v17  ;;  %v9142_v59 = vadd.f32 %v15161_v62, %v9131_v25  ;;  %v9153_v21 = vld [vmem:[#allocation9 + $0x1] sm:$0x3]  ;;  %v9283_v20 = vld [vmem:[%s15404_s8 + $0x1a8] sm:$0xff]  ;;  %v11645_v25 = vpack.c.bf16 %v9267_v52, %v9266_v28  ;;  %v9286_v23 = vld [vmem:[%s15404_s8 + $0x1c0] sm:$0xff] }
 0x7ec   : > { %v9149_v29 = vld [vmem:[#allocation9] sm:$0x3]  ;;  %v9166_v38 = vld [vmem:[#allocation9 + $0x2] sm:$0x3]  ;;  %9157 = vrot.lane.b32.xlu1 %v9153_v21, %s11993_s29  ;;  %v11643_v30 = vpack.c.bf16 %v9283_v20, %v9282_v6  ;;  %v9287_v17 = vld [vmem:[%s15404_s8 + $0x1c8] sm:$0xff] }
 0x7ed   : > { %v9132_v61 = vmax.f32 %v9127_v7, %v9128_v46  ;;  %9147 = vst.msk [vmem:[#allocation9 + $0x10] sm:$0xf] %vm9144_vm9, %v9142_v59  ;;  %v9269_v46 = vld [vmem:[%s15404_s8 + $0x138] sm:$0xff]  ;;  %v11651_v59 = vpack.c.bf16 %v9287_v17, %v9286_v23  ;;  %v9271_v21 = vld [vmem:[%s15404_s8 + $0x148] sm:$0xff] }
 0x7ee   : > { %9151 = vst.msk [vmem:[#allocation10] sm:$0x3] %vm8337_vm8, %v9149_v29  ;;  %9168 = vst.msk [vmem:[#allocation10 + $0x8] sm:$0x3] %vm8337_vm8, %v9166_v38  ;;  %v11649_v7 = vpack.c.bf16 %v9269_v46, %v9268_v39  ;;  %v9288_v29 = vld [vmem:[%s15404_s8 + $0x1d0] sm:$0xff]  ;;  %v9289_v38 = vld [vmem:[%s15404_s8 + $0x1d8] sm:$0xff]  ;;  %v11653_v13 = vpack.c.bf16 %v9271_v21, %v9270_v60 }
 0x7ef   : > { %v9143_v54 = vadd.f32 %v15161_v62, %v9132_v61  ;;  %v9171_v55 = vld [vmem:[#allocation9 + $0x8] sm:$0x3]  ;;  %v9167_v31 = vld [vmem:[#allocation9 + $0xa] sm:$0x3]  ;;  %v11655_v61 = vpack.c.bf16 %v9289_v38, %v9288_v29  ;;  %v9550_v38 = vld [vmem:[%s15406_s10 + $0x8] sm:$0xff] }
 0x7f0   : > { %v9154_v56 = vld [vmem:[#allocation9 + $0x9] sm:$0x3]  ;;  %9175 = vrot.lane.b32.xlu0 %v9171_v55, %s11993_s29  ;;  %9169 = vst.msk [vmem:[#allocation10 + $0x30] sm:$0x3] %vm8337_vm8, %v9167_v31  ;;  %v11657_v55 = vpack.c.bf16 %v9273_v19, %v9272_v11  ;;  %v9275_v31 = vld [vmem:[%s15404_s8 + $0x168] sm:$0xff] }
 0x7f1   : > { %9159 = vrot.lane.b32.xlu1 %v9154_v56, %s11993_s29  ;;  %9148 = vst.msk [vmem:[#allocation9 + $0x18] sm:$0xf] %vm9144_vm9, %v9143_v54  ;;  %v9150_v1 = vld [vmem:[#allocation9 + $0x8] sm:$0x3]  ;;  %v9187_v5 = vld [vmem:[#allocation9 + $0xa] sm:$0x3] }
 0x7f2   : > { %v9183_v45 = vld [vmem:[#allocation9 + $0x9] sm:$0x3]  ;;  %9152 = vst.msk [vmem:[#allocation10 + $0x28] sm:$0x3] %vm8337_vm8, %v9150_v1  ;;  %v9291_v54 = vld [vmem:[%s15404_s8 + $0x1e8] sm:$0xff] }
 0x7f3   : > { %9185 = vst.msk [vmem:[#allocation10 + $0x10] sm:$0x3] %vm8337_vm8, %v9183_v45  ;;  %v11659_v56 = vpack.c.bf16 %v9291_v54, %v9290_v35  ;;  %v9274_v1 = vld [vmem:[%s15404_s8 + $0x160] sm:$0xff]  ;;  %v9292_v45 = vld [vmem:[%s15404_s8 + $0x1f0] sm:$0xff] }
 0x7f4   : > { %v9172_v24 = vld [vmem:[#allocation9 + $0x10] sm:$0x3]  ;;  %v9216_v16 = vld [vmem:[#allocation9 + $0x12] sm:$0x3]  ;;  %v9549_v29 = vld [vmem:[%s15406_s10] sm:$0xff] }
 0x7f5   : > { %9177 = vrot.lane.b32.xlu0 %v9172_v24, %s11993_s29  ;;  %9191 = vrot.lane.b32.xlu1 %v9187_v5, %s11993_s29  ;;  %v9200_v49 = vld [vmem:[#allocation9 + $0x10] sm:$0x3]  ;;  %v9188_v3 = vld [vmem:[#allocation9 + $0x12] sm:$0x3]  ;;  %9218 = vst.msk [vmem:[#allocation10 + $0x20] sm:$0x3] %vm8337_vm8, %v9216_v16  ;;  %v11661_v5 = vpack.c.bf16 %v9275_v31, %v9274_v1  ;;  %v11687_v11 = vpack.c.bf16 %v9550_v38, %v9549_v29 }
 0x7f6   : > { %v9184_v62 = vld [vmem:[#allocation9 + $0x11] sm:$0x3]  ;;  %9202 = vst.msk [vmem:[#allocation10 + $0x18] sm:$0x3] %vm8337_vm8, %v9200_v49  ;;  %v9293_v24 = vld [vmem:[%s15404_s8 + $0x1f8] sm:$0xff]  ;;  %v9294_v16 = vld [vmem:[%s15404_s8 + $0x200] sm:$0xff] }
 0x7f7   : > { %9186 = vst.msk [vmem:[#allocation10 + $0x38] sm:$0x3] %vm8337_vm8, %v9184_v62  ;;  %v9204_v57 = vld [vmem:[#allocation9 + $0x11] sm:$0x3]  ;;  %v11663_v49 = vpack.c.bf16 %v9293_v24, %v9292_v45  ;;  %v9276_v62 = vld [vmem:[%s15404_s8 + $0x170] sm:$0xff] }
 0x7f8   : > { %v9201_v43 = vld [vmem:[#allocation9 + $0x18] sm:$0x3]  ;;  %v9217_v14 = vld [vmem:[#allocation9 + $0x1a] sm:$0x3]  ;;  %v9548_v35 = vld [vmem:[%s415_s18] sm:$0x1] }
 0x7f9   : > { %9208 = vrot.lane.b32.xlu0 %v9204_v57, %s11993_s29  ;;  %9193 = vrot.lane.b32.xlu1 %v9188_v3, %s11993_s29  ;;  %9203 = vst.msk [vmem:[#allocation10 + $0x40] sm:$0x3] %vm8337_vm8, %v9201_v43  ;;  %9219 = vst.msk [vmem:[#allocation10 + $0x48] sm:$0x3] %vm8337_vm8, %v9217_v14  ;;  %v9205_v0 = vld [vmem:[#allocation9 + $0x19] sm:$0x3] }
 0x7fa   : > { %v9277_v57 = vld [vmem:[%s15404_s8 + $0x178] sm:$0xff]  ;;  %v9295_v3 = vld [vmem:[%s15404_s8 + $0x208] sm:$0xff]  ;;  %v9699_v1 = vld [vmem:[%s15407_s11] sm:$0x1] }
 0x7fb   : > { %v11665_v43 = vpack.c.bf16 %v9277_v57, %v9276_v62  ;;  %v11667_v14 = vpack.c.bf16 %v9295_v3, %v9294_v16  ;;  %v9718_v3 = vlaneseq }
 0x7fd   : > { %9210 = vrot.lane.b32.xlu0 %v9205_v0, %s11993_s29  ;;  %v9296_v0 = vld [vmem:[%s15404_s8 + $0x210] sm:$0xff] }
 0x85e   : > { %v9158_v4 = vpop.permute.xlu1 %9157 }
 0x85f   : > { %9164 = vst.msk [vmem:[#allocation10] sm:$0x3] %vm9163_vm10, %v9158_v4  ;;  %v9297_v4 = vld [vmem:[%s15404_s8 + $0x218] sm:$0xff] }
 0x862   : > { %v9176_v41 = vpop.permute.xlu0 %9175 }
 0x863   : > { %v9160_v34 = vpop.permute.xlu1 %9159  ;;  %9181 = vst.msk [vmem:[#allocation10 + $0x8] sm:$0x3] %vm9163_vm10, %v9176_v41  ;;  %v11671_v41 = vpack.c.bf16 %v9297_v4, %v9296_v0 }
 0x864   : > { %9165 = vst.msk [vmem:[#allocation10 + $0x28] sm:$0x3] %vm9163_vm10, %v9160_v34 }
 0x866   : > { %v9220_v15 = vld [vmem:[#allocation10] sm:$0xff] }
 0x867   : > { %v9178_v63 = vpop.permute.xlu0 %9177  ;;  %v9192_v44 = vpop.permute.xlu1 %9191 }
 0x868   : > { %9182 = vst.msk [vmem:[#allocation10 + $0x30] sm:$0x3] %vm9163_vm10, %v9178_v63  ;;  %9197 = vst.msk [vmem:[#allocation10 + $0x10] sm:$0x3] %vm9163_vm10, %v9192_v44  ;;  %v9298_v63 = vld [vmem:[%s15404_s8 + $0x220] sm:$0xff]  ;;  %v9299_v44 = vld [vmem:[%s15404_s8 + $0x228] sm:$0xff] }
 0x869   : > { %v11675_v12 = vpack.c.bf16 %v9299_v44, %v9298_v63 }
 0x86a   : > { %v9221_v18 = vld [vmem:[#allocation10 + $0x8] sm:$0xff] }
 0x86b   : > { %v9209_v27 = vpop.permute.xlu0 %9208  ;;  %v9194_v26 = vpop.permute.xlu1 %9193  ;;  %9372 = vmatprep.mubr.f32.mxu0 %v9221_v18  ;;  %v9225_v58 = vld [vmem:[#allocation10 + $0x28] sm:$0xff] }
 0x86c   : > { %9214 = vst.msk [vmem:[#allocation10 + $0x18] sm:$0x3] %vm9163_vm10, %v9209_v27  ;;  %9198 = vst.msk [vmem:[#allocation10 + $0x38] sm:$0x3] %vm9163_vm10, %v9194_v26  ;;  %9373 = vmatmul.mubr.f32.vlgmr.msra.gmra.mrb[84].mxu0 %v9220_v15  ;;  %v9224_v27 = vld [vmem:[#allocation10 + $0x20] sm:$0xff]  ;;  %v9229_v18 = vld [vmem:[#allocation10 + $0x48] sm:$0xff] }
 0x86d   : > { %11638 = vmatpush3.bf16.msra.mxu0 %v11637_v36  ;;  %v9301_v36 = vld [vmem:[%s15404_s8 + $0x238] sm:$0xff] }
 0x86e   : > { %11640 = vmatprep.subr.bf16.mxu0 %v11639_v48  ;;  %v11679_v26 = vpack.c.bf16 %v9301_v36, %v9300_v50  ;;  %v9551_v48 = vld [vmem:[%s15406_s10 + $0x10] sm:$0xff] }
 0x86f   : > { %v9211_v32 = vpop.permute.xlu0 %9210  ;;  %v9226_v2 = vld [vmem:[#allocation10 + $0x30] sm:$0xff]  ;;  %v11684_v9 = vpack.c.bf16 %v9552_v53, %v9551_v48 }
 0x870   : > { %9215 = vst.msk [vmem:[#allocation10 + $0x40] sm:$0x3] %vm9163_vm10, %v9211_v32  ;;  %9377 = vmatprep.mubr.f32.mxu0 %v9226_v2  ;;  %v9222_v34 = vld [vmem:[#allocation10 + $0x10] sm:$0xff] }
 0x871   : > { %9378 = vmatmul.mubr.f32.gmra.mrb[86].mxu0 %v9225_v58 }
 0x872   : > { %11642 = vmatpush3.bf16.msra.mxu0 %v11641_v33 }
 0x873   : > { %11644 = vmatprep.subr.bf16.mxu0 %v11643_v30  ;;  %v9223_v8 = vld [vmem:[#allocation10 + $0x18] sm:$0xff] }
 0x874   : > { %9447 = vmatprep.mubr.f32.mxu0 %v9223_v8  ;;  %v9227_v42 = vld [vmem:[#allocation10 + $0x38] sm:$0xff] }
 0x876   : > { %11646 = vmatpush3.bf16.msra.mxu0 %v11645_v25 }
 0x877   : > { %11648 = vmatprep.subr.bf16.mxu0 %v11647_v22  ;;  %v9228_v51 = vld [vmem:[#allocation10 + $0x40] sm:$0xff] }
 0x87a   : > { %11650 = vmatpush3.bf16.msra.mxu0 %v11649_v7 }
 0x87b   : > { %11652 = vmatprep.subr.bf16.mxu0 %v11651_v59 }
 0x87e   : > { %11654 = vmatpush3.bf16.msra.mxu0 %v11653_v13  ;;  %v9546_v13 = vld [vmem:[%s15405_s9] sm:$0x1] }
 0x87f   : > { %11656 = vmatprep.subr.bf16.mxu0 %v11655_v61 }
 0x882   : > { %11658 = vmatpush3.bf16.msra.mxu0 %v11657_v55 }
 0x883   : > { %11660 = vmatprep.subr.bf16.mxu0 %v11659_v56 }
 0x886   : > { %11662 = vmatpush3.bf16.msra.mxu0 %v11661_v5 }
 0x887   : > { %11664 = vmatprep.subr.bf16.mxu0 %v11663_v49 }
 0x88a   : > { %11666 = vmatpush3.bf16.msra.mxu0 %v11665_v43 }
 0x88b   : > { %11668 = vmatprep.subr.bf16.mxu0 %v11667_v14 }
 0x88d   : > { %9448 = vmatmul.mubr.f32.vlgmr.msra.gmra.mrb[88].mxu0 %v9222_v34 }
 0x88e   : > { %9452 = vmatprep.mubr.f32.mxu0 %v9228_v51  ;;  %11670 = vmatpush3.bf16.msra.mxu0 %v11667_v14  ;;  %v9719_v14 = vand.u32 127, %v9718_v3 }
 0x88f   : > { %11672 = vmatprep.subr.bf16.mxu0 %v11671_v41 }
 0x890   : > { %vm9720_vm12 = vcmp.ge.s32.totalorder %v9719_v14, 4  ;;  %vm9721_vm13 = vcmp.lt.s32.totalorder %v9719_v14, 8 }
 0x891   : > { %9453 = vmatmul.mubr.f32.gmra.mrb[90].mxu0 %v9227_v42  ;;  %vm9722_vm15 = vmand %vm9720_vm12, %vm9721_vm13 }
 0x892   : > { %11674 = vmatpush3.bf16.msra.mxu0 %v11671_v41  ;;  %11390 = vmatprep.mubr.msk.f32.mxu0 %vm2983_vm2, %v9224_v27 }
 0x893   : > { %11676 = vmatprep.subr.bf16.mxu0 %v11675_v12 }
 0x896   : > { %11678 = vmatpush3.bf16.msra.mxu0 %v11675_v12 }
 0x897   : > { %11680 = vmatprep.subr.bf16.mxu0 %v11679_v26 }
 0x89a   : > { %11682 = vmatpush3.bf16.msra.mxu0 %v11679_v26 }
 0x89b   : > { %11683 = vmatprep.subr.bf16.mxu0 %v15425_v10 }
 0x89d   : > { %11391 = vmatmul.mubr.msk.f32.vlgmr.msra.gmra.mrb[92].mxu0 %vm2983_vm2, %v9229_v18 }
 0x89e   : > { %11397 = vmatprep.mubr.msk.f32.mxu0 %vm11994_vm7, %v11995_v40  ;;  %11685 = vmatpush3.bf16.msra.mxu0 %v11684_v9 }
 0x89f   : > { %11686 = vmatprep.subr.bf16.mxu0 %v15425_v10 }
 0x93f   : > { %v10657_v15 = vpop.f32.mrb[84].mxu0 }
 0x940   : > { %v10658_v6 = vpop.f32.mrb[85].mxu0 }
 0x941   : > { %v10659_v20 = vadd.f32 %v10658_v6, %v10657_v15 }
 0x944   : > { %v10660_v33 = vpop.f32.mrb[86].mxu0 }
 0x945   : > { %v10661_v32 = vpop.f32.mrb[87].mxu0 }
 0x946   : > { %v10662_v2 = vadd.f32 %v10661_v32, %v10660_v33 }
 0x960   : > { %v10695_v30 = vpop.f32.mrb[88].mxu0 }
 0x961   : > { %v10696_v28 = vpop.f32.mrb[89].mxu0 }
 0x962   : > { %v10697_v52 = vadd.f32 %v10696_v28, %v10695_v30 }
 0x964   : > { %v10698_v58 = vpop.f32.mrb[90].mxu0  ;;  %v9450_v47 = vadd.f32 %v10697_v52, %v10659_v20 }
 0x965   : > { %v10699_v37 = vpop.f32.mrb[91].mxu0 }
 0x966   : > { %v10700_v25 = vadd.f32 %v10699_v37, %v10698_v58 }
 0x968   : > { %v9455_v8 = vadd.f32 %v10700_v25, %v10662_v2 }
 0x970   : > { %v11392_v22 = vpop.f32.mrb[92].mxu0 }
 0x971   : > { %v9530_v39 = vadd.f32 %v11392_v22, %v9455_v8  ;;  %v9524_v46 = vpop.f32.mrb[93].mxu0 }
 0x972   : > { %v9525_v10 = vadd.f32 %v9524_v46, %v9450_v47 }
 0x973   : > { %9535 = vst.msk [vmem:[#allocation11 + $0x8] sm:$0xff] %vm9533_vm11, %v9530_v39 }
 0x974   : > { %9534 = vst.msk [vmem:[#allocation11] sm:$0xff] %vm9533_vm11, %v9525_v10 }
 0x97a   : > { %v9538_v23 = vld [vmem:[#allocation11 + $0x8] ss:$2 sm:$0x1]  ;;  %v9542_v17 = vld [vmem:[#allocation11 + $0x9] ss:$2 sm:$0x1] }
 0x97b   : > { %v9536_v7 = vld [vmem:[#allocation11] ss:$2 sm:$0x1]  ;;  %v9540_v59 = vld [vmem:[#allocation11 + $0x1] ss:$2 sm:$0x1]  ;;  %v9544_v60 = vmax.f32 %v9538_v23, %v9542_v17 }
 0x97c   : > { %v9543_v21 = vmax.f32 %v9536_v7, %v9540_v59 }
 0x97e   : > { %v9545_v61 = vmax.f32 %v9543_v21, %v9544_v60 }
 0x980   : > { %v9547_v19 = vadd.f32 %v9546_v13, %v9545_v61 }
 0x982   : > { %11398 = vmatmul.mubr.msk.f32.vlgmr.msra.gmra.mrb[94].mxu0 %vm9533_vm11, %v9547_v19 }
 0x983   : > { %11688 = vmatpush3.bf16.msra.mxu0 %v11687_v11  ;;  %11404 = vmatprep.mubr.msk.f32.mxu0 %vm11994_vm7, %v11995_v40 }
 0x986   : > { %11405 = vmatmul.mubr.msk.f32.vlgmr.msra.gmra.mrb[96].mxu0 %vm9533_vm11, %v9548_v35 }
 0xa55   : > { %v9622_v54 = vpop.f32.mrb[94].mxu0 }
 0xa56   : > { %v11399_v55 = vpop.f32.mrb[95].mxu0 }
 0xa59   : > { %v9695_v56 = vpop.f32.mrb[96].mxu0 }
 0xa5a   : > { %v9696_v31 = vadd.f32 %v9695_v56, %v9622_v54  ;;  %v11406_v45 = vpop.f32.mrb[97].mxu0 }
 0xa5c   : > { %v9700_v24 = vadd.f32 %v9699_v1, %v9696_v31 }
 0xa5e   : > { %v9703_v5 = vand.u32 2147483647, %v9700_v24  ;;  %v9702_v63 = vmax.f32 %v9700_v24, 0.0  ;;  %vm9701_vm0 = vcmp.gt.f32.partialorder %v9700_v24, 20.0 }
 0xa60   : > { %v9704_v49 = vsub.f32 0.0, %v9703_v5 }
 0xa62   : > { %v9705_v62 = vmul.f32 1.442695, %v9704_v49 }
 0xa64   : > { %11974 = vpow2.f32 %v9705_v62 }
 0xa6e   : > { %v11975_v57 = vpop.eup %11974 }
 0xa6f   : > { %v9707_v16 = vadd.f32 1.0, %v11975_v57  ;;  %v9710_v40 = vmul.f32 -0.5, %v11975_v57  ;;  %v9713_v0 = vand.u32 2147483647, %v11975_v57 }
 0xa71   : > { %11976 = vlog2.f32 %v9707_v16  ;;  %v9711_v43 = vadd.f32 1.0, %v9710_v40  ;;  %vm9714_vm14 = vcmp.lt.f32.partialorder %v9713_v0, 0.0004427343 }
 0xa73   : > { %v9712_v34 = vmul.f32 %v11975_v57, %v9711_v43 }
 0xa7b   : > { %v11977_v4 = vpop.eup %11976 }
 0xa7c   : > { %v9709_v41 = vmul.f32 0.6931472, %v11977_v4 }
 0xa7e   : > { %v9715_v44 = vsel %vm9714_vm14, %v9712_v34, %v9709_v41 }
 0xa7f   : > { %v9716_v51 = vadd.f32 %v9715_v44, %v9702_v63 }
 0xa81   : > { %v9717_v12 = vsel %vm9701_vm0, %v9700_v24, %v9716_v51 }
 0xa82   : > { %v9723_v42 = vsel %vm9722_vm15, %v9717_v12, %v9700_v24 }
 0xa83   : > { %9725 = vst.msk [vmem:[%s423_s16] sm:$0x1] %vm9724_vm1, %v9723_v42 }
 0xa84 PF: > { %s22_s21 = sadd.s32 1, %s11990_s21  }
 0xa85   : > { %p19_p4 = scmp.ge.s32.totalorder %s22_s21, 4  }
 0xa87   :  { %21 = sbr.rel (!%p19_p4) target bundleno = 1 (0x1), region = 479 }

</bundles_post_ra>
